<compile_context>
chip_gen: v7x
topology: tpu7x:2x2x1
jax: 0.10.0
libtpu: 0.0.40
codegen_flags: <defaults>
</compile_context>

<pallas_src>
import functools
import numpy as np
import jax
import jax.numpy as jnp
from jax.experimental import pallas as pl
from jax.experimental.pallas import tpu as pltpu


# ----------------------------- Pallas kernel -----------------------------

def _swin_attn_kernel(x_ref, wqkv_ref, bqkv_ref, woutT_ref, boutT_ref, bm_ref,
                      o_ref, *, heads):
    # x_ref:     (1, nW, N, C)      all windows of one batch element
    # wqkv_ref:  (C, 3C) bf16       Q columns pre-scaled
    # bqkv_ref:  (1, 3C) f32        Q part pre-scaled
    # woutT_ref: (C, C)  bf16       Wout transposed
    # boutT_ref: (C, 1)  f32
    # bm_ref:    (heads, M, M) bf16 rel-pos bias + shift mask, -1e9 cross-window
    # o_ref:     (1, C, M)          lane-dense (tokens on lanes) output
    _, nW, N, C = x_ref.shape
    M = nW * N
    hd = C // heads

    x = x_ref[0].reshape(M, C).astype(jnp.bfloat16)                 # (M, C)

    # Fused QKV projection: one MXU push, f32 accumulate + f32 bias.
    qkv = jnp.dot(x, wqkv_ref[...],
                  preferred_element_type=jnp.float32) + bqkv_ref[...]  # (M, 3C)

    q = qkv[:, :C]                                                   # (M, C) f32
    k = qkv[:, C:2 * C].astype(jnp.bfloat16)                         # (M, C)
    v = qkv[:, 2 * C:]                                               # (M, C) f32

    # Per-head channel masks (heads, 1, C) built from iotas.
    ch = jax.lax.broadcasted_iota(jnp.int32, (1, 1, C), 2)
    hidx = jax.lax.broadcasted_iota(jnp.int32, (heads, 1, 1), 0)
    hmask = (ch >= hidx * hd) & (ch < (hidx + 1) * hd)               # (heads,1,C)

    # Heads stacked into the matmul M dim (no per-head loop / serial selects).
    qm = jnp.where(hmask, q[None], 0.0).astype(jnp.bfloat16)         # (h, M, C)
    vm = jnp.where(hmask, v[None], 0.0).astype(jnp.bfloat16)         # (h, M, C)

    # Scores: one (heads*M, C) @ (C, M) contraction (Q @ K^T pattern).
    s = jnp.einsum('xc,nc->xn', qm.reshape(heads * M, C), k,
                   preferred_element_type=jnp.float32)
    s = s.reshape(heads, M, M)
    s = s + bm_ref[...].astype(jnp.float32)                          # bias+mask (f32)

    # Lane-dense softmax over 256 keys.
    s = s - jnp.max(s, axis=-1, keepdims=True)
    p = jnp.exp(s)
    p = p * pl.reciprocal(jnp.sum(p, axis=-1, keepdims=True), approx=True)

    # PV: batched matmul on channel-masked V, then disjoint-channel head sum.
    oh = jnp.einsum('hmn,hnc->hmc', p.astype(jnp.bfloat16), vm,
                    preferred_element_type=jnp.float32)              # (h, M, C)
    acc = jnp.sum(oh, axis=0)                                        # (M, C) f32

    # Lane-dense output projection: out^T[j,m] = sum_c Wout^T[j,c] * acc[m,c].
    outT = jnp.einsum('jc,mc->jm', woutT_ref[...], acc.astype(jnp.bfloat16),
                      preferred_element_type=jnp.float32) + boutT_ref[...]
    o_ref[0] = outT.astype(o_ref.dtype)                              # (C, M)


# ------------------------------ wrapper ----------------------------------

def shift_window_attention(x, params, *, heads, window_size, shift_size):
    Wh, Ww = window_size
    B, C, H, W = x.shape
    r1, r2 = H // Wh, W // Ww
    nW, N = r1 * r2, Wh * Ww
    M = nW * N

    # cyclic roll + window partition:  b c (r1 h1) (r2 w1) -> (B, nW, N, C)
    shifted = jnp.roll(x, shift=(-shift_size, -shift_size), axis=(2, 3))
    xw = shifted.reshape(B, C, r1, Wh, r2, Ww)
    xw = xw.transpose(0, 2, 4, 3, 5, 1).reshape(B, nW, N, C)

    # advisory cost estimate (tiny, latency-bound kernel)
    flops = int(2 * B * (M * C * 3 * C            # QKV projection
                         + heads * M * M * C      # Q K^T
                         + heads * M * M * C      # P V
                         + M * C * C))            # output projection
    transcendentals = int(B * heads * M * M)      # exp
    bytes_accessed = int(
        xw.size * 4 + B * C * M * 4
        + params['wqkv_f'].size * 2 + params['bqkv_f'].size * 4
        + params['woutT'].size * 2 + params['boutT'].size * 4
        + params['bias_mask'].size * 2)

    kernel = functools.partial(_swin_attn_kernel, heads=heads)
    out_t = pl.pallas_call(
        kernel,
        out_shape=jax.ShapeDtypeStruct((B, C, M), x.dtype),
        grid_spec=pltpu.PrefetchScalarGridSpec(
            num_scalar_prefetch=0,
            grid=(B,),                                       # parallel across TCs
            in_specs=[
                pl.BlockSpec((1, nW, N, C), lambda b: (b, 0, 0, 0)),   # x
                pl.BlockSpec((C, 3 * C), lambda b: (0, 0)),            # Wqkv (Q scaled)
                pl.BlockSpec((1, 3 * C), lambda b: (0, 0)),            # bqkv (Q scaled)
                pl.BlockSpec((C, C), lambda b: (0, 0)),                # Wout^T
                pl.BlockSpec((C, 1), lambda b: (0, 0)),                # bout^T
                pl.BlockSpec((heads, M, M), lambda b: (0, 0, 0)),      # bias+mask
            ],
            out_specs=pl.BlockSpec((1, C, M), lambda b: (b, 0, 0)),
        ),
        compiler_params=pltpu.CompilerParams(
            dimension_semantics=("parallel",)),
        cost_estimate=pl.CostEstimate(flops=flops,
                                      transcendentals=transcendentals,
                                      bytes_accessed=bytes_accessed),
    )(xw, params['wqkv_f'], params['bqkv_f'], params['woutT'],
      params['boutT'], params['bias_mask'])

    # (B, C, M) with token order (r1, r2, h1, w1) -> (B, C, H, W), roll back.
    y = out_t.reshape(B, C, r1, r2, Wh, Ww).transpose(0, 1, 2, 4, 3, 5)
    y = y.reshape(B, C, H, W)
    y = jnp.roll(y, shift=(shift_size, shift_size), axis=(2, 3))
    return y


# ----------------------- parameters / static buffers ----------------------

def build_params(key, dim, heads, window_size, fmap_size, shift_size):
    Wh, Ww = window_size
    H, W = fmap_size
    N = Wh * Ww
    hd = dim // heads
    scale = hd ** (-0.5)
    k1, k2, k3, k4, k5 = jax.random.split(key, 5)

    # torch-equivalent linear layers (stored pre-transposed: y = x @ W + b)
    wqkv = jax.random.normal(k1, (dim, 3 * dim), jnp.float32) * 0.02
    bqkv = jax.random.normal(k2, (1, 3 * dim), jnp.float32) * 0.02
    wout = jax.random.normal(k3, (dim, dim), jnp.float32) * 0.02
    bout = jax.random.normal(k4, (1, dim), jnp.float32) * 0.02
    table = jax.random.normal(
        k5, ((2 * Wh - 1) * (2 * Ww - 1), heads), jnp.float32) * 0.01

    # relative position index (matches torch.meshgrid(..., indexing='xy'))
    gh, gw = np.meshgrid(np.arange(Wh), np.arange(Ww), indexing='xy')
    coords = np.stack([gh, gw]).reshape(2, -1)                  # (2, N)
    rel = coords[:, :, None] - coords[:, None, :]               # (2, N, N)
    rel = rel.transpose(1, 2, 0).astype(np.int64)
    rel[:, :, 0] += Wh - 1
    rel[:, :, 1] += Ww - 1
    rel[:, :, 0] *= 2 * Ww - 1
    rel_index = rel.sum(-1)                                     # (N, N)
    rel_bias = jnp.take(table, jnp.asarray(rel_index.reshape(-1)), axis=0)
    rel_bias = rel_bias.reshape(N, N, heads).transpose(2, 0, 1)  # (heads, N, N)

    # shift-window attention mask (same construction as ShiftWindowAttention.__init__)
    img_mask = np.zeros((H, W), np.float32)
    h_slices = (slice(0, -Wh), slice(-Wh, -shift_size), slice(-shift_size, None))
    w_slices = (slice(0, -Ww), slice(-Ww, -shift_size), slice(-shift_size, None))
    cnt = 0
    for hs in h_slices:
        for ws in w_slices:
            img_mask[hs, ws] = cnt
            cnt += 1
    r1, r2 = H // Wh, W // Ww
    nW = r1 * r2
    mw = img_mask.reshape(r1, Wh, r2, Ww).transpose(0, 2, 1, 3).reshape(nW, N)
    am = mw[:, None, :] - mw[:, :, None]
    attn_mask_np = np.where(am != 0, -100.0, 0.0).astype(np.float32)  # (nW, N, N)

    # kernel-ready fused QKV weights with the softmax scale folded into Q.
    col_scale = jnp.concatenate(
        [jnp.full((dim,), scale, jnp.float32), jnp.ones((2 * dim,), jnp.float32)])
    wqkv_f = (wqkv * col_scale[None, :]).astype(jnp.bfloat16)
    bqkv_f = bqkv * col_scale[None, :]

    # block-diagonal bias + window-shift mask table over the full slab:
    # (heads, nW*N, nW*N) with -1e9 on cross-window entries; stored in bf16.
    rel_bias_np = np.asarray(rel_bias)                          # (heads, N, N)
    bm_small = rel_bias_np[:, None] + attn_mask_np[None]        # (heads, nW, N, N)
    full = np.full((heads, nW, N, nW, N), -1e9, np.float32)
    for w in range(nW):
        full[:, w, :, w, :] = bm_small[:, w]
    bias_mask = jnp.asarray(full.reshape(heads, nW * N, nW * N), jnp.bfloat16)

    return {
        # reference (torch-equivalent) parameters
        'wqkv': wqkv, 'bqkv': bqkv, 'wout': wout, 'bout': bout,
        'rel_bias': rel_bias,
        'attn_mask': jnp.asarray(attn_mask_np),
        # kernel-ready parameters
        'wqkv_f': wqkv_f,                       # (C, 3C) bf16, Q pre-scaled
        'bqkv_f': bqkv_f,                       # (1, 3C) f32,  Q pre-scaled
        'woutT': wout.T.astype(jnp.bfloat16),   # (C, C)  bf16
        'boutT': bout.T,                        # (C, 1)  f32
        'bias_mask': bias_mask,                 # (heads, M, M) bf16
    }


# ------------------------- pure-JAX reference -----------------------------

def reference(x, params, *, heads, window_size, shift_size):
    Wh, Ww = window_size
    B, C, H, W = x.shape
    r1, r2 = H // Wh, W // Ww
    nW, N = r1 * r2, Wh * Ww
    hd = C // heads
    scale = hd ** (-0.5)

    shifted = jnp.roll(x, (-shift_size, -shift_size), (2, 3))
    xw = shifted.reshape(B, C, r1, Wh, r2, Ww).transpose(0, 2, 4, 3, 5, 1)
    xw = xw.reshape(B * nW, N, C)
    qkv = xw @ params['wqkv'] + params['bqkv'][0]
    q, k, v = jnp.split(qkv, 3, axis=-1)
    q = q * scale
    toh = lambda t: t.reshape(B * nW, N, heads, hd).transpose(0, 2, 1, 3)
    q, k, v = toh(q), toh(k), toh(v)
    attn = jnp.einsum('bhmc,bhnc->bhmn', q, k) + params['rel_bias'][None]
    attn = attn.reshape(B, nW, heads, N, N) + params['attn_mask'][None, :, None]
    attn = jax.nn.softmax(attn, axis=-1).reshape(B * nW, heads, N, N)
    o = jnp.einsum('bhmn,bhnc->bhmc', attn, v).transpose(0, 2, 1, 3)
    o = o.reshape(B * nW, N, C) @ params['wout'] + params['bout'][0]
    y = o.reshape(B, r1, r2, Wh, Ww, C).transpose(0, 5, 1, 3, 2, 4)
    y = y.reshape(B, C, H, W)
    return jnp.roll(y, (shift_size, shift_size), (2, 3))


# --------------------------------- main -----------------------------------

if __name__ == "__main__":
    B, dim, heads = 2, 32, 4
    window_size = (4, 4)
    shift_size = 2
    fmap_size = (16, 16)
    # attn_drop = proj_drop = 0.0  -> dropout is identity in this setup

    key = jax.random.PRNGKey(0)
    kx, kp = jax.random.split(key)
    x = jax.random.normal(kx, (B, dim, *fmap_size), jnp.float32)

    params = build_params(kp, dim, heads, window_size, fmap_size, shift_size)

    y = shift_window_attention(x, params, heads=heads,
                               window_size=window_size, shift_size=shift_size)
    y = jax.block_until_ready(y)

    y_ref = reference(x, params, heads=heads,
                      window_size=window_size, shift_size=shift_size)
    # bf16 MXU matmuls + bf16 bias table + approx reciprocal -> loose tolerance
    np.testing.assert_allclose(np.asarray(y), np.asarray(y_ref),
                               rtol=1e-2, atol=1e-2)

    print("KERNEL_OK")
</pallas_src>

<mosaic_0001>
module attributes {stable_mosaic.version = 11 : i64} {
  func.func @_swin_attn_kernel(%arg0: i32, %arg1: memref<1x16x16x32xf32, #tpu.memory_space<vmem>>, %arg2: memref<32x96xbf16, #tpu.memory_space<vmem>>, %arg3: memref<1x96xf32, #tpu.memory_space<vmem>>, %arg4: memref<32x32xbf16, #tpu.memory_space<vmem>>, %arg5: memref<32x1xf32, #tpu.memory_space<vmem>>, %arg6: memref<4x256x256xbf16, #tpu.memory_space<vmem>>, %arg7: memref<1x32x256xf32, #tpu.memory_space<vmem>>) attributes {dimension_semantics = [#tpu.dimension_semantics<parallel>], iteration_bounds = array<i64: 2>, scalar_prefetch = 0 : i64, scratch_operands = 0 : i64, tpu.core_type = #tpu.core_type<tc>, window_params = [{transform_indices = @transform_0, window_bounds = array<i64: 1, 16, 16, 32>}, {pipeline_mode = #tpu.pipeline_mode<synchronous>, transform_indices = @transform_1, window_bounds = array<i64: 32, 96>}, {pipeline_mode = #tpu.pipeline_mode<synchronous>, transform_indices = @transform_2, window_bounds = array<i64: 1, 96>}, {pipeline_mode = #tpu.pipeline_mode<synchronous>, transform_indices = @transform_3, window_bounds = array<i64: 32, 32>}, {pipeline_mode = #tpu.pipeline_mode<synchronous>, transform_indices = @transform_4, window_bounds = array<i64: 32, 1>}, {pipeline_mode = #tpu.pipeline_mode<synchronous>, transform_indices = @transform_5, window_bounds = array<i64: 4, 256, 256>}, {transform_indices = @transform_6, window_bounds = array<i64: 1, 32, 256>}]} {
    %c0 = arith.constant 0 : index
    %c0_0 = arith.constant 0 : index
    %c0_1 = arith.constant 0 : index
    %c0_2 = arith.constant 0 : index
    %0 = vector.load %arg1[%c0, %c0_0, %c0_1, %c0_2] : memref<1x16x16x32xf32, #tpu.memory_space<vmem>>, vector<1x16x16x32xf32>
    %1 = vector.shape_cast %0 : vector<1x16x16x32xf32> to vector<16x16x32xf32>
    %2 = vector.shape_cast %1 : vector<16x16x32xf32> to vector<256x32xf32>
    %3 = arith.truncf %2 : vector<256x32xf32> to vector<256x32xbf16>
    %c0_3 = arith.constant 0 : index
    %c0_4 = arith.constant 0 : index
    %4 = vector.load %arg2[%c0_3, %c0_4] : memref<32x96xbf16, #tpu.memory_space<vmem>>, vector<32x96xbf16>
    %cst = arith.constant dense<0.000000e+00> : vector<256x96xf32>
    %5 = tpu.matmul %3, %4, %cst {dimension_numbers = #tpu.dot_dimension_numbers<[1], [0], [0], [1], [0, 0, 1, 1], [], []>} : vector<256x32xbf16>, vector<32x96xbf16>, vector<256x96xf32> -> vector<256x96xf32>
    %c0_5 = arith.constant 0 : index
    %c0_6 = arith.constant 0 : index
    %6 = vector.load %arg3[%c0_5, %c0_6] : memref<1x96xf32, #tpu.memory_space<vmem>>, vector<1x96xf32>
    %7 = vector.broadcast %6 : vector<1x96xf32> to vector<256x96xf32>
    %8 = arith.addf %5, %7 : vector<256x96xf32>
    %9 = vector.extract_strided_slice %8 {offsets = [0, 0], sizes = [256, 32], strides = [1, 1]} : vector<256x96xf32> to vector<256x32xf32>
    %10 = vector.extract_strided_slice %8 {offsets = [0, 32], sizes = [256, 32], strides = [1, 1]} : vector<256x96xf32> to vector<256x32xf32>
    %11 = arith.truncf %10 : vector<256x32xf32> to vector<256x32xbf16>
    %12 = vector.extract_strided_slice %8 {offsets = [0, 64], sizes = [256, 32], strides = [1, 1]} : vector<256x96xf32> to vector<256x32xf32>
    %13 = tpu.iota {dimensions = array<i32: 2>} : vector<1x1x32xi32>
    %14 = tpu.iota {dimensions = array<i32: 0>} : vector<4x1x1xi32>
    %c8_i32 = arith.constant 8 : i32
    %15 = vector.broadcast %c8_i32 : i32 to vector<4x1x1xi32>
    %16 = arith.muli %14, %15 : vector<4x1x1xi32>
    %17 = vector.broadcast %13 : vector<1x1x32xi32> to vector<4x1x32xi32>
    %18 = vector.broadcast %16 : vector<4x1x1xi32> to vector<4x1x32xi32>
    %19 = arith.cmpi sge, %17, %18 : vector<4x1x32xi32>
    %c1_i32 = arith.constant 1 : i32
    %20 = vector.broadcast %c1_i32 : i32 to vector<4x1x1xi32>
    %21 = arith.addi %14, %20 : vector<4x1x1xi32>
    %c8_i32_7 = arith.constant 8 : i32
    %22 = vector.broadcast %c8_i32_7 : i32 to vector<4x1x1xi32>
    %23 = arith.muli %21, %22 : vector<4x1x1xi32>
    %24 = vector.broadcast %13 : vector<1x1x32xi32> to vector<4x1x32xi32>
    %25 = vector.broadcast %23 : vector<4x1x1xi32> to vector<4x1x32xi32>
    %26 = arith.cmpi slt, %24, %25 : vector<4x1x32xi32>
    %27 = arith.andi %19, %26 : vector<4x1x32xi1>
    %28 = vector.shape_cast %9 : vector<256x32xf32> to vector<1x256x32xf32>
    %cst_8 = arith.constant 0.000000e+00 : f32
    %29 = vector.shape_cast %27 : vector<4x1x32xi1> to vector<4x1x32xi1>
    %30 = vector.broadcast %29 : vector<4x1x32xi1> to vector<4x256x32xi1>
    %31 = vector.shape_cast %28 : vector<1x256x32xf32> to vector<1x256x32xf32>
    %32 = vector.broadcast %31 : vector<1x256x32xf32> to vector<4x256x32xf32>
    %33 = vector.broadcast %cst_8 : f32 to vector<4x256x32xf32>
    %34 = arith.select %30, %32, %33 : vector<4x256x32xi1>, vector<4x256x32xf32>
    %35 = arith.truncf %34 : vector<4x256x32xf32> to vector<4x256x32xbf16>
    %36 = vector.shape_cast %12 : vector<256x32xf32> to vector<1x256x32xf32>
    %cst_9 = arith.constant 0.000000e+00 : f32
    %37 = vector.shape_cast %27 : vector<4x1x32xi1> to vector<4x1x32xi1>
    %38 = vector.broadcast %37 : vector<4x1x32xi1> to vector<4x256x32xi1>
    %39 = vector.shape_cast %36 : vector<1x256x32xf32> to vector<1x256x32xf32>
    %40 = vector.broadcast %39 : vector<1x256x32xf32> to vector<4x256x32xf32>
    %41 = vector.broadcast %cst_9 : f32 to vector<4x256x32xf32>
    %42 = arith.select %38, %40, %41 : vector<4x256x32xi1>, vector<4x256x32xf32>
    %43 = arith.truncf %42 : vector<4x256x32xf32> to vector<4x256x32xbf16>
    %44 = vector.shape_cast %35 : vector<4x256x32xbf16> to vector<1024x32xbf16>
    "tpu.trace_start"() <{level = 10 : i32, message = "xc,nc->xn"}> : () -> ()
    %cst_10 = arith.constant dense<0.000000e+00> : vector<1024x256xf32>
    %45 = tpu.matmul %44, %11, %cst_10 {dimension_numbers = #tpu.dot_dimension_numbers<[1], [1], [0], [0], [0, 0, 1, 0], [], []>} : vector<1024x32xbf16>, vector<256x32xbf16>, vector<1024x256xf32> -> vector<1024x256xf32>
    "tpu.trace_stop"() : () -> ()
    %46 = vector.shape_cast %45 : vector<1024x256xf32> to vector<4x256x256xf32>
    %c0_11 = arith.constant 0 : index
    %c0_12 = arith.constant 0 : index
    %c0_13 = arith.constant 0 : index
    %47 = vector.load %arg6[%c0_11, %c0_12, %c0_13] : memref<4x256x256xbf16, #tpu.memory_space<vmem>>, vector<4x256x256xbf16>
    %48 = arith.extf %47 : vector<4x256x256xbf16> to vector<4x256x256xf32>
    %49 = arith.addf %46, %48 : vector<4x256x256xf32>
    %cst_14 = arith.constant dense<0xFF800000> : vector<4x256xf32>
    %50 = vector.multi_reduction <maximumf>, %49, %cst_14 [2] : vector<4x256x256xf32> to vector<4x256xf32>
    %51 = vector.shape_cast %50 : vector<4x256xf32> to vector<4x256x1xf32>
    %52 = vector.broadcast %51 : vector<4x256x1xf32> to vector<4x256x256xf32>
    %53 = arith.subf %49, %52 : vector<4x256x256xf32>
    %54 = math.exp %53 : vector<4x256x256xf32>
    %cst_15 = arith.constant dense<0.000000e+00> : vector<4x256xf32>
    %55 = vector.multi_reduction <add>, %54, %cst_15 [2] : vector<4x256x256xf32> to vector<4x256xf32>
    %56 = vector.shape_cast %55 : vector<4x256xf32> to vector<4x256x1xf32>
    %57 = tpu.reciprocal %56 {approx = true} : vector<4x256x1xf32> -> vector<4x256x1xf32>
    %58 = vector.broadcast %57 : vector<4x256x1xf32> to vector<4x256x256xf32>
    %59 = arith.mulf %54, %58 : vector<4x256x256xf32>
    %60 = arith.truncf %59 : vector<4x256x256xf32> to vector<4x256x256xbf16>
    "tpu.trace_start"() <{level = 10 : i32, message = "hmn,hnc->hmc"}> : () -> ()
    %cst_16 = arith.constant dense<0.000000e+00> : vector<4x256x32xf32>
    %61 = tpu.matmul %60, %43, %cst_16 {dimension_numbers = #tpu.dot_dimension_numbers<[2], [1], [1], [2], [0, 0, 0, 1, 1, 2], [0], [0]>} : vector<4x256x256xbf16>, vector<4x256x32xbf16>, vector<4x256x32xf32> -> vector<4x256x32xf32>
    "tpu.trace_stop"() : () -> ()
    %cst_17 = arith.constant dense<0.000000e+00> : vector<256x32xf32>
    %62 = vector.multi_reduction <add>, %61, %cst_17 [0] : vector<4x256x32xf32> to vector<256x32xf32>
    %c0_18 = arith.constant 0 : index
    %c0_19 = arith.constant 0 : index
    %63 = vector.load %arg4[%c0_18, %c0_19] : memref<32x32xbf16, #tpu.memory_space<vmem>>, vector<32x32xbf16>
    %64 = arith.truncf %62 : vector<256x32xf32> to vector<256x32xbf16>
    "tpu.trace_start"() <{level = 10 : i32, message = "jc,mc->jm"}> : () -> ()
    %cst_20 = arith.constant dense<0.000000e+00> : vector<32x256xf32>
    %65 = tpu.matmul %63, %64, %cst_20 {dimension_numbers = #tpu.dot_dimension_numbers<[1], [1], [0], [0], [0, 0, 1, 0], [], []>} : vector<32x32xbf16>, vector<256x32xbf16>, vector<32x256xf32> -> vector<32x256xf32>
    "tpu.trace_stop"() : () -> ()
    %c0_21 = arith.constant 0 : index
    %c0_22 = arith.constant 0 : index
    %66 = vector.load %arg5[%c0_21, %c0_22] : memref<32x1xf32, #tpu.memory_space<vmem>>, vector<32x1xf32>
    %67 = vector.broadcast %66 : vector<32x1xf32> to vector<32x256xf32>
    %68 = arith.addf %65, %67 : vector<32x256xf32>
    %c0_23 = arith.constant 0 : index
    %c0_24 = arith.constant 0 : index
    %c0_25 = arith.constant 0 : index
    %69 = vector.load %arg7[%c0_23, %c0_24, %c0_25] : memref<1x32x256xf32, #tpu.memory_space<vmem>>, vector<1x32x256xf32>
    %70 = vector.shape_cast %69 : vector<1x32x256xf32> to vector<32x256xf32>
    %71 = vector.shape_cast %68 : vector<32x256xf32> to vector<1x32x256xf32>
    tpu.vector_store %arg7[%c0_23, %c0_24, %c0_25], %71 {strides = array<i32>} : memref<1x32x256xf32, #tpu.memory_space<vmem>>, vector<1x32x256xf32>,
    return
  }
  func.func @transform_0(%arg0: i32) -> (i32, i32, i32, i32) {
    %c0_i32 = arith.constant 0 : i32
    %c0_i32_0 = arith.constant 0 : i32
    %c0_i32_1 = arith.constant 0 : i32
    %c0_i32_2 = arith.constant 0 : i32
    return %arg0, %c0_i32, %c0_i32_0, %c0_i32_1 : i32, i32, i32, i32
  }
  func.func @transform_1(%arg0: i32) -> (i32, i32) {
    %c0_i32 = arith.constant 0 : i32
    %c0_i32_0 = arith.constant 0 : i32
    %c0_i32_1 = arith.constant 0 : i32
    return %c0_i32, %c0_i32_0 : i32, i32
  }
  func.func @transform_2(%arg0: i32) -> (i32, i32) {
    %c0_i32 = arith.constant 0 : i32
    %c0_i32_0 = arith.constant 0 : i32
    %c0_i32_1 = arith.constant 0 : i32
    return %c0_i32, %c0_i32_0 : i32, i32
  }
  func.func @transform_3(%arg0: i32) -> (i32, i32) {
    %c0_i32 = arith.constant 0 : i32
    %c0_i32_0 = arith.constant 0 : i32
    %c0_i32_1 = arith.constant 0 : i32
    return %c0_i32, %c0_i32_0 : i32, i32
  }
  func.func @transform_4(%arg0: i32) -> (i32, i32) {
    %c0_i32 = arith.constant 0 : i32
    %c0_i32_0 = arith.constant 0 : i32
    %c0_i32_1 = arith.constant 0 : i32
    return %c0_i32, %c0_i32_0 : i32, i32
  }
  func.func @transform_5(%arg0: i32) -> (i32, i32, i32) {
    %c0_i32 = arith.constant 0 : i32
    %c0_i32_0 = arith.constant 0 : i32
    %c0_i32_1 = arith.constant 0 : i32
    %c0_i32_2 = arith.constant 0 : i32
    return %c0_i32, %c0_i32_0, %c0_i32_1 : i32, i32, i32
  }
  func.func @transform_6(%arg0: i32) -> (i32, i32, i32) {
    %c0_i32 = arith.constant 0 : i32
    %c0_i32_0 = arith.constant 0 : i32
    %c0_i32_1 = arith.constant 0 : i32
    return %arg0, %c0_i32, %c0_i32_0 : i32, i32, i32
  }
}

</mosaic_0001>

<bundles_post_ra>
// kernel: tpu_custom_call.1
= control target key start
LH: loop header
LB: loop body
LE: loop exit
PB: predicated region body
PF: predicated region fallthrough
CT: control target
= control target key end

     0   :  { %11 = vsyncpa [#allocation3], 0  ;;  %s13037_s0 = inlined_call_operand.hbm [shape: f32[2,16,16,32], index: 0, kind: input, shape index: {}]   ;;  %s13038_s1 = inlined_call_operand.vmem [shape: bf16[32,96], index: 1, kind: input, shape index: {}]   ;;  %s13039_s2 = inlined_call_operand.vmem [shape: f32[1,96], index: 2, kind: input, shape index: {}]   ;;  %s13040_s3 = inlined_call_operand.vmem [shape: bf16[32,32], index: 3, kind: input, shape index: {}]   ;;  %s13041_s4 = inlined_call_operand.vmem [shape: f32[32,1], index: 4, kind: input, shape index: {}]   ;;  %s13042_s5 = inlined_call_operand.hbm [shape: bf16[4,256,256], index: 5, kind: input, shape index: {}]   ;;  %s13043_s6 = inlined_call_operand.hbm [shape: f32[2,32,256], index: 6, kind: output, shape index: {}]  }
   0x1   :  { %13 = vsyncpa [#allocation3 + $0x1], 0 }
   0x2   :  { %14 = vsyncpa [#allocation6], 0 }
   0x3   :  { %15 = vsyncpa [#allocation4], 0 }
   0x4   :  { %17 = vsyncpa [#allocation4 + $0x1], 0  ;;  %s7972_s21 = smov 0   ;;  %s7974_s22 = smov 0  }
   0x5   :  { %s7976_s23 = smov 0   ;;  %s7978_s24 = smov 0  }
   0x6 LB: > { %s7993_s25 = sadd.s32 4294967295, %s7925_s24   ;;  %s5900_s26 = sadd.s32 4294967294, %s7925_s24   ;;  %s7925_s24 = sphi %s7978_s24, %s14696_s24   ;;  %s7921_s23 = sphi %s7976_s23, %s14695_s23   ;;  %s7917_s22 = sphi %s7974_s22, %s14694_s22   ;;  %s7913_s21 = sphi %s7972_s21, %s14693_s21  }
   0x7   : > { %p43_p0 = scmp.ne.s32.totalorder %s7917_s22, %s7913_s21  ;;  %p13044_p1 = scmp.eq.s32.totalorder %s7993_s25, 0 }
   0x8   : > { %p178_p3 = scmp.eq.s32.totalorder %s5900_s26, 1  ;;  %p5901_p5 = scmp.ge.s32.totalorder %s7925_s24, 1 }
   0x9   : > { %p8002_p4 = por %p13044_p1, %p43_p0  ;;  %p185_p7 = scmp.lt.s32.totalorder %s7925_s24, 3 }
   0xa   : > { %p8007_p6 = por %p178_p3, %p43_p0  ;;  %s7927_s30 = smov [#allocation5]  }
   0xb   : > { %s13423_s27 = scalar_select %p8002_p4, 1, 0 }
   0xc   : > { %s13424_s28 = scalar_select %p8007_p6, 1, 0 }
   0xd   : > { %p8012_p8 = pnand %p5901_p5, %p185_p7  ;;  %s209_s7 = sshll.u32 %s7927_s30, 4  ;;  %s8016_s7 = int_to_ptr.vmem [resolvable:$true] %s209_s7 }
   0xe   : > { %s8028_s9 = sadd.s32 1, %s7925_s24   ;;  %s30_s10 = sadd.s32 1, %s7921_s23 }
   0xf   : > { %s13425_s29 = scalar_select %p8012_p8, 1, 0 }
  0x10   : > { %p6887_p9 = pneg %p8012_p8  ;;  %s27_s11 = ssub.s32 %s7925_s24, %s8028_s9 }
  0x11   : > { %s7797_s14 = scalar_lea.hbm %s13042_s5, 16384 }
  0x12   : > { %p8023_p11 = pnand %p6887_p9, %p13044_p1  ;;  %p7798_p12 = scmp.ne.s32.totalorder %s13042_s5, %s7797_s14 }
  0x13   : > { %p7804_p5 = scmp.lt.u32.totalorder %s7797_s14, %s13042_s5 }
  0x14   : > { %p7799_p13 = pneg %p8023_p11 }
  0x16   : > { %p7800_p0 = pnand %p7799_p13, %p7798_p12 }
  0x18   : > { %p7801_p3 = pneg %p7800_p0 }
  0x1a   : > { %p7806_p7 = pnand %p7804_p5, %p7801_p3 }
  0x1c   : > { %7809 = shalt.err (!%p7806_p7)
}
  0x1d   : > { %s7810_s19 = scalar_lea.vmem %s8016_s7, 16384  ;;  %p7818_p2 = scmp.lt.s32.totalorder %s8016_s7, %s8016_s7 }
  0x1e   : > { %p7811_p9 = scmp.ne.s32.totalorder %s8016_s7, %s7810_s19  ;;  %p7819_p6 = scmp.lt.s32.totalorder %s7810_s19, %s7810_s19 }
  0x20   : > { %p7813_p10 = pnand %p7811_p9, %p7799_p13  ;;  %p7820_p4 = por %p7819_p6, %p7818_p2 }
  0x22   : > { %p7814_p1 = pneg %p7813_p10 }
  0x24   : > { %p7821_p8 = pnand %p7820_p4, %p7814_p1 }
  0x26   : > { %7824 = shalt.err (!%p7821_p8)
}
  0x27   : > { %s7928_s20 = smov 128   ;;  %s7929_s26 = smov 8  }
  0x28   : > { %6890 = dma.hbm_to_vmem [thread:$0]  (!%p8023_p11), %s13042_s5, 16384, %s8016_s7, [#allocation6], %s7928_s20, %s7928_s20, %s7929_s26  }
  0x29   : > { %p28_p1 = scmp.eq.s32.totalorder %s27_s11, 0  ;;  %p37_p2 = scmp.ne.s32.totalorder %s7921_s23, %s7917_s22 }
  0x2a   : > { %p38_p4 = scmp.eq.s32.totalorder %s7925_s24, 0  ;;  %p6900_p6 = scmp.lt.s32.totalorder %s7925_s24, 2 }
  0x2b   : > { %s8062_s13 = scalar_select %p28_p1, %s7921_s23, %s30_s10  }
  0x2c   : > { %p39_p8 = por %p38_p4, %p37_p2  ;;  %p13427_p10 = scmp.eq.s32.totalorder %s7993_s25, 1 }
  0x2d   : > { %s223_s8 = sand.u32 1, %s7921_s23   ;;  %s6195_s15 = sshll.u32 %s7925_s24, 12 }
  0x2e   : > { %p8066_p12 = por %p13427_p10, %p37_p2  ;;  %s5904_s16 = sshll.u32 %s223_s8, 8 }
  0x2f   : > { %s8075_s19 = scalar_lea.hbm %s13037_s0, %s6195_s15  ;;  %s227_s7 = scalar_lea.vmem [#allocation2], %s5904_s16 }
  0x30   : > { %s234_s10 = sshll.u32 %s227_s7, 4  ;;  %p8077_p11 = pnand %p6900_p6, %p39_p8  ;;  %s8081_s10 = int_to_ptr.vmem [resolvable:$true] %s234_s10 }
  0x31   : > { %s8083_s30 = scalar_lea.sflag [#allocation3], %s223_s8  ;;  %s7825_s12 = scalar_lea.hbm %s8075_s19, 4096 }
  0x32   : > { %p7826_p13 = scmp.ne.s32.totalorder %s8075_s19, %s7825_s12  ;;  %p7827_p0 = pneg %p8077_p11 }
  0x33   : > { %s7830_s17 = scalar_lea.hbm %s13037_s0, 8192  ;;  %p7831_p7 = scmp.lt.u32.totalorder %s8075_s19, %s13037_s0 }
  0x34   : > { %p7828_p3 = pnand %p7827_p0, %p7826_p13  ;;  %p7832_p9 = scmp.lt.u32.totalorder %s7830_s17, %s7825_s12 }
  0x35   : > { %p7834_p2 = scmp.lt.u32.totalorder %s7825_s12, %s8075_s19 }
  0x36   : > { %p7829_p5 = pneg %p7828_p3  ;;  %p7833_p1 = por %p7832_p9, %p7831_p7 }
  0x38   : > { %p7835_p4 = por %p7834_p2, %p7833_p1 }
  0x3a   : > { %p7836_p6 = pnand %p7835_p4, %p7829_p5 }
  0x3c   : > { %7839 = shalt.err (!%p7836_p6)
}
  0x3d   : > { %s7840_s8 = scalar_lea.vmem %s8081_s10, 4096  ;;  %s7930_s15 = smov [#allocation2]  }
  0x3e   : > { %p7841_p8 = scmp.ne.s32.totalorder %s8081_s10, %s7840_s8  ;;  %s7845_s16 = sshll.u32 %s7930_s15, 4  ;;  %s7846_s16 = int_to_ptr.vmem [resolvable:$false] %s7845_s16 }
  0x3f   : > { %s7847_s18 = scalar_lea.vmem %s7846_s16, 8192  ;;  %p7848_p3 = scmp.lt.s32.totalorder %s8081_s10, %s7846_s16 }
  0x40   : > { %p7843_p10 = pnand %p7841_p8, %p7827_p0  ;;  %p7849_p7 = scmp.lt.s32.totalorder %s7847_s18, %s7840_s8 }
  0x42   : > { %p7844_p13 = pneg %p7843_p10  ;;  %p7850_p9 = por %p7849_p7, %p7848_p3 }
  0x44   : > { %p7851_p1 = pnand %p7850_p9, %p7844_p13 }
  0x46   : > { %7854 = shalt.err (!%p7851_p1)
}
  0x47   : > { %6894 = dma.hbm_to_vmem [thread:$0]  (!%p8077_p11), %s8075_s19, 4096, %s8081_s10, %s8083_s30, %s7928_s20, %s7928_s20, %s7929_s26  }
  0x48   : > { %p13430_p0 = scmp.ne.s32.totalorder %s13425_s29, 0 }
  0x4a   : > { %246 = sbr.rel (%p13430_p0) target bundleno = 2474 (0x9aa), region = 44 }
  0x51   : > { %s8117_s12 = sand.u32 1, %s7917_s22   ;;  %p13431_p5 = scmp.ne.s32.totalorder %s13423_s27, 0 }
  0x52   : > { %s5908_s17 = sshll.u32 %s8117_s12, 8  ;;  %s249_s7 = scalar_lea.sflag [#allocation3], %s8117_s12 }
  0x53   : > { %s8121_s8 = scalar_lea.vmem [#allocation2], %s5908_s17 }
  0x54   : > { %7900 = dma.done.wait (%p13431_p5), %s249_s7, 4096  }
  0x55   : > { %7902 = vsyncadd (%p13431_p5), %s249_s7, 4294963200  ;;  %p13432_p11 = scmp.eq.s32.totalorder %s7993_s25, 0 }
  0x57   : > { %7904 = dma.done.wait (%p13432_p11), [#allocation6], 16384   ;;  %p13433_p2 = pmov %p13432_p11 }
  0x58   : > { %v7025_v0 = vld [vmem:[%s13038_s1] sm:$0xff]   ;;  %v7026_v1 = vld [vmem:[%s13038_s1 + $0x8] sm:$0xff]   ;;  %vm357_vm0 = vcmask 261120   ;;  %v288_v5 = vld [vmem:[%s8121_s8 + $0x10] sm:$0xff]  ;;  %v583_v50 = vlaneseq  ;;  %v13434_v54 = vmov 0  ;;  %v13437_v57 = vmov 0 }
  0x59   : > { %7906 = vsyncadd (%p13433_p2), [#allocation6], 4294950912  ;;  %6827 = vmatprep.subr.bf16.mxu0 %v7025_v0  ;;  %v286_v2 = vld [vmem:[%s8121_s8] sm:$0xff]  ;;  %v287_v3 = vld [vmem:[%s8121_s8 + $0x8] sm:$0xff]  ;;  %s7931_s11 = smov 96   ;;  %s7932_s30 = smov 64  }
  0x5a   : > { %6828 = vmatpush3.bf16.msra.mxu0 %v7025_v0  ;;  %v318_v4 = vpack.c.bf16 %v287_v3, %v286_v2  ;;  %v289_v6 = vld [vmem:[%s8121_s8 + $0x18] sm:$0xff]  ;;  %v290_v7 = vld [vmem:[%s8121_s8 + $0x20] sm:$0xff]  ;;  %v291_v8 = vld [vmem:[%s8121_s8 + $0x28] sm:$0xff]  ;;  %v8185_v51 = vand.u32 127, %v583_v50  ;;  %s6196_s16 = sshll.u32 %s7993_s25, 10  ;;  %s5804_s25 = scalar_lea.sflag [#allocation4], %s8117_s12 }
  0x5b   : > { %6829 = vmatprep.subr.bf16.mxu0 %v7026_v1  ;;  %v319_v9 = vpack.c.bf16 %v289_v6, %v288_v5  ;;  %v320_v10 = vpack.c.bf16 %v291_v8, %v290_v7  ;;  %v292_v11 = vld [vmem:[%s8121_s8 + $0x30] sm:$0xff]  ;;  %v293_v12 = vld [vmem:[%s8121_s8 + $0x38] sm:$0xff]  ;;  %v294_v13 = vld [vmem:[%s8121_s8 + $0x40] sm:$0xff]  ;;  %s12993_s7 = scalar_lea.hbm %s13043_s6, %s6196_s16  ;;  %s7934_s29 = smov [#allocation7]  }
  0x5c   : > { %6831 = vmatprep.mubr.msk.bf16.mxu0 %vm357_vm0, %v318_v4  ;;  %v295_v14 = vld [vmem:[%s8121_s8 + $0x48] sm:$0xff]  ;;  %v321_v15 = vpack.c.bf16 %v293_v12, %v292_v11  ;;  %v296_v17 = vld [vmem:[%s8121_s8 + $0x50] sm:$0xff]  ;;  %v297_v18 = vld [vmem:[%s8121_s8 + $0x58] sm:$0xff]  ;;  %vm586_vm1 = vcmp.ge.s32.totalorder %v8185_v51, 8  ;;  %vm590_vm2 = vcmp.lt.s32.totalorder %v8185_v51, 16  ;;  %vm587_vm3 = vcmp.ge.s32.totalorder %v8185_v51, 16 }
  0x5d   : > { %v322_v16 = vpack.c.bf16 %v295_v14, %v294_v13  ;;  %v298_v19 = vld [vmem:[%s8121_s8 + $0x60] sm:$0xff]  ;;  %v299_v20 = vld [vmem:[%s8121_s8 + $0x68] sm:$0xff]  ;;  %v323_v21 = vpack.c.bf16 %v297_v18, %v296_v17  ;;  %v300_v23 = vld [vmem:[%s8121_s8 + $0x70] sm:$0xff]  ;;  %vm591_vm4 = vcmp.lt.s32.totalorder %v8185_v51, 24  ;;  %vm589_vm5 = vcmp.lt.s32.totalorder %v8185_v51, 8  ;;  %s7859_s20 = sshll.u32 %s7934_s29, 4  ;;  %s7860_s20 = int_to_ptr.vmem [resolvable:$false] %s7859_s20 }
  0x5e   : > { %6830 = vmatpush3.bf16.msra.mxu0 %v7026_v1  ;;  %v324_v22 = vpack.c.bf16 %v299_v20, %v298_v19  ;;  %v301_v24 = vld [vmem:[%s8121_s8 + $0x78] sm:$0xff]  ;;  %v302_v25 = vld [vmem:[%s8121_s8 + $0x80] sm:$0xff]  ;;  %v303_v26 = vld [vmem:[%s8121_s8 + $0x88] sm:$0xff]  ;;  %vm588_vm8 = vcmp.ge.s32.totalorder %v8185_v51, 24  ;;  %vm592_vm9 = vcmp.lt.s32.totalorder %v8185_v51, 32  ;;  %v13440_v12 = vmov 0 }
  0x5f   : > { %v325_v27 = vpack.c.bf16 %v301_v24, %v300_v23  ;;  %v326_v28 = vpack.c.bf16 %v303_v26, %v302_v25  ;;  %v304_v29 = vld [vmem:[%s8121_s8 + $0x90] sm:$0xff]  ;;  %v305_v30 = vld [vmem:[%s8121_s8 + $0x98] sm:$0xff]  ;;  %v306_v31 = vld [vmem:[%s8121_s8 + $0xa0] sm:$0xff]  ;;  %s7861_s26 = scalar_lea.vmem %s7860_s20, 2048 }
  0x60   : > { %v307_v32 = vld [vmem:[%s8121_s8 + $0xa8] sm:$0xff]  ;;  %v327_v33 = vpack.c.bf16 %v305_v30, %v304_v29  ;;  %v308_v35 = vld [vmem:[%s8121_s8 + $0xb0] sm:$0xff]  ;;  %v309_v36 = vld [vmem:[%s8121_s8 + $0xb8] sm:$0xff] }
  0x61   : > { %6832 = vmatmul.mubr.msk.bf16.vlgmr.msra.gmra.mrb[0].mxu0 %vm357_vm0, %v319_v9  ;;  %v328_v34 = vpack.c.bf16 %v307_v32, %v306_v31  ;;  %v310_v37 = vld [vmem:[%s8121_s8 + $0xc0] sm:$0xff]  ;;  %v311_v38 = vld [vmem:[%s8121_s8 + $0xc8] sm:$0xff]  ;;  %v329_v39 = vpack.c.bf16 %v309_v36, %v308_v35  ;;  %v312_v41 = vld [vmem:[%s8121_s8 + $0xd0] sm:$0xff] }
  0x62   : > { %6835 = vmatprep.mubr.msk.bf16.mxu0 %vm357_vm0, %v320_v10  ;;  %v330_v40 = vpack.c.bf16 %v311_v38, %v310_v37  ;;  %v313_v42 = vld [vmem:[%s8121_s8 + $0xd8] sm:$0xff]  ;;  %v314_v43 = vld [vmem:[%s8121_s8 + $0xe0] sm:$0xff]  ;;  %v315_v44 = vld [vmem:[%s8121_s8 + $0xe8] sm:$0xff] }
  0x63   : > { %v331_v45 = vpack.c.bf16 %v313_v42, %v312_v41  ;;  %v332_v46 = vpack.c.bf16 %v315_v44, %v314_v43  ;;  %v316_v47 = vld [vmem:[%s8121_s8 + $0xf0] sm:$0xff]  ;;  %v317_v48 = vld [vmem:[%s8121_s8 + $0xf8] sm:$0xff]  ;;  %v8192_v52 = vld [vmem:[%s13039_s2] ss:$0 sm:$0xff] }
  0x64   : > { %v333_v49 = vpack.c.bf16 %v317_v48, %v316_v47  ;;  %vm8197_vm6 = vmand %vm586_vm1, %vm590_vm2 }
  0x65   : > { %v13435_v54 = vsel %vm8197_vm6, 4294967295, %v13434_v54  ;;  %vm8204_vm7 = vmand %vm587_vm3, %vm591_vm4 }
  0x66   : > { %13436 = vst [vmem:[#allocation11_spill] sm:$0xff] %v13435_v54  ;;  %v13438_v57 = vsel %vm8204_vm7, 4294967295, %v13437_v57  ;;  %vm8255_vm10 = vmand %vm588_vm8, %vm592_vm9 }
  0x67   : > { %13439 = vst [vmem:[#allocation12_spill] sm:$0xff] %v13438_v57  ;;  %v13441_v12 = vsel %vm8255_vm10, 4294967295, %v13440_v12  ;;  %vm8969_vm11 = vmpackc.low %vm589_vm5, %vm589_vm5  ;;  %v2093_v57 = vld [vmem:[#allocation5 + $0x78] sm:$0xff] }
  0x68   : > { %13442 = vst [vmem:[#allocation13_spill] sm:$0xff] %v13441_v12  ;;  %vm10326_vm12 = vmpackc.low %vm8197_vm6, %vm8197_vm6 }
  0x69   : > { %6836 = vmatmul.mubr.msk.bf16.gmra.mrb[4].mxu0 %vm357_vm0, %v321_v15  ;;  %vm10488_vm13 = vmpackc.low %vm8204_vm7, %vm8204_vm7 }
  0x6a   : > { %6839 = vmatprep.mubr.msk.bf16.mxu0 %vm357_vm0, %v322_v16  ;;  %vm11414_vm14 = vmpackc.low %vm8255_vm10, %vm8255_vm10 }
  0x71   : > { %6840 = vmatmul.mubr.msk.bf16.gmra.mrb[8].mxu0 %vm357_vm0, %v323_v21 }
  0x72   : > { %6843 = vmatprep.mubr.msk.bf16.mxu0 %vm357_vm0, %v324_v22 }
  0x79   : > { %6844 = vmatmul.mubr.msk.bf16.gmra.mrb[12].mxu0 %vm357_vm0, %v325_v27 }
  0x7a   : > { %6847 = vmatprep.mubr.msk.bf16.mxu0 %vm357_vm0, %v326_v28 }
  0x81   : > { %6848 = vmatmul.mubr.msk.bf16.gmra.mrb[16].mxu0 %vm357_vm0, %v327_v33 }
  0x82   : > { %6851 = vmatprep.mubr.msk.bf16.mxu0 %vm357_vm0, %v328_v34 }
  0x89   : > { %6852 = vmatmul.mubr.msk.bf16.gmra.mrb[20].mxu0 %vm357_vm0, %v329_v39 }
  0x8a   : > { %6855 = vmatprep.mubr.msk.bf16.mxu0 %vm357_vm0, %v330_v40 }
  0x91   : > { %6856 = vmatmul.mubr.msk.bf16.gmra.mrb[24].mxu0 %vm357_vm0, %v331_v45 }
  0x92   : > { %6859 = vmatprep.mubr.msk.bf16.mxu0 %vm357_vm0, %v332_v46 }
  0x99   : > { %6860 = vmatmul.mubr.msk.bf16.gmra.mrb[28].mxu0 %vm357_vm0, %v333_v49 }
 0x134   : > { %v6833_v53 = vpop.f32.mrb[0].mxu0 }
 0x135   : > { %v8202_v55 = vadd.f32 %v6833_v53, %v8192_v52  ;;  %v440_v56 = vpop.f32.mrb[1].mxu0 }
 0x136   : > { %v8209_v58 = vadd.f32 %v8192_v52, %v440_v56  ;;  %v6834_v59 = vpop.f32.mrb[2].mxu0 }
 0x137   : > { %v8213_v60 = vadd.f32 %v6834_v59, %v8192_v52  ;;  %v443_v61 = vpop.f32.mrb[3].mxu0  ;;  %v607_v62 = vsel %vm589_vm5, %v8202_v55, 0.0  ;;  %v639_v63 = vsel %vm8197_vm6, %v8202_v55, 0.0  ;;  %v671_v20 = vsel %vm8204_vm7, %v8202_v55, 0.0 }
 0x138   : > { %v8223_v0 = vadd.f32 %v8192_v52, %v443_v61  ;;  %v605_v1 = vsel %vm589_vm5, %v8209_v58, 0.0  ;;  %v637_v2 = vsel %vm8197_vm6, %v8209_v58, 0.0  ;;  %v669_v3 = vsel %vm8204_vm7, %v8209_v58, 0.0 }
 0x139   : > { %v568_v4 = vpack.c.bf16 %v8213_v60, %v8202_v55  ;;  %v608_v6 = vsel %vm589_vm5, %v8213_v60, 0.0  ;;  %v640_v7 = vsel %vm8197_vm6, %v8213_v60, 0.0  ;;  %v672_v21 = vsel %vm8204_vm7, %v8213_v60, 0.0 }
 0x13a   : > { %v567_v8 = vpack.c.bf16 %v8223_v0, %v8209_v58  ;;  %v606_v9 = vsel %vm589_vm5, %v8223_v0, 0.0  ;;  %v8251_v11 = vpack.c.bf16 %v608_v6, %v607_v62  ;;  %v638_v14 = vsel %vm8197_vm6, %v8223_v0, 0.0 }
 0x13b   : > { %1135 = vrot.lane.b32.xlu1 %v568_v4, %s7931_s11  ;;  %v8260_v13 = vpack.c.bf16 %v606_v9, %v605_v1  ;;  %v8265_v15 = vpack.c.bf16 %v640_v7, %v639_v63  ;;  %v670_v16 = vsel %vm8204_vm7, %v8223_v0, 0.0  ;;  %v8271_v18 = vpack.c.bf16 %v638_v14, %v637_v2 }
 0x13c   : > { %v6837_v17 = vpop.f32.mrb[4].mxu0  ;;  %1133 = vrot.lane.b32.xlu0 %v567_v8, %s7931_s11  ;;  %v8273_v19 = vpack.c.bf16 %v670_v16, %v669_v3  ;;  %v8286_v24 = vpack.c.bf16 %v672_v21, %v671_v20  ;;  %v701_v25 = vsel %vm8255_vm10, %v8209_v58, 0.0  ;;  %v702_v26 = vsel %vm8255_vm10, %v8223_v0, 0.0 }
 0x13d   : > { %13443 = vst [vmem:[#allocation14_spill] sm:$0xff] %v8265_v15  ;;  %13444 = vst [vmem:[#allocation15_spill] sm:$0xff] %v8271_v18  ;;  %v8282_v22 = vadd.f32 %v6837_v17, %v8192_v52  ;;  %v456_v23 = vpop.f32.mrb[5].mxu0  ;;  %6231 = vmatprep.mubr.msk.bf16.mxu1 %vm357_vm0, %v8260_v13  ;;  %v8297_v29 = vpack.c.bf16 %v702_v26, %v701_v25  ;;  %v703_v30 = vsel %vm8255_vm10, %v8202_v55, 0.0  ;;  %v704_v31 = vsel %vm8255_vm10, %v8213_v60, 0.0 }
 0x13e   : > { %13445 = vst [vmem:[#allocation16_spill] sm:$0xff] %v8273_v19  ;;  %13446 = vst [vmem:[#allocation17_spill] sm:$0xff] %v8286_v24  ;;  %v8295_v27 = vadd.f32 %v8192_v52, %v456_v23  ;;  %v6838_v28 = vpop.f32.mrb[6].mxu0  ;;  %v8365_v1 = vpack.c.bf16 %v704_v31, %v703_v30 }
 0x13f   : > { %13447 = vst [vmem:[#allocation18_spill] sm:$0xff] %v8297_v29  ;;  %v8306_v32 = vadd.f32 %v6838_v28, %v8192_v52  ;;  %v459_v33 = vpop.f32.mrb[7].mxu0  ;;  %v611_v34 = vsel %vm589_vm5, %v8282_v22, 0.0  ;;  %v643_v35 = vsel %vm8197_vm6, %v8282_v22, 0.0  ;;  %v675_v36 = vsel %vm8204_vm7, %v8282_v22, 0.0 }
 0x140   : > { %v8318_v37 = vadd.f32 %v8192_v52, %v459_v33  ;;  %v609_v38 = vsel %vm589_vm5, %v8295_v27, 0.0  ;;  %v641_v39 = vsel %vm8197_vm6, %v8295_v27, 0.0  ;;  %v673_v40 = vsel %vm8204_vm7, %v8295_v27, 0.0  ;;  %13451 = vst [vmem:[#allocation22_spill] sm:$0xff] %v8365_v1 }
 0x141   : > { %v612_v43 = vsel %vm589_vm5, %v8306_v32, 0.0  ;;  %v644_v44 = vsel %vm8197_vm6, %v8306_v32, 0.0  ;;  %v676_v63 = vsel %vm8204_vm7, %v8306_v32, 0.0  ;;  %v705_v6 = vsel %vm8255_vm10, %v8295_v27, 0.0 }
 0x142   : > { %v610_v47 = vsel %vm589_vm5, %v8318_v37, 0.0  ;;  %v8346_v48 = vpack.c.bf16 %v612_v43, %v611_v34  ;;  %v642_v50 = vsel %vm8197_vm6, %v8318_v37, 0.0  ;;  %v8353_v53 = vpack.c.bf16 %v644_v44, %v643_v35 }
 0x143   : > { %v8348_v49 = vpack.c.bf16 %v610_v47, %v609_v38  ;;  %v674_v56 = vsel %vm8204_vm7, %v8318_v37, 0.0  ;;  %v8358_v61 = vpack.c.bf16 %v642_v50, %v641_v39  ;;  %v8370_v4 = vpack.c.bf16 %v676_v63, %v675_v36 }
 0x144   : > { %13448 = vst [vmem:[#allocation19_spill] sm:$0xff] %v8353_v53  ;;  %v6841_v59 = vpop.f32.mrb[8].mxu0  ;;  %v8360_v62 = vpack.c.bf16 %v674_v56, %v673_v40  ;;  %v706_v7 = vsel %vm8255_vm10, %v8318_v37, 0.0  ;;  %v707_v16 = vsel %vm8255_vm10, %v8282_v22, 0.0  ;;  %v708_v17 = vsel %vm8255_vm10, %v8306_v32, 0.0 }
 0x145   : > { %13449 = vst [vmem:[#allocation20_spill] sm:$0xff] %v8358_v61  ;;  %v8368_v2 = vadd.f32 %v6841_v59, %v8192_v52  ;;  %v472_v3 = vpop.f32.mrb[9].mxu0  ;;  %13452 = vst [vmem:[#allocation23_spill] sm:$0xff] %v8370_v4  ;;  %v8381_v14 = vpack.c.bf16 %v706_v7, %v705_v6 }
 0x146   : > { %13450 = vst [vmem:[#allocation21_spill] sm:$0xff] %v8360_v62  ;;  %v8379_v8 = vadd.f32 %v8192_v52, %v472_v3  ;;  %v6842_v9 = vpop.f32.mrb[10].mxu0 }
 0x147   : > { %13453 = vst [vmem:[#allocation24_spill] sm:$0xff] %v8381_v14  ;;  %v8390_v20 = vadd.f32 %v6842_v9, %v8192_v52  ;;  %v475_v21 = vpop.f32.mrb[11].mxu0  ;;  %v615_v23 = vsel %vm589_vm5, %v8368_v2, 0.0  ;;  %v647_v25 = vsel %vm8197_vm6, %v8368_v2, 0.0  ;;  %v679_v26 = vsel %vm8204_vm7, %v8368_v2, 0.0 }
 0x148   : > { %v8402_v28 = vadd.f32 %v8192_v52, %v475_v21  ;;  %v613_v30 = vsel %vm589_vm5, %v8379_v8, 0.0  ;;  %v645_v31 = vsel %vm8197_vm6, %v8379_v8, 0.0  ;;  %v677_v33 = vsel %vm8204_vm7, %v8379_v8, 0.0 }
 0x149   : > { %v616_v36 = vsel %vm589_vm5, %v8390_v20, 0.0  ;;  %v648_v38 = vsel %vm8197_vm6, %v8390_v20, 0.0  ;;  %v680_v7 = vsel %vm8204_vm7, %v8390_v20, 0.0  ;;  %v8449_v9 = vpack.c.bf16 %v708_v17, %v707_v16 }
 0x14a   : > { %v614_v43 = vsel %vm589_vm5, %v8402_v28, 0.0  ;;  %v8430_v44 = vpack.c.bf16 %v616_v36, %v615_v23  ;;  %v646_v50 = vsel %vm8197_vm6, %v8402_v28, 0.0  ;;  %v8437_v56 = vpack.c.bf16 %v648_v38, %v647_v25 }
 0x14b   : > { %v8432_v47 = vpack.c.bf16 %v614_v43, %v613_v30  ;;  %v678_v59 = vsel %vm8204_vm7, %v8402_v28, 0.0  ;;  %v8442_v3 = vpack.c.bf16 %v646_v50, %v645_v31  ;;  %13457 = vst [vmem:[#allocation28_spill] sm:$0xff] %v8449_v9  ;;  %v8454_v25 = vpack.c.bf16 %v680_v7, %v679_v26 }
 0x14c   : > { %13454 = vst [vmem:[#allocation25_spill] sm:$0xff] %v8437_v56  ;;  %v6845_v63 = vpop.f32.mrb[12].mxu0  ;;  %v8444_v6 = vpack.c.bf16 %v678_v59, %v677_v33  ;;  %v709_v30 = vsel %vm8255_vm10, %v8379_v8, 0.0  ;;  %v710_v31 = vsel %vm8255_vm10, %v8402_v28, 0.0  ;;  %v711_v17 = vsel %vm8255_vm10, %v8368_v2, 0.0 }
 0x14d   : > { %13455 = vst [vmem:[#allocation26_spill] sm:$0xff] %v8442_v3  ;;  %v8452_v21 = vadd.f32 %v6845_v63, %v8192_v52  ;;  %v488_v23 = vpop.f32.mrb[13].mxu0  ;;  %13458 = vst [vmem:[#allocation29_spill] sm:$0xff] %v8454_v25  ;;  %v8465_v16 = vpack.c.bf16 %v710_v31, %v709_v30  ;;  %v712_v26 = vsel %vm8255_vm10, %v8390_v20, 0.0 }
 0x14e   : > { %13456 = vst [vmem:[#allocation27_spill] sm:$0xff] %v8444_v6  ;;  %v8463_v33 = vadd.f32 %v8192_v52, %v488_v23  ;;  %v6846_v36 = vpop.f32.mrb[14].mxu0 }
 0x14f   : > { %13460 = vst [vmem:[#allocation31_spill] sm:$0xff] %v8465_v16  ;;  %v8474_v38 = vadd.f32 %v6846_v36, %v8192_v52  ;;  %v491_v43 = vpop.f32.mrb[15].mxu0  ;;  %v619_v50 = vsel %vm589_vm5, %v8452_v21, 0.0  ;;  %v651_v59 = vsel %vm8197_vm6, %v8452_v21, 0.0  ;;  %v683_v63 = vsel %vm8204_vm7, %v8452_v21, 0.0 }
 0x150   : > { %13459 = vst [vmem:[#allocation30_spill] sm:$0xff] %v8463_v33  ;;  %v8486_v7 = vadd.f32 %v8192_v52, %v491_v43  ;;  %v617_v23 = vsel %vm589_vm5, %v8463_v33, 0.0  ;;  %v649_v30 = vsel %vm8197_vm6, %v8463_v33, 0.0  ;;  %v681_v31 = vsel %vm8204_vm7, %v8463_v33, 0.0 }
 0x151   : > { %v620_v43 = vsel %vm589_vm5, %v8474_v38, 0.0  ;;  %v652_v40 = vsel %vm8197_vm6, %v8474_v38, 0.0  ;;  %v684_v46 = vsel %vm8204_vm7, %v8474_v38, 0.0 }
 0x152   : > { %13461 = vst [vmem:[#allocation32_spill] sm:$0xff] %v8486_v7  ;;  %v618_v42 = vsel %vm589_vm5, %v8486_v7, 0.0  ;;  %v8513_v5 = vpack.c.bf16 %v620_v43, %v619_v50  ;;  %v650_v10 = vsel %vm8197_vm6, %v8486_v7, 0.0  ;;  %v8522_v39 = vpack.c.bf16 %v652_v40, %v651_v59 }
 0x153   : > { %v8518_v36 = vpack.c.bf16 %v618_v42, %v617_v23  ;;  %v8520_v34 = vpack.c.bf16 %v650_v10, %v649_v30  ;;  %v682_v45 = vsel %vm8204_vm7, %v8486_v7, 0.0  ;;  %v8529_v50 = vpack.c.bf16 %v684_v46, %v683_v63 }
 0x154   : > { %13463 = vst [vmem:[#allocation34_spill] sm:$0xff] %v8522_v39  ;;  %v6849_v35 = vpop.f32.mrb[16].mxu0  ;;  %v8531_v43 = vpack.c.bf16 %v712_v26, %v711_v17  ;;  %v713_v42 = vsel %vm8255_vm10, %v8463_v33, 0.0  ;;  %v8539_v59 = vpack.c.bf16 %v682_v45, %v681_v31  ;;  %v714_v23 = vsel %vm8255_vm10, %v8486_v7, 0.0 }
 0x155   : > { %13462 = vst [vmem:[#allocation33_spill] sm:$0xff] %v8520_v34  ;;  %13464 = vst [vmem:[#allocation35_spill] sm:$0xff] %v8529_v50  ;;  %v8537_v10 = vadd.f32 %v6849_v35, %v8192_v52  ;;  %v504_v40 = vpop.f32.mrb[17].mxu0  ;;  %v715_v46 = vsel %vm8255_vm10, %v8452_v21, 0.0  ;;  %v8550_v63 = vpack.c.bf16 %v714_v23, %v713_v42  ;;  %v716_v35 = vsel %vm8255_vm10, %v8474_v38, 0.0 }
 0x156   : > { %13465 = vst [vmem:[#allocation36_spill] sm:$0xff] %v8531_v43  ;;  %13466 = vst [vmem:[#allocation37_spill] sm:$0xff] %v8539_v59  ;;  %v8548_v17 = vadd.f32 %v8192_v52, %v504_v40  ;;  %v6850_v26 = vpop.f32.mrb[18].mxu0 }
 0x157   : > { %13467 = vst [vmem:[#allocation38_spill] sm:$0xff] %v8550_v63  ;;  %v8558_v30 = vadd.f32 %v6850_v26, %v8192_v52  ;;  %v507_v31 = vpop.f32.mrb[19].mxu0  ;;  %v623_v41 = vsel %vm589_vm5, %v8537_v10, 0.0  ;;  %v655_v42 = vsel %vm8197_vm6, %v8537_v10, 0.0  ;;  %v687_v40 = vsel %vm8204_vm7, %v8537_v10, 0.0 }
 0x158   : > { %v8570_v23 = vadd.f32 %v8192_v52, %v507_v31  ;;  %v621_v26 = vsel %vm589_vm5, %v8548_v17, 0.0  ;;  %v653_v45 = vsel %vm8197_vm6, %v8548_v17, 0.0  ;;  %v685_v63 = vsel %vm8204_vm7, %v8548_v17, 0.0 }
 0x159   : > { %v576_v43 = vpack.c.bf16 %v8558_v30, %v8537_v10  ;;  %v624_v31 = vsel %vm589_vm5, %v8558_v30, 0.0  ;;  %v656_v9 = vsel %vm8197_vm6, %v8558_v30, 0.0 }
 0x15a   : > { %v575_v14 = vpack.c.bf16 %v8570_v23, %v8548_v17  ;;  %v622_v29 = vsel %vm589_vm5, %v8570_v23, 0.0  ;;  %v8598_v50 = vpack.c.bf16 %v624_v31, %v623_v41  ;;  %v654_v59 = vsel %vm8197_vm6, %v8570_v23, 0.0 }
 0x15b   : > { %1151 = vrot.lane.b32.xlu1 %v576_v43, %s7931_s11  ;;  %v8601_v16 = vpack.c.bf16 %v622_v29, %v621_v26  ;;  %v8606_v25 = vpack.c.bf16 %v656_v9, %v655_v42  ;;  %v686_v1 = vsel %vm8204_vm7, %v8570_v23, 0.0  ;;  %v8612_v4 = vpack.c.bf16 %v654_v59, %v653_v45 }
 0x15c   : > { %13468 = vst [vmem:[#allocation39_spill] sm:$0xff] %v8598_v50  ;;  %v6853_v6 = vpop.f32.mrb[20].mxu0  ;;  %1149 = vrot.lane.b32.xlu0 %v575_v14, %s7931_s11  ;;  %v8614_v41 = vpack.c.bf16 %v686_v1, %v685_v63  ;;  %v688_v29 = vsel %vm8204_vm7, %v8558_v30, 0.0  ;;  %v8619_v43 = vpack.c.bf16 %v716_v35, %v715_v46  ;;  %v717_v14 = vsel %vm8255_vm10, %v8548_v17, 0.0 }
 0x15d   : > { %13469 = vst [vmem:[#allocation40_spill] sm:$0xff] %v8606_v25  ;;  %13470 = vst [vmem:[#allocation41_spill] sm:$0xff] %v8612_v4  ;;  %v8622_v9 = vadd.f32 %v6853_v6, %v8192_v52  ;;  %v520_v42 = vpop.f32.mrb[21].mxu0  ;;  %v8624_v26 = vpack.c.bf16 %v688_v29, %v687_v40  ;;  %v718_v1 = vsel %vm8255_vm10, %v8570_v23, 0.0  ;;  %v719_v6 = vsel %vm8255_vm10, %v8537_v10, 0.0 }
 0x15e   : > { %13471 = vst [vmem:[#allocation42_spill] sm:$0xff] %v8614_v41  ;;  %13472 = vst [vmem:[#allocation43_spill] sm:$0xff] %v8619_v43  ;;  %v8633_v59 = vadd.f32 %v8192_v52, %v520_v42  ;;  %v6854_v63 = vpop.f32.mrb[22].mxu0  ;;  %v8635_v46 = vpack.c.bf16 %v718_v1, %v717_v14  ;;  %v720_v35 = vsel %vm8255_vm10, %v8558_v30, 0.0  ;;  %v13475_v1 = vpack.c.bf16 %v8318_v37, %v8295_v27 }
 0x15f   : > { %13473 = vst [vmem:[#allocation44_spill] sm:$0xff] %v8624_v26  ;;  %v8644_v45 = vadd.f32 %v6854_v63, %v8192_v52  ;;  %v523_v40 = vpop.f32.mrb[23].mxu0  ;;  %v627_v31 = vsel %vm589_vm5, %v8622_v9, 0.0  ;;  %v659_v29 = vsel %vm8197_vm6, %v8622_v9, 0.0  ;;  %v691_v42 = vsel %vm8204_vm7, %v8622_v9, 0.0 }
 0x160   : > { %13474 = vst [vmem:[#allocation45_spill] sm:$0xff] %v8635_v46  ;;  %v8656_v14 = vadd.f32 %v8192_v52, %v523_v40  ;;  %1137 = vrot.lane.b32.xlu0 %v13475_v1, %s7931_s11  ;;  %v625_v63 = vsel %vm589_vm5, %v8633_v59, 0.0  ;;  %v657_v46 = vsel %vm8197_vm6, %v8633_v59, 0.0  ;;  %v689_v43 = vsel %vm8204_vm7, %v8633_v59, 0.0 }
 0x161   : > { %v578_v40 = vpack.c.bf16 %v8644_v45, %v8622_v9  ;;  %v628_v1 = vsel %vm589_vm5, %v8644_v45, 0.0  ;;  %v660_v41 = vsel %vm8197_vm6, %v8644_v45, 0.0 }
 0x162   : > { %v577_v62 = vpack.c.bf16 %v8656_v14, %v8633_v59  ;;  %v626_v19 = vsel %vm589_vm5, %v8656_v14, 0.0  ;;  %v8688_v25 = vpack.c.bf16 %v628_v1, %v627_v31  ;;  %v658_v4 = vsel %vm8197_vm6, %v8656_v14, 0.0 }
 0x163   : > { %v8690_v26 = vpack.c.bf16 %v626_v19, %v625_v63  ;;  %v8695_v39 = vpack.c.bf16 %v660_v41, %v659_v29  ;;  %v690_v34 = vsel %vm8204_vm7, %v8656_v14, 0.0  ;;  %v13479_v31 = vpack.c.bf16 %v8306_v32, %v8282_v22 }
 0x164   : > { %13476 = vst [vmem:[#allocation46_spill] sm:$0xff] %v8688_v25  ;;  %v6857_v56 = vpop.f32.mrb[24].mxu0  ;;  %1153 = vrot.lane.b32.xlu1 %v577_v62, %s7931_s11  ;;  %v8705_v19 = vpack.c.bf16 %v658_v4, %v657_v46  ;;  %v8707_v63 = vpack.c.bf16 %v690_v34, %v689_v43  ;;  %v692_v41 = vsel %vm8204_vm7, %v8644_v45, 0.0  ;;  %v8712_v29 = vpack.c.bf16 %v720_v35, %v719_v6 }
 0x165   : > { %13477 = vst [vmem:[#allocation47_spill] sm:$0xff] %v8690_v26  ;;  %13478 = vst [vmem:[#allocation48_spill] sm:$0xff] %v8695_v39  ;;  %1139 = vrot.lane.b32.xlu0 %v13479_v31, %s7931_s11  ;;  %v8715_v1 = vadd.f32 %v6857_v56, %v8192_v52  ;;  %v536_v24 = vpop.f32.mrb[25].mxu0  ;;  %v8717_v62 = vpack.c.bf16 %v692_v41, %v691_v42  ;;  %v721_v31 = vsel %vm8255_vm10, %v8633_v59, 0.0  ;;  %v722_v4 = vsel %vm8255_vm10, %v8656_v14, 0.0 }
 0x166   : > { %13480 = vst [vmem:[#allocation49_spill] sm:$0xff] %v8705_v19  ;;  %13481 = vst [vmem:[#allocation50_spill] sm:$0xff] %v8707_v63  ;;  %v8726_v34 = vadd.f32 %v8192_v52, %v536_v24  ;;  %v6858_v43 = vpop.f32.mrb[26].mxu0  ;;  %v8728_v46 = vpack.c.bf16 %v722_v4, %v721_v31  ;;  %v723_v56 = vsel %vm8255_vm10, %v8622_v9, 0.0  ;;  %v724_v6 = vsel %vm8255_vm10, %v8644_v45, 0.0 }
 0x167   : > { %13482 = vst [vmem:[#allocation51_spill] sm:$0xff] %v8712_v29  ;;  %13483 = vst [vmem:[#allocation52_spill] sm:$0xff] %v8717_v62  ;;  %v8737_v35 = vadd.f32 %v6858_v43, %v8192_v52  ;;  %v539_v42 = vpop.f32.mrb[27].mxu0  ;;  %v631_v24 = vsel %vm589_vm5, %v8715_v1, 0.0  ;;  %v663_v41 = vsel %vm8197_vm6, %v8715_v1, 0.0  ;;  %v695_v31 = vsel %vm8204_vm7, %v8715_v1, 0.0 }
 0x168   : > { %13484 = vst [vmem:[#allocation53_spill] sm:$0xff] %v8728_v46  ;;  %v8749_v4 = vadd.f32 %v8192_v52, %v539_v42  ;;  %1155 = vrot.lane.b32.xlu1 %v578_v40, %s7931_s11  ;;  %v13485_v43 = vpack.c.bf16 %v8402_v28, %v8379_v8  ;;  %v629_v46 = vsel %vm589_vm5, %v8726_v34, 0.0  ;;  %v661_v29 = vsel %vm8197_vm6, %v8726_v34, 0.0 }
 0x169   : > { %v693_v42 = vsel %vm8204_vm7, %v8726_v34, 0.0  ;;  %v580_v40 = vpack.c.bf16 %v8737_v35, %v8715_v1  ;;  %v664_v63 = vsel %vm8197_vm6, %v8737_v35, 0.0 }
 0x16a   : > { %1141 = vrot.lane.b32.xlu0 %v13485_v43, %s7931_s11  ;;  %v632_v43 = vsel %vm589_vm5, %v8737_v35, 0.0  ;;  %v579_v39 = vpack.c.bf16 %v8749_v4, %v8726_v34  ;;  %v630_v3 = vsel %vm589_vm5, %v8749_v4, 0.0  ;;  %v662_v61 = vsel %vm8197_vm6, %v8749_v4, 0.0 }
 0x16b   : > { %v8782_v53 = vpack.c.bf16 %v632_v43, %v631_v24  ;;  %v8784_v62 = vpack.c.bf16 %v630_v3, %v629_v46  ;;  %v8789_v15 = vpack.c.bf16 %v664_v63, %v663_v41  ;;  %v694_v18 = vsel %vm8204_vm7, %v8749_v4, 0.0 }
 0x16c   : > { %v6861_v25 = vpop.f32.mrb[28].mxu0  ;;  %1157 = vrot.lane.b32.xlu1 %v579_v39, %s7931_s11  ;;  %v13489_v24 = vpack.c.bf16 %v8390_v20, %v8368_v2  ;;  %v8799_v3 = vpack.c.bf16 %v662_v61, %v661_v29  ;;  %v8801_v46 = vpack.c.bf16 %v694_v18, %v693_v42  ;;  %v696_v63 = vsel %vm8204_vm7, %v8737_v35, 0.0 }
 0x16d   : > { %13486 = vst [vmem:[#allocation54_spill] sm:$0xff] %v8782_v53  ;;  %13487 = vst [vmem:[#allocation55_spill] sm:$0xff] %v8784_v62  ;;  %v8806_v41 = vpack.c.bf16 %v724_v6, %v723_v56  ;;  %v8809_v43 = vadd.f32 %v6861_v25, %v8192_v52  ;;  %v552_v19 = vpop.f32.mrb[29].mxu0  ;;  %v8811_v39 = vpack.c.bf16 %v696_v63, %v695_v31  ;;  %v726_v18 = vsel %vm8255_vm10, %v8749_v4, 0.0 }
 0x16e   : > { %13488 = vst [vmem:[#allocation56_spill] sm:$0xff] %v8789_v15  ;;  %1143 = vrot.lane.b32.xlu0 %v13489_v24, %s7931_s11  ;;  %13490 = vst [vmem:[#allocation57_spill] sm:$0xff] %v8799_v3  ;;  %v725_v24 = vsel %vm8255_vm10, %v8726_v34, 0.0  ;;  %v553_v61 = vadd.f32 %v8192_v52, %v552_v19  ;;  %v6862_v29 = vpop.f32.mrb[30].mxu0  ;;  %v727_v25 = vsel %vm8255_vm10, %v8715_v1, 0.0  ;;  %v728_v56 = vsel %vm8255_vm10, %v8737_v35, 0.0 }
 0x16f   : > { %13491 = vst [vmem:[#allocation58_spill] sm:$0xff] %v8801_v46  ;;  %13492 = vst [vmem:[#allocation59_spill] sm:$0xff] %v8806_v41  ;;  %v8820_v42 = vpack.c.bf16 %v726_v18, %v725_v24  ;;  %v8829_v6 = vadd.f32 %v6862_v29, %v8192_v52  ;;  %v555_v31 = vpop.f32.mrb[31].mxu0  ;;  %v635_v63 = vsel %vm589_vm5, %v8809_v43, 0.0  ;;  %v667_v19 = vsel %vm8197_vm6, %v8809_v43, 0.0 }
 0x170   : > { %13493 = vst [vmem:[#allocation60_spill] sm:$0xff] %v8811_v39  ;;  %v699_v24 = vsel %vm8204_vm7, %v8809_v43, 0.0  ;;  %v556_v18 = vadd.f32 %v8192_v52, %v555_v31  ;;  %1159 = vrot.lane.b32.xlu1 %v580_v40, %s7931_s11  ;;  %v13495_v29 = vpack.c.bf16 %v8486_v7, %v8463_v33  ;;  %v665_v41 = vsel %vm8197_vm6, %v553_v61, 0.0 }
 0x171   : > { %13494 = vst [vmem:[#allocation61_spill] sm:$0xff] %v8820_v42  ;;  %v633_v42 = vsel %vm589_vm5, %v553_v61, 0.0  ;;  %v697_v39 = vsel %vm8204_vm7, %v553_v61, 0.0  ;;  %v582_v46 = vpack.c.bf16 %v8829_v6, %v8809_v43  ;;  %v636_v52 = vsel %vm589_vm5, %v8829_v6, 0.0 }
 0x172   : > { %1145 = vrot.lane.b32.xlu0 %v13495_v29, %s7931_s11  ;;  %v668_v40 = vsel %vm8197_vm6, %v8829_v6, 0.0  ;;  %v581_v29 = vpack.c.bf16 %v556_v18, %v553_v61  ;;  %v7003_v33 = vpack.i.bf16 %v556_v18, %v553_v61  ;;  %v634_v7 = vsel %vm589_vm5, %v556_v18, 0.0 }
 0x173   : > { %v8864_v15 = vpack.c.bf16 %v636_v52, %v635_v63  ;;  %v8866_v3 = vpack.c.bf16 %v634_v7, %v633_v42  ;;  %v666_v53 = vsel %vm8197_vm6, %v556_v18, 0.0  ;;  %v8870_v62 = vpack.c.bf16 %v668_v40, %v667_v19 }
 0x174   : > { %v698_v26 = vsel %vm8204_vm7, %v556_v18, 0.0  ;;  %1161 = vrot.lane.b32.xlu1 %v581_v29, %s7931_s11  ;;  %v13496_v31 = vpack.c.bf16 %v8474_v38, %v8452_v21  ;;  %v8879_v50 = vpack.c.bf16 %v666_v53, %v665_v41  ;;  %v700_v7 = vsel %vm8204_vm7, %v8829_v6, 0.0 }
 0x175   : > { %v8881_v63 = vpack.c.bf16 %v698_v26, %v697_v39  ;;  %v8886_v42 = vpack.c.bf16 %v728_v56, %v727_v25  ;;  %v8888_v19 = vpack.c.bf16 %v700_v7, %v699_v24  ;;  %v729_v52 = vsel %vm8255_vm10, %v553_v61, 0.0 }
 0x176   : > { %1147 = vrot.lane.b32.xlu0 %v13496_v31, %s7931_s11  ;;  %v730_v40 = vsel %vm8255_vm10, %v556_v18, 0.0  ;;  %v731_v53 = vsel %vm8255_vm10, %v8809_v43, 0.0  ;;  %v732_v41 = vsel %vm8255_vm10, %v8829_v6, 0.0  ;;  %v13499_v61 = vpack.i.bf16 %v8223_v0, %v8209_v58 }
 0x177   : > { %v8897_v26 = vpack.c.bf16 %v730_v40, %v729_v52  ;;  %v8902_v39 = vpack.c.bf16 %v732_v41, %v731_v53  ;;  %v13500_v25 = vpack.i.bf16 %v8570_v23, %v8548_v17  ;;  %v13501_v56 = vpack.i.bf16 %v8213_v60, %v8202_v55 }
 0x178   : > { %1163 = vrot.lane.b32.xlu1 %v582_v46, %s7931_s11  ;;  %v13502_v46 = vpack.i.bf16 %v8558_v30, %v8537_v10  ;;  %v13503_v58 = vpack.i.bf16 %v8306_v32, %v8282_v22  ;;  %v13504_v0 = vpack.i.bf16 %v8656_v14, %v8633_v59  ;;  %v13505_v55 = vpack.i.bf16 %v8390_v20, %v8368_v2  ;;  %s5910_s11 = sshll.u32 %s8117_s12, 6 }
 0x179   : > { %13497 = vst [vmem:[#allocation62_spill] sm:$0xff] %v8897_v26  ;;  %13498 = vst [vmem:[#allocation63_spill] sm:$0xff] %v8902_v39  ;;  %v13506_v60 = vpack.i.bf16 %v8318_v37, %v8295_v27  ;;  %v13507_v22 = vpack.i.bf16 %v8644_v45, %v8622_v9  ;;  %v13508_v32 = vpack.i.bf16 %v8749_v4, %v8726_v34 }
 0x17a   : > { %6949 = vrot.lane.b32.xlu0 %v13499_v61, %s7932_s30  ;;  %v13509_v2 = vpack.i.bf16 %v8402_v28, %v8379_v8  ;;  %v13510_v27 = vpack.i.bf16 %v8737_v35, %v8715_v1 }
 0x17c   : > { %6944 = vrot.lane.b32.xlu1 %v13500_v25, %s7932_s30 }
 0x17e   : > { %6959 = vrot.lane.b32.xlu0 %v13501_v56, %s7932_s30 }
 0x180   : > { %6954 = vrot.lane.b32.xlu1 %v13502_v46, %s7932_s30 }
 0x182   : > { %6979 = vrot.lane.b32.xlu0 %v13503_v58, %s7932_s30 }
 0x184   : > { %6964 = vrot.lane.b32.xlu1 %v13504_v0, %s7932_s30 }
 0x186   : > { %6999 = vrot.lane.b32.xlu0 %v13505_v55, %s7932_s30 }
 0x188   : > { %6969 = vrot.lane.b32.xlu1 %v13506_v60, %s7932_s30 }
 0x18c   : > { %6974 = vrot.lane.b32.xlu1 %v13507_v22, %s7932_s30 }
 0x190   : > { %6984 = vrot.lane.b32.xlu1 %v13508_v32, %s7932_s30 }
 0x194   : > { %6989 = vrot.lane.b32.xlu1 %v13509_v2, %s7932_s30 }
 0x198   : > { %6994 = vrot.lane.b32.xlu1 %v13510_v27, %s7932_s30 }
 0x19c   : > { %7004 = vrot.lane.b32.xlu1 %v7003_v33, %s7932_s30 }
 0x1ad   : > { %v1136_v20 = vpop.permute.xlu1 %1135 }
 0x1ae   : > { %v1134_v37 = vpop.permute.xlu0 %1133  ;;  %v1361_v9 = vsel %vm357_vm0, %v1136_v20, 0 }
 0x1af   : > { %v1358_v17 = vsel %vm357_vm0, %v1134_v37, 0 }
 0x1cd   : > { %v1152_v30 = vpop.permute.xlu1 %1151 }
 0x1ce   : > { %v1150_v10 = vpop.permute.xlu0 %1149 }
 0x1cf   : > { %6863 = vmatprep.subr.msk.bf16.mxu1 %vm357_vm0, %v1150_v10 }
 0x1d0   : > { %6216 = vmatpush3.bf16.xpose.msra.mxu1 %v1358_v17 }
 0x1d1   : > { %6864 = vmatprep.subr.msk.bf16.mxu1 %vm357_vm0, %v1152_v30 }
 0x1d2   : > { %v1138_v8 = vpop.permute.xlu0 %1137 }
 0x1d3   : > { %v1364_v1 = vsel %vm357_vm0, %v1138_v8, 0 }
 0x1d6   : > { %v1154_v28 = vpop.permute.xlu1 %1153 }
 0x1d7   : > { %v1140_v23 = vpop.permute.xlu0 %1139 }
 0x1d8   : > { %6218 = vmatpush3.bf16.xpose.msra.mxu1 %v1361_v9  ;;  %v1367_v18 = vsel %vm357_vm0, %v1140_v23, 0 }
 0x1d9   : > { %6865 = vmatprep.subr.msk.bf16.mxu1 %vm357_vm0, %v1154_v28 }
 0x1da   : > { %v1156_v33 = vpop.permute.xlu1 %1155 }
 0x1dc   : > { %v1142_v59 = vpop.permute.xlu0 %1141 }
 0x1dd   : > { %v1370_v25 = vsel %vm357_vm0, %v1142_v59, 0 }
 0x1de   : > { %v1158_v45 = vpop.permute.xlu1 %1157 }
 0x1e0   : > { %v1144_v14 = vpop.permute.xlu0 %1143  ;;  %6220 = vmatpush3.bf16.xpose.msra.mxu1 %v1364_v1 }
 0x1e1   : > { %6866 = vmatprep.subr.msk.bf16.mxu1 %vm357_vm0, %v1156_v33  ;;  %v1373_v10 = vsel %vm357_vm0, %v1144_v14, 0 }
 0x1e2   : > { %v1160_v34 = vpop.permute.xlu1 %1159 }
 0x1e4   : > { %v1146_v35 = vpop.permute.xlu0 %1145 }
 0x1e6   : > { %v1162_v4 = vpop.permute.xlu1 %1161 }
 0x1e8   : > { %v8961_v24 = vpop.permute.xlu0 %1147  ;;  %6222 = vmatpush3.bf16.xpose.msra.mxu1 %v1367_v18 }
 0x1e9   : > { %6867 = vmatprep.subr.msk.bf16.mxu1 %vm357_vm0, %v1158_v45 }
 0x1ea   : > { %v1164_v31 = vpop.permute.xlu1 %1163 }
 0x1ec   : > { %v6950_v29 = vpop.permute.xlu0 %6949 }
 0x1ed   : > { %v6952_v7 = vunpack.i.h.bf16 %v6950_v29  ;;  %v6951_v52 = vunpack.i.l.bf16 %v6950_v29 }
 0x1ee   : > { %v6945_v40 = vpop.permute.xlu1 %6944 }
 0x1ef   : > { %v6947_v53 = vunpack.i.h.bf16 %v6945_v40  ;;  %v6946_v41 = vunpack.i.l.bf16 %v6945_v40  ;;  %v8976_v58 = vpack.c.bf16 %v6952_v7, %v6951_v52 }
 0x1f0   : > { %v6960_v61 = vpop.permute.xlu0 %6959  ;;  %6224 = vmatpush3.bf16.xpose.msra.mxu1 %v1370_v25 }
 0x1f1   : > { %v8973_v46 = vpack.c.bf16 %v6947_v53, %v6946_v41  ;;  %6868 = vmatprep.subr.msk.bf16.mxu1 %vm357_vm0, %v1160_v34  ;;  %13514 = vst [vmem:[#allocation65_spill] sm:$0xff] %v8976_v58  ;;  %v6962_v0 = vunpack.i.h.bf16 %v6960_v61  ;;  %v6961_v55 = vunpack.i.l.bf16 %v6960_v61  ;;  %v1376_v34 = vsel %vm357_vm0, %v1146_v35, 0 }
 0x1f2   : > { %v6955_v60 = vpop.permute.xlu1 %6954 }
 0x1f3   : > { %13513 = vst [vmem:[#allocation64_spill] sm:$0xff] %v8973_v46  ;;  %v6957_v22 = vunpack.i.h.bf16 %v6955_v60  ;;  %v6956_v32 = vunpack.i.l.bf16 %v6955_v60  ;;  %6359 = vmatprep.subr.msk.bf16.mxu0 %vm8969_vm11, %v8973_v46  ;;  %v8986_v2 = vpack.c.bf16 %v6962_v0, %v6961_v55 }
 0x1f4   : > { %6360 = vmatpush3.bf16.msk.msra.mxu0 %vm8969_vm11, %v8976_v58  ;;  %v6980_v8 = vpop.permute.xlu0 %6979 }
 0x1f5   : > { %v8984_v51 = vpack.c.bf16 %v6957_v22, %v6956_v32  ;;  %13516 = vst [vmem:[#allocation67_spill] sm:$0xff] %v8986_v2  ;;  %v6982_v33 = vunpack.i.h.bf16 %v6980_v8  ;;  %v6981_v59 = vunpack.i.l.bf16 %v6980_v8  ;;  %v13537_v8 = vld [vmem:[#allocation33_spill] sm:$0xff] }
 0x1f6   : > { %v6965_v27 = vpop.permute.xlu1 %6964 }
 0x1f7   : > { %13515 = vst [vmem:[#allocation66_spill] sm:$0xff] %v8984_v51  ;;  %v6967_v37 = vunpack.i.h.bf16 %v6965_v27  ;;  %v6966_v20 = vunpack.i.l.bf16 %v6965_v27  ;;  %6361 = vmatprep.subr.msk.bf16.mxu0 %vm8969_vm11, %v8984_v51  ;;  %v9010_v18 = vpack.c.bf16 %v6982_v33, %v6981_v59  ;;  %v13540_v33 = vld [vmem:[#allocation40_spill] sm:$0xff]  ;;  %v13541_v59 = vld [vmem:[#allocation49_spill] sm:$0xff] }
 0x1f8   : > { %6226 = vmatpush3.bf16.xpose.msra.mxu1 %v1373_v10  ;;  %6362 = vmatpush3.bf16.msk.msra.mxu0 %vm8969_vm11, %v8986_v2  ;;  %v7000_v53 = vpop.permute.xlu0 %6999 }
 0x1f9   : > { %v8995_v17 = vpack.c.bf16 %v6967_v37, %v6966_v20  ;;  %6869 = vmatprep.subr.msk.bf16.mxu1 %vm357_vm0, %v1162_v4  ;;  %13520 = vst [vmem:[#allocation71_spill] sm:$0xff] %v9010_v18  ;;  %v7002_v0 = vunpack.i.h.bf16 %v7000_v53  ;;  %v7001_v55 = vunpack.i.l.bf16 %v7000_v53 }
 0x1fa   : > { %v6970_v30 = vpop.permute.xlu1 %6969 }
 0x1fb   : > { %13517 = vst [vmem:[#allocation68_spill] sm:$0xff] %v8995_v17  ;;  %v6972_v28 = vunpack.i.h.bf16 %v6970_v30  ;;  %v6971_v23 = vunpack.i.l.bf16 %v6970_v30  ;;  %6363 = vmatprep.subr.msk.bf16.mxu0 %vm8969_vm11, %v8995_v17  ;;  %v9032_v37 = vpack.c.bf16 %v7002_v0, %v7001_v55  ;;  %v2080_v0 = vld [vmem:[#allocation5 + $0x10] sm:$0xff] }
 0x1fd   : > { %v9001_v9 = vpack.c.bf16 %v6972_v28, %v6971_v23  ;;  %13524 = vst [vmem:[#allocation75_spill] sm:$0xff] %v9032_v37  ;;  %v13538_v28 = vld [vmem:[#allocation34_spill] sm:$0xff]  ;;  %v13539_v23 = vld [vmem:[#allocation41_spill] sm:$0xff] }
 0x1fe   : > { %v6975_v45 = vpop.permute.xlu1 %6974 }
 0x1ff   : > { %13518 = vst [vmem:[#allocation69_spill] sm:$0xff] %v9001_v9  ;;  %v6977_v14 = vunpack.i.h.bf16 %v6975_v45  ;;  %v6976_v1 = vunpack.i.l.bf16 %v6975_v45  ;;  %6364 = vmatpush3.bf16.msk.msra.mxu0 %vm8969_vm11, %v9001_v9  ;;  %v2078_v45 = vld [vmem:[#allocation5] sm:$0xff] }
 0x200   : > { %6228 = vmatpush3.bf16.xpose.msra.mxu1 %v1376_v34  ;;  %v13542_v34 = vld [vmem:[#allocation48_spill] sm:$0xff] }
 0x201   : > { %v9007_v4 = vpack.c.bf16 %v6977_v14, %v6976_v1  ;;  %6870 = vmatprep.subr.msk.bf16.mxu1 %vm357_vm0, %v1164_v31  ;;  %v1379_v31 = vsel %vm357_vm0, %v8961_v24, 0  ;;  %v2079_v14 = vld [vmem:[#allocation5 + $0x8] sm:$0xff]  ;;  %v2206_v1 = vunpack.c.l.bf16 %v2078_v45 }
 0x202   : > { %v6985_v29 = vpop.permute.xlu1 %6984 }
 0x203   : > { %13519 = vst [vmem:[#allocation70_spill] sm:$0xff] %v9007_v4  ;;  %v6987_v7 = vunpack.i.h.bf16 %v6985_v29  ;;  %v6986_v52 = vunpack.i.l.bf16 %v6985_v29  ;;  %6365 = vmatprep.subr.msk.bf16.mxu0 %vm8969_vm11, %v9007_v4  ;;  %v2207_v29 = vunpack.c.h.bf16 %v2078_v45 }
 0x204   : > { %6366 = vmatpush3.bf16.msk.msra.mxu0 %vm8969_vm11, %v9010_v18 }
 0x205   : > { %v9018_v40 = vpack.c.bf16 %v6987_v7, %v6986_v52  ;;  %v2208_v7 = vunpack.c.l.bf16 %v2079_v14 }
 0x206   : > { %v6990_v35 = vpop.permute.xlu1 %6989 }
 0x207   : > { %13521 = vst [vmem:[#allocation72_spill] sm:$0xff] %v9018_v40  ;;  %v6992_v41 = vunpack.i.h.bf16 %v6990_v35  ;;  %v6991_v61 = vunpack.i.l.bf16 %v6990_v35  ;;  %6367 = vmatprep.subr.msk.bf16.mxu0 %vm8969_vm11, %v9018_v40  ;;  %v2209_v35 = vunpack.c.h.bf16 %v2079_v14 }
 0x208   : > { %6230 = vmatpush3.bf16.xpose.msra.mxu1 %v1379_v31 }
 0x209   : > { %v9025_v25 = vpack.c.bf16 %v6992_v41, %v6991_v61 }
 0x20a   : > { %v6995_v60 = vpop.permute.xlu1 %6994 }
 0x20b   : > { %13522 = vst [vmem:[#allocation73_spill] sm:$0xff] %v9025_v25  ;;  %v6997_v22 = vunpack.i.h.bf16 %v6995_v60  ;;  %v6996_v32 = vunpack.i.l.bf16 %v6995_v60  ;;  %6368 = vmatpush3.bf16.msk.msra.mxu0 %vm8969_vm11, %v9025_v25 }
 0x20d   : > { %v9030_v27 = vpack.c.bf16 %v6997_v22, %v6996_v32 }
 0x20e   : > { %v7005_v20 = vpop.permute.xlu1 %7004 }
 0x20f   : > { %13523 = vst [vmem:[#allocation74_spill] sm:$0xff] %v9030_v27  ;;  %v7007_v10 = vunpack.i.h.bf16 %v7005_v20  ;;  %v7006_v30 = vunpack.i.l.bf16 %v7005_v20  ;;  %6232 = vmatmul.mubr.msk.bf16.vlgmr.msra.gmra.mrb[0].mxu1 %vm357_vm0, %v8260_v13  ;;  %6369 = vmatprep.subr.msk.bf16.mxu0 %vm8969_vm11, %v9030_v27  ;;  %v13527_v13 = vld [vmem:[#allocation47_spill] sm:$0xff]  ;;  %v2210_v20 = vunpack.c.l.bf16 %v2080_v0  ;;  %v2237_v27 = vunpack.c.h.bf16 %v2093_v57 }
 0x210   : > { %6233 = vmatprep.mubr.msk.bf16.mxu1 %vm357_vm0, %v8251_v11  ;;  %6370 = vmatpush3.bf16.msk.msra.mxu0 %vm8969_vm11, %v9032_v37 }
 0x211   : > { %v9044_v24 = vpack.c.bf16 %v7007_v10, %v7006_v30  ;;  %v2081_v10 = vld [vmem:[#allocation5 + $0x18] sm:$0xff]  ;;  %v13543_v30 = vld [vmem:[#allocation57_spill] sm:$0xff] }
 0x213   : > { %13525 = vst [vmem:[#allocation76_spill] sm:$0xff] %v9044_v24  ;;  %6371 = vmatprep.subr.msk.bf16.mxu0 %vm8969_vm11, %v9044_v24 }
 0x217   : > { %6234 = vmatmul.mubr.msk.bf16.gmra.mrb[4].mxu1 %vm357_vm0, %v8251_v11  ;;  %v13526_v11 = vld [vmem:[#allocation39_spill] sm:$0xff] }
 0x218   : > { %6235 = vmatprep.mubr.msk.bf16.mxu1 %vm357_vm0, %v8348_v49 }
 0x21f   : > { %6236 = vmatmul.mubr.msk.bf16.gmra.mrb[8].mxu1 %vm357_vm0, %v8348_v49  ;;  %v13530_v49 = vld [vmem:[#allocation54_spill] sm:$0xff] }
 0x220   : > { %6237 = vmatprep.mubr.msk.bf16.mxu1 %vm357_vm0, %v8346_v48 }
 0x227   : > { %6238 = vmatmul.mubr.msk.bf16.gmra.mrb[12].mxu1 %vm357_vm0, %v8346_v48  ;;  %v13528_v48 = vld [vmem:[#allocation46_spill] sm:$0xff] }
 0x228   : > { %6239 = vmatprep.mubr.msk.bf16.mxu1 %vm357_vm0, %v8432_v47 }
 0x22f   : > { %6240 = vmatmul.mubr.msk.bf16.gmra.mrb[16].mxu1 %vm357_vm0, %v8432_v47  ;;  %v13532_v47 = vld [vmem:[#allocation14_spill] sm:$0xff] }
 0x230   : > { %6241 = vmatprep.mubr.msk.bf16.mxu1 %vm357_vm0, %v8430_v44 }
 0x237   : > { %6242 = vmatmul.mubr.msk.bf16.gmra.mrb[20].mxu1 %vm357_vm0, %v8430_v44  ;;  %v13531_v44 = vld [vmem:[#allocation15_spill] sm:$0xff] }
 0x238   : > { %6243 = vmatprep.mubr.msk.bf16.mxu1 %vm357_vm0, %v8518_v36 }
 0x23f   : > { %6244 = vmatmul.mubr.msk.bf16.gmra.mrb[24].mxu1 %vm357_vm0, %v8518_v36  ;;  %v13534_v36 = vld [vmem:[#allocation19_spill] sm:$0xff] }
 0x240   : > { %6245 = vmatprep.mubr.msk.bf16.mxu1 %vm357_vm0, %v8513_v5 }
 0x247   : > { %6246 = vmatmul.mubr.msk.bf16.gmra.mrb[28].mxu1 %vm357_vm0, %v8513_v5  ;;  %v13529_v5 = vld [vmem:[#allocation55_spill] sm:$0xff] }
 0x248   : > { %6247 = vmatprep.mubr.msk.bf16.mxu1 %vm357_vm0, %v8601_v16 }
 0x24f   : > { %6248 = vmatmul.mubr.msk.bf16.gmra.mrb[32].mxu1 %vm357_vm0, %v8601_v16  ;;  %v13533_v16 = vld [vmem:[#allocation20_spill] sm:$0xff] }
 0x250   : > { %6249 = vmatprep.mubr.msk.bf16.mxu1 %vm357_vm0, %v13526_v11 }
 0x257   : > { %6250 = vmatmul.mubr.msk.bf16.gmra.mrb[36].mxu1 %vm357_vm0, %v13526_v11 }
 0x258   : > { %6251 = vmatprep.mubr.msk.bf16.mxu1 %vm357_vm0, %v13527_v13 }
 0x25f   : > { %6252 = vmatmul.mubr.msk.bf16.gmra.mrb[40].mxu1 %vm357_vm0, %v13527_v13  ;;  %v2211_v13 = vunpack.c.h.bf16 %v2080_v0 }
 0x260   : > { %6253 = vmatprep.mubr.msk.bf16.mxu1 %vm357_vm0, %v13528_v48 }
 0x267   : > { %6254 = vmatmul.mubr.msk.bf16.gmra.mrb[44].mxu1 %vm357_vm0, %v13528_v48 }
 0x268   : > { %6255 = vmatprep.mubr.msk.bf16.mxu1 %vm357_vm0, %v13529_v5 }
 0x26f   : > { %6256 = vmatmul.mubr.msk.bf16.gmra.mrb[48].mxu1 %vm357_vm0, %v13529_v5  ;;  %v2212_v5 = vunpack.c.l.bf16 %v2081_v10 }
 0x270   : > { %6257 = vmatprep.mubr.msk.bf16.mxu1 %vm357_vm0, %v13530_v49 }
 0x277   : > { %6258 = vmatmul.mubr.msk.bf16.gmra.mrb[52].mxu1 %vm357_vm0, %v13530_v49  ;;  %v2213_v49 = vunpack.c.h.bf16 %v2081_v10  ;;  %v13546_v10 = vld [vmem:[#allocation30_spill] sm:$0xff] }
 0x278   : > { %6259 = vmatprep.mubr.msk.bf16.mxu1 %vm357_vm0, %v8866_v3 }
 0x27f   : > { %6260 = vmatmul.mubr.msk.bf16.gmra.mrb[56].mxu1 %vm357_vm0, %v8866_v3  ;;  %v13536_v3 = vld [vmem:[#allocation25_spill] sm:$0xff] }
 0x280   : > { %6261 = vmatprep.mubr.msk.bf16.mxu1 %vm357_vm0, %v8864_v15 }
 0x287   : > { %6262 = vmatmul.mubr.msk.bf16.gmra.mrb[60].mxu1 %vm357_vm0, %v8864_v15  ;;  %v13535_v15 = vld [vmem:[#allocation26_spill] sm:$0xff] }
 0x288   : > { %6263 = vmatprep.mubr.msk.bf16.mxu1 %vm357_vm0, %v13531_v44 }
 0x28f   : > { %6264 = vmatmul.mubr.msk.bf16.gmra.mrb[64].mxu1 %vm357_vm0, %v13531_v44 }
 0x290   : > { %6265 = vmatprep.mubr.msk.bf16.mxu1 %vm357_vm0, %v13532_v47 }
 0x297   : > { %6266 = vmatmul.mubr.msk.bf16.gmra.mrb[68].mxu1 %vm357_vm0, %v13532_v47 }
 0x298   : > { %6267 = vmatprep.mubr.msk.bf16.mxu1 %vm357_vm0, %v13533_v16 }
 0x29f   : > { %6268 = vmatmul.mubr.msk.bf16.gmra.mrb[72].mxu1 %vm357_vm0, %v13533_v16 }
 0x2a0   : > { %6269 = vmatprep.mubr.msk.bf16.mxu1 %vm357_vm0, %v13534_v36 }
 0x2a7   : > { %6270 = vmatmul.mubr.msk.bf16.gmra.mrb[76].mxu1 %vm357_vm0, %v13534_v36 }
 0x2a8   : > { %6271 = vmatprep.mubr.msk.bf16.mxu1 %vm357_vm0, %v13535_v15 }
 0x2af   : > { %6272 = vmatmul.mubr.msk.bf16.gmra.mrb[80].mxu1 %vm357_vm0, %v13535_v15 }
 0x2b0   : > { %6273 = vmatprep.mubr.msk.bf16.mxu1 %vm357_vm0, %v13536_v3 }
 0x2b7   : > { %6274 = vmatmul.mubr.msk.bf16.gmra.mrb[84].mxu1 %vm357_vm0, %v13536_v3 }
 0x2b8   : > { %6275 = vmatprep.mubr.msk.bf16.mxu1 %vm357_vm0, %v13537_v8 }
 0x2bf   : > { %6276 = vmatmul.mubr.msk.bf16.gmra.mrb[88].mxu1 %vm357_vm0, %v13537_v8 }
 0x2c0   : > { %6277 = vmatprep.mubr.msk.bf16.mxu1 %vm357_vm0, %v13538_v28 }
 0x2c7   : > { %6278 = vmatmul.mubr.msk.bf16.gmra.mrb[92].mxu1 %vm357_vm0, %v13538_v28 }
 0x2c8   : > { %6279 = vmatprep.mubr.msk.bf16.mxu1 %vm357_vm0, %v13539_v23 }
 0x2cf   : > { %6280 = vmatmul.mubr.msk.bf16.gmra.mrb[96].mxu1 %vm357_vm0, %v13539_v23  ;;  %v2083_v23 = vld [vmem:[#allocation5 + $0x28] sm:$0xff] }
 0x2d0   : > { %6281 = vmatprep.mubr.msk.bf16.mxu1 %vm357_vm0, %v13540_v33 }
 0x2d7   : > { %6282 = vmatmul.mubr.msk.bf16.gmra.mrb[100].mxu1 %vm357_vm0, %v13540_v33  ;;  %v13544_v33 = vld [vmem:[#allocation56_spill] sm:$0xff] }
 0x2d8   : > { %6283 = vmatprep.mubr.msk.bf16.mxu1 %vm357_vm0, %v13541_v59 }
 0x2df   : > { %6284 = vmatmul.mubr.msk.bf16.gmra.mrb[104].mxu1 %vm357_vm0, %v13541_v59  ;;  %v2216_v59 = vunpack.c.l.bf16 %v2083_v23 }
 0x2e0   : > { %6285 = vmatprep.mubr.msk.bf16.mxu1 %vm357_vm0, %v13542_v34 }
 0x2e2   : > { %v1439_v52 = vpop.f32.mrb[0].mxu1 }
 0x2e3   : > { %v1441_v53 = vpop.f32.mrb[1].mxu1  ;;  %v9153_v41 = vadd.f32 %v2206_v1, %v1439_v52  ;;  %v2217_v1 = vunpack.c.h.bf16 %v2083_v23 }
 0x2e4   : > { %v1443_v61 = vpop.f32.mrb[2].mxu1  ;;  %v9155_v31 = vadd.f32 %v2207_v29, %v1441_v53  ;;  %v2085_v53 = vld [vmem:[#allocation5 + $0x38] sm:$0xff] }
 0x2e5   : > { %v1445_v55 = vpop.f32.mrb[3].mxu1  ;;  %v9157_v60 = vadd.f32 %v2208_v7, %v1443_v61  ;;  %v2220_v0 = vunpack.c.l.bf16 %v2085_v53 }
 0x2e6   : > { %v2718_v22 = vmax.f32 %v9153_v41, %v9155_v31  ;;  %v9161_v32 = vadd.f32 %v2209_v35, %v1445_v55 }
 0x2e7   : > { %6286 = vmatmul.mubr.msk.bf16.gmra.mrb[108].mxu1 %vm357_vm0, %v13542_v34 }
 0x2e8   : > { %6287 = vmatprep.mubr.msk.bf16.mxu1 %vm357_vm0, %v13543_v30  ;;  %2719 = vmax.xlane.f32.xlu0 %v2718_v22  ;;  %v2721_v11 = vmax.f32 %v9157_v60, %v9161_v32  ;;  %v2221_v22 = vunpack.c.h.bf16 %v2085_v53 }
 0x2ea   : > { %2722 = vmax.xlane.f32.xlu1 %v2721_v11  ;;  %v1449_v48 = vpop.f32.mrb[4].mxu1 }
 0x2eb   : > { %v1451_v44 = vpop.f32.mrb[5].mxu1  ;;  %v9169_v47 = vadd.f32 %v2210_v20, %v1449_v48  ;;  %v13545_v20 = vld [vmem:[#allocation32_spill] sm:$0xff] }
 0x2ec   : > { %v1453_v16 = vpop.f32.mrb[6].mxu1  ;;  %v9171_v36 = vadd.f32 %v2211_v13, %v1451_v44  ;;  %v2087_v44 = vld [vmem:[#allocation5 + $0x48] sm:$0xff] }
 0x2ed   : > { %v1455_v15 = vpop.f32.mrb[7].mxu1  ;;  %v9175_v8 = vadd.f32 %v2212_v5, %v1453_v16  ;;  %v2225_v23 = vunpack.c.h.bf16 %v2087_v44 }
 0x2ee   : > { %v2724_v3 = vmax.f32 %v9169_v47, %v9171_v36  ;;  %v9177_v28 = vadd.f32 %v2213_v49, %v1455_v15  ;;  %v2224_v15 = vunpack.c.l.bf16 %v2087_v44  ;;  %v13551_v44 = vld [vmem:[#allocation17_spill] sm:$0xff] }
 0x2ef   : > { %6288 = vmatmul.mubr.msk.bf16.gmra.mrb[112].mxu1 %vm357_vm0, %v13543_v30  ;;  %v13547_v30 = vpack.i.bf16 %v13545_v20, %v13546_v10 }
 0x2f0   : > { %6289 = vmatprep.mubr.msk.bf16.mxu1 %vm357_vm0, %v13544_v33  ;;  %2725 = vmax.xlane.f32.xlu0 %v2724_v3  ;;  %v2727_v14 = vmax.f32 %v9175_v8, %v9177_v28 }
 0x2f2   : > { %v9183_v45 = vpop.f32.mrb[8].mxu1 }
 0x2f3   : > { %v9187_v34 = vpop.f32.mrb[9].mxu1 }
 0x2f4   : > { %2728 = vmax.xlane.f32.xlu0 %v2727_v14  ;;  %v1463_v29 = vpop.f32.mrb[10].mxu1 }
 0x2f5   : > { %v9189_v7 = vadd.f32 %v2216_v59, %v1463_v29  ;;  %v1465_v52 = vpop.f32.mrb[11].mxu1 }
 0x2f6   : > { %v9191_v35 = vadd.f32 %v2217_v1, %v1465_v52  ;;  %v13548_v52 = vld [vmem:[#allocation16_spill] sm:$0xff] }
 0x2f7   : > { %6290 = vmatmul.mubr.msk.bf16.gmra.mrb[116].mxu1 %vm357_vm0, %v13544_v33 }
 0x2f8   : > { %6291 = vmatprep.mubr.msk.bf16.mxu1 %vm357_vm0, %v8879_v50  ;;  %v2733_v61 = vmax.f32 %v9189_v7, %v9191_v35 }
 0x2fa   : > { %2734 = vmax.xlane.f32.xlu0 %v2733_v61  ;;  %v9199_v55 = vpop.f32.mrb[12].mxu1 }
 0x2fb   : > { %7009 = vrot.lane.b32.xlu1 %v13547_v30, %s7932_s30  ;;  %v9205_v11 = vpop.f32.mrb[13].mxu1 }
 0x2fc   : > { %v1473_v13 = vpop.f32.mrb[14].mxu1 }
 0x2fd   : > { %v9207_v48 = vadd.f32 %v2220_v0, %v1473_v13  ;;  %v1475_v5 = vpop.f32.mrb[15].mxu1 }
 0x2fe   : > { %v9209_v49 = vadd.f32 %v2221_v22, %v1475_v5 }
 0x2ff   : > { %6292 = vmatmul.mubr.msk.bf16.gmra.mrb[120].mxu1 %vm357_vm0, %v8879_v50  ;;  %v2089_v50 = vld [vmem:[#allocation5 + $0x58] sm:$0xff] }
 0x300   : > { %6293 = vmatprep.mubr.msk.bf16.mxu1 %vm357_vm0, %v8870_v62  ;;  %v2739_v16 = vmax.f32 %v9207_v48, %v9209_v49  ;;  %v2228_v61 = vunpack.c.l.bf16 %v2089_v50  ;;  %v2229_v22 = vunpack.c.h.bf16 %v2089_v50 }
 0x302   : > { %2740 = vmax.xlane.f32.xlu0 %v2739_v16  ;;  %v9217_v3 = vpop.f32.mrb[16].mxu1 }
 0x303   : > { %v9219_v33 = vpop.f32.mrb[17].mxu1 }
 0x304   : > { %v1483_v59 = vpop.f32.mrb[18].mxu1 }
 0x305   : > { %v9221_v14 = vadd.f32 %v2224_v15, %v1483_v59  ;;  %v1485_v1 = vpop.f32.mrb[19].mxu1 }
 0x306   : > { %v9223_v29 = vadd.f32 %v2225_v23, %v1485_v1  ;;  %v2082_v23 = vld [vmem:[#allocation5 + $0x20] sm:$0xff] }
 0x307   : > { %6294 = vmatmul.mubr.msk.bf16.gmra.mrb[124].mxu1 %vm357_vm0, %v8870_v62  ;;  %v2091_v62 = vld [vmem:[#allocation5 + $0x68] sm:$0xff] }
 0x308   : > { %6295 = vmatprep.mubr.msk.bf16.mxu1 %vm357_vm0, %v13548_v52  ;;  %v2745_v53 = vmax.f32 %v9221_v14, %v9223_v29  ;;  %v2232_v15 = vunpack.c.l.bf16 %v2091_v62  ;;  %v2233_v1 = vunpack.c.h.bf16 %v2091_v62 }
 0x30a   : > { %2746 = vmax.xlane.f32.xlu0 %v2745_v53  ;;  %v9231_v0 = vpop.f32.mrb[20].mxu1 }
 0x30b   : > { %v9233_v20 = vpop.f32.mrb[21].mxu1 }
 0x30c   : > { %v1493_v10 = vpop.f32.mrb[22].mxu1 }
 0x30d   : > { %v9235_v30 = vadd.f32 %v2228_v61, %v1493_v10  ;;  %v1495_v13 = vpop.f32.mrb[23].mxu1  ;;  %v2214_v61 = vunpack.c.l.bf16 %v2082_v23  ;;  %v2084_v10 = vld [vmem:[#allocation5 + $0x30] sm:$0xff] }
 0x30e   : > { %v9237_v5 = vadd.f32 %v2229_v22, %v1495_v13  ;;  %v2215_v22 = vunpack.c.h.bf16 %v2082_v23  ;;  %v2218_v24 = vunpack.c.l.bf16 %v2084_v10  ;;  %v2219_v23 = vunpack.c.h.bf16 %v2084_v10 }
 0x30f   : > { %13549 = vst [vmem:[#allocation39_spill] sm:$0xff] %v9235_v30  ;;  %6296 = vmatmul.mubr.msk.bf16.gmra.mrb[128].mxu1 %vm357_vm0, %v13548_v52  ;;  %v9260_v37 = vadd.f32 %v2214_v61, %v9183_v45  ;;  %v2088_v45 = vld [vmem:[#allocation5 + $0x50] sm:$0xff] }
 0x310   : > { %13550 = vst [vmem:[#allocation47_spill] sm:$0xff] %v9237_v5  ;;  %6297 = vmatprep.mubr.msk.bf16.mxu1 %vm357_vm0, %v13551_v44  ;;  %v2751_v16 = vmax.f32 %v9235_v30, %v9237_v5  ;;  %v9266_v4 = vadd.f32 %v2218_v24, %v9199_v55  ;;  %v9269_v9 = vadd.f32 %v2219_v23, %v9205_v11  ;;  %v2227_v24 = vunpack.c.h.bf16 %v2088_v45  ;;  %v13557_v55 = vld [vmem:[#allocation23_spill] sm:$0xff] }
 0x312   : > { %2752 = vmax.xlane.f32.xlu0 %v2751_v16  ;;  %v9245_v59 = vpop.f32.mrb[24].mxu1  ;;  %v13554_v16 = vld [vmem:[#allocation21_spill] sm:$0xff] }
 0x313   : > { %v9247_v50 = vpop.f32.mrb[25].mxu1 }
 0x314   : > { %v1503_v53 = vpop.f32.mrb[26].mxu1 }
 0x315   : > { %v9249_v13 = vadd.f32 %v2232_v15, %v1503_v53  ;;  %v1505_v52 = vpop.f32.mrb[27].mxu1  ;;  %v9263_v15 = vadd.f32 %v2215_v22, %v9187_v34  ;;  %v2236_v53 = vunpack.c.l.bf16 %v2093_v57  ;;  %v2095_v57 = vld [vmem:[#allocation5 + $0x88] sm:$0xff] }
 0x316   : > { %v9251_v12 = vadd.f32 %v2233_v1, %v1505_v52  ;;  %v2086_v1 = vld [vmem:[#allocation5 + $0x40] sm:$0xff] }
 0x317   : > { %13552 = vst [vmem:[#allocation46_spill] sm:$0xff] %v9249_v13  ;;  %6298 = vmatmul.mubr.msk.bf16.gmra.mrb[132].mxu1 %vm357_vm0, %v13551_v44  ;;  %v2222_v25 = vunpack.c.l.bf16 %v2086_v1  ;;  %v2223_v40 = vunpack.c.h.bf16 %v2086_v1  ;;  %v2730_v22 = vmax.f32 %v9260_v37, %v9263_v15  ;;  %v2736_v1 = vmax.f32 %v9266_v4, %v9269_v9 }
 0x318   : > { %13553 = vst [vmem:[#allocation55_spill] sm:$0xff] %v9251_v12  ;;  %6299 = vmatprep.mubr.msk.bf16.mxu1 %vm357_vm0, %v13554_v16  ;;  %v2757_v62 = vmax.f32 %v9249_v13, %v9251_v12 }
 0x319   : > { %v9284_v11 = vadd.f32 %v2222_v25, %v9217_v3  ;;  %v9287_v23 = vadd.f32 %v2223_v40, %v9219_v33  ;;  %v9295_v25 = vadd.f32 %v2227_v24, %v9233_v20  ;;  %v2092_v40 = vld [vmem:[#allocation5 + $0x70] sm:$0xff] }
 0x31a   : > { %2758 = vmax.xlane.f32.xlu0 %v2757_v62  ;;  %v1509_v52 = vpop.f32.mrb[28].mxu1  ;;  %v2226_v62 = vunpack.c.l.bf16 %v2088_v45  ;;  %v2241_v45 = vunpack.c.h.bf16 %v2095_v57 }
 0x31b   : > { %v1511_v44 = vpop.f32.mrb[29].mxu1 }
 0x31c   : > { %v1513_v18 = vpop.f32.mrb[30].mxu1  ;;  %v9292_v51 = vadd.f32 %v2226_v62, %v9231_v0  ;;  %v2235_v0 = vunpack.c.h.bf16 %v2092_v40  ;;  %v13560_v62 = vld [vmem:[#allocation27_spill] sm:$0xff] }
 0x31d   : > { %v9271_v61 = vadd.f32 %v2236_v53, %v1513_v18  ;;  %v1515_v34 = vpop.f32.mrb[31].mxu1 }
 0x31e   : > { %v9275_v10 = vadd.f32 %v2237_v27, %v1515_v34  ;;  %v2090_v27 = vld [vmem:[#allocation5 + $0x60] sm:$0xff] }
 0x31f   : > { %13555 = vst [vmem:[#allocation54_spill] sm:$0xff] %v9271_v61  ;;  %6300 = vmatmul.mubr.msk.bf16.gmra.mrb[136].mxu1 %vm357_vm0, %v13554_v16  ;;  %2731 = vmax.xlane.f32.xlu1 %v2730_v22  ;;  %v2240_v16 = vunpack.c.l.bf16 %v2095_v57  ;;  %v2230_v22 = vunpack.c.l.bf16 %v2090_v27  ;;  %v2231_v17 = vunpack.c.h.bf16 %v2090_v27  ;;  %v2097_v57 = vld [vmem:[#allocation5 + $0x98] sm:$0xff]  ;;  %v2234_v27 = vunpack.c.l.bf16 %v2092_v40 }
 0x320   : > { %13556 = vst [vmem:[#allocation15_spill] sm:$0xff] %v9275_v10  ;;  %6301 = vmatprep.mubr.msk.bf16.mxu1 %vm357_vm0, %v13557_v55  ;;  %v2763_v18 = vmax.f32 %v9271_v61, %v9275_v10  ;;  %v2245_v40 = vunpack.c.h.bf16 %v2097_v57 }
 0x321   : > { %v9310_v20 = vadd.f32 %v2230_v22, %v9245_v59  ;;  %v9313_v24 = vadd.f32 %v2231_v17, %v9247_v50  ;;  %v9319_v59 = vadd.f32 %v2235_v0, %v1511_v44  ;;  %v2096_v22 = vld [vmem:[#allocation5 + $0x90] sm:$0xff]  ;;  %v2098_v0 = vld [vmem:[#allocation5 + $0xa0] sm:$0xff] }
 0x322   : > { %2764 = vmax.xlane.f32.xlu0 %v2763_v18  ;;  %v1519_v53 = vpop.f32.mrb[32].mxu1  ;;  %v2742_v18 = vmax.f32 %v9284_v11, %v9287_v23 }
 0x323   : > { %2737 = vmax.xlane.f32.xlu1 %v2736_v1  ;;  %v1521_v34 = vpop.f32.mrb[33].mxu1  ;;  %v2094_v1 = vld [vmem:[#allocation5 + $0x80] sm:$0xff] }
 0x324   : > { %v1523_v2 = vpop.f32.mrb[34].mxu1  ;;  %v2239_v46 = vunpack.c.h.bf16 %v2094_v1 }
 0x325   : > { %v9297_v3 = vadd.f32 %v2240_v16, %v1523_v2  ;;  %v1525_v33 = vpop.f32.mrb[35].mxu1  ;;  %v2748_v16 = vmax.f32 %v9292_v51, %v9295_v25 }
 0x326   : > { %v9301_v58 = vadd.f32 %v2241_v45, %v1525_v33 }
 0x327   : > { %13558 = vst [vmem:[#allocation14_spill] sm:$0xff] %v9297_v3  ;;  %6302 = vmatmul.mubr.msk.bf16.gmra.mrb[140].mxu1 %vm357_vm0, %v13557_v55  ;;  %2743 = vmax.xlane.f32.xlu1 %v2742_v18  ;;  %v2244_v55 = vunpack.c.l.bf16 %v2097_v57  ;;  %v2238_v18 = vunpack.c.l.bf16 %v2094_v1  ;;  %v2242_v57 = vunpack.c.l.bf16 %v2096_v22  ;;  %v2243_v1 = vunpack.c.h.bf16 %v2096_v22 }
 0x328   : > { %13559 = vst [vmem:[#allocation20_spill] sm:$0xff] %v9301_v58  ;;  %6303 = vmatprep.mubr.msk.bf16.mxu1 %vm357_vm0, %v13560_v62  ;;  %v2769_v2 = vmax.f32 %v9297_v3, %v9301_v58  ;;  %v9317_v58 = vadd.f32 %v2234_v27, %v1509_v52  ;;  %v2754_v3 = vmax.f32 %v9310_v20, %v9313_v24  ;;  %v13563_v52 = vld [vmem:[#allocation29_spill] sm:$0xff]  ;;  %v2246_v22 = vunpack.c.l.bf16 %v2098_v0 }
 0x329   : > { %v9333_v44 = vadd.f32 %v2238_v18, %v1519_v53  ;;  %v9335_v27 = vadd.f32 %v2239_v46, %v1521_v34  ;;  %v2100_v18 = vld [vmem:[#allocation5 + $0xb0] sm:$0xff] }
 0x32a   : > { %2770 = vmax.xlane.f32.xlu0 %v2769_v2  ;;  %v1529_v45 = vpop.f32.mrb[36].mxu1  ;;  %v2099_v2 = vld [vmem:[#allocation5 + $0xa8] sm:$0xff] }
 0x32b   : > { %2749 = vmax.xlane.f32.xlu1 %v2748_v16  ;;  %v1531_v33 = vpop.f32.mrb[37].mxu1  ;;  %v2760_v16 = vmax.f32 %v9317_v58, %v9319_v59  ;;  %v9339_v39 = vadd.f32 %v2242_v57, %v1529_v45  ;;  %v2766_v34 = vmax.f32 %v9333_v44, %v9335_v27 }
 0x32c   : > { %v1533_v54 = vpop.f32.mrb[38].mxu1 }
 0x32d   : > { %v9321_v17 = vadd.f32 %v2244_v55, %v1533_v54  ;;  %v1535_v50 = vpop.f32.mrb[39].mxu1  ;;  %v2248_v55 = vunpack.c.l.bf16 %v2099_v2 }
 0x32e   : > { %v9325_v10 = vadd.f32 %v2245_v40, %v1535_v50  ;;  %v2247_v50 = vunpack.c.h.bf16 %v2098_v0 }
 0x32f   : > { %13561 = vst [vmem:[#allocation19_spill] sm:$0xff] %v9321_v17  ;;  %6304 = vmatmul.mubr.msk.bf16.gmra.mrb[144].mxu1 %vm357_vm0, %v13560_v62  ;;  %2755 = vmax.xlane.f32.xlu1 %v2754_v3  ;;  %v2249_v3 = vunpack.c.h.bf16 %v2099_v2  ;;  %v13566_v2 = vld [vmem:[#allocation37_spill] sm:$0xff] }
 0x330   : > { %13562 = vst [vmem:[#allocation26_spill] sm:$0xff] %v9325_v10  ;;  %6305 = vmatprep.mubr.msk.bf16.mxu1 %vm357_vm0, %v13563_v52  ;;  %v2775_v54 = vmax.f32 %v9321_v17, %v9325_v10  ;;  %v9341_v10 = vadd.f32 %v2243_v1, %v1531_v33  ;;  %v2251_v33 = vunpack.c.h.bf16 %v2100_v18 }
 0x332   : > { %2776 = vmax.xlane.f32.xlu0 %v2775_v54  ;;  %v1539_v62 = vpop.f32.mrb[40].mxu1  ;;  %v2101_v54 = vld [vmem:[#allocation5 + $0xb8] sm:$0xff]  ;;  %v2772_v0 = vmax.f32 %v9339_v39, %v9341_v10 }
 0x333   : > { %2761 = vmax.xlane.f32.xlu1 %v2760_v16  ;;  %v1541_v40 = vpop.f32.mrb[41].mxu1  ;;  %v9355_v57 = vadd.f32 %v2246_v22, %v1539_v62  ;;  %v2252_v16 = vunpack.c.l.bf16 %v2101_v54 }
 0x334   : > { %v1543_v61 = vpop.f32.mrb[42].mxu1  ;;  %v9357_v1 = vadd.f32 %v2247_v50, %v1541_v40  ;;  %v2103_v50 = vld [vmem:[#allocation5 + $0xc8] sm:$0xff] }
 0x335   : > { %v9343_v53 = vadd.f32 %v2248_v55, %v1543_v61  ;;  %v1545_v46 = vpop.f32.mrb[43].mxu1  ;;  %v2250_v61 = vunpack.c.l.bf16 %v2100_v18 }
 0x336   : > { %v9347_v17 = vadd.f32 %v2249_v3, %v1545_v46  ;;  %v2778_v40 = vmax.f32 %v9355_v57, %v9357_v1 }
 0x337   : > { %13564 = vst [vmem:[#allocation25_spill] sm:$0xff] %v9343_v53  ;;  %6306 = vmatmul.mubr.msk.bf16.gmra.mrb[148].mxu1 %vm357_vm0, %v13563_v52  ;;  %2767 = vmax.xlane.f32.xlu1 %v2766_v34  ;;  %v2253_v52 = vunpack.c.h.bf16 %v2101_v54  ;;  %v2102_v34 = vld [vmem:[#allocation5 + $0xc0] sm:$0xff] }
 0x338   : > { %13565 = vst [vmem:[#allocation33_spill] sm:$0xff] %v9347_v17  ;;  %6307 = vmatprep.mubr.msk.bf16.mxu1 %vm357_vm0, %v13566_v2  ;;  %v2781_v45 = vmax.f32 %v9343_v53, %v9347_v17  ;;  %v2254_v54 = vunpack.c.l.bf16 %v2102_v34 }
 0x33a   : > { %2782 = vmax.xlane.f32.xlu0 %v2781_v45  ;;  %v1549_v55 = vpop.f32.mrb[44].mxu1  ;;  %v13569_v45 = vld [vmem:[#allocation35_spill] sm:$0xff] }
 0x33b   : > { %2773 = vmax.xlane.f32.xlu1 %v2772_v0  ;;  %v1551_v3 = vpop.f32.mrb[45].mxu1  ;;  %v9361_v12 = vadd.f32 %v2250_v61, %v1549_v55 }
 0x33c   : > { %v1553_v46 = vpop.f32.mrb[46].mxu1  ;;  %v9363_v17 = vadd.f32 %v2251_v33, %v1551_v3  ;;  %v2255_v33 = vunpack.c.h.bf16 %v2102_v34 }
 0x33d   : > { %v9365_v18 = vadd.f32 %v2252_v16, %v1553_v46  ;;  %v1555_v62 = vpop.f32.mrb[47].mxu1  ;;  %v2256_v16 = vunpack.c.l.bf16 %v2103_v50 }
 0x33e   : > { %v9369_v22 = vadd.f32 %v2253_v52, %v1555_v62  ;;  %v2784_v0 = vmax.f32 %v9361_v12, %v9363_v17  ;;  %v2257_v52 = vunpack.c.h.bf16 %v2103_v50 }
 0x33f   : > { %13567 = vst [vmem:[#allocation34_spill] sm:$0xff] %v9365_v18  ;;  %6308 = vmatmul.mubr.msk.bf16.gmra.mrb[152].mxu1 %vm357_vm0, %v13566_v2  ;;  %2779 = vmax.xlane.f32.xlu1 %v2778_v40  ;;  %v2104_v40 = vld [vmem:[#allocation5 + $0xd0] sm:$0xff] }
 0x340   : > { %13568 = vst [vmem:[#allocation41_spill] sm:$0xff] %v9369_v22  ;;  %6309 = vmatprep.mubr.msk.bf16.mxu1 %vm357_vm0, %v13569_v45  ;;  %v2787_v61 = vmax.f32 %v9365_v18, %v9369_v22  ;;  %v2105_v18 = vld [vmem:[#allocation5 + $0xd8] sm:$0xff]  ;;  %v2258_v50 = vunpack.c.l.bf16 %v2104_v40 }
 0x342   : > { %2788 = vmax.xlane.f32.xlu0 %v2787_v61  ;;  %v1559_v55 = vpop.f32.mrb[48].mxu1 }
 0x343   : > { %v9379_v3 = vadd.f32 %v2254_v54, %v1559_v55  ;;  %2785 = vmax.xlane.f32.xlu1 %v2784_v0  ;;  %v1561_v2 = vpop.f32.mrb[49].mxu1  ;;  %v13574_v54 = vld [vmem:[#allocation42_spill] sm:$0xff]  ;;  %v2260_v0 = vunpack.c.l.bf16 %v2105_v18 }
 0x344   : > { %v9381_v46 = vadd.f32 %v2255_v33, %v1561_v2  ;;  %v1563_v62 = vpop.f32.mrb[50].mxu1  ;;  %v2259_v33 = vunpack.c.h.bf16 %v2104_v40  ;;  %v13579_v40 = vld [vmem:[#allocation44_spill] sm:$0xff] }
 0x345   : > { %13570 = vst [vmem:[#allocation40_spill] sm:$0xff] %v9379_v3  ;;  %v9383_v53 = vadd.f32 %v2256_v16, %v1563_v62  ;;  %v1565_v13 = vpop.f32.mrb[51].mxu1  ;;  %v2261_v16 = vunpack.c.h.bf16 %v2105_v18 }
 0x346   : > { %13571 = vst [vmem:[#allocation49_spill] sm:$0xff] %v9381_v46  ;;  %v9385_v22 = vadd.f32 %v2257_v52, %v1565_v13  ;;  %v2790_v34 = vmax.f32 %v9379_v3, %v9381_v46 }
 0x347   : > { %13572 = vst [vmem:[#allocation48_spill] sm:$0xff] %v9383_v53  ;;  %6310 = vmatmul.mubr.msk.bf16.gmra.mrb[156].mxu1 %vm357_vm0, %v13569_v45 }
 0x348   : > { %13573 = vst [vmem:[#allocation57_spill] sm:$0xff] %v9385_v22  ;;  %6311 = vmatprep.mubr.msk.bf16.mxu1 %vm357_vm0, %v13574_v54  ;;  %2791 = vmax.xlane.f32.xlu1 %v2790_v34  ;;  %v2793_v61 = vmax.f32 %v9383_v53, %v9385_v22  ;;  %v2107_v22 = vld [vmem:[#allocation5 + $0xe8] sm:$0xff] }
 0x34a   : > { %2794 = vmax.xlane.f32.xlu0 %v2793_v61  ;;  %v1569_v13 = vpop.f32.mrb[52].mxu1 }
 0x34b   : > { %v9395_v55 = vadd.f32 %v2258_v50, %v1569_v13  ;;  %v1571_v52 = vpop.f32.mrb[53].mxu1  ;;  %v2264_v50 = vunpack.c.l.bf16 %v2107_v22 }
 0x34c   : > { %v9397_v2 = vadd.f32 %v2259_v33, %v1571_v52  ;;  %v1573_v62 = vpop.f32.mrb[54].mxu1 }
 0x34d   : > { %13575 = vst [vmem:[#allocation56_spill] sm:$0xff] %v9395_v55  ;;  %v9399_v45 = vadd.f32 %v2260_v0, %v1573_v62  ;;  %v1575_v26 = vpop.f32.mrb[55].mxu1 }
 0x34e   : > { %13576 = vst [vmem:[#allocation32_spill] sm:$0xff] %v9397_v2  ;;  %v9401_v46 = vadd.f32 %v2261_v16, %v1575_v26  ;;  %v2796_v34 = vmax.f32 %v9395_v55, %v9397_v2  ;;  %v2265_v26 = vunpack.c.h.bf16 %v2107_v22 }
 0x34f   : > { %13577 = vst [vmem:[#allocation30_spill] sm:$0xff] %v9399_v45  ;;  %6312 = vmatmul.mubr.msk.bf16.gmra.mrb[160].mxu1 %vm357_vm0, %v13574_v54  ;;  %v13582_v54 = vld [vmem:[#allocation50_spill] sm:$0xff] }
 0x350   : > { %13578 = vst [vmem:[#allocation16_spill] sm:$0xff] %v9401_v46  ;;  %6313 = vmatprep.mubr.msk.bf16.mxu1 %vm357_vm0, %v13579_v40  ;;  %2797 = vmax.xlane.f32.xlu1 %v2796_v34  ;;  %v2799_v18 = vmax.f32 %v9399_v45, %v9401_v46 }
 0x352   : > { %2800 = vmax.xlane.f32.xlu0 %v2799_v18  ;;  %v9411_v61 = vpop.f32.mrb[56].mxu1 }
 0x353   : > { %v9413_v33 = vpop.f32.mrb[57].mxu1 }
 0x354   : > { %v1583_v0 = vpop.f32.mrb[58].mxu1 }
 0x355   : > { %v9415_v13 = vadd.f32 %v2264_v50, %v1583_v0  ;;  %v1585_v16 = vpop.f32.mrb[59].mxu1 }
 0x356   : > { %v9417_v52 = vadd.f32 %v2265_v26, %v1585_v16  ;;  %v13585_v26 = vld [vmem:[#allocation52_spill] sm:$0xff] }
 0x357   : > { %13580 = vst [vmem:[#allocation17_spill] sm:$0xff] %v9415_v13  ;;  %6314 = vmatmul.mubr.msk.bf16.gmra.mrb[164].mxu1 %vm357_vm0, %v13579_v40  ;;  %v13586_v40 = vpack.i.bf16 %v8829_v6, %v8809_v43 }
 0x358   : > { %13581 = vst [vmem:[#allocation21_spill] sm:$0xff] %v9417_v52  ;;  %6315 = vmatprep.mubr.msk.bf16.mxu1 %vm357_vm0, %v13582_v54  ;;  %v2805_v62 = vmax.f32 %v9415_v13, %v9417_v52 }
 0x35a   : > { %2806 = vmax.xlane.f32.xlu0 %v2805_v62  ;;  %v9425_v34 = vpop.f32.mrb[60].mxu1 }
 0x35b   : > { %v9427_v22 = vpop.f32.mrb[61].mxu1 }
 0x35c   : > { %v9429_v18 = vpop.f32.mrb[62].mxu1 }
 0x35d   : > { %13583 = vst [vmem:[#allocation23_spill] sm:$0xff] %v9429_v18  ;;  %v9431_v50 = vpop.f32.mrb[63].mxu1 }
 0x35e   : > { %13584 = vst [vmem:[#allocation27_spill] sm:$0xff] %v9431_v50 }
 0x35f   : > { %6316 = vmatmul.mubr.msk.bf16.gmra.mrb[168].mxu1 %vm357_vm0, %v13582_v54  ;;  %v13589_v54 = vld [vmem:[#allocation58_spill] sm:$0xff] }
 0x360   : > { %6317 = vmatprep.mubr.msk.bf16.mxu1 %vm357_vm0, %v13585_v26 }
 0x361   : > { %7014 = vrot.lane.b32.xlu1 %v13586_v40, %s7932_s30  ;;  %v13592_v40 = vld [vmem:[#allocation60_spill] sm:$0xff] }
 0x362   : > { %v9441_v0 = vpop.f32.mrb[64].mxu1 }
 0x363   : > { %v9443_v16 = vpop.f32.mrb[65].mxu1 }
 0x364   : > { %v9445_v62 = vpop.f32.mrb[66].mxu1 }
 0x365   : > { %13587 = vst [vmem:[#allocation29_spill] sm:$0xff] %v9445_v62  ;;  %v9447_v52 = vpop.f32.mrb[67].mxu1 }
 0x366   : > { %13588 = vst [vmem:[#allocation37_spill] sm:$0xff] %v9447_v52 }
 0x367   : > { %6318 = vmatmul.mubr.msk.bf16.gmra.mrb[172].mxu1 %vm357_vm0, %v13585_v26 }
 0x368   : > { %6319 = vmatprep.mubr.msk.bf16.mxu1 %vm357_vm0, %v13589_v54 }
 0x36a   : > { %v9453_v13 = vpop.f32.mrb[68].mxu1 }
 0x36b   : > { %v9455_v46 = vpop.f32.mrb[69].mxu1 }
 0x36c   : > { %v9457_v43 = vpop.f32.mrb[70].mxu1 }
 0x36d   : > { %13590 = vst [vmem:[#allocation35_spill] sm:$0xff] %v9457_v43  ;;  %v9459_v6 = vpop.f32.mrb[71].mxu1 }
 0x36e   : > { %13591 = vst [vmem:[#allocation42_spill] sm:$0xff] %v9459_v6  ;;  %v2106_v6 = vld [vmem:[#allocation5 + $0xe0] sm:$0xff] }
 0x36f   : > { %6320 = vmatmul.mubr.msk.bf16.gmra.mrb[176].mxu1 %vm357_vm0, %v13589_v54 }
 0x370   : > { %6321 = vmatprep.mubr.msk.bf16.mxu1 %vm357_vm0, %v13592_v40 }
 0x372   : > { %v9465_v45 = vpop.f32.mrb[72].mxu1 }
 0x373   : > { %v9467_v26 = vpop.f32.mrb[73].mxu1 }
 0x374   : > { %v9469_v53 = vpop.f32.mrb[74].mxu1 }
 0x375   : > { %13593 = vst [vmem:[#allocation44_spill] sm:$0xff] %v9469_v53  ;;  %v9471_v52 = vpop.f32.mrb[75].mxu1  ;;  %v2720_v62 = vpop.xlane.xlu0 %2719 }
 0x376   : > { %13594 = vst [vmem:[#allocation50_spill] sm:$0xff] %v9471_v52  ;;  %v3102_v2 = vsub.f32 %v9153_v41, %v2720_v62  ;;  %v3103_v43 = vsub.f32 %v9155_v31, %v2720_v62  ;;  %v2262_v31 = vunpack.c.l.bf16 %v2106_v6  ;;  %v2263_v62 = vunpack.c.h.bf16 %v2106_v6 }
 0x377   : > { %6322 = vmatmul.mubr.msk.bf16.gmra.mrb[180].mxu1 %vm357_vm0, %v13592_v40  ;;  %v2723_v54 = vpop.xlane.xlu1 %2722 }
 0x378   : > { %v3358_v55 = vmul.f32 1.442695, %v3102_v2  ;;  %v3360_v50 = vmul.f32 1.442695, %v3103_v43  ;;  %v3104_v18 = vsub.f32 %v9157_v60, %v2723_v54  ;;  %v3105_v3 = vsub.f32 %v9161_v32, %v2723_v54  ;;  %6323 = vmatprep.mubr.msk.bf16.mxu1 %vm357_vm0, %v8881_v63  ;;  %v2108_v2 = vld [vmem:[#allocation5 + $0xf0] sm:$0xff] }
 0x379   : > { %v9497_v54 = vadd.f32 %v2263_v62, %v9413_v33 }
 0x37a   : > { %7029 = vpow2.f32 %v3358_v55  ;;  %v3362_v52 = vmul.f32 1.442695, %v3104_v18  ;;  %v3364_v53 = vmul.f32 1.442695, %v3105_v3  ;;  %v9481_v41 = vpop.f32.mrb[76].mxu1 }
 0x37b   : > { %7031 = vpow2.f32 %v3360_v50  ;;  %v7010_v40 = vpop.permute.xlu1 %7009  ;;  %v9483_v5 = vpop.f32.mrb[77].mxu1  ;;  %v9494_v50 = vadd.f32 %v2262_v31, %v9411_v61  ;;  %13599 = vst [vmem:[#allocation78_spill] sm:$0xff] %v9497_v54 }
 0x37c   : > { %7033 = vpow2.f32 %v3362_v52  ;;  %v7012_v43 = vunpack.i.h.bf16 %v7010_v40  ;;  %v7011_v60 = vunpack.i.l.bf16 %v7010_v40  ;;  %v9485_v30 = vpop.f32.mrb[78].mxu1  ;;  %v2266_v52 = vunpack.c.l.bf16 %v2108_v2 }
 0x37d   : > { %13595 = vst [vmem:[#allocation52_spill] sm:$0xff] %v9485_v30  ;;  %7035 = vpow2.f32 %v3364_v53  ;;  %v9487_v32 = vpop.f32.mrb[79].mxu1  ;;  %v2726_v55 = vpop.xlane.xlu0 %2725  ;;  %13598 = vst [vmem:[#allocation77_spill] sm:$0xff] %v9494_v50  ;;  %v2267_v40 = vunpack.c.h.bf16 %v2108_v2  ;;  %v2802_v2 = vmax.f32 %v9494_v50, %v9497_v54 }
 0x37e   : > { %13596 = vst [vmem:[#allocation58_spill] sm:$0xff] %v9487_v32  ;;  %v9489_v18 = vpack.c.bf16 %v7012_v43, %v7011_v60  ;;  %v3106_v3 = vsub.f32 %v9169_v47, %v2726_v55  ;;  %v3107_v6 = vsub.f32 %v9171_v36, %v2726_v55  ;;  %v9511_v31 = vadd.f32 %v2266_v52, %v9425_v34  ;;  %v13608_v52 = vld [vmem:[#allocation18_spill] sm:$0xff] }
 0x37f   : > { %6324 = vmatmul.mubr.msk.bf16.gmra.mrb[184].mxu1 %vm357_vm0, %v8881_v63  ;;  %v9514_v63 = vadd.f32 %v2267_v40, %v9427_v22 }
 0x380   : > { %13597 = vst [vmem:[#allocation60_spill] sm:$0xff] %v9489_v18  ;;  %v3366_v53 = vmul.f32 1.442695, %v3106_v3  ;;  %v3368_v32 = vmul.f32 1.442695, %v3107_v6  ;;  %6325 = vmatprep.mubr.msk.bf16.mxu1 %vm357_vm0, %v8888_v19  ;;  %6372 = vmatpush3.bf16.msk.msra.mxu0 %vm8969_vm11, %v9489_v18  ;;  %13600 = vst [vmem:[#allocation79_spill] sm:$0xff] %v9511_v31 }
 0x381   : > { %v2729_v47 = vpop.xlane.xlu0 %2728  ;;  %13601 = vst [vmem:[#allocation80_spill] sm:$0xff] %v9514_v63  ;;  %v2808_v6 = vmax.f32 %v9511_v31, %v9514_v63 }
 0x382   : > { %7037 = vpow2.f32 %v3366_v53  ;;  %v3108_v36 = vsub.f32 %v9175_v8, %v2729_v47  ;;  %v3109_v61 = vsub.f32 %v9177_v28, %v2729_v47  ;;  %v9508_v33 = vpop.f32.mrb[80].mxu1 }
 0x383   : > { %7039 = vpow2.f32 %v3368_v32  ;;  %v9516_v62 = vpop.f32.mrb[81].mxu1 }
 0x384   : > { %v9520_v43 = vpop.eup %7029  ;;  %v3370_v60 = vmul.f32 1.442695, %v3108_v36  ;;  %v3372_v8 = vmul.f32 1.442695, %v3109_v61  ;;  %v9522_v55 = vpop.f32.mrb[82].mxu1 }
 0x385   : > { %13602 = vst [vmem:[#allocation81_spill] sm:$0xff] %v9520_v43  ;;  %13603 = vst [vmem:[#allocation82_spill] sm:$0xff] %v9522_v55  ;;  %v9524_v28 = vpop.eup %7031  ;;  %2803 = vmax.xlane.f32.xlu1 %v2802_v2  ;;  %v9526_v34 = vpop.f32.mrb[83].mxu1 }
 0x386   : > { %13604 = vst [vmem:[#allocation83_spill] sm:$0xff] %v9524_v28  ;;  %13605 = vst [vmem:[#allocation84_spill] sm:$0xff] %v9526_v34  ;;  %v9528_v3 = vpop.eup %7033  ;;  %7041 = vpow2.f32 %v3370_v60  ;;  %v3870_v22 = vadd.f32 %v9524_v28, %v9520_v43 }
 0x387   : > { %13606 = vst [vmem:[#allocation85_spill] sm:$0xff] %v9528_v3  ;;  %v9532_v32 = vpop.eup %7035  ;;  %7043 = vpow2.f32 %v3372_v8  ;;  %6326 = vmatmul.mubr.msk.bf16.gmra.mrb[188].mxu1 %vm357_vm0, %v8888_v19  ;;  %v2735_v28 = vpop.xlane.xlu0 %2734 }
 0x388   : > { %13607 = vst [vmem:[#allocation86_spill] sm:$0xff] %v9532_v32  ;;  %3871 = vadd.xlane.f32.xlu0 %v3870_v22  ;;  %6327 = vmatprep.mubr.msk.bf16.mxu1 %vm357_vm0, %v13608_v52  ;;  %v3873_v53 = vadd.f32 %v9532_v32, %v9528_v3  ;;  %v13614_v22 = vld [vmem:[#allocation22_spill] sm:$0xff]  ;;  %v3112_v43 = vsub.f32 %v9189_v7, %v2735_v28  ;;  %v13628_v7 = vld [vmem:[#allocation36_spill] sm:$0xff] }
 0x389   : > { %2809 = vmax.xlane.f32.xlu1 %v2808_v6 }
 0x38a   : > { %v9540_v40 = vpop.f32.mrb[84].mxu1  ;;  %v3378_v50 = vmul.f32 1.442695, %v3112_v43 }
 0x38b   : > { %v9544_v47 = vpop.f32.mrb[85].mxu1 }
 0x38c   : > { %v9546_v36 = vpop.eup %7037  ;;  %3874 = vadd.xlane.f32.xlu0 %v3873_v53  ;;  %v9548_v61 = vpop.f32.mrb[86].mxu1 }
 0x38d   : > { %13609 = vst [vmem:[#allocation18_spill] sm:$0xff] %v9546_v36  ;;  %13610 = vst [vmem:[#allocation87_spill] sm:$0xff] %v9548_v61  ;;  %v9550_v19 = vpop.eup %7039  ;;  %v9552_v2 = vpop.f32.mrb[87].mxu1 }
 0x38e   : > { %13611 = vst [vmem:[#allocation88_spill] sm:$0xff] %v9550_v19  ;;  %13612 = vst [vmem:[#allocation89_spill] sm:$0xff] %v9552_v2  ;;  %v3876_v60 = vadd.f32 %v9550_v19, %v9546_v36 }
 0x38f   : > { %6328 = vmatmul.mubr.msk.bf16.gmra.mrb[192].mxu1 %vm357_vm0, %v13608_v52  ;;  %v13618_v52 = vld [vmem:[#allocation24_spill] sm:$0xff] }
 0x390   : > { %v9558_v8 = vpop.eup %7041  ;;  %3877 = vadd.xlane.f32.xlu0 %v3876_v60  ;;  %6329 = vmatprep.mubr.msk.bf16.mxu1 %vm357_vm0, %v13614_v22 }
 0x391   : > { %13613 = vst [vmem:[#allocation90_spill] sm:$0xff] %v9558_v8  ;;  %v9562_v6 = vpop.eup %7043 }
 0x392   : > { %13615 = vst [vmem:[#allocation22_spill] sm:$0xff] %v9562_v6  ;;  %v9564_v53 = vpop.f32.mrb[88].mxu1  ;;  %v3879_v18 = vadd.f32 %v9562_v6, %v9558_v8 }
 0x393   : > { %v9568_v2 = vpop.f32.mrb[89].mxu1 }
 0x394   : > { %3880 = vadd.xlane.f32.xlu0 %v3879_v18  ;;  %v9570_v36 = vpop.f32.mrb[90].mxu1  ;;  %v13621_v18 = vld [vmem:[#allocation28_spill] sm:$0xff] }
 0x395   : > { %13616 = vst [vmem:[#allocation91_spill] sm:$0xff] %v9570_v36  ;;  %v9572_v19 = vpop.f32.mrb[91].mxu1 }
 0x396   : > { %13617 = vst [vmem:[#allocation92_spill] sm:$0xff] %v9572_v19 }
 0x397   : > { %6330 = vmatmul.mubr.msk.bf16.gmra.mrb[196].mxu1 %vm357_vm0, %v13614_v22 }
 0x398   : > { %6331 = vmatprep.mubr.msk.bf16.mxu1 %vm357_vm0, %v13618_v52 }
 0x39a   : > { %v9578_v60 = vpop.f32.mrb[92].mxu1 }
 0x39b   : > { %v9580_v61 = vpop.f32.mrb[93].mxu1 }
 0x39c   : > { %v9582_v32 = vpop.f32.mrb[94].mxu1 }
 0x39d   : > { %13619 = vst [vmem:[#allocation24_spill] sm:$0xff] %v9582_v32  ;;  %v9584_v8 = vpop.f32.mrb[95].mxu1  ;;  %v13624_v32 = vld [vmem:[#allocation31_spill] sm:$0xff] }
 0x39e   : > { %13620 = vst [vmem:[#allocation93_spill] sm:$0xff] %v9584_v8 }
 0x39f   : > { %6332 = vmatmul.mubr.msk.bf16.gmra.mrb[200].mxu1 %vm357_vm0, %v13618_v52  ;;  %v2741_v52 = vpop.xlane.xlu0 %2740 }
 0x3a0   : > { %6333 = vmatprep.mubr.msk.bf16.mxu1 %vm357_vm0, %v13621_v18  ;;  %v3116_v31 = vsub.f32 %v9207_v48, %v2741_v52 }
 0x3a2   : > { %v9590_v6 = vpop.f32.mrb[96].mxu1 }
 0x3a3   : > { %v9592_v22 = vpop.f32.mrb[97].mxu1 }
 0x3a4   : > { %v9594_v19 = vpop.f32.mrb[98].mxu1 }
 0x3a5   : > { %13622 = vst [vmem:[#allocation28_spill] sm:$0xff] %v9594_v19  ;;  %v9596_v36 = vpop.f32.mrb[99].mxu1  ;;  %v3113_v19 = vsub.f32 %v9191_v35, %v2735_v28  ;;  %v2747_v35 = vpop.xlane.xlu0 %2746  ;;  %v3386_v28 = vmul.f32 1.442695, %v3116_v31 }
 0x3a6   : > { %13623 = vst [vmem:[#allocation94_spill] sm:$0xff] %v9596_v36  ;;  %v3120_v43 = vsub.f32 %v9221_v14, %v2747_v35 }
 0x3a7   : > { %6334 = vmatmul.mubr.msk.bf16.gmra.mrb[204].mxu1 %vm357_vm0, %v13621_v18 }
 0x3a8   : > { %6335 = vmatprep.mubr.msk.bf16.mxu1 %vm357_vm0, %v13624_v32  ;;  %v3394_v14 = vmul.f32 1.442695, %v3120_v43 }
 0x3aa   : > { %v9602_v8 = vpop.f32.mrb[100].mxu1 }
 0x3ab   : > { %v9604_v3 = vpop.f32.mrb[101].mxu1 }
 0x3ac   : > { %13625 = vst [vmem:[#allocation31_spill] sm:$0xff] %v9604_v3  ;;  %v2732_v34 = vpop.xlane.xlu1 %2731  ;;  %v9607_v55 = vpop.f32.mrb[102].mxu1  ;;  %v3380_v3 = vmul.f32 1.442695, %v3113_v19 }
 0x3ad   : > { %13626 = vst [vmem:[#allocation95_spill] sm:$0xff] %v9607_v55  ;;  %v3110_v36 = vsub.f32 %v9260_v37, %v2732_v34  ;;  %v3111_v63 = vsub.f32 %v9263_v15, %v2732_v34  ;;  %v9612_v18 = vpop.f32.mrb[103].mxu1 }
 0x3ae   : > { %13627 = vst [vmem:[#allocation96_spill] sm:$0xff] %v9612_v18 }
 0x3af   : > { %v3374_v30 = vmul.f32 1.442695, %v3110_v36  ;;  %v3376_v54 = vmul.f32 1.442695, %v3111_v63  ;;  %6336 = vmatmul.mubr.msk.bf16.gmra.mrb[208].mxu1 %vm357_vm0, %v13624_v32  ;;  %v3117_v63 = vsub.f32 %v9209_v49, %v2741_v52 }
 0x3b0   : > { %6337 = vmatprep.mubr.msk.bf16.mxu1 %vm357_vm0, %v13628_v7  ;;  %v2738_v55 = vpop.xlane.xlu1 %2737 }
 0x3b1   : > { %7045 = vpow2.f32 %v3374_v30  ;;  %v3114_v37 = vsub.f32 %v9266_v4, %v2738_v55  ;;  %v3115_v15 = vsub.f32 %v9269_v9, %v2738_v55  ;;  %v3121_v4 = vsub.f32 %v9223_v29, %v2747_v35  ;;  %v13629_v55 = vld [vmem:[#allocation38_spill] sm:$0xff] }
 0x3b2   : > { %7047 = vpow2.f32 %v3376_v54  ;;  %v9621_v48 = vpop.f32.mrb[104].mxu1  ;;  %v3388_v49 = vmul.f32 1.442695, %v3117_v63 }
 0x3b3   : > { %v3382_v34 = vmul.f32 1.442695, %v3114_v37  ;;  %v9624_v32 = vpop.f32.mrb[105].mxu1  ;;  %7049 = vpow2.f32 %v3378_v50  ;;  %v3384_v36 = vmul.f32 1.442695, %v3115_v15 }
 0x3b4   : > { %v2744_v19 = vpop.xlane.xlu1 %2743  ;;  %v9627_v18 = vpop.f32.mrb[106].mxu1  ;;  %7051 = vpow2.f32 %v3380_v3  ;;  %v3396_v3 = vmul.f32 1.442695, %v3121_v4  ;;  %v13634_v4 = vld [vmem:[#allocation43_spill] sm:$0xff] }
 0x3b5   : > { %v3118_v9 = vsub.f32 %v9284_v11, %v2744_v19  ;;  %v3119_v30 = vsub.f32 %v9287_v23, %v2744_v19  ;;  %v9632_v54 = vpop.f32.mrb[107].mxu1  ;;  %7053 = vpow2.f32 %v3386_v28 }
 0x3b6   : > { %7055 = vpow2.f32 %v3382_v34 }
 0x3b7   : > { %v3390_v31 = vmul.f32 1.442695, %v3118_v9  ;;  %v3392_v50 = vmul.f32 1.442695, %v3119_v30  ;;  %6338 = vmatmul.mubr.msk.bf16.gmra.mrb[212].mxu1 %vm357_vm0, %v13628_v7  ;;  %7057 = vpow2.f32 %v3384_v36 }
 0x3b8   : > { %6339 = vmatprep.mubr.msk.bf16.mxu1 %vm357_vm0, %v13629_v55  ;;  %v2750_v29 = vpop.xlane.xlu1 %2749 }
 0x3b9   : > { %7059 = vpow2.f32 %v3390_v31  ;;  %v3122_v7 = vsub.f32 %v9292_v51, %v2750_v29  ;;  %v3123_v28 = vsub.f32 %v9295_v25, %v2750_v29 }
 0x3ba   : > { %7061 = vpow2.f32 %v3392_v50  ;;  %v9638_v11 = vpop.f32.mrb[108].mxu1 }
 0x3bb   : > { %v9640_v23 = vpop.eup %7045  ;;  %7063 = vpow2.f32 %v3388_v49  ;;  %v9642_v52 = vpop.f32.mrb[109].mxu1  ;;  %v3398_v51 = vmul.f32 1.442695, %v3122_v7  ;;  %v3400_v30 = vmul.f32 1.442695, %v3123_v28 }
 0x3bc   : > { %13630 = vst [vmem:[#allocation36_spill] sm:$0xff] %v9640_v23  ;;  %v9644_v35 = vpop.eup %7047  ;;  %7065 = vpow2.f32 %v3394_v14  ;;  %v2756_v37 = vpop.xlane.xlu1 %2755 }
 0x3bd   : > { %v9647_v15 = vpop.f32.mrb[110].mxu1  ;;  %7067 = vpow2.f32 %v3396_v3  ;;  %v9652_v34 = vpop.eup %7049  ;;  %v3882_v43 = vadd.f32 %v9644_v35, %v9640_v23  ;;  %v3126_v7 = vsub.f32 %v9310_v20, %v2756_v37 }
 0x3be   : > { %13631 = vst [vmem:[#allocation38_spill] sm:$0xff] %v9647_v15  ;;  %v9650_v63 = vpop.f32.mrb[111].mxu1  ;;  %13633 = vst [vmem:[#allocation98_spill] sm:$0xff] %v9652_v34  ;;  %v9656_v36 = vpop.eup %7051  ;;  %7069 = vpow2.f32 %v3398_v51  ;;  %v3127_v15 = vsub.f32 %v9313_v24, %v2756_v37 }
 0x3bf   : > { %13632 = vst [vmem:[#allocation97_spill] sm:$0xff] %v9650_v63  ;;  %6340 = vmatmul.mubr.msk.bf16.gmra.mrb[216].mxu1 %vm357_vm0, %v13629_v55  ;;  %v9660_v19 = vpop.eup %7053  ;;  %3883 = vadd.xlane.f32.xlu0 %v3882_v43  ;;  %v3885_v50 = vadd.f32 %v9656_v36, %v9652_v34  ;;  %v2110_v55 = vld [vmem:[#allocation5 + $0x100] sm:$0xff]  ;;  %7071 = vpow2.f32 %v3400_v30  ;;  %v3406_v30 = vmul.f32 1.442695, %v3126_v7 }
 0x3c0   : > { %6341 = vmatprep.mubr.msk.bf16.mxu1 %vm357_vm0, %v13634_v4  ;;  %v2762_v25 = vpop.xlane.xlu1 %2761  ;;  %v9664_v9 = vpop.eup %7055  ;;  %v3408_v37 = vmul.f32 1.442695, %v3127_v15 }
 0x3c1   : > { %13635 = vst [vmem:[#allocation43_spill] sm:$0xff] %v9664_v9  ;;  %v9666_v49 = vpop.eup %7057  ;;  %7073 = vpow2.f32 %v3406_v30  ;;  %v3130_v15 = vsub.f32 %v9317_v58, %v2762_v25 }
 0x3c2   : > { %v9668_v31 = vpop.f32.mrb[112].mxu1  ;;  %v3888_v20 = vadd.f32 %v9666_v49, %v9664_v9  ;;  %7075 = vpow2.f32 %v3408_v37  ;;  %v13649_v37 = vld [vmem:[#allocation51_spill] sm:$0xff] }
 0x3c3   : > { %13636 = vst [vmem:[#allocation99_spill] sm:$0xff] %v9668_v31  ;;  %v9672_v14 = vpop.eup %7059  ;;  %v9674_v29 = vpop.f32.mrb[113].mxu1  ;;  %3886 = vadd.xlane.f32.xlu0 %v3885_v50  ;;  %v2271_v31 = vunpack.c.h.bf16 %v2110_v55  ;;  %v3414_v58 = vmul.f32 1.442695, %v3130_v15 }
 0x3c4   : > { %13637 = vst [vmem:[#allocation100_spill] sm:$0xff] %v9672_v14  ;;  %13638 = vst [vmem:[#allocation101_spill] sm:$0xff] %v9674_v29  ;;  %v9676_v3 = vpop.eup %7061  ;;  %v9679_v43 = vpop.xlane.xlu1 %2767  ;;  %v2270_v29 = vunpack.c.l.bf16 %v2110_v55 }
 0x3c5   : > { %13639 = vst [vmem:[#allocation102_spill] sm:$0xff] %v9676_v3  ;;  %v9681_v28 = vpop.f32.mrb[114].mxu1  ;;  %v9683_v63 = vpop.eup %7063  ;;  %v3894_v51 = vadd.f32 %v9676_v3, %v9672_v14  ;;  %7077 = vpow2.f32 %v3414_v58  ;;  %v3134_v15 = vsub.f32 %v9333_v44, %v9679_v43 }
 0x3c6   : > { %13640 = vst [vmem:[#allocation103_spill] sm:$0xff] %v9681_v28  ;;  %v9686_v23 = vpop.f32.mrb[115].mxu1  ;;  %v9688_v34 = vpop.eup %7065  ;;  %v9703_v55 = vadd.f32 %v2270_v29, %v9441_v0  ;;  %v9706_v28 = vadd.f32 %v2271_v31, %v9443_v16  ;;  %v3131_v16 = vsub.f32 %v9319_v59, %v2762_v25 }
 0x3c7   : > { %13641 = vst [vmem:[#allocation104_spill] sm:$0xff] %v9686_v23  ;;  %13642 = vst [vmem:[#allocation105_spill] sm:$0xff] %v9688_v34  ;;  %v9694_v50 = vpop.eup %7067  ;;  %6342 = vmatmul.mubr.msk.bf16.gmra.mrb[220].mxu1 %vm357_vm0, %v13634_v4  ;;  %3895 = vadd.xlane.f32.xlu1 %v3894_v51  ;;  %v13644_v23 = vld [vmem:[#allocation45_spill] sm:$0xff]  ;;  %v3891_v4 = vadd.f32 %v9683_v63, %v9660_v19  ;;  %v3422_v44 = vmul.f32 1.442695, %v3134_v15 }
 0x3c8   : > { %13643 = vst [vmem:[#allocation106_spill] sm:$0xff] %v9694_v50  ;;  %3889 = vadd.xlane.f32.xlu0 %v3888_v20  ;;  %v9698_v24 = vpop.xlane.xlu1 %2773  ;;  %6343 = vmatprep.mubr.msk.bf16.mxu1 %vm357_vm0, %v13644_v23  ;;  %v3897_v7 = vadd.f32 %v9694_v50, %v9688_v34  ;;  %v2112_v51 = vld [vmem:[#allocation5 + $0x110] sm:$0xff]  ;;  %v9724_v3 = vpop.eup %7069  ;;  %v2814_v30 = vmax.f32 %v9703_v55, %v9706_v28  ;;  %v3416_v59 = vmul.f32 1.442695, %v3131_v16 }
 0x3c9   : > { %13647 = vst [vmem:[#allocation108_spill] sm:$0xff] %v9724_v3  ;;  %v2274_v34 = vunpack.c.l.bf16 %v2112_v51  ;;  %v2275_v9 = vunpack.c.h.bf16 %v2112_v51  ;;  %v9728_v50 = vpop.eup %7071 }
 0x3ca   : > { %v9708_v14 = vpop.f32.mrb[116].mxu1  ;;  %13648 = vst [vmem:[#allocation109_spill] sm:$0xff] %v9728_v50  ;;  %v3900_v51 = vadd.f32 %v9728_v50, %v9724_v3  ;;  %7079 = vpow2.f32 %v3416_v59  ;;  %v13654_v59 = vld [vmem:[#allocation53_spill] sm:$0xff] }
 0x3cb   : > { %v9714_v20 = vpop.f32.mrb[117].mxu1  ;;  %3898 = vadd.xlane.f32.xlu1 %v3897_v7  ;;  %v9735_v25 = vadd.f32 %v2274_v34, %v9453_v13  ;;  %7081 = vpow2.f32 %v3422_v44 }
 0x3cc   : > { %3892 = vadd.xlane.f32.xlu0 %v3891_v4  ;;  %v9717_v0 = vpop.f32.mrb[118].mxu1  ;;  %v9720_v31 = vpop.xlane.xlu1 %2779  ;;  %v9738_v4 = vadd.f32 %v2275_v9, %v9455_v46  ;;  %v3135_v46 = vsub.f32 %v9335_v27, %v9679_v43 }
 0x3cd   : > { %13645 = vst [vmem:[#allocation45_spill] sm:$0xff] %v9717_v0  ;;  %v9722_v29 = vpop.f32.mrb[119].mxu1  ;;  %v9756_v9 = vpop.eup %7073 }
 0x3ce   : > { %13646 = vst [vmem:[#allocation107_spill] sm:$0xff] %v9722_v29  ;;  %v2114_v29 = vld [vmem:[#allocation5 + $0x120] sm:$0xff]  ;;  %13652 = vst [vmem:[#allocation111_spill] sm:$0xff] %v9756_v9  ;;  %v2820_v3 = vmax.f32 %v9735_v25, %v9738_v4  ;;  %v9760_v58 = vpop.eup %7075  ;;  %v3424_v27 = vmul.f32 1.442695, %v3135_v46 }
 0x3cf   : > { %6344 = vmatmul.mubr.msk.bf16.gmra.mrb[224].mxu1 %vm357_vm0, %v13644_v23  ;;  %2815 = vmax.xlane.f32.xlu1 %v2814_v30  ;;  %v2278_v16 = vunpack.c.l.bf16 %v2114_v29  ;;  %v2279_v30 = vunpack.c.h.bf16 %v2114_v29  ;;  %13653 = vst [vmem:[#allocation112_spill] sm:$0xff] %v9760_v58  ;;  %v9790_v50 = vpop.eup %7077 }
 0x3d0   : > { %6345 = vmatprep.mubr.msk.bf16.mxu1 %vm357_vm0, %v13649_v37  ;;  %v9744_v0 = vpop.xlane.xlu1 %2785  ;;  %7083 = vpow2.f32 %v3424_v27  ;;  %13659 = vst [vmem:[#allocation116_spill] sm:$0xff] %v9790_v50  ;;  %v13661_v27 = vld [vmem:[#allocation59_spill] sm:$0xff] }
 0x3d1   : > { %v9772_v29 = vadd.f32 %v2279_v30, %v9467_v26  ;;  %v3139_v26 = vsub.f32 %v9341_v10, %v9698_v24 }
 0x3d2   : > { %v9740_v7 = vpop.f32.mrb[120].mxu1 }
 0x3d3   : > { %v9746_v23 = vpop.f32.mrb[121].mxu1  ;;  %3901 = vadd.xlane.f32.xlu1 %v3900_v51  ;;  %v9769_v51 = vadd.f32 %v2278_v16, %v9465_v45 }
 0x3d4   : > { %v9750_v13 = vpop.f32.mrb[122].mxu1 }
 0x3d5   : > { %13650 = vst [vmem:[#allocation51_spill] sm:$0xff] %v9750_v13  ;;  %v9754_v34 = vpop.f32.mrb[123].mxu1  ;;  %v9766_v43 = vpop.xlane.xlu1 %2791  ;;  %v2826_v44 = vmax.f32 %v9769_v51, %v9772_v29 }
 0x3d6   : > { %13651 = vst [vmem:[#allocation110_spill] sm:$0xff] %v9754_v34  ;;  %v2116_v34 = vld [vmem:[#allocation5 + $0x130] sm:$0xff] }
 0x3d7   : > { %6346 = vmatmul.mubr.msk.bf16.gmra.mrb[228].mxu1 %vm357_vm0, %v13649_v37  ;;  %2821 = vmax.xlane.f32.xlu1 %v2820_v3  ;;  %v3906_v37 = vadd.f32 %v9760_v58, %v9756_v9  ;;  %v3138_v3 = vsub.f32 %v9339_v39, %v9698_v24  ;;  %v2282_v45 = vunpack.c.l.bf16 %v2116_v34  ;;  %v2283_v9 = vunpack.c.h.bf16 %v2116_v34  ;;  %v9794_v58 = vpop.eup %7079 }
 0x3d8   : > { %6347 = vmatprep.mubr.msk.bf16.mxu1 %vm357_vm0, %v13654_v59  ;;  %13660 = vst [vmem:[#allocation117_spill] sm:$0xff] %v9794_v58  ;;  %v3432_v24 = vmul.f32 1.442695, %v3139_v26  ;;  %v9826_v26 = vpop.eup %7081 }
 0x3d9   : > { %v3430_v39 = vmul.f32 1.442695, %v3138_v3  ;;  %v9801_v10 = vadd.f32 %v2282_v45, %v9481_v41  ;;  %v9804_v34 = vadd.f32 %v2283_v9, %v9483_v5  ;;  %v3142_v5 = vsub.f32 %v9355_v57, %v9720_v31  ;;  %13668 = vst [vmem:[#allocation122_spill] sm:$0xff] %v9826_v26 }
 0x3da   : > { %v9774_v13 = vpop.f32.mrb[124].mxu1  ;;  %v9833_v57 = vpop.eup %7083 }
 0x3db   : > { %13655 = vst [vmem:[#allocation53_spill] sm:$0xff] %v9774_v13  ;;  %v9778_v15 = vpop.f32.mrb[125].mxu1  ;;  %3907 = vadd.xlane.f32.xlu1 %v3906_v37  ;;  %7085 = vpow2.f32 %v3430_v39  ;;  %v2832_v39 = vmax.f32 %v9801_v10, %v9804_v34  ;;  %13669 = vst [vmem:[#allocation123_spill] sm:$0xff] %v9833_v57 }
 0x3dc   : > { %13656 = vst [vmem:[#allocation113_spill] sm:$0xff] %v9778_v15  ;;  %v9782_v46 = vpop.f32.mrb[126].mxu1  ;;  %v2118_v15 = vld [vmem:[#allocation5 + $0x140] sm:$0xff]  ;;  %7087 = vpow2.f32 %v3432_v24 }
 0x3dd   : > { %13657 = vst [vmem:[#allocation114_spill] sm:$0xff] %v9782_v46  ;;  %v9786_v16 = vpop.xlane.xlu1 %2797  ;;  %v9788_v30 = vpop.f32.mrb[127].mxu1 }
 0x3de   : > { %13658 = vst [vmem:[#allocation115_spill] sm:$0xff] %v9788_v30  ;;  %v13662_v30 = vpack.i.bf16 %v8474_v38, %v8452_v21  ;;  %v3143_v21 = vsub.f32 %v9357_v1, %v9720_v31  ;;  %v13670_v1 = vld [vmem:[#allocation61_spill] sm:$0xff] }
 0x3df   : > { %6348 = vmatmul.mubr.msk.bf16.gmra.mrb[232].mxu1 %vm357_vm0, %v13654_v59  ;;  %2827 = vmax.xlane.f32.xlu1 %v2826_v44  ;;  %v3912_v44 = vadd.f32 %v9794_v58, %v9790_v50 }
 0x3e0   : > { %6349 = vmatprep.mubr.msk.bf16.mxu1 %vm357_vm0, %v13661_v27  ;;  %v3440_v31 = vmul.f32 1.442695, %v3143_v21 }
 0x3e1   : > { %v7015_v37 = vpop.permute.xlu1 %7014 }
 0x3e2   : > { %7019 = vrot.lane.b32.xlu0 %v13662_v30, %s7932_s30  ;;  %v7017_v46 = vunpack.i.h.bf16 %v7015_v37  ;;  %v7016_v59 = vunpack.i.l.bf16 %v7015_v37  ;;  %v9810_v3 = vpop.f32.mrb[128].mxu1  ;;  %v2286_v30 = vunpack.c.l.bf16 %v2118_v15  ;;  %v2287_v37 = vunpack.c.h.bf16 %v2118_v15  ;;  %s284_s30 = scalar_lea.vmem [#allocation7], %s5910_s11 }
 0x3e3   : > { %13663 = vst [vmem:[#allocation59_spill] sm:$0xff] %v9810_v3  ;;  %v9814_v41 = vpop.f32.mrb[129].mxu1  ;;  %3913 = vadd.xlane.f32.xlu1 %v3912_v44  ;;  %v3918_v44 = vadd.f32 %v9833_v57, %v9826_v26  ;;  %v13678_v57 = vld [vmem:[#allocation47_spill] sm:$0xff]  ;;  %s5817_s15 = sshll.u32 %s284_s30, 4  ;;  %s12988_s15 = int_to_ptr.vmem [resolvable:$true] %s5817_s15 }
 0x3e4   : > { %13664 = vst [vmem:[#allocation118_spill] sm:$0xff] %v9814_v41  ;;  %v9818_v9 = vpack.c.bf16 %v7017_v46, %v7016_v59  ;;  %v9820_v45 = vpop.f32.mrb[130].mxu1  ;;  %v3438_v46 = vmul.f32 1.442695, %v3142_v5  ;;  %v9840_v15 = vadd.f32 %v2286_v30, %v9508_v33  ;;  %v9843_v24 = vadd.f32 %v2287_v37, %v9516_v62  ;;  %v2753_v33 = vpop.xlane.xlu0 %2752  ;;  %s7855_s8 = scalar_lea.vmem %s12988_s15, 1024  ;;  %p7862_p10 = scmp.lt.s32.totalorder %s12988_s15, %s7860_s20 }
 0x3e5   : > { %13666 = vst [vmem:[#allocation120_spill] sm:$0xff] %v9820_v45  ;;  %v9824_v38 = vpop.f32.mrb[131].mxu1  ;;  %v3147_v62 = vsub.f32 %v9363_v17, %v9744_v0  ;;  %v9859_v30 = vpop.eup %7085  ;;  %v13677_v17 = vld [vmem:[#allocation39_spill] sm:$0xff]  ;;  %v3125_v50 = vsub.f32 %v13678_v57, %v2753_v33  ;;  %v13683_v57 = vld [vmem:[#allocation49_spill] sm:$0xff]  ;;  %p7856_p4 = scmp.ne.s32.totalorder %s12988_s15, %s7855_s8  ;;  %p7863_p13 = scmp.lt.s32.totalorder %s7861_s26, %s7855_s8 }
 0x3e6   : > { %13665 = vst [vmem:[#allocation119_spill] sm:$0xff] %v9818_v9  ;;  %13667 = vst [vmem:[#allocation121_spill] sm:$0xff] %v9824_v38  ;;  %6373 = vmatprep.subr.msk.bf16.mxu0 %vm8969_vm11, %v9818_v9  ;;  %v2120_v38 = vld [vmem:[#allocation5 + $0x150] sm:$0xff]  ;;  %7089 = vpow2.f32 %v3438_v46  ;;  %v2838_v46 = vmax.f32 %v9840_v15, %v9843_v24  ;;  %v9863_v26 = vpop.eup %7087 }
 0x3e7   : > { %6350 = vmatmul.mubr.msk.bf16.gmra.mrb[236].mxu1 %vm357_vm0, %v13661_v27  ;;  %2833 = vmax.xlane.f32.xlu1 %v2832_v39  ;;  %v3146_v27 = vsub.f32 %v9361_v12, %v9744_v0  ;;  %7091 = vpow2.f32 %v3440_v31  ;;  %13675 = vst [vmem:[#allocation127_spill] sm:$0xff] %v9859_v30  ;;  %v2290_v37 = vunpack.c.l.bf16 %v2120_v38  ;;  %v2291_v39 = vunpack.c.h.bf16 %v2120_v38  ;;  %13676 = vst [vmem:[#allocation128_spill] sm:$0xff] %v9863_v26  ;;  %p7857_p6 = pnand %p7856_p4, %p8066_p12  ;;  %p7864_p3 = por %p7863_p13, %p7862_p10 }
 0x3e8   : > { %6351 = vmatprep.mubr.msk.bf16.mxu1 %vm357_vm0, %v13670_v1  ;;  %v3124_v0 = vsub.f32 %v13677_v17, %v2753_v33  ;;  %v2759_v31 = vpop.xlane.xlu0 %2758  ;;  %v3151_v33 = vsub.f32 %v13683_v57, %v9766_v43 }
 0x3e9   : > { %v3446_v12 = vmul.f32 1.442695, %v3146_v27  ;;  %v9874_v38 = vadd.f32 %v2291_v39, %v9544_v47  ;;  %p7858_p8 = pneg %p7857_p6 }
 0x3ea   : > { %v9845_v59 = vpop.f32.mrb[132].mxu1 }
 0x3eb   : > { %13671 = vst [vmem:[#allocation61_spill] sm:$0xff] %v9845_v59  ;;  %v9849_v45 = vpop.f32.mrb[133].mxu1  ;;  %3919 = vadd.xlane.f32.xlu1 %v3918_v44  ;;  %v3448_v44 = vmul.f32 1.442695, %v3147_v62  ;;  %7093 = vpow2.f32 %v3446_v12  ;;  %v13681_v62 = vld [vmem:[#allocation40_spill] sm:$0xff]  ;;  %v2124_v59 = vld [vmem:[#allocation5 + $0x170] sm:$0xff]  ;;  %p7865_p7 = pnand %p7864_p3, %p7858_p8 }
 0x3ec   : > { %13672 = vst [vmem:[#allocation124_spill] sm:$0xff] %v9849_v45  ;;  %v9853_v5 = vpop.f32.mrb[134].mxu1  ;;  %v3150_v17 = vsub.f32 %v13681_v62, %v9766_v43  ;;  %v9887_v39 = vpop.xlane.xlu0 %2764  ;;  %v3404_v12 = vmul.f32 1.442695, %v3125_v50  ;;  %v13687_v43 = vld [vmem:[#allocation62_spill] sm:$0xff] }
 0x3ed   : > { %13673 = vst [vmem:[#allocation125_spill] sm:$0xff] %v9853_v5  ;;  %v9857_v21 = vpop.f32.mrb[135].mxu1  ;;  %v2122_v5 = vld [vmem:[#allocation5 + $0x160] sm:$0xff]  ;;  %7095 = vpow2.f32 %v3448_v44  ;;  %v13688_v50 = vld [vmem:[#allocation46_spill] sm:$0xff]  ;;  %v3456_v45 = vmul.f32 1.442695, %v3151_v33 }
 0x3ee   : > { %13674 = vst [vmem:[#allocation126_spill] sm:$0xff] %v9857_v21  ;;  %v9871_v21 = vadd.f32 %v2290_v37, %v9540_v40  ;;  %v2294_v47 = vunpack.c.l.bf16 %v2122_v5  ;;  %v3402_v37 = vmul.f32 1.442695, %v3124_v0  ;;  %v2111_v0 = vld [vmem:[#allocation5 + $0x108] sm:$0xff]  ;;  %v3454_v44 = vmul.f32 1.442695, %v3150_v17 }
 0x3ef   : > { %6352 = vmatmul.mubr.msk.bf16.gmra.mrb[240].mxu1 %vm357_vm0, %v13670_v1  ;;  %2839 = vmax.xlane.f32.xlu1 %v2838_v46  ;;  %v3924_v1 = vadd.f32 %v9863_v26, %v9859_v30  ;;  %v2109_v46 = vld [vmem:[#allocation5 + $0xf8] sm:$0xff]  ;;  %v2295_v26 = vunpack.c.h.bf16 %v2122_v5  ;;  %v3128_v5 = vsub.f32 %v13688_v50, %v2759_v31  ;;  %v2272_v3 = vunpack.c.l.bf16 %v2111_v0 }
 0x3f0   : > { %6353 = vmatprep.mubr.msk.bf16.mxu1 %vm357_vm0, %v8886_v42  ;;  %v9893_v30 = vpop.eup %7089  ;;  %v2844_v62 = vmax.f32 %v9871_v21, %v9874_v38  ;;  %v9904_v57 = vadd.f32 %v2294_v47, %v9564_v53  ;;  %7097 = vpow2.f32 %v3402_v37  ;;  %v13691_v53 = vld [vmem:[#allocation23_spill] sm:$0xff]  ;;  %v2273_v33 = vunpack.c.h.bf16 %v2111_v0 }
 0x3f1   : > { %13685 = vst [vmem:[#allocation129_spill] sm:$0xff] %v9893_v30  ;;  %7099 = vpow2.f32 %v3404_v12  ;;  %v13692_v37 = vld [vmem:[#allocation27_spill] sm:$0xff]  ;;  %v2298_v12 = vunpack.c.l.bf16 %v2124_v59 }
 0x3f2   : > { %v9877_v58 = vpop.f32.mrb[136].mxu1  ;;  %7101 = vpow2.f32 %v3454_v44 }
 0x3f3   : > { %13679 = vst [vmem:[#allocation39_spill] sm:$0xff] %v9877_v58  ;;  %v9881_v27 = vpop.f32.mrb[137].mxu1  ;;  %3925 = vadd.xlane.f32.xlu1 %v3924_v1  ;;  %v9897_v1 = vpop.eup %7091  ;;  %7103 = vpow2.f32 %v3456_v45  ;;  %v2113_v45 = vld [vmem:[#allocation5 + $0x118] sm:$0xff] }
 0x3f4   : > { %13680 = vst [vmem:[#allocation47_spill] sm:$0xff] %v9881_v27  ;;  %v9885_v40 = vpop.f32.mrb[138].mxu1  ;;  %13686 = vst [vmem:[#allocation130_spill] sm:$0xff] %v9897_v1  ;;  %v2269_v27 = vunpack.c.h.bf16 %v2109_v46  ;;  %v3930_v41 = vadd.f32 %v9897_v1, %v9893_v30 }
 0x3f5   : > { %13682 = vst [vmem:[#allocation40_spill] sm:$0xff] %v9885_v40  ;;  %v9891_v58 = vpop.f32.mrb[139].mxu1  ;;  %v2268_v40 = vunpack.c.l.bf16 %v2109_v46  ;;  %v9910_v46 = vadd.f32 %v2295_v26, %v9568_v2  ;;  %v13695_v2 = vld [vmem:[#allocation56_spill] sm:$0xff]  ;;  %v9935_v0 = vpop.eup %7093 }
 0x3f6   : > { %13684 = vst [vmem:[#allocation49_spill] sm:$0xff] %v9891_v58  ;;  %v9907_v58 = vpop.xlane.xlu0 %2770  ;;  %v9921_v50 = vadd.f32 %v2269_v27, %v13692_v37  ;;  %v3154_v26 = vsub.f32 %v13695_v2, %v9786_v16  ;;  %13699 = vst [vmem:[#allocation56_spill] sm:$0xff] %v9935_v0  ;;  %v2299_v37 = vunpack.c.h.bf16 %v2124_v59 }
 0x3f7   : > { %6354 = vmatmul.mubr.msk.bf16.gmra.mrb[244].mxu1 %vm357_vm0, %v8886_v42  ;;  %2845 = vmax.xlane.f32.xlu1 %v2844_v62  ;;  %v13689_v42 = vld [vmem:[#allocation55_spill] sm:$0xff]  ;;  %v9918_v47 = vadd.f32 %v2268_v40, %v13691_v53  ;;  %v13697_v40 = vld [vmem:[#allocation32_spill] sm:$0xff]  ;;  %v2850_v2 = vmax.f32 %v9904_v57, %v9910_v46 }
 0x3f8   : > { %6355 = vmatprep.mubr.msk.bf16.mxu1 %vm357_vm0, %v13687_v43  ;;  %v3129_v17 = vsub.f32 %v13689_v42, %v2759_v31  ;;  %13693 = vst [vmem:[#allocation46_spill] sm:$0xff] %v9921_v50  ;;  %v3410_v42 = vmul.f32 1.442695, %v3128_v5  ;;  %v3155_v27 = vsub.f32 %v13697_v40, %v9786_v16  ;;  %v13702_v5 = vld [vmem:[#allocation37_spill] sm:$0xff]  ;;  %v3462_v59 = vmul.f32 1.442695, %v3154_v26 }
 0x3f9   : > { %v2811_v16 = vmax.f32 %v9918_v47, %v9921_v50  ;;  %v9954_v40 = vadd.f32 %v2298_v12, %v9578_v60  ;;  %v13708_v26 = vld [vmem:[#allocation15_spill] sm:$0xff] }
 0x3fa   : > { %v9913_v62 = vpop.f32.mrb[140].mxu1  ;;  %v9929_v30 = vpop.xlane.xlu0 %2776  ;;  %v3412_v44 = vmul.f32 1.442695, %v3129_v17  ;;  %v13704_v17 = vld [vmem:[#allocation63_spill] sm:$0xff]  ;;  %7105 = vpow2.f32 %v3410_v42  ;;  %v2276_v42 = vunpack.c.l.bf16 %v2113_v45 }
 0x3fb   : > { %13690 = vst [vmem:[#allocation62_spill] sm:$0xff] %v9913_v62  ;;  %v9923_v13 = vpop.f32.mrb[141].mxu1  ;;  %3931 = vadd.xlane.f32.xlu1 %v3930_v41  ;;  %v9939_v41 = vpop.eup %7095  ;;  %13705 = vst [vmem:[#allocation37_spill] sm:$0xff] %v9954_v40 }
 0x3fc   : > { %13694 = vst [vmem:[#allocation55_spill] sm:$0xff] %v9923_v13  ;;  %v9927_v31 = vpop.f32.mrb[142].mxu1  ;;  %13700 = vst [vmem:[#allocation32_spill] sm:$0xff] %v9939_v41  ;;  %v9945_v13 = vadd.f32 %v2273_v33, %v13702_v5  ;;  %v3464_v5 = vmul.f32 1.442695, %v3155_v27  ;;  %7107 = vpow2.f32 %v3412_v44  ;;  %v3936_v60 = vadd.f32 %v9939_v41, %v9935_v0  ;;  %v9969_v12 = vpop.eup %7097 }
 0x3fd   : > { %13696 = vst [vmem:[#allocation23_spill] sm:$0xff] %v9927_v31  ;;  %v9933_v53 = vpop.f32.mrb[143].mxu1  ;;  %v13701_v31 = vld [vmem:[#allocation29_spill] sm:$0xff]  ;;  %13710 = vst [vmem:[#allocation15_spill] sm:$0xff] %v9969_v12  ;;  %v9975_v27 = vpop.eup %7099  ;;  %7109 = vpow2.f32 %v3462_v59  ;;  %v13717_v59 = vld [vmem:[#allocation35_spill] sm:$0xff] }
 0x3fe   : > { %13698 = vst [vmem:[#allocation27_spill] sm:$0xff] %v9933_v53  ;;  %v9942_v1 = vadd.f32 %v2272_v3, %v13701_v31  ;;  %13703 = vst [vmem:[#allocation29_spill] sm:$0xff] %v9945_v13  ;;  %v13706_v3 = vld [vmem:[#allocation54_spill] sm:$0xff]  ;;  %v9958_v31 = vpop.xlane.xlu0 %2782  ;;  %v2126_v53 = vld [vmem:[#allocation5 + $0x180] sm:$0xff]  ;;  %7111 = vpow2.f32 %v3464_v5  ;;  %v3903_v5 = vadd.f32 %v9975_v27, %v9969_v12 }
 0x3ff   : > { %6356 = vmatmul.mubr.msk.bf16.gmra.mrb[248].mxu1 %vm357_vm0, %v13687_v43  ;;  %2851 = vmax.xlane.f32.xlu1 %v2850_v2  ;;  %v3132_v33 = vsub.f32 %v13706_v3, %v9887_v39  ;;  %v9961_v43 = vadd.f32 %v2299_v37, %v9580_v61  ;;  %v3133_v2 = vsub.f32 %v13708_v26, %v9887_v39  ;;  %v2277_v3 = vunpack.c.h.bf16 %v2113_v45  ;;  %v9983_v45 = vpop.eup %7101 }
 0x400   : > { %6357 = vmatprep.mubr.msk.bf16.mxu1 %vm357_vm0, %v13704_v17  ;;  %v2817_v61 = vmax.f32 %v9942_v1, %v9945_v13  ;;  %13712 = vst [vmem:[#allocation132_spill] sm:$0xff] %v9975_v27  ;;  %v2302_v39 = vunpack.c.l.bf16 %v2126_v53  ;;  %13715 = vst [vmem:[#allocation135_spill] sm:$0xff] %v9983_v45  ;;  %v2303_v41 = vunpack.c.h.bf16 %v2126_v53  ;;  %v13721_v53 = vld [vmem:[#allocation14_spill] sm:$0xff] }
 0x401   : > { %2812 = vmax.xlane.f32.xlu0 %v2811_v16  ;;  %13707 = vst [vmem:[#allocation63_spill] sm:$0xff] %v9961_v43  ;;  %v3418_v44 = vmul.f32 1.442695, %v3132_v33  ;;  %v2856_v0 = vmax.f32 %v9954_v40, %v9961_v43 }
 0x402   : > { %v9965_v62 = vpop.f32.mrb[144].mxu1  ;;  %v9979_v16 = vpop.xlane.xlu0 %2788 }
 0x403   : > { %13709 = vst [vmem:[#allocation54_spill] sm:$0xff] %v9965_v62  ;;  %v9971_v50 = vpop.f32.mrb[145].mxu1  ;;  %3937 = vadd.xlane.f32.xlu1 %v3936_v60  ;;  %v9987_v62 = vpop.eup %7103  ;;  %v9990_v60 = vadd.f32 %v2276_v42, %v13717_v59  ;;  %7113 = vpow2.f32 %v3418_v44 }
 0x404   : > { %13711 = vst [vmem:[#allocation131_spill] sm:$0xff] %v9971_v50  ;;  %v9977_v37 = vpop.f32.mrb[146].mxu1  ;;  %v3420_v50 = vmul.f32 1.442695, %v3133_v2  ;;  %13716 = vst [vmem:[#allocation136_spill] sm:$0xff] %v9987_v62  ;;  %v3136_v2 = vsub.f32 %v13721_v53, %v9907_v58  ;;  %v2128_v53 = vld [vmem:[#allocation5 + $0x190] sm:$0xff] }
 0x405   : > { %13713 = vst [vmem:[#allocation133_spill] sm:$0xff] %v9977_v37  ;;  %2818 = vmax.xlane.f32.xlu0 %v2817_v61  ;;  %v9981_v26 = vpop.f32.mrb[147].mxu1  ;;  %13718 = vst [vmem:[#allocation35_spill] sm:$0xff] %v9990_v60  ;;  %v13719_v37 = vld [vmem:[#allocation42_spill] sm:$0xff]  ;;  %v2115_v61 = vld [vmem:[#allocation5 + $0x128] sm:$0xff]  ;;  %v2306_v27 = vunpack.c.l.bf16 %v2128_v53 }
 0x406   : > { %13714 = vst [vmem:[#allocation134_spill] sm:$0xff] %v9981_v26  ;;  %v9993_v33 = vadd.f32 %v2277_v3, %v13719_v37  ;;  %v10000_v26 = vadd.f32 %v2302_v39, %v9590_v6  ;;  %v10004_v42 = vpop.xlane.xlu0 %2794  ;;  %v10007_v3 = vadd.f32 %v2303_v41, %v9592_v22  ;;  %7115 = vpow2.f32 %v3420_v50 }
 0x407   : > { %6358 = vmatmul.mubr.msk.bf16.gmra.mrb[252].mxu1 %vm357_vm0, %v13704_v17  ;;  %2857 = vmax.xlane.f32.xlu1 %v2856_v0  ;;  %v13723_v17 = vld [vmem:[#allocation20_spill] sm:$0xff]  ;;  %v3942_v6 = vadd.f32 %v9987_v62, %v9983_v45  ;;  %v10015_v0 = vpop.eup %7105  ;;  %v2280_v39 = vunpack.c.l.bf16 %v2115_v61  ;;  %v2281_v44 = vunpack.c.h.bf16 %v2115_v61 }
 0x408   : > { %13720 = vst [vmem:[#allocation42_spill] sm:$0xff] %v9993_v33  ;;  %13722 = vst [vmem:[#allocation14_spill] sm:$0xff] %v10007_v3  ;;  %v3137_v37 = vsub.f32 %v13723_v17, %v9907_v58  ;;  %v2823_v22 = vmax.f32 %v9990_v60, %v9993_v33  ;;  %v10021_v41 = vpop.eup %7107  ;;  %v3426_v58 = vmul.f32 1.442695, %v3136_v2  ;;  %v2307_v33 = vunpack.c.h.bf16 %v2128_v53  ;;  %v13733_v2 = vld [vmem:[#allocation44_spill] sm:$0xff] }
 0x409   : > { %3904 = vadd.xlane.f32.xlu0 %v3903_v5  ;;  %13725 = vst [vmem:[#allocation137_spill] sm:$0xff] %v10015_v0  ;;  %13727 = vst [vmem:[#allocation139_spill] sm:$0xff] %v10021_v41  ;;  %v13729_v5 = vld [vmem:[#allocation19_spill] sm:$0xff]  ;;  %v10031_v61 = vpop.eup %7109 }
 0x40a   : > { %v10011_v59 = vpop.f32.mrb[148].mxu1  ;;  %v3140_v17 = vsub.f32 %v13729_v5, %v9929_v30  ;;  %v10027_v45 = vpop.xlane.xlu0 %2800  ;;  %13731 = vst [vmem:[#allocation141_spill] sm:$0xff] %v10031_v61  ;;  %v13735_v5 = vld [vmem:[#allocation50_spill] sm:$0xff]  ;;  %7117 = vpow2.f32 %v3426_v58 }
 0x40b   : > { %13724 = vst [vmem:[#allocation20_spill] sm:$0xff] %v10011_v59  ;;  %v10017_v12 = vpop.f32.mrb[149].mxu1  ;;  %3943 = vadd.xlane.f32.xlu1 %v3942_v6  ;;  %v2862_v59 = vmax.f32 %v10000_v26, %v10007_v3  ;;  %v3428_v6 = vmul.f32 1.442695, %v3137_v37  ;;  %v10035_v60 = vpop.eup %7111  ;;  %v10041_v43 = vadd.f32 %v2281_v44, %v13735_v5  ;;  %v13744_v58 = vld [vmem:[#allocation78_spill] sm:$0xff] }
 0x40c   : > { %13726 = vst [vmem:[#allocation138_spill] sm:$0xff] %v10017_v12  ;;  %v10023_v50 = vpop.f32.mrb[150].mxu1  ;;  %v2117_v12 = vld [vmem:[#allocation5 + $0x138] sm:$0xff]  ;;  %13732 = vst [vmem:[#allocation142_spill] sm:$0xff] %v10035_v60  ;;  %v3434_v53 = vmul.f32 1.442695, %v3140_v17 }
 0x40d   : > { %13728 = vst [vmem:[#allocation140_spill] sm:$0xff] %v10023_v50  ;;  %2824 = vmax.xlane.f32.xlu0 %v2823_v22  ;;  %v10029_v62 = vpop.f32.mrb[151].mxu1  ;;  %v10038_v50 = vadd.f32 %v2280_v39, %v13733_v2  ;;  %13736 = vst [vmem:[#allocation50_spill] sm:$0xff] %v10041_v43  ;;  %v3909_v22 = vadd.f32 %v10021_v41, %v10015_v0  ;;  %v2284_v13 = vunpack.c.l.bf16 %v2117_v12  ;;  %v2285_v3 = vunpack.c.h.bf16 %v2117_v12  ;;  %v13739_v2 = vld [vmem:[#allocation31_spill] sm:$0xff]  ;;  %v13743_v12 = vld [vmem:[#allocation77_spill] sm:$0xff] }
 0x40e   : > { %13730 = vst [vmem:[#allocation19_spill] sm:$0xff] %v10029_v62  ;;  %v13737_v62 = vld [vmem:[#allocation26_spill] sm:$0xff]  ;;  %v10047_v37 = vpop.xlane.xlu0 %2806  ;;  %v10050_v39 = vadd.f32 %v2306_v27, %v9602_v8  ;;  %v10053_v44 = vadd.f32 %v2307_v33, %v13739_v2  ;;  %7119 = vpow2.f32 %v3428_v6 }
 0x40f   : > { %13734 = vst [vmem:[#allocation44_spill] sm:$0xff] %v10038_v50  ;;  %v3141_v40 = vsub.f32 %v13737_v62, %v9929_v30  ;;  %2863 = vmax.xlane.f32.xlu1 %v2862_v59  ;;  %v3948_v30 = vadd.f32 %v10035_v60, %v10031_v61  ;;  %v10059_v62 = vpop.eup %7113  ;;  %v2829_v8 = vmax.f32 %v10038_v50, %v10041_v43  ;;  %7121 = vpow2.f32 %v3434_v53  ;;  %v13780_v43 = vld [vmem:[#allocation89_spill] sm:$0xff] }
 0x410   : > { %13738 = vst [vmem:[#allocation26_spill] sm:$0xff] %v10050_v39  ;;  %13740 = vst [vmem:[#allocation31_spill] sm:$0xff] %v10053_v44  ;;  %v10067_v27 = vpop.eup %7115  ;;  %v2868_v41 = vmax.f32 %v10050_v39, %v10053_v44 }
 0x411   : > { %3910 = vadd.xlane.f32.xlu0 %v3909_v22  ;;  %13742 = vst [vmem:[#allocation144_spill] sm:$0xff] %v10059_v62  ;;  %13746 = vst [vmem:[#allocation78_spill] sm:$0xff] %v10067_v27  ;;  %v3436_v33 = vmul.f32 1.442695, %v3141_v40 }
 0x412   : > { %v2804_v5 = vpop.xlane.xlu1 %2803  ;;  %v10055_v0 = vpop.f32.mrb[152].mxu1 }
 0x413   : > { %13741 = vst [vmem:[#allocation143_spill] sm:$0xff] %v10055_v0  ;;  %v3158_v59 = vsub.f32 %v13743_v12, %v2804_v5  ;;  %v3159_v17 = vsub.f32 %v13744_v58, %v2804_v5  ;;  %v10063_v22 = vpop.f32.mrb[153].mxu1  ;;  %3949 = vadd.xlane.f32.xlu1 %v3948_v30  ;;  %v13749_v12 = vld [vmem:[#allocation52_spill] sm:$0xff]  ;;  %v13751_v58 = vld [vmem:[#allocation58_spill] sm:$0xff]  ;;  %v13753_v30 = vld [vmem:[#allocation79_spill] sm:$0xff] }
 0x414   : > { %13745 = vst [vmem:[#allocation77_spill] sm:$0xff] %v10063_v22  ;;  %v10069_v6 = vpop.f32.mrb[154].mxu1  ;;  %v10074_v5 = vadd.f32 %v2284_v13, %v13749_v12  ;;  %v10077_v22 = vadd.f32 %v2285_v3, %v13751_v58  ;;  %v13755_v13 = vld [vmem:[#allocation25_spill] sm:$0xff] }
 0x415   : > { %13747 = vst [vmem:[#allocation145_spill] sm:$0xff] %v10069_v6  ;;  %v3470_v2 = vmul.f32 1.442695, %v3158_v59  ;;  %v3472_v61 = vmul.f32 1.442695, %v3159_v17  ;;  %2830 = vmax.xlane.f32.xlu0 %v2829_v8  ;;  %v3872_v60 = vpop.xlane.xlu0 %3871  ;;  %v10071_v0 = vpop.f32.mrb[155].mxu1  ;;  %v3915_v8 = vadd.f32 %v10067_v27, %v10059_v62  ;;  %v3144_v3 = vsub.f32 %v13755_v13, %v9958_v31 }
 0x416   : > { %13748 = vst [vmem:[#allocation146_spill] sm:$0xff] %v10071_v0  ;;  %13750 = vst [vmem:[#allocation52_spill] sm:$0xff] %v10074_v5  ;;  %7123 = vrcp.f32 %v3872_v60  ;;  %v2810_v40 = vpop.xlane.xlu1 %2809  ;;  %v13754_v59 = vld [vmem:[#allocation80_spill] sm:$0xff]  ;;  %v13756_v60 = vld [vmem:[#allocation33_spill] sm:$0xff] }
 0x417   : > { %13752 = vst [vmem:[#allocation58_spill] sm:$0xff] %v10077_v22  ;;  %7125 = vpow2.f32 %v3470_v2  ;;  %v3162_v53 = vsub.f32 %v13753_v30, %v2810_v40  ;;  %v3163_v17 = vsub.f32 %v13754_v59, %v2810_v40  ;;  %v2119_v0 = vld [vmem:[#allocation5 + $0x148] sm:$0xff]  ;;  %2869 = vmax.xlane.f32.xlu1 %v2868_v41  ;;  %v3145_v2 = vsub.f32 %v13756_v60, %v9958_v31  ;;  %v10091_v40 = vpop.eup %7117 }
 0x418   : > { %7127 = vpow2.f32 %v3472_v61  ;;  %13758 = vst [vmem:[#allocation80_spill] sm:$0xff] %v10091_v40  ;;  %v2288_v59 = vunpack.c.l.bf16 %v2119_v0  ;;  %v2289_v62 = vunpack.c.h.bf16 %v2119_v0  ;;  %v2130_v61 = vld [vmem:[#allocation5 + $0x1a0] sm:$0xff]  ;;  %v3442_v13 = vmul.f32 1.442695, %v3144_v3  ;;  %v13763_v0 = vld [vmem:[#allocation82_spill] sm:$0xff] }
 0x419   : > { %7129 = vpow2.f32 %v3436_v33  ;;  %v3478_v12 = vmul.f32 1.442695, %v3162_v53  ;;  %3916 = vadd.xlane.f32.xlu0 %v3915_v8  ;;  %v3875_v58 = vpop.xlane.xlu0 %3874  ;;  %v3480_v6 = vmul.f32 1.442695, %v3163_v17  ;;  %v2835_v33 = vmax.f32 %v10074_v5, %v10077_v22  ;;  %v10097_v53 = vpop.eup %7119  ;;  %v2121_v22 = vld [vmem:[#allocation5 + $0x158] sm:$0xff] }
 0x41a   : > { %7131 = vrcp.f32 %v3875_v58  ;;  %v10089_v30 = vpop.f32.mrb[156].mxu1  ;;  %13760 = vst [vmem:[#allocation33_spill] sm:$0xff] %v10097_v53  ;;  %v2310_v17 = vunpack.c.l.bf16 %v2130_v61  ;;  %v3444_v58 = vmul.f32 1.442695, %v3145_v2  ;;  %v10103_v60 = vpop.eup %7121  ;;  %v2311_v5 = vunpack.c.h.bf16 %v2130_v61 }
 0x41b   : > { %13757 = vst [vmem:[#allocation79_spill] sm:$0xff] %v10089_v30  ;;  %v10093_v41 = vpop.f32.mrb[157].mxu1  ;;  %7133 = vpow2.f32 %v3478_v12  ;;  %v10106_v30 = vadd.f32 %v2288_v59, %v13763_v0  ;;  %v3921_v3 = vadd.f32 %v10097_v53, %v10091_v40  ;;  %v2292_v59 = vunpack.c.l.bf16 %v2121_v22 }
 0x41c   : > { %13759 = vst [vmem:[#allocation25_spill] sm:$0xff] %v10093_v41  ;;  %v10099_v8 = vpop.f32.mrb[158].mxu1  ;;  %7135 = vpow2.f32 %v3480_v6  ;;  %v13765_v41 = vld [vmem:[#allocation84_spill] sm:$0xff]  ;;  %v13768_v6 = vld [vmem:[#allocation34_spill] sm:$0xff]  ;;  %v2293_v0 = vunpack.c.h.bf16 %v2121_v22  ;;  %v10126_v53 = vadd.f32 %v2310_v17, %v9621_v48  ;;  %v13775_v17 = vld [vmem:[#allocation85_spill] sm:$0xff] }
 0x41d   : > { %13761 = vst [vmem:[#allocation147_spill] sm:$0xff] %v10099_v8  ;;  %2836 = vmax.xlane.f32.xlu0 %v2835_v33  ;;  %v10101_v31 = vpop.f32.mrb[159].mxu1  ;;  %13764 = vst [vmem:[#allocation82_spill] sm:$0xff] %v10106_v30  ;;  %v10109_v27 = vadd.f32 %v2289_v62, %v13765_v41  ;;  %7137 = vpow2.f32 %v3442_v13  ;;  %v3148_v2 = vsub.f32 %v13768_v6, %v9979_v16  ;;  %v13770_v62 = vld [vmem:[#allocation41_spill] sm:$0xff] }
 0x41e   : > { %13762 = vst [vmem:[#allocation148_spill] sm:$0xff] %v10101_v31  ;;  %v2132_v31 = vld [vmem:[#allocation5 + $0x1b0] sm:$0xff]  ;;  %7139 = vpow2.f32 %v3444_v58  ;;  %v3149_v61 = vsub.f32 %v13770_v62, %v9979_v16  ;;  %v10129_v13 = vadd.f32 %v2311_v5, %v9624_v32  ;;  %v13777_v5 = vld [vmem:[#allocation83_spill] sm:$0xff] }
 0x41f   : > { %13766 = vst [vmem:[#allocation84_spill] sm:$0xff] %v10109_v27  ;;  %v2314_v16 = vunpack.c.l.bf16 %v2132_v31  ;;  %v13773_v62 = vld [vmem:[#allocation81_spill] sm:$0xff]  ;;  %v3450_v48 = vmul.f32 1.442695, %v3148_v2  ;;  %v2315_v50 = vunpack.c.h.bf16 %v2132_v31 }
 0x420   : > { %v7124_v12 = vpop.eup %7123 }
 0x421   : > { %v10113_v33 = vpop.eup %7125  ;;  %3922 = vadd.xlane.f32.xlu0 %v3921_v3  ;;  %v2841_v3 = vmax.f32 %v10106_v30, %v10109_v27  ;;  %v13778_v27 = vld [vmem:[#allocation86_spill] sm:$0xff]  ;;  %7141 = vpow2.f32 %v3450_v48  ;;  %v10177_v48 = vadd.f32 %v2315_v50, %v9642_v52  ;;  %v13789_v52 = vld [vmem:[#allocation91_spill] sm:$0xff] }
 0x422   : > { %13767 = vst [vmem:[#allocation149_spill] sm:$0xff] %v10113_v33  ;;  %v10117_v8 = vpop.eup %7127  ;;  %v10121_v41 = vpop.f32.mrb[160].mxu1 }
 0x423   : > { %13769 = vst [vmem:[#allocation34_spill] sm:$0xff] %v10117_v8  ;;  %13771 = vst [vmem:[#allocation41_spill] sm:$0xff] %v10121_v41  ;;  %v10123_v40 = vpop.eup %7129  ;;  %v10131_v6 = vpop.f32.mrb[161].mxu1  ;;  %v3954_v22 = vadd.f32 %v10117_v8, %v10113_v33  ;;  %v10138_v41 = vmul.f32 %v7124_v12, %v13773_v62  ;;  %v13779_v33 = vld [vmem:[#allocation87_spill] sm:$0xff]  ;;  %v10153_v62 = vadd.f32 %v2293_v0, %v13780_v43  ;;  %v13783_v43 = vld [vmem:[#allocation48_spill] sm:$0xff] }
 0x424   : > { %13772 = vst [vmem:[#allocation150_spill] sm:$0xff] %v10131_v6  ;;  %v7132_v58 = vpop.eup %7131  ;;  %v10140_v44 = vpop.f32.mrb[162].mxu1  ;;  %v4383_v6 = vmul.f32 %v7124_v12, %v13777_v5  ;;  %v10150_v8 = vadd.f32 %v2292_v59, %v13779_v33  ;;  %v3152_v31 = vsub.f32 %v13783_v43, %v10004_v42 }
 0x425   : > { %13774 = vst [vmem:[#allocation81_spill] sm:$0xff] %v10140_v44  ;;  %v10143_v39 = vmul.f32 %v7132_v58, %v13775_v17  ;;  %2842 = vmax.xlane.f32.xlu0 %v2841_v3  ;;  %3955 = vadd.xlane.f32.xlu1 %v3954_v22  ;;  %v10145_v32 = vpop.f32.mrb[163].mxu1  ;;  %v4385_v30 = vmul.f32 %v7132_v58, %v13778_v27  ;;  %v3452_v44 = vmul.f32 1.442695, %v3149_v61  ;;  %v10155_v2 = vpop.eup %7133  ;;  %v2123_v17 = vld [vmem:[#allocation5 + $0x168] sm:$0xff]  ;;  %v13784_v61 = vld [vmem:[#allocation57_spill] sm:$0xff] }
 0x426   : > { %13776 = vst [vmem:[#allocation85_spill] sm:$0xff] %v10145_v32  ;;  %13781 = vst [vmem:[#allocation83_spill] sm:$0xff] %v10155_v2  ;;  %v2874_v3 = vmax.f32 %v10126_v53, %v10129_v13  ;;  %v3927_v22 = vadd.f32 %v10123_v40, %v10103_v60  ;;  %v10163_v33 = vpop.eup %7135  ;;  %v2296_v59 = vunpack.c.l.bf16 %v2123_v17  ;;  %v2297_v0 = vunpack.c.h.bf16 %v2123_v17 }
 0x427   : > { %v4639_v12 = vpack.c.bf16 %v4385_v30, %v4383_v6  ;;  %13782 = vst [vmem:[#allocation86_spill] sm:$0xff] %v10163_v33  ;;  %7143 = vpow2.f32 %v3452_v44  ;;  %v3153_v58 = vsub.f32 %v13784_v61, %v10004_v42  ;;  %v10171_v30 = vpop.eup %7137  ;;  %v10174_v6 = vadd.f32 %v2314_v16, %v9638_v11 }
 0x428   : > { %v2847_v17 = vmax.f32 %v10150_v8, %v10153_v62  ;;  %v3960_v44 = vadd.f32 %v10163_v33, %v10155_v2  ;;  %v10185_v42 = vpop.eup %7139  ;;  %v10192_v50 = vadd.f32 %v2296_v59, %v13789_v52  ;;  %v2125_v2 = vld [vmem:[#allocation5 + $0x178] sm:$0xff]  ;;  %v13792_v59 = vld [vmem:[#allocation16_spill] sm:$0xff]  ;;  %v13800_v33 = vld [vmem:[#allocation93_spill] sm:$0xff] }
 0x429   : > { %3928 = vadd.xlane.f32.xlu0 %v3927_v22  ;;  %2875 = vmax.xlane.f32.xlu1 %v2874_v3  ;;  %v3458_v22 = vmul.f32 1.442695, %v3152_v31  ;;  %v3460_v16 = vmul.f32 1.442695, %v3153_v58  ;;  %v2880_v27 = vmax.f32 %v10174_v6, %v10177_v48  ;;  %v3933_v32 = vadd.f32 %v10185_v42, %v10171_v30  ;;  %v13791_v31 = vld [vmem:[#allocation30_spill] sm:$0xff] }
 0x42a   : > { %4798 = vmatprep.mubr.bf16.mxu0 %v4639_v12  ;;  %v10169_v5 = vpop.f32.mrb[164].mxu1  ;;  %v13790_v12 = vld [vmem:[#allocation92_spill] sm:$0xff]  ;;  %v3157_v58 = vsub.f32 %v13792_v59, %v10027_v45 }
 0x42b   : > { %13785 = vst [vmem:[#allocation87_spill] sm:$0xff] %v10169_v5  ;;  %v10179_v43 = vpop.f32.mrb[165].mxu1  ;;  %v10195_v61 = vadd.f32 %v2297_v0, %v13790_v12  ;;  %7145 = vpow2.f32 %v3458_v22  ;;  %v10207_v0 = vpop.eup %7141  ;;  %v2300_v12 = vunpack.c.l.bf16 %v2125_v2 }
 0x42c   : > { %13786 = vst [vmem:[#allocation89_spill] sm:$0xff] %v10179_v43  ;;  %v10187_v3 = vpop.f32.mrb[166].mxu1  ;;  %7147 = vpow2.f32 %v3460_v16  ;;  %13794 = vst [vmem:[#allocation92_spill] sm:$0xff] %v10207_v0  ;;  %v13799_v16 = vld [vmem:[#allocation24_spill] sm:$0xff] }
 0x42d   : > { %13787 = vst [vmem:[#allocation48_spill] sm:$0xff] %v10187_v3  ;;  %2848 = vmax.xlane.f32.xlu0 %v2847_v17  ;;  %3961 = vadd.xlane.f32.xlu1 %v3960_v44  ;;  %v10189_v11 = vpop.f32.mrb[167].mxu1  ;;  %v3156_v17 = vsub.f32 %v13791_v31, %v10027_v45  ;;  %v2853_v52 = vmax.f32 %v10192_v50, %v10195_v61  ;;  %v3468_v45 = vmul.f32 1.442695, %v3157_v58  ;;  %v2127_v43 = vld [vmem:[#allocation5 + $0x188] sm:$0xff] }
 0x42e   : > { %13788 = vst [vmem:[#allocation57_spill] sm:$0xff] %v10189_v11  ;;  %v2301_v11 = vunpack.c.h.bf16 %v2125_v2  ;;  %v10220_v59 = vadd.f32 %v2300_v12, %v13799_v16  ;;  %v2305_v16 = vunpack.c.h.bf16 %v2127_v43 }
 0x431   : > { %3934 = vadd.xlane.f32.xlu0 %v3933_v32  ;;  %2881 = vmax.xlane.f32.xlu1 %v2880_v27  ;;  %v10213_v22 = vpop.eup %7143  ;;  %v3466_v32 = vmul.f32 1.442695, %v3156_v17  ;;  %v13802_v17 = vld [vmem:[#allocation21_spill] sm:$0xff] }
 0x432   : > { %v10205_v44 = vpop.f32.mrb[168].mxu1  ;;  %13796 = vst [vmem:[#allocation16_spill] sm:$0xff] %v10213_v22  ;;  %v3939_v2 = vadd.f32 %v10213_v22, %v10207_v0  ;;  %v2129_v22 = vld [vmem:[#allocation5 + $0x198] sm:$0xff] }
 0x433   : > { %13793 = vst [vmem:[#allocation91_spill] sm:$0xff] %v10205_v44  ;;  %v10211_v3 = vpop.f32.mrb[169].mxu1  ;;  %v10223_v44 = vadd.f32 %v2301_v11, %v13800_v33  ;;  %7149 = vpow2.f32 %v3466_v32  ;;  %v2304_v11 = vunpack.c.l.bf16 %v2127_v43 }
 0x434   : > { %13795 = vst [vmem:[#allocation30_spill] sm:$0xff] %v10211_v3  ;;  %v10215_v31 = vpop.f32.mrb[170].mxu1  ;;  %v13801_v3 = vld [vmem:[#allocation17_spill] sm:$0xff]  ;;  %7151 = vpow2.f32 %v3468_v45 }
 0x435   : > { %13797 = vst [vmem:[#allocation151_spill] sm:$0xff] %v10215_v31  ;;  %2854 = vmax.xlane.f32.xlu0 %v2853_v52  ;;  %v10217_v27 = vpop.f32.mrb[171].mxu1  ;;  %v3160_v5 = vsub.f32 %v13801_v3, %v10047_v37  ;;  %v3161_v52 = vsub.f32 %v13802_v17, %v10047_v37  ;;  %v10233_v12 = vpop.eup %7145  ;;  %v2859_v33 = vmax.f32 %v10220_v59, %v10223_v44 }
 0x436   : > { %13798 = vst [vmem:[#allocation152_spill] sm:$0xff] %v10217_v27  ;;  %13804 = vst [vmem:[#allocation93_spill] sm:$0xff] %v10233_v12  ;;  %v10239_v32 = vpop.eup %7147 }
 0x437   : > { %13806 = vst [vmem:[#allocation21_spill] sm:$0xff] %v10239_v32  ;;  %v3474_v3 = vmul.f32 1.442695, %v3160_v5  ;;  %v3476_v37 = vmul.f32 1.442695, %v3161_v52  ;;  %v3945_v43 = vadd.f32 %v10239_v32, %v10233_v12 }
 0x439   : > { %3940 = vadd.xlane.f32.xlu0 %v3939_v2  ;;  %v13809_v2 = vld [vmem:[#allocation28_spill] sm:$0xff]  ;;  %7153 = vpow2.f32 %v3474_v3 }
 0x43a   : > { %v10231_v58 = vpop.f32.mrb[172].mxu1  ;;  %v10246_v17 = vadd.f32 %v2304_v11, %v13809_v2  ;;  %7155 = vpow2.f32 %v3476_v37  ;;  %v2309_v11 = vunpack.c.h.bf16 %v2129_v22  ;;  %v3878_v2 = vpop.xlane.xlu0 %3877  ;;  %v13819_v37 = vld [vmem:[#allocation95_spill] sm:$0xff] }
 0x43b   : > { %13803 = vst [vmem:[#allocation24_spill] sm:$0xff] %v10231_v58  ;;  %v10237_v27 = vpop.f32.mrb[173].mxu1  ;;  %v13811_v58 = vld [vmem:[#allocation94_spill] sm:$0xff] }
 0x43c   : > { %13805 = vst [vmem:[#allocation17_spill] sm:$0xff] %v10237_v27  ;;  %v10241_v31 = vpop.f32.mrb[174].mxu1  ;;  %13810 = vst [vmem:[#allocation28_spill] sm:$0xff] %v10246_v17  ;;  %v10249_v0 = vadd.f32 %v2305_v16, %v13811_v58 }
 0x43d   : > { %13807 = vst [vmem:[#allocation153_spill] sm:$0xff] %v10241_v31  ;;  %2860 = vmax.xlane.f32.xlu0 %v2859_v33  ;;  %v10243_v45 = vpop.f32.mrb[175].mxu1  ;;  %v10255_v5 = vpop.eup %7149  ;;  %v2308_v33 = vunpack.c.l.bf16 %v2129_v22  ;;  %v13821_v31 = vld [vmem:[#allocation96_spill] sm:$0xff] }
 0x43e   : > { %13808 = vst [vmem:[#allocation154_spill] sm:$0xff] %v10243_v45  ;;  %13812 = vst [vmem:[#allocation94_spill] sm:$0xff] %v10249_v0  ;;  %v2865_v52 = vmax.f32 %v10246_v17, %v10249_v0  ;;  %v10261_v58 = vpop.eup %7151  ;;  %v2131_v22 = vld [vmem:[#allocation5 + $0x1a8] sm:$0xff]  ;;  %v3881_v32 = vpop.xlane.xlu0 %3880 }
 0x43f   : > { %13814 = vst [vmem:[#allocation156_spill] sm:$0xff] %v10255_v5  ;;  %13816 = vst [vmem:[#allocation158_spill] sm:$0xff] %v10261_v58  ;;  %v3951_v12 = vadd.f32 %v10261_v58, %v10255_v5  ;;  %7157 = vrcp.f32 %v3881_v32 }
 0x440   : > { %7159 = vrcp.f32 %v3878_v2 }
 0x441   : > { %3946 = vadd.xlane.f32.xlu0 %v3945_v43  ;;  %v10268_v43 = vadd.f32 %v2308_v33, %v13819_v37 }
 0x442   : > { %v10253_v27 = vpop.f32.mrb[176].mxu1 }
 0x443   : > { %13813 = vst [vmem:[#allocation155_spill] sm:$0xff] %v10253_v27  ;;  %v10259_v45 = vpop.f32.mrb[177].mxu1  ;;  %13820 = vst [vmem:[#allocation95_spill] sm:$0xff] %v10268_v43  ;;  %v10271_v27 = vadd.f32 %v2309_v11, %v13821_v31  ;;  %v10277_v0 = vpop.eup %7153 }
 0x444   : > { %13815 = vst [vmem:[#allocation157_spill] sm:$0xff] %v10259_v45  ;;  %v10263_v16 = vpop.f32.mrb[178].mxu1  ;;  %13824 = vst [vmem:[#allocation162_spill] sm:$0xff] %v10277_v0  ;;  %v10283_v37 = vpop.eup %7155 }
 0x445   : > { %13817 = vst [vmem:[#allocation159_spill] sm:$0xff] %v10263_v16  ;;  %2866 = vmax.xlane.f32.xlu0 %v2865_v52  ;;  %v10265_v3 = vpop.f32.mrb[179].mxu1  ;;  %13822 = vst [vmem:[#allocation96_spill] sm:$0xff] %v10271_v27  ;;  %v2871_v52 = vmax.f32 %v10268_v43, %v10271_v27  ;;  %v2313_v16 = vunpack.c.h.bf16 %v2131_v22  ;;  %v3957_v58 = vadd.f32 %v10283_v37, %v10277_v0 }
 0x446   : > { %13818 = vst [vmem:[#allocation160_spill] sm:$0xff] %v10265_v3  ;;  %v2312_v3 = vunpack.c.l.bf16 %v2131_v22  ;;  %13826 = vst [vmem:[#allocation164_spill] sm:$0xff] %v10283_v37 }
 0x449   : > { %3952 = vadd.xlane.f32.xlu0 %v3951_v12  ;;  %v10290_v12 = vadd.f32 %v2312_v3, %v9627_v18 }
 0x44a   : > { %v10275_v45 = vpop.f32.mrb[180].mxu1 }
 0x44b   : > { %13823 = vst [vmem:[#allocation161_spill] sm:$0xff] %v10275_v45  ;;  %v10281_v33 = vpop.f32.mrb[181].mxu1  ;;  %13829 = vst [vmem:[#allocation167_spill] sm:$0xff] %v10290_v12  ;;  %v10293_v45 = vadd.f32 %v2313_v16, %v9632_v54 }
 0x44c   : > { %13825 = vst [vmem:[#allocation163_spill] sm:$0xff] %v10281_v33  ;;  %v10285_v31 = vpop.f32.mrb[182].mxu1  ;;  %v3884_v11 = vpop.xlane.xlu0 %3883 }
 0x44d   : > { %13827 = vst [vmem:[#allocation165_spill] sm:$0xff] %v10285_v31  ;;  %2872 = vmax.xlane.f32.xlu0 %v2871_v52  ;;  %v10287_v5 = vpop.f32.mrb[183].mxu1  ;;  %13830 = vst [vmem:[#allocation168_spill] sm:$0xff] %v10293_v45  ;;  %v2877_v31 = vmax.f32 %v10290_v12, %v10293_v45  ;;  %v7158_v45 = vpop.eup %7157 }
 0x44e   : > { %13828 = vst [vmem:[#allocation166_spill] sm:$0xff] %v10287_v5  ;;  %v7160_v27 = vpop.eup %7159 }
 0x450   : > { %v3887_v22 = vpop.xlane.xlu0 %3886 }
 0x451   : > { %3958 = vadd.xlane.f32.xlu0 %v3957_v58  ;;  %7161 = vrcp.f32 %v3887_v22 }
 0x452   : > { %v10297_v33 = vpop.f32.mrb[184].mxu1  ;;  %7163 = vrcp.f32 %v3884_v11 }
 0x453   : > { %13831 = vst [vmem:[#allocation169_spill] sm:$0xff] %v10297_v33  ;;  %v10301_v52 = vpop.f32.mrb[185].mxu1 }
 0x454   : > { %13832 = vst [vmem:[#allocation170_spill] sm:$0xff] %v10301_v52  ;;  %v10303_v5 = vpop.f32.mrb[186].mxu1  ;;  %v10305_v18 = vpop.xlane.xlu1 %3895 }
 0x455   : > { %13833 = vst [vmem:[#allocation171_spill] sm:$0xff] %v10303_v5  ;;  %2878 = vmax.xlane.f32.xlu0 %v2877_v31  ;;  %v3890_v54 = vpop.xlane.xlu0 %3889  ;;  %v10307_v16 = vpop.f32.mrb[187].mxu1 }
 0x456   : > { %13834 = vst [vmem:[#allocation172_spill] sm:$0xff] %v10307_v16 }
 0x458   : > { %v3899_v3 = vpop.xlane.xlu1 %3898 }
 0x459   : > { %v3893_v58 = vpop.xlane.xlu0 %3892 }
 0x45a   : > { %v10309_v0 = vpop.f32.mrb[188].mxu1 }
 0x45b   : > { %13835 = vst [vmem:[#allocation173_spill] sm:$0xff] %v10309_v0  ;;  %v10311_v33 = vpop.f32.mrb[189].mxu1 }
 0x45c   : > { %13836 = vst [vmem:[#allocation174_spill] sm:$0xff] %v10311_v33  ;;  %v10313_v37 = vpop.f32.mrb[190].mxu1  ;;  %v2816_v52 = vpop.xlane.xlu1 %2815 }
 0x45d   : > { %13837 = vst [vmem:[#allocation175_spill] sm:$0xff] %v10313_v37  ;;  %v7020_v32 = vpop.permute.xlu0 %7019  ;;  %v3166_v5 = vsub.f32 %v9703_v55, %v2816_v52  ;;  %v3167_v31 = vsub.f32 %v9706_v28, %v2816_v52  ;;  %v10317_v12 = vpop.f32.mrb[191].mxu1  ;;  %v13843_v55 = vld [vmem:[#allocation22_spill] sm:$0xff]  ;;  %v13847_v37 = vld [vmem:[#allocation64_spill] sm:$0xff] }
 0x45e   : > { %v7022_v2 = vunpack.i.h.bf16 %v7020_v32  ;;  %13838 = vst [vmem:[#allocation176_spill] sm:$0xff] %v10317_v12  ;;  %v7021_v16 = vunpack.i.l.bf16 %v7020_v32  ;;  %v4389_v28 = vmul.f32 %v7158_v45, %v13843_v55 }
 0x45f   : > { %v3486_v43 = vmul.f32 1.442695, %v3166_v5  ;;  %v3488_v0 = vmul.f32 1.442695, %v3167_v31 }
 0x460   : > { %v10319_v17 = vpack.c.bf16 %v7022_v2, %v7021_v16  ;;  %v10321_v22 = vpop.xlane.xlu1 %3901  ;;  %v13846_v16 = vld [vmem:[#allocation88_spill] sm:$0xff] }
 0x461   : > { %7165 = vpow2.f32 %v3486_v43  ;;  %v4387_v32 = vmul.f32 %v7160_v27, %v13846_v16  ;;  %v13850_v16 = vpack.c.bf16 %v10143_v39, %v10138_v41 }
 0x462   : > { %13839 = vst [vmem:[#allocation177_spill] sm:$0xff] %v10319_v17  ;;  %v10331_v52 = vpop.f32.mrb[192].mxu1  ;;  %7167 = vpow2.f32 %v3488_v0  ;;  %6374 = vmatpush3.bf16.msk.msra.mxu0 %vm8969_vm11, %v10319_v17  ;;  %v7162_v0 = vpop.eup %7161 }
 0x463   : > { %13844 = vst [vmem:[#allocation11_spill] sm:$0xff] %v10331_v52  ;;  %v10336_v5 = vpop.f32.mrb[193].mxu1  ;;  %7169 = vrcp.f32 %v3893_v58  ;;  %6471 = vmatprep.subr.msk.bf16.mxu0 %vm10326_vm12, %v13847_v37  ;;  %v4641_v43 = vpack.c.bf16 %v4389_v28, %v4387_v32  ;;  %v13851_v58 = vld [vmem:[#allocation65_spill] sm:$0xff]  ;;  %v4393_v39 = vmul.f32 %v7162_v0, %v9656_v36  ;;  %v13859_v36 = vld [vmem:[#allocation68_spill] sm:$0xff] }
 0x464   : > { %13845 = vst [vmem:[#allocation22_spill] sm:$0xff] %v10336_v5  ;;  %v10342_v31 = vpop.f32.mrb[194].mxu1  ;;  %v2822_v2 = vpop.xlane.xlu1 %2821  ;;  %7171 = vrcp.f32 %v3890_v54  ;;  %v2134_v5 = vld [vmem:[#allocation5 + $0x1c0] sm:$0xff] }
 0x465   : > { %13848 = vst [vmem:[#allocation88_spill] sm:$0xff] %v10342_v31  ;;  %v10344_v55 = vpop.f32.mrb[195].mxu1  ;;  %v3170_v56 = vsub.f32 %v9735_v25, %v2822_v2  ;;  %v3171_v12 = vsub.f32 %v9738_v4, %v2822_v2  ;;  %4799 = vmatmul.mubr.bf16.vlgmr.msra.gmra.mrb[32].mxu0 %v13850_v16  ;;  %v7164_v31 = vpop.eup %7163  ;;  %v13853_v25 = vld [vmem:[#allocation90_spill] sm:$0xff]  ;;  %v2318_v16 = vunpack.c.l.bf16 %v2134_v5  ;;  %v2319_v52 = vunpack.c.h.bf16 %v2134_v5 }
 0x466   : > { %13849 = vst [vmem:[#allocation178_spill] sm:$0xff] %v10344_v55  ;;  %4806 = vmatprep.mubr.bf16.mxu0 %v4641_v43  ;;  %6472 = vmatpush3.bf16.msk.msra.mxu0 %vm10326_vm12, %v13851_v58  ;;  %v13852_v55 = vld [vmem:[#allocation66_spill] sm:$0xff]  ;;  %v4388_v54 = vmul.f32 %v7158_v45, %v13853_v25  ;;  %v4391_v45 = vmul.f32 %v7164_v31, %v9644_v35 }
 0x467   : > { %v3494_v28 = vmul.f32 1.442695, %v3170_v56  ;;  %v3496_v32 = vmul.f32 1.442695, %v3171_v12  ;;  %6473 = vmatprep.subr.msk.bf16.mxu0 %vm10326_vm12, %v13852_v55  ;;  %v13855_v2 = vld [vmem:[#allocation18_spill] sm:$0xff]  ;;  %v13856_v56 = vld [vmem:[#allocation67_spill] sm:$0xff] }
 0x468   : > { %v10358_v4 = vpop.xlane.xlu1 %3907  ;;  %v4386_v43 = vmul.f32 %v7160_v27, %v13855_v2  ;;  %v4643_v2 = vpack.c.bf16 %v4393_v39, %v4391_v45 }
 0x469   : > { %7173 = vpow2.f32 %v3494_v28 }
 0x46a   : > { %v10361_v41 = vpop.f32.mrb[196].mxu1  ;;  %7175 = vpow2.f32 %v3496_v32  ;;  %6474 = vmatpush3.bf16.msk.msra.mxu0 %vm10326_vm12, %v13856_v56  ;;  %v4640_v28 = vpack.c.bf16 %v4388_v54, %v4386_v43  ;;  %v13864_v54 = vld [vmem:[#allocation101_spill] sm:$0xff] }
 0x46b   : > { %13854 = vst [vmem:[#allocation90_spill] sm:$0xff] %v10361_v41  ;;  %v10367_v12 = vpop.f32.mrb[197].mxu1  ;;  %v10370_v25 = vpop.eup %7165  ;;  %7177 = vrcp.f32 %v3899_v3  ;;  %6475 = vmatprep.subr.msk.bf16.mxu0 %vm10326_vm12, %v13859_v36  ;;  %v10388_v43 = vadd.f32 %v2319_v52, %v13864_v54  ;;  %v13865_v36 = vld [vmem:[#allocation69_spill] sm:$0xff]  ;;  %v13869_v54 = vld [vmem:[#allocation36_spill] sm:$0xff] }
 0x46c   : > { %13857 = vst [vmem:[#allocation18_spill] sm:$0xff] %v10367_v12  ;;  %13858 = vst [vmem:[#allocation179_spill] sm:$0xff] %v10370_v25  ;;  %v10375_v27 = vpop.f32.mrb[198].mxu1  ;;  %v10377_v5 = vpop.eup %7167  ;;  %7179 = vrcp.f32 %v10305_v18  ;;  %v13863_v12 = vld [vmem:[#allocation99_spill] sm:$0xff] }
 0x46d   : > { %13860 = vst [vmem:[#allocation180_spill] sm:$0xff] %v10375_v27  ;;  %13861 = vst [vmem:[#allocation181_spill] sm:$0xff] %v10377_v5  ;;  %v2828_v32 = vpop.xlane.xlu1 %2827  ;;  %v10379_v41 = vpop.f32.mrb[199].mxu1  ;;  %4807 = vmatmul.mubr.bf16.gmra.mrb[36].mxu0 %v4640_v28  ;;  %v10385_v55 = vadd.f32 %v2318_v16, %v13863_v12  ;;  %v2136_v27 = vld [vmem:[#allocation5 + $0x1d0] sm:$0xff]  ;;  %v3966_v18 = vadd.f32 %v10377_v5, %v10370_v25  ;;  %v13867_v16 = vld [vmem:[#allocation98_spill] sm:$0xff] }
 0x46e   : > { %13862 = vst [vmem:[#allocation182_spill] sm:$0xff] %v10379_v41  ;;  %v7170_v56 = vpop.eup %7169  ;;  %v3174_v35 = vsub.f32 %v9769_v51, %v2828_v32  ;;  %v3175_v3 = vsub.f32 %v9772_v29, %v2828_v32  ;;  %4814 = vmatprep.mubr.bf16.mxu0 %v4643_v2  ;;  %6476 = vmatpush3.bf16.msk.msra.mxu0 %vm10326_vm12, %v13865_v36  ;;  %v13866_v29 = vld [vmem:[#allocation70_spill] sm:$0xff]  ;;  %v2322_v32 = vunpack.c.l.bf16 %v2136_v27  ;;  %v13870_v36 = vld [vmem:[#allocation71_spill] sm:$0xff] }
 0x46f   : > { %v7172_v39 = vpop.eup %7171  ;;  %6477 = vmatprep.subr.msk.bf16.mxu0 %vm10326_vm12, %v13866_v29  ;;  %v4392_v12 = vmul.f32 %v7162_v0, %v13867_v16  ;;  %3967 = vadd.xlane.f32.xlu1 %v3966_v18  ;;  %v4397_v28 = vmul.f32 %v7170_v56, %v9683_v63  ;;  %v4390_v41 = vmul.f32 %v7164_v31, %v13869_v54  ;;  %v13953_v5 = vld [vmem:[#allocation15_spill] sm:$0xff] }
 0x470   : > { %v3502_v51 = vmul.f32 1.442695, %v3174_v35  ;;  %v3504_v45 = vmul.f32 1.442695, %v3175_v3  ;;  %v2886_v35 = vmax.f32 %v10385_v55, %v10388_v43  ;;  %v2323_v3 = vunpack.c.h.bf16 %v2136_v27 }
 0x471   : > { %v10399_v52 = vpop.xlane.xlu1 %3913  ;;  %v4395_v18 = vmul.f32 %v7172_v39, %v9666_v49  ;;  %v4642_v31 = vpack.c.bf16 %v4392_v12, %v4390_v41  ;;  %v10427_v29 = vadd.f32 %v2322_v32, %v9708_v14  ;;  %v2138_v12 = vld [vmem:[#allocation5 + $0x1e0] sm:$0xff]  ;;  %v4396_v14 = vmul.f32 %v7170_v56, %v9660_v19  ;;  %v13879_v32 = vld [vmem:[#allocation106_spill] sm:$0xff] }
 0x472   : > { %7181 = vpow2.f32 %v3502_v51  ;;  %v10402_v2 = vpop.f32.mrb[200].mxu1  ;;  %6478 = vmatpush3.bf16.msk.msra.mxu0 %vm10326_vm12, %v13870_v36  ;;  %v13873_v51 = vld [vmem:[#allocation72_spill] sm:$0xff]  ;;  %v10430_v41 = vadd.f32 %v2323_v3, %v9714_v20  ;;  %v13884_v56 = vld [vmem:[#allocation102_spill] sm:$0xff] }
 0x473   : > { %13868 = vst [vmem:[#allocation99_spill] sm:$0xff] %v10402_v2  ;;  %7183 = vpow2.f32 %v3504_v45  ;;  %v10410_v0 = vpop.f32.mrb[201].mxu1  ;;  %v10413_v63 = vpop.eup %7173  ;;  %6479 = vmatprep.subr.msk.bf16.mxu0 %vm10326_vm12, %v13873_v51  ;;  %2887 = vmax.xlane.f32.xlu1 %v2886_v35  ;;  %v4645_v45 = vpack.c.bf16 %v4397_v28, %v4395_v18  ;;  %v13936_v51 = vld [vmem:[#allocation39_spill] sm:$0xff] }
 0x474   : > { %13871 = vst [vmem:[#allocation101_spill] sm:$0xff] %v10410_v0  ;;  %13872 = vst [vmem:[#allocation98_spill] sm:$0xff] %v10413_v63  ;;  %v10418_v16 = vpop.f32.mrb[202].mxu1  ;;  %v10420_v54 = vpop.eup %7175 }
 0x475   : > { %13874 = vst [vmem:[#allocation36_spill] sm:$0xff] %v10418_v16  ;;  %13875 = vst [vmem:[#allocation183_spill] sm:$0xff] %v10420_v54  ;;  %v2834_v27 = vpop.xlane.xlu1 %2833  ;;  %v10422_v2 = vpop.f32.mrb[203].mxu1  ;;  %4815 = vmatmul.mubr.bf16.gmra.mrb[40].mxu0 %v4642_v31  ;;  %v13877_v16 = vld [vmem:[#allocation73_spill] sm:$0xff]  ;;  %v3972_v28 = vadd.f32 %v10420_v54, %v10413_v63  ;;  %v2326_v31 = vunpack.c.l.bf16 %v2138_v12 }
 0x476   : > { %13876 = vst [vmem:[#allocation184_spill] sm:$0xff] %v10422_v2  ;;  %v7178_v36 = vpop.eup %7177  ;;  %v3178_v0 = vsub.f32 %v9801_v10, %v2834_v27  ;;  %v3179_v49 = vsub.f32 %v9804_v34, %v2834_v27  ;;  %4822 = vmatprep.mubr.bf16.mxu0 %v4645_v45  ;;  %6480 = vmatpush3.bf16.msk.msra.mxu0 %vm10326_vm12, %v13877_v16  ;;  %v13878_v34 = vld [vmem:[#allocation74_spill] sm:$0xff]  ;;  %v13881_v45 = vld [vmem:[#allocation43_spill] sm:$0xff]  ;;  %v13942_v54 = vld [vmem:[#allocation97_spill] sm:$0xff] }
 0x477   : > { %v7180_v35 = vpop.eup %7179  ;;  %6481 = vmatprep.subr.msk.bf16.mxu0 %vm10326_vm12, %v13878_v34  ;;  %3973 = vadd.xlane.f32.xlu1 %v3972_v28  ;;  %v4401_v3 = vmul.f32 %v7178_v36, %v13879_v32  ;;  %v4394_v2 = vmul.f32 %v7172_v39, %v13881_v45  ;;  %v13882_v16 = vld [vmem:[#allocation75_spill] sm:$0xff] }
 0x478   : > { %v3510_v10 = vmul.f32 1.442695, %v3178_v0  ;;  %v3512_v18 = vmul.f32 1.442695, %v3179_v49  ;;  %v2892_v0 = vmax.f32 %v10427_v29, %v10430_v41  ;;  %v2327_v49 = vunpack.c.h.bf16 %v2138_v12 }
 0x479   : > { %v10441_v20 = vpop.xlane.xlu1 %3919  ;;  %v4399_v28 = vmul.f32 %v7180_v35, %v13884_v56  ;;  %v4644_v39 = vpack.c.bf16 %v4396_v14, %v4394_v2  ;;  %v13890_v2 = vld [vmem:[#allocation60_spill] sm:$0xff] }
 0x47a   : > { %7185 = vpow2.f32 %v3510_v10  ;;  %v10444_v27 = vpop.f32.mrb[204].mxu1  ;;  %6482 = vmatpush3.bf16.msk.msra.mxu0 %vm10326_vm12, %v13882_v16  ;;  %v13886_v10 = vld [vmem:[#allocation76_spill] sm:$0xff]  ;;  %v10469_v16 = vadd.f32 %v2326_v31, %v9740_v7  ;;  %v13891_v7 = vld [vmem:[#allocation105_spill] sm:$0xff] }
 0x47b   : > { %13880 = vst [vmem:[#allocation106_spill] sm:$0xff] %v10444_v27  ;;  %7187 = vpow2.f32 %v3512_v18  ;;  %v10452_v19 = vpop.f32.mrb[205].mxu1  ;;  %6483 = vmatprep.subr.msk.bf16.mxu0 %vm10326_vm12, %v13886_v10  ;;  %2893 = vmax.xlane.f32.xlu1 %v2892_v0  ;;  %v4647_v18 = vpack.c.bf16 %v4401_v3, %v4399_v28  ;;  %v10472_v10 = vadd.f32 %v2327_v49, %v9746_v23  ;;  %v2140_v3 = vld [vmem:[#allocation5 + $0x1f0] sm:$0xff]  ;;  %v13893_v49 = vmov 0 }
 0x47c   : > { %13883 = vst [vmem:[#allocation43_spill] sm:$0xff] %v10452_v19  ;;  %v10455_v32 = vpop.eup %7181  ;;  %v10460_v45 = vpop.f32.mrb[206].mxu1  ;;  %v13894_v49 = vsel %vm10488_vm13, 4294967295, %v13893_v49 }
 0x47d   : > { %13885 = vst [vmem:[#allocation102_spill] sm:$0xff] %v10455_v32  ;;  %13887 = vst [vmem:[#allocation185_spill] sm:$0xff] %v10460_v45  ;;  %v10462_v27 = vpop.eup %7183  ;;  %v2840_v12 = vpop.xlane.xlu1 %2839  ;;  %4823 = vmatmul.mubr.bf16.gmra.mrb[44].mxu0 %v4644_v39  ;;  %v13904_v45 = vld [vmem:[#allocation113_spill] sm:$0xff] }
 0x47e   : > { %13888 = vst [vmem:[#allocation186_spill] sm:$0xff] %v10462_v27  ;;  %v10464_v34 = vpop.f32.mrb[207].mxu1  ;;  %v3182_v19 = vsub.f32 %v9840_v15, %v2840_v12  ;;  %v3183_v56 = vsub.f32 %v9843_v24, %v2840_v12  ;;  %4830 = vmatprep.mubr.bf16.mxu0 %v4647_v18  ;;  %6484 = vmatpush3.bf16.msk.msra.mxu0 %vm10326_vm12, %v13890_v2  ;;  %13895 = vst [vmem:[#allocation105_spill] sm:$0xff] %v13894_v49  ;;  %v2330_v18 = vunpack.c.l.bf16 %v2140_v3 }
 0x47f   : > { %13889 = vst [vmem:[#allocation187_spill] sm:$0xff] %v10464_v34  ;;  %v3978_v14 = vadd.f32 %v10462_v27, %v10455_v32  ;;  %6485 = vmatprep.subr.msk.bf16.mxu0 %vm10326_vm12, %v9818_v9  ;;  %v4400_v24 = vmul.f32 %v7178_v36, %v13891_v7  ;;  %v2898_v12 = vmax.f32 %v10469_v16, %v10472_v10  ;;  %v2331_v36 = vunpack.c.h.bf16 %v2140_v3 }
 0x480   : > { %v3518_v0 = vmul.f32 1.442695, %v3182_v19  ;;  %v3520_v15 = vmul.f32 1.442695, %v3183_v56  ;;  %v13897_v19 = vld [vmem:[#allocation100_spill] sm:$0xff] }
 0x481   : > { %3979 = vadd.xlane.f32.xlu1 %v3978_v14  ;;  %v10483_v23 = vpop.xlane.xlu1 %3925  ;;  %v4398_v39 = vmul.f32 %v7180_v35, %v13897_v19  ;;  %v13903_v19 = vld [vmem:[#allocation53_spill] sm:$0xff] }
 0x482   : > { %7189 = vpow2.f32 %v3518_v0  ;;  %v10492_v28 = vpop.f32.mrb[208].mxu1  ;;  %6486 = vmatpush3.bf16.msk.msra.mxu0 %vm10326_vm12, %v10319_v17  ;;  %v10516_v34 = vadd.f32 %v2330_v18, %v13903_v19  ;;  %v13913_v17 = vld [vmem:[#allocation46_spill] sm:$0xff] }
 0x483   : > { %13896 = vst [vmem:[#allocation12_spill] sm:$0xff] %v10492_v28  ;;  %7191 = vpow2.f32 %v3520_v15  ;;  %v10500_v56 = vpop.f32.mrb[209].mxu1  ;;  %6583 = vmatprep.subr.msk.bf16.mxu0 %vm10488_vm13, %v13847_v37  ;;  %v4646_v0 = vpack.c.bf16 %v4400_v24, %v4398_v39  ;;  %v2142_v24 = vld [vmem:[#allocation5 + $0x200] sm:$0xff]  ;;  %v2144_v37 = vld [vmem:[#allocation5 + $0x210] sm:$0xff] }
 0x484   : > { %13898 = vst [vmem:[#allocation100_spill] sm:$0xff] %v10500_v56  ;;  %v10502_v14 = vpop.eup %7185  ;;  %v10507_v35 = vpop.f32.mrb[210].mxu1  ;;  %v10519_v56 = vadd.f32 %v2331_v36, %v13904_v45  ;;  %v2335_v18 = vunpack.c.h.bf16 %v2142_v24 }
 0x485   : > { %13899 = vst [vmem:[#allocation188_spill] sm:$0xff] %v10502_v14  ;;  %13900 = vst [vmem:[#allocation189_spill] sm:$0xff] %v10507_v35  ;;  %v10509_v7 = vpop.eup %7187  ;;  %2899 = vmax.xlane.f32.xlu1 %v2898_v12  ;;  %v2846_v3 = vpop.xlane.xlu1 %2845  ;;  %4831 = vmatmul.mubr.bf16.gmra.mrb[48].mxu0 %v4646_v0 }
 0x486   : > { %13901 = vst [vmem:[#allocation190_spill] sm:$0xff] %v10509_v7  ;;  %v10511_v15 = vpop.f32.mrb[211].mxu1  ;;  %v3186_v11 = vsub.f32 %v9871_v21, %v2846_v3  ;;  %v3187_v31 = vsub.f32 %v9874_v38, %v2846_v3  ;;  %v3984_v39 = vadd.f32 %v10509_v7, %v10502_v14  ;;  %v2904_v38 = vmax.f32 %v10516_v34, %v10519_v56 }
 0x487   : > { %13902 = vst [vmem:[#allocation191_spill] sm:$0xff] %v10511_v15  ;;  %v2334_v15 = vunpack.c.l.bf16 %v2142_v24 }
 0x488   : > { %v3526_v35 = vmul.f32 1.442695, %v3186_v11  ;;  %v3528_v12 = vmul.f32 1.442695, %v3187_v31 }
 0x489   : > { %3985 = vadd.xlane.f32.xlu1 %v3984_v39  ;;  %v10523_v28 = vpop.xlane.xlu1 %3931 }
 0x48a   : > { %7193 = vpow2.f32 %v3526_v35  ;;  %v10525_v21 = vpop.f32.mrb[212].mxu1  ;;  %v13911_v35 = vld [vmem:[#allocation59_spill] sm:$0xff] }
 0x48b   : > { %13905 = vst [vmem:[#allocation53_spill] sm:$0xff] %v10525_v21  ;;  %7195 = vpow2.f32 %v3528_v12  ;;  %v10529_v45 = vpop.f32.mrb[213].mxu1  ;;  %v10540_v19 = vadd.f32 %v2334_v15, %v13911_v35  ;;  %v13912_v21 = vld [vmem:[#allocation118_spill] sm:$0xff] }
 0x48c   : > { %13906 = vst [vmem:[#allocation113_spill] sm:$0xff] %v10529_v45  ;;  %v10531_v36 = vpop.eup %7189  ;;  %v10533_v0 = vpop.f32.mrb[214].mxu1  ;;  %v10545_v45 = vadd.f32 %v2335_v18, %v13912_v21  ;;  %v2339_v18 = vunpack.c.h.bf16 %v2144_v37 }
 0x48d   : > { %13907 = vst [vmem:[#allocation192_spill] sm:$0xff] %v10531_v36  ;;  %13908 = vst [vmem:[#allocation193_spill] sm:$0xff] %v10533_v0  ;;  %v10535_v3 = vpop.eup %7191  ;;  %2905 = vmax.xlane.f32.xlu1 %v2904_v38  ;;  %v2852_v11 = vpop.xlane.xlu1 %2851 }
 0x48e   : > { %13909 = vst [vmem:[#allocation194_spill] sm:$0xff] %v10535_v3  ;;  %v10537_v31 = vpop.f32.mrb[215].mxu1  ;;  %v3190_v39 = vsub.f32 %v9904_v57, %v2852_v11  ;;  %v3191_v24 = vsub.f32 %v9910_v46, %v2852_v11  ;;  %v2813_v12 = vpop.xlane.xlu0 %2812  ;;  %v3990_v38 = vadd.f32 %v10535_v3, %v10531_v36  ;;  %v2338_v46 = vunpack.c.l.bf16 %v2144_v37 }
 0x48f   : > { %13910 = vst [vmem:[#allocation195_spill] sm:$0xff] %v10537_v31  ;;  %v3164_v0 = vsub.f32 %v9918_v47, %v2813_v12  ;;  %v3165_v9 = vsub.f32 %v13913_v17, %v2813_v12  ;;  %v2910_v47 = vmax.f32 %v10540_v19, %v10545_v45 }
 0x490   : > { %v3534_v31 = vmul.f32 1.442695, %v3190_v39  ;;  %v3536_v2 = vmul.f32 1.442695, %v3191_v24 }
 0x491   : > { %v3482_v15 = vmul.f32 1.442695, %v3164_v0  ;;  %v3484_v35 = vmul.f32 1.442695, %v3165_v9  ;;  %3991 = vadd.xlane.f32.xlu1 %v3990_v38  ;;  %v10551_v57 = vpop.xlane.xlu1 %3937  ;;  %v13917_v9 = vld [vmem:[#allocation29_spill] sm:$0xff] }
 0x492   : > { %7197 = vpow2.f32 %v3534_v31  ;;  %v2819_v11 = vpop.xlane.xlu0 %2818  ;;  %v10553_v21 = vpop.f32.mrb[216].mxu1 }
 0x493   : > { %13914 = vst [vmem:[#allocation59_spill] sm:$0xff] %v10553_v21  ;;  %7199 = vpow2.f32 %v3536_v2  ;;  %v3168_v17 = vsub.f32 %v9942_v1, %v2819_v11  ;;  %v10558_v12 = vpop.f32.mrb[217].mxu1  ;;  %v3169_v0 = vsub.f32 %v13917_v9, %v2819_v11  ;;  %v13921_v1 = vld [vmem:[#allocation37_spill] sm:$0xff]  ;;  %v13922_v2 = vld [vmem:[#allocation63_spill] sm:$0xff]  ;;  %v13924_v11 = vld [vmem:[#allocation124_spill] sm:$0xff] }
 0x494   : > { %13915 = vst [vmem:[#allocation118_spill] sm:$0xff] %v10558_v12  ;;  %v10560_v39 = vpop.eup %7193  ;;  %7201 = vpow2.f32 %v3482_v15  ;;  %v10563_v24 = vpop.f32.mrb[218].mxu1  ;;  %v13923_v15 = vld [vmem:[#allocation61_spill] sm:$0xff]  ;;  %v10576_v9 = vadd.f32 %v2339_v18, %v13924_v11  ;;  %v13926_v11 = vld [vmem:[#allocation35_spill] sm:$0xff] }
 0x495   : > { %13916 = vst [vmem:[#allocation46_spill] sm:$0xff] %v10560_v39  ;;  %13918 = vst [vmem:[#allocation29_spill] sm:$0xff] %v10563_v24  ;;  %v10565_v31 = vpop.eup %7195  ;;  %7203 = vpow2.f32 %v3484_v35  ;;  %v3490_v38 = vmul.f32 1.442695, %v3168_v17  ;;  %2911 = vmax.xlane.f32.xlu1 %v2910_v47  ;;  %v2858_v21 = vpop.xlane.xlu1 %2857  ;;  %v10573_v14 = vadd.f32 %v2338_v46, %v13923_v15  ;;  %v2146_v24 = vld [vmem:[#allocation5 + $0x220] sm:$0xff] }
 0x496   : > { %13919 = vst [vmem:[#allocation196_spill] sm:$0xff] %v10565_v31  ;;  %v10567_v36 = vpop.f32.mrb[219].mxu1  ;;  %7205 = vrcp.f32 %v10321_v22  ;;  %v3194_v37 = vsub.f32 %v13921_v1, %v2858_v21  ;;  %v3195_v12 = vsub.f32 %v13922_v2, %v2858_v21  ;;  %v3905_v3 = vpop.xlane.xlu0 %3904  ;;  %v3996_v35 = vadd.f32 %v10565_v31, %v10560_v39  ;;  %v2133_v21 = vld [vmem:[#allocation5 + $0x1b8] sm:$0xff] }
 0x497   : > { %13920 = vst [vmem:[#allocation197_spill] sm:$0xff] %v10567_v36  ;;  %7207 = vpow2.f32 %v3490_v38  ;;  %v3492_v47 = vmul.f32 1.442695, %v3169_v0  ;;  %v2342_v1 = vunpack.c.l.bf16 %v2146_v24  ;;  %v2916_v18 = vmax.f32 %v10573_v14, %v10576_v9 }
 0x498   : > { %v3542_v17 = vmul.f32 1.442695, %v3194_v37  ;;  %v3544_v36 = vmul.f32 1.442695, %v3195_v12  ;;  %7209 = vrcp.f32 %v3905_v3  ;;  %v2343_v15 = vunpack.c.h.bf16 %v2146_v24  ;;  %v13929_v3 = vld [vmem:[#allocation42_spill] sm:$0xff] }
 0x499   : > { %3997 = vadd.xlane.f32.xlu1 %v3996_v35  ;;  %v10580_v22 = vpop.xlane.xlu1 %3943  ;;  %v2316_v39 = vunpack.c.l.bf16 %v2133_v21 }
 0x49a   : > { %7211 = vpow2.f32 %v3542_v17  ;;  %v2825_v46 = vpop.xlane.xlu0 %2824  ;;  %v10582_v2 = vpop.f32.mrb[220].mxu1 }
 0x49b   : > { %13925 = vst [vmem:[#allocation37_spill] sm:$0xff] %v10582_v2  ;;  %7213 = vpow2.f32 %v3544_v36  ;;  %v3172_v38 = vsub.f32 %v13926_v11, %v2825_v46  ;;  %v10587_v0 = vpop.f32.mrb[221].mxu1  ;;  %v3173_v37 = vsub.f32 %v13929_v3, %v2825_v46  ;;  %v2317_v2 = vunpack.c.h.bf16 %v2133_v21 }
 0x49c   : > { %13927 = vst [vmem:[#allocation63_spill] sm:$0xff] %v10587_v0  ;;  %v10589_v12 = vpop.eup %7197  ;;  %7215 = vpow2.f32 %v3492_v47  ;;  %v10592_v35 = vpop.f32.mrb[222].mxu1  ;;  %v13934_v47 = vld [vmem:[#allocation14_spill] sm:$0xff]  ;;  %v10608_v21 = vadd.f32 %v2342_v1, %v13936_v51 }
 0x49d   : > { %13928 = vst [vmem:[#allocation61_spill] sm:$0xff] %v10589_v12  ;;  %13930 = vst [vmem:[#allocation124_spill] sm:$0xff] %v10592_v35  ;;  %v10594_v17 = vpop.eup %7199  ;;  %v3498_v31 = vmul.f32 1.442695, %v3172_v38  ;;  %2917 = vmax.xlane.f32.xlu1 %v2916_v18  ;;  %v2864_v7 = vpop.xlane.xlu1 %2863  ;;  %7217 = vrcp.f32 %v10358_v4  ;;  %v10605_v35 = vld [vmem:[#allocation5 + $0x1c8] sm:$0xff]  ;;  %v13938_v18 = vld [vmem:[#allocation47_spill] sm:$0xff]  ;;  %v10619_v49 = vadd.f32 %v2317_v2, %v13942_v54 }
 0x49e   : > { %13931 = vst [vmem:[#allocation35_spill] sm:$0xff] %v10594_v17  ;;  %v10596_v24 = vpop.f32.mrb[223].mxu1  ;;  %v10598_v36 = vpop.eup %7201  ;;  %v3198_v11 = vsub.f32 %v10000_v26, %v2864_v7  ;;  %v3199_v0 = vsub.f32 %v13934_v47, %v2864_v7  ;;  %13937 = vst [vmem:[#allocation39_spill] sm:$0xff] %v10608_v21  ;;  %v10611_v38 = vadd.f32 %v2343_v15, %v13938_v18  ;;  %v3500_v26 = vmul.f32 1.442695, %v3173_v37  ;;  %v13940_v47 = vld [vmem:[#allocation38_spill] sm:$0xff] }
 0x49f   : > { %13932 = vst [vmem:[#allocation42_spill] sm:$0xff] %v10596_v24  ;;  %13933 = vst [vmem:[#allocation198_spill] sm:$0xff] %v10598_v36  ;;  %v3911_v46 = vpop.xlane.xlu0 %3910  ;;  %v10603_v3 = vpop.eup %7203  ;;  %v2148_v24 = vld [vmem:[#allocation5 + $0x230] sm:$0xff]  ;;  %v4002_v32 = vadd.f32 %v10594_v17, %v10589_v12  ;;  %7219 = vpow2.f32 %v3498_v31  ;;  %v10616_v63 = vadd.f32 %v2316_v39, %v13940_v47  ;;  %v2320_v31 = vunpack.c.l.bf16 %v10605_v35 }
 0x4a0   : > { %13935 = vst [vmem:[#allocation14_spill] sm:$0xff] %v10603_v3  ;;  %13939 = vst [vmem:[#allocation47_spill] sm:$0xff] %v10611_v38  ;;  %v7206_v4 = vpop.eup %7205  ;;  %v3550_v27 = vmul.f32 1.442695, %v3198_v11  ;;  %v3552_v7 = vmul.f32 1.442695, %v3199_v0  ;;  %7221 = vrcp.f32 %v3911_v46  ;;  %v3963_v51 = vadd.f32 %v10603_v3, %v10598_v36 }
 0x4a1   : > { %13941 = vst [vmem:[#allocation38_spill] sm:$0xff] %v10616_v63  ;;  %13943 = vst [vmem:[#allocation97_spill] sm:$0xff] %v10619_v49  ;;  %4003 = vadd.xlane.f32.xlu1 %v4002_v32  ;;  %v10623_v1 = vpop.xlane.xlu1 %3949  ;;  %v10625_v15 = vpop.eup %7207  ;;  %v2346_v37 = vunpack.c.l.bf16 %v2148_v24  ;;  %v2347_v11 = vunpack.c.h.bf16 %v2148_v24  ;;  %v2922_v54 = vmax.f32 %v10608_v21, %v10611_v38  ;;  %v13946_v32 = vld [vmem:[#allocation44_spill] sm:$0xff]  ;;  %v13948_v47 = vld [vmem:[#allocation109_spill] sm:$0xff] }
 0x4a2   : > { %13944 = vst [vmem:[#allocation199_spill] sm:$0xff] %v10625_v15  ;;  %7223 = vpow2.f32 %v3550_v27  ;;  %v10628_v39 = vpop.f32.mrb[224].mxu1  ;;  %v7210_v18 = vpop.eup %7209  ;;  %3964 = vadd.xlane.f32.xlu0 %v3963_v51  ;;  %v4403_v12 = vmul.f32 %v7206_v4, %v13948_v47  ;;  %v13950_v24 = vld [vmem:[#allocation50_spill] sm:$0xff]  ;;  %v2321_v51 = vunpack.c.h.bf16 %v10605_v35  ;;  %v13961_v35 = vld [vmem:[#allocation55_spill] sm:$0xff] }
 0x4a3   : > { %v2831_v0 = vpop.xlane.xlu0 %2830  ;;  %13945 = vst [vmem:[#allocation200_spill] sm:$0xff] %v10628_v39  ;;  %7225 = vpow2.f32 %v3552_v7  ;;  %v10633_v46 = vpop.f32.mrb[225].mxu1  ;;  %v13952_v39 = vld [vmem:[#allocation132_spill] sm:$0xff]  ;;  %v4404_v25 = vmul.f32 %v7210_v18, %v13953_v5  ;;  %v2883_v7 = vmax.f32 %v10616_v63, %v10619_v49  ;;  %v13960_v49 = vld [vmem:[#allocation62_spill] sm:$0xff] }
 0x4a4   : > { %v3176_v2 = vsub.f32 %v13946_v32, %v2831_v0  ;;  %13947 = vst [vmem:[#allocation44_spill] sm:$0xff] %v10633_v46  ;;  %v10636_v17 = vpop.eup %7211  ;;  %7227 = vpow2.f32 %v3500_v26  ;;  %v3177_v27 = vsub.f32 %v13950_v24, %v2831_v0  ;;  %v10639_v58 = vpop.f32.mrb[226].mxu1  ;;  %v4405_v33 = vmul.f32 %v7210_v18, %v13952_v39  ;;  %v13956_v26 = vld [vmem:[#allocation108_spill] sm:$0xff]  ;;  %v13958_v39 = vld [vmem:[#allocation26_spill] sm:$0xff]  ;;  %v13959_v18 = vld [vmem:[#allocation31_spill] sm:$0xff] }
 0x4a5   : > { %13949 = vst [vmem:[#allocation109_spill] sm:$0xff] %v10636_v17  ;;  %13951 = vst [vmem:[#allocation50_spill] sm:$0xff] %v10639_v58  ;;  %v10643_v36 = vpop.eup %7213  ;;  %2923 = vmax.xlane.f32.xlu1 %v2922_v54  ;;  %v2870_v47 = vpop.xlane.xlu1 %2869  ;;  %v4402_v0 = vmul.f32 %v7206_v4, %v13956_v26  ;;  %7229 = vrcp.f32 %v10399_v52  ;;  %v10657_v63 = vadd.f32 %v2346_v37, %v13960_v49  ;;  %v13963_v49 = vld [vmem:[#allocation104_spill] sm:$0xff] }
 0x4a6   : > { %13954 = vst [vmem:[#allocation132_spill] sm:$0xff] %v10643_v36  ;;  %v3506_v32 = vmul.f32 1.442695, %v3176_v2  ;;  %v10648_v46 = vpop.f32.mrb[227].mxu1  ;;  %v10651_v24 = vpop.eup %7215  ;;  %v3202_v5 = vsub.f32 %v13958_v39, %v2870_v47  ;;  %v3203_v58 = vsub.f32 %v13959_v18, %v2870_v47  ;;  %v4649_v38 = vpack.c.bf16 %v4405_v33, %v4403_v12  ;;  %v2150_v2 = vld [vmem:[#allocation5 + $0x240] sm:$0xff]  ;;  %2884 = vmax.xlane.f32.xlu0 %v2883_v7 }
 0x4a7   : > { %13955 = vst [vmem:[#allocation15_spill] sm:$0xff] %v10648_v46  ;;  %13957 = vst [vmem:[#allocation108_spill] sm:$0xff] %v10651_v24  ;;  %v3917_v3 = vpop.xlane.xlu0 %3916  ;;  %v10660_v54 = vadd.f32 %v2347_v11, %v13961_v35  ;;  %v4008_v4 = vadd.f32 %v10643_v36, %v10636_v17  ;;  %v4648_v26 = vpack.c.bf16 %v4404_v25, %v4402_v0  ;;  %v7218_v46 = vpop.eup %7217  ;;  %v3508_v52 = vmul.f32 1.442695, %v3177_v27  ;;  %v13962_v47 = vld [vmem:[#allocation103_spill] sm:$0xff]  ;;  %v2137_v25 = vld [vmem:[#allocation5 + $0x1d8] sm:$0xff] }
 0x4a8   : > { %7231 = vpow2.f32 %v3506_v32  ;;  %v3558_v39 = vmul.f32 1.442695, %v3202_v5  ;;  %v3560_v21 = vmul.f32 1.442695, %v3203_v58  ;;  %4838 = vmatprep.mubr.bf16.mxu0 %v4649_v38  ;;  %v10665_v33 = vadd.f32 %v2320_v31, %v13962_v47  ;;  %v13968_v5 = vld [vmem:[#allocation112_spill] sm:$0xff] }
 0x4a9   : > { %v10668_v12 = vadd.f32 %v2321_v51, %v13963_v49  ;;  %7233 = vrcp.f32 %v3917_v3  ;;  %4009 = vadd.xlane.f32.xlu1 %v4008_v4  ;;  %4839 = vmatmul.mubr.bf16.gmra.mrb[52].mxu0 %v4648_v26  ;;  %v3969_v37 = vadd.f32 %v10651_v24, %v10625_v15  ;;  %v10672_v11 = vpop.eup %7219  ;;  %v2350_v7 = vunpack.c.l.bf16 %v2150_v2  ;;  %v13966_v3 = vld [vmem:[#allocation52_spill] sm:$0xff]  ;;  %v13973_v49 = vld [vmem:[#allocation137_spill] sm:$0xff] }
 0x4aa   : > { %13964 = vst [vmem:[#allocation26_spill] sm:$0xff] %v10672_v11  ;;  %v2351_v27 = vunpack.c.h.bf16 %v2150_v2  ;;  %7235 = vpow2.f32 %v3558_v39  ;;  %v10674_v38 = vpop.f32.mrb[228].mxu1  ;;  %v7222_v31 = vpop.eup %7221  ;;  %v2928_v51 = vmax.f32 %v10657_v63, %v10660_v54  ;;  %v4407_v18 = vmul.f32 %v7218_v46, %v13968_v5  ;;  %v13970_v2 = vld [vmem:[#allocation58_spill] sm:$0xff]  ;;  %v13972_v39 = vld [vmem:[#allocation139_spill] sm:$0xff]  ;;  %v2152_v15 = vld [vmem:[#allocation5 + $0x250] sm:$0xff] }
 0x4ab   : > { %v2837_v58 = vpop.xlane.xlu0 %2836  ;;  %13965 = vst [vmem:[#allocation31_spill] sm:$0xff] %v10674_v38  ;;  %7237 = vpow2.f32 %v3560_v21  ;;  %3970 = vadd.xlane.f32.xlu0 %v3969_v37  ;;  %v10679_v0 = vpop.f32.mrb[229].mxu1  ;;  %v4409_v47 = vmul.f32 %v7222_v31, %v13972_v39  ;;  %v4408_v38 = vmul.f32 %v7222_v31, %v13973_v49  ;;  %v2889_v21 = vmax.f32 %v10665_v33, %v10668_v12  ;;  %v13980_v39 = vld [vmem:[#allocation131_spill] sm:$0xff] }
 0x4ac   : > { %v3180_v32 = vsub.f32 %v13966_v3, %v2837_v58  ;;  %13967 = vst [vmem:[#allocation62_spill] sm:$0xff] %v10679_v0  ;;  %v10682_v35 = vpop.eup %7223  ;;  %7239 = vpow2.f32 %v3508_v52  ;;  %v3181_v4 = vsub.f32 %v13970_v2, %v2837_v58  ;;  %v10685_v26 = vpop.f32.mrb[230].mxu1  ;;  %v2324_v37 = vunpack.c.l.bf16 %v2137_v25  ;;  %v13976_v0 = vld [vmem:[#allocation111_spill] sm:$0xff]  ;;  %v13978_v58 = vld [vmem:[#allocation54_spill] sm:$0xff] }
 0x4ad   : > { %13969 = vst [vmem:[#allocation55_spill] sm:$0xff] %v10682_v35  ;;  %13971 = vst [vmem:[#allocation103_spill] sm:$0xff] %v10685_v26  ;;  %v10689_v17 = vpop.eup %7225  ;;  %v2325_v3 = vunpack.c.h.bf16 %v2137_v25  ;;  %2929 = vmax.xlane.f32.xlu1 %v2928_v51  ;;  %v10693_v5 = vpop.f32.mrb[231].mxu1  ;;  %v4406_v52 = vmul.f32 %v7218_v46, %v13976_v0  ;;  %v10699_v2 = vadd.f32 %v2350_v7, %v13978_v58  ;;  %7241 = vrcp.f32 %v10441_v20  ;;  %v13984_v58 = vld [vmem:[#allocation107_spill] sm:$0xff]  ;;  %v2139_v20 = vld [vmem:[#allocation5 + $0x1e8] sm:$0xff] }
 0x4ae   : > { %13974 = vst [vmem:[#allocation104_spill] sm:$0xff] %v10689_v17  ;;  %13975 = vst [vmem:[#allocation52_spill] sm:$0xff] %v10693_v5  ;;  %v10696_v36 = vpop.eup %7227  ;;  %v10702_v26 = vadd.f32 %v2351_v27, %v13980_v39  ;;  %v4651_v49 = vpack.c.bf16 %v4409_v47, %v4407_v18  ;;  %v4014_v24 = vadd.f32 %v10689_v17, %v10682_v35  ;;  %v3514_v25 = vmul.f32 1.442695, %v3180_v32  ;;  %v13982_v5 = vld [vmem:[#allocation45_spill] sm:$0xff] }
 0x4af   : > { %13977 = vst [vmem:[#allocation112_spill] sm:$0xff] %v10696_v36  ;;  %13979 = vst [vmem:[#allocation58_spill] sm:$0xff] %v10699_v2  ;;  %v3923_v31 = vpop.xlane.xlu0 %3922  ;;  %2890 = vmax.xlane.f32.xlu0 %v2889_v21  ;;  %v4650_v51 = vpack.c.bf16 %v4408_v38, %v4406_v52  ;;  %v7230_v46 = vpop.eup %7229  ;;  %v3516_v0 = vmul.f32 1.442695, %v3181_v4  ;;  %v10708_v7 = vadd.f32 %v2324_v37, %v13982_v5  ;;  %v2354_v32 = vunpack.c.l.bf16 %v2152_v15  ;;  %v13987_v52 = vld [vmem:[#allocation84_spill] sm:$0xff] }
 0x4b0   : > { %13981 = vst [vmem:[#allocation139_spill] sm:$0xff] %v10702_v26  ;;  %4846 = vmatprep.mubr.bf16.mxu0 %v4651_v49  ;;  %v10711_v27 = vadd.f32 %v2325_v3, %v13984_v58  ;;  %7243 = vrcp.f32 %v3923_v31  ;;  %v3975_v18 = vadd.f32 %v10696_v36, %v10672_v11  ;;  %v2934_v38 = vmax.f32 %v10699_v2, %v10702_v26  ;;  %v13986_v3 = vld [vmem:[#allocation82_spill] sm:$0xff]  ;;  %v13989_v49 = vld [vmem:[#allocation117_spill] sm:$0xff]  ;;  %v13993_v11 = vld [vmem:[#allocation116_spill] sm:$0xff] }
 0x4b1   : > { %13983 = vst [vmem:[#allocation137_spill] sm:$0xff] %v10708_v7  ;;  %4015 = vadd.xlane.f32.xlu1 %v4014_v24  ;;  %4847 = vmatmul.mubr.bf16.gmra.mrb[56].mxu0 %v4650_v51  ;;  %v2355_v4 = vunpack.c.h.bf16 %v2152_v15  ;;  %7245 = vpow2.f32 %v3514_v25  ;;  %v4411_v51 = vmul.f32 %v7230_v46, %v13989_v49  ;;  %v13992_v15 = vld [vmem:[#allocation78_spill] sm:$0xff]  ;;  %v4410_v36 = vmul.f32 %v7230_v46, %v13993_v11  ;;  %v13994_v26 = vld [vmem:[#allocation144_spill] sm:$0xff] }
 0x4b2   : > { %13985 = vst [vmem:[#allocation111_spill] sm:$0xff] %v10711_v27  ;;  %v10715_v47 = vpop.eup %7231  ;;  %v10719_v37 = vpop.xlane.xlu1 %3955  ;;  %7247 = vpow2.f32 %v3516_v0 }
 0x4b3   : > { %v2843_v21 = vpop.xlane.xlu0 %2842  ;;  %v7234_v5 = vpop.eup %7233  ;;  %3976 = vadd.xlane.f32.xlu0 %v3975_v18  ;;  %7249 = vrcp.f32 %v10483_v23 }
 0x4b4   : > { %v3184_v24 = vsub.f32 %v13986_v3, %v2843_v21  ;;  %v3185_v39 = vsub.f32 %v13987_v52, %v2843_v21  ;;  %v10723_v31 = vpop.f32.mrb[232].mxu1  ;;  %v10726_v58 = vpop.eup %7235  ;;  %v4413_v17 = vmul.f32 %v7234_v5, %v13992_v15  ;;  %v4412_v25 = vmul.f32 %v7234_v5, %v13994_v26  ;;  %v2141_v5 = vld [vmem:[#allocation5 + $0x1f8] sm:$0xff] }
 0x4b5   : > { %13988 = vst [vmem:[#allocation54_spill] sm:$0xff] %v10723_v31  ;;  %13990 = vst [vmem:[#allocation131_spill] sm:$0xff] %v10726_v58  ;;  %v10728_v35 = vpop.f32.mrb[233].mxu1  ;;  %v10733_v18 = vpop.eup %7237  ;;  %v2895_v21 = vmax.f32 %v10708_v7, %v10711_v27  ;;  %v2328_v3 = vunpack.c.l.bf16 %v2139_v20  ;;  %v2329_v52 = vunpack.c.h.bf16 %v2139_v20  ;;  %2935 = vmax.xlane.f32.xlu1 %v2934_v38  ;;  %v13998_v27 = vld [vmem:[#allocation20_spill] sm:$0xff]  ;;  %v13999_v20 = vld [vmem:[#allocation138_spill] sm:$0xff] }
 0x4b6   : > { %13991 = vst [vmem:[#allocation45_spill] sm:$0xff] %v10728_v35  ;;  %13995 = vst [vmem:[#allocation107_spill] sm:$0xff] %v10733_v18  ;;  %v10738_v49 = vpop.f32.mrb[234].mxu1  ;;  %v10740_v0 = vpop.eup %7239  ;;  %v3522_v35 = vmul.f32 1.442695, %v3184_v24  ;;  %v4653_v31 = vpack.c.bf16 %v4413_v17, %v4411_v51  ;;  %v4020_v26 = vadd.f32 %v10733_v18, %v10726_v58  ;;  %v4652_v46 = vpack.c.bf16 %v4412_v25, %v4410_v36  ;;  %v14001_v36 = vld [vmem:[#allocation110_spill] sm:$0xff] }
 0x4b7   : > { %13996 = vst [vmem:[#allocation82_spill] sm:$0xff] %v10738_v49  ;;  %v3929_v15 = vpop.xlane.xlu0 %3928  ;;  %v10742_v11 = vpop.f32.mrb[235].mxu1  ;;  %v10747_v7 = vadd.f32 %v2354_v32, %v13998_v27  ;;  %v10750_v23 = vadd.f32 %v2355_v4, %v13999_v20  ;;  %v3524_v38 = vmul.f32 1.442695, %v3185_v39  ;;  %2896 = vmax.xlane.f32.xlu0 %v2895_v21  ;;  %v10758_v25 = vadd.f32 %v2329_v52, %v14001_v36 }
 0x4b8   : > { %13997 = vst [vmem:[#allocation84_spill] sm:$0xff] %v10742_v11  ;;  %v2876_v49 = vpop.xlane.xlu1 %2875  ;;  %4854 = vmatprep.mubr.bf16.mxu0 %v4653_v31  ;;  %v7242_v51 = vpop.eup %7241  ;;  %v14000_v11 = vld [vmem:[#allocation51_spill] sm:$0xff]  ;;  %7251 = vrcp.f32 %v3929_v15  ;;  %v3981_v27 = vadd.f32 %v10740_v0, %v10715_v47  ;;  %v2332_v32 = vunpack.c.l.bf16 %v2141_v5 }
 0x4b9   : > { %v3206_v24 = vsub.f32 %v10126_v53, %v2876_v49  ;;  %v3207_v17 = vsub.f32 %v10129_v13, %v2876_v49  ;;  %v10755_v2 = vadd.f32 %v2328_v3, %v14000_v11  ;;  %4021 = vadd.xlane.f32.xlu1 %v4020_v26  ;;  %4855 = vmatmul.mubr.bf16.gmra.mrb[60].mxu0 %v4652_v46  ;;  %7253 = vpow2.f32 %v3522_v35  ;;  %v14005_v11 = vld [vmem:[#allocation123_spill] sm:$0xff]  ;;  %v14006_v46 = vld [vmem:[#allocation33_spill] sm:$0xff] }
 0x4ba   : > { %v10762_v31 = vpop.f32.mrb[236].mxu1  ;;  %v7244_v13 = vpop.eup %7243  ;;  %v2940_v21 = vmax.f32 %v10747_v7, %v10750_v23  ;;  %7255 = vpow2.f32 %v3524_v38  ;;  %v4415_v26 = vmul.f32 %v7242_v51, %v14005_v11  ;;  %v2333_v38 = vunpack.c.h.bf16 %v2141_v5 }
 0x4bb   : > { %v3566_v4 = vmul.f32 1.442695, %v3206_v24  ;;  %v3568_v39 = vmul.f32 1.442695, %v3207_v17  ;;  %v2849_v53 = vpop.xlane.xlu0 %2848  ;;  %14002 = vst [vmem:[#allocation117_spill] sm:$0xff] %v10762_v31  ;;  %3982 = vadd.xlane.f32.xlu0 %v3981_v27  ;;  %v10770_v15 = vpop.f32.mrb[237].mxu1  ;;  %v4417_v20 = vmul.f32 %v7244_v13, %v14006_v46 }
 0x4bc   : > { %v3188_v3 = vsub.f32 %v10150_v8, %v2849_v53  ;;  %v3189_v52 = vsub.f32 %v10153_v62, %v2849_v53  ;;  %v10768_v49 = vpop.xlane.xlu1 %3961  ;;  %14003 = vst [vmem:[#allocation78_spill] sm:$0xff] %v10770_v15  ;;  %v10772_v35 = vpop.f32.mrb[238].mxu1  ;;  %v14007_v24 = vld [vmem:[#allocation80_spill] sm:$0xff]  ;;  %v2901_v8 = vmax.f32 %v10755_v2, %v10758_v25  ;;  %v2154_v27 = vld [vmem:[#allocation5 + $0x260] sm:$0xff]  ;;  %v14009_v53 = vld [vmem:[#allocation122_spill] sm:$0xff] }
 0x4bd   : > { %7257 = vpow2.f32 %v3566_v4  ;;  %14004 = vst [vmem:[#allocation116_spill] sm:$0xff] %v10772_v35  ;;  %v4416_v17 = vmul.f32 %v7244_v13, %v14007_v24  ;;  %v10777_v36 = vpop.eup %7245  ;;  %v10781_v62 = vld [vmem:[#allocation5 + $0x208] sm:$0xff]  ;;  %2941 = vmax.xlane.f32.xlu1 %v2940_v21  ;;  %v10783_v4 = vpop.f32.mrb[239].mxu1  ;;  %v4414_v35 = vmul.f32 %v7242_v51, %v14009_v53  ;;  %v4655_v24 = vpack.c.bf16 %v4417_v20, %v4415_v26  ;;  %v14010_v53 = vld [vmem:[#allocation114_spill] sm:$0xff] }
 0x4be   : > { %7259 = vpow2.f32 %v3568_v39  ;;  %14008 = vst [vmem:[#allocation144_spill] sm:$0xff] %v10783_v4  ;;  %v10786_v11 = vpop.eup %7247  ;;  %v3530_v13 = vmul.f32 1.442695, %v3188_v3  ;;  %v3532_v31 = vmul.f32 1.442695, %v3189_v52  ;;  %v2336_v18 = vunpack.c.l.bf16 %v10781_v62 }
 0x4bf   : > { %7261 = vrcp.f32 %v10523_v28  ;;  %v3935_v46 = vpop.xlane.xlu0 %3934  ;;  %v7250_v15 = vpop.eup %7249  ;;  %2902 = vmax.xlane.f32.xlu0 %v2901_v8  ;;  %v4654_v58 = vpack.c.bf16 %v4416_v17, %v4414_v35  ;;  %v2358_v39 = vunpack.c.l.bf16 %v2154_v27  ;;  %4862 = vmatprep.mubr.bf16.mxu0 %v4655_v24  ;;  %v10793_v4 = vadd.f32 %v2332_v32, %v14010_v53  ;;  %v14011_v28 = vld [vmem:[#allocation115_spill] sm:$0xff] }
 0x4c0   : > { %v2882_v5 = vpop.xlane.xlu1 %2881  ;;  %v10796_v3 = vadd.f32 %v2333_v38, %v14011_v28  ;;  %7263 = vrcp.f32 %v3935_v46  ;;  %v3987_v52 = vadd.f32 %v10786_v11, %v10777_v36  ;;  %v2359_v35 = vunpack.c.h.bf16 %v2154_v27  ;;  %v14014_v38 = vld [vmem:[#allocation128_spill] sm:$0xff]  ;;  %v14017_v28 = vld [vmem:[#allocation143_spill] sm:$0xff] }
 0x4c1   : > { %v3210_v21 = vsub.f32 %v10174_v6, %v2882_v5  ;;  %v3211_v51 = vsub.f32 %v10177_v48, %v2882_v5  ;;  %4863 = vmatmul.mubr.bf16.gmra.mrb[64].mxu0 %v4654_v58  ;;  %7265 = vpow2.f32 %v3530_v13  ;;  %v4419_v46 = vmul.f32 %v7250_v15, %v14014_v38  ;;  %v14015_v58 = vld [vmem:[#allocation127_spill] sm:$0xff] }
 0x4c2   : > { %v10800_v8 = vpop.f32.mrb[240].mxu1  ;;  %v7252_v6 = vpop.eup %7251  ;;  %7267 = vpow2.f32 %v3532_v31  ;;  %v4418_v24 = vmul.f32 %v7250_v15, %v14015_v58  ;;  %v2337_v53 = vunpack.c.h.bf16 %v10781_v62  ;;  %v10820_v15 = vadd.f32 %v2358_v39, %v14017_v28 }
 0x4c3   : > { %v3574_v26 = vmul.f32 1.442695, %v3210_v21  ;;  %v3576_v20 = vmul.f32 1.442695, %v3211_v51  ;;  %v2855_v17 = vpop.xlane.xlu0 %2854  ;;  %14012 = vst [vmem:[#allocation20_spill] sm:$0xff] %v10800_v8  ;;  %3988 = vadd.xlane.f32.xlu0 %v3987_v52  ;;  %v10803_v32 = vpop.f32.mrb[241].mxu1  ;;  %v4421_v21 = vmul.f32 %v7252_v6, %v10123_v40  ;;  %v4420_v31 = vmul.f32 %v7252_v6, %v10103_v60 }
 0x4c4   : > { %v3192_v48 = vsub.f32 %v10192_v50, %v2855_v17  ;;  %14013 = vst [vmem:[#allocation138_spill] sm:$0xff] %v10803_v32  ;;  %v10807_v5 = vpop.eup %7253  ;;  %v3193_v27 = vsub.f32 %v10195_v61, %v2855_v17  ;;  %v10810_v13 = vpop.f32.mrb[242].mxu1  ;;  %v2907_v50 = vmax.f32 %v10793_v4, %v10796_v3  ;;  %v2156_v52 = vld [vmem:[#allocation5 + $0x270] sm:$0xff] }
 0x4c5   : > { %7269 = vpow2.f32 %v3574_v26  ;;  %14016 = vst [vmem:[#allocation51_spill] sm:$0xff] %v10810_v13  ;;  %v10814_v51 = vpop.eup %7255  ;;  %v10822_v26 = vpop.f32.mrb[243].mxu1  ;;  %v14020_v17 = vld [vmem:[#allocation77_spill] sm:$0xff]  ;;  %v4657_v6 = vpack.c.bf16 %v4421_v21, %v4419_v46  ;;  %v4656_v38 = vpack.c.bf16 %v4420_v31, %v4418_v24  ;;  %v2362_v28 = vunpack.c.l.bf16 %v2156_v52 }
 0x4c6   : > { %7271 = vpow2.f32 %v3576_v20  ;;  %14018 = vst [vmem:[#allocation110_spill] sm:$0xff] %v10822_v26  ;;  %v10827_v40 = vadd.f32 %v2359_v35, %v14020_v17  ;;  %v3538_v62 = vmul.f32 1.442695, %v3192_v48  ;;  %v3540_v13 = vmul.f32 1.442695, %v3193_v27  ;;  %v14022_v26 = vld [vmem:[#allocation120_spill] sm:$0xff] }
 0x4c7   : > { %v10824_v61 = vpop.eup %7257  ;;  %7273 = vrcp.f32 %v10551_v57  ;;  %v3941_v60 = vpop.xlane.xlu0 %3940  ;;  %2908 = vmax.xlane.f32.xlu0 %v2907_v50  ;;  %4870 = vmatprep.mubr.bf16.mxu0 %v4657_v6  ;;  %v10835_v32 = vadd.f32 %v2336_v18, %v14022_v26  ;;  %v14023_v35 = vld [vmem:[#allocation121_spill] sm:$0xff]  ;;  %v3993_v57 = vadd.f32 %v10814_v51, %v10807_v5  ;;  %v2145_v48 = vld [vmem:[#allocation5 + $0x218] sm:$0xff]  ;;  %v2363_v24 = vunpack.c.h.bf16 %v2156_v52 }
 0x4c8   : > { %14019 = vst [vmem:[#allocation123_spill] sm:$0xff] %v10824_v61  ;;  %v10830_v58 = vpop.eup %7259  ;;  %v10838_v17 = vadd.f32 %v2337_v53, %v14023_v35  ;;  %7275 = vrcp.f32 %v3941_v60  ;;  %v2946_v46 = vmax.f32 %v10820_v15, %v10827_v40  ;;  %v14026_v53 = vld [vmem:[#allocation130_spill] sm:$0xff]  ;;  %v14027_v60 = vld [vmem:[#allocation129_spill] sm:$0xff] }
 0x4c9   : > { %14021 = vst [vmem:[#allocation33_spill] sm:$0xff] %v10830_v58  ;;  %v7262_v39 = vpop.eup %7261  ;;  %v4026_v20 = vadd.f32 %v10830_v58, %v10824_v61  ;;  %4871 = vmatmul.mubr.bf16.gmra.mrb[68].mxu0 %v4656_v38  ;;  %7277 = vpow2.f32 %v3538_v62 }
 0x4ca   : > { %v10844_v21 = vpop.f32.mrb[244].mxu1  ;;  %v7264_v31 = vpop.eup %7263  ;;  %v4423_v26 = vmul.f32 %v7262_v39, %v14026_v53  ;;  %v4422_v6 = vmul.f32 %v7262_v39, %v14027_v60  ;;  %7279 = vpow2.f32 %v3540_v13  ;;  %v2341_v53 = vunpack.c.h.bf16 %v2145_v48 }
 0x4cb   : > { %4027 = vadd.xlane.f32.xlu1 %v4026_v20  ;;  %v2861_v27 = vpop.xlane.xlu0 %2860  ;;  %14024 = vst [vmem:[#allocation80_spill] sm:$0xff] %v10844_v21  ;;  %3994 = vadd.xlane.f32.xlu0 %v3993_v57  ;;  %v10847_v50 = vpop.f32.mrb[245].mxu1  ;;  %v4425_v35 = vmul.f32 %v7264_v31, %v10185_v42  ;;  %v4424_v62 = vmul.f32 %v7264_v31, %v10171_v30  ;;  %v14031_v21 = vld [vmem:[#allocation79_spill] sm:$0xff]  ;;  %7281 = vrcp.f32 %v10580_v22 }
 0x4cc   : > { %v3196_v18 = vsub.f32 %v10220_v59, %v2861_v27  ;;  %14025 = vst [vmem:[#allocation122_spill] sm:$0xff] %v10847_v50  ;;  %v10851_v38 = vpop.eup %7265  ;;  %v3197_v52 = vsub.f32 %v10223_v44, %v2861_v27  ;;  %v10854_v20 = vpop.f32.mrb[246].mxu1  ;;  %v2913_v59 = vmax.f32 %v10835_v32, %v10838_v17  ;;  %v2340_v50 = vunpack.c.l.bf16 %v2145_v48  ;;  %v14034_v44 = vld [vmem:[#allocation25_spill] sm:$0xff] }
 0x4cd   : > { %14028 = vst [vmem:[#allocation114_spill] sm:$0xff] %v10851_v38  ;;  %14029 = vst [vmem:[#allocation115_spill] sm:$0xff] %v10854_v20  ;;  %v10858_v57 = vpop.eup %7267  ;;  %v10863_v39 = vadd.f32 %v2362_v28, %v14031_v21  ;;  %v10865_v60 = vpop.f32.mrb[247].mxu1  ;;  %v10870_v27 = vadd.f32 %v2363_v24, %v14034_v44  ;;  %v4659_v42 = vpack.c.bf16 %v4425_v35, %v4423_v26  ;;  %v14037_v24 = vld [vmem:[#allocation126_spill] sm:$0xff] }
 0x4ce   : > { %14030 = vst [vmem:[#allocation128_spill] sm:$0xff] %v10858_v57  ;;  %14032 = vst [vmem:[#allocation127_spill] sm:$0xff] %v10865_v60  ;;  %v4658_v31 = vpack.c.bf16 %v4424_v62, %v4422_v6  ;;  %v3546_v8 = vmul.f32 1.442695, %v3196_v18  ;;  %v3548_v28 = vmul.f32 1.442695, %v3197_v52  ;;  %v10881_v44 = vadd.f32 %v2341_v53, %v14037_v24 }
 0x4cf   : > { %v10867_v13 = vpop.eup %7269  ;;  %2947 = vmax.xlane.f32.xlu1 %v2946_v46  ;;  %v3947_v30 = vpop.xlane.xlu0 %3946  ;;  %2914 = vmax.xlane.f32.xlu0 %v2913_v59  ;;  %v14036_v60 = vld [vmem:[#allocation125_spill] sm:$0xff]  ;;  %v3999_v22 = vadd.f32 %v10858_v57, %v10851_v38  ;;  %v2147_v46 = vld [vmem:[#allocation5 + $0x228] sm:$0xff]  ;;  %v2952_v18 = vmax.f32 %v10863_v39, %v10870_v27 }
 0x4d0   : > { %14033 = vst [vmem:[#allocation143_spill] sm:$0xff] %v10867_v13  ;;  %v10873_v20 = vpop.eup %7271  ;;  %4878 = vmatprep.mubr.bf16.mxu0 %v4659_v42  ;;  %v10878_v61 = vadd.f32 %v2340_v50, %v14036_v60  ;;  %7283 = vrcp.f32 %v3947_v30  ;;  %v14039_v50 = vld [vmem:[#allocation28_spill] sm:$0xff]  ;;  %v14043_v42 = vld [vmem:[#allocation94_spill] sm:$0xff] }
 0x4d1   : > { %14035 = vst [vmem:[#allocation77_spill] sm:$0xff] %v10873_v20  ;;  %v7274_v48 = vpop.eup %7273  ;;  %v4032_v21 = vadd.f32 %v10873_v20, %v10867_v13  ;;  %4879 = vmatmul.mubr.bf16.gmra.mrb[72].mxu0 %v4658_v31  ;;  %7285 = vpow2.f32 %v3546_v8  ;;  %v14041_v59 = vld [vmem:[#allocation32_spill] sm:$0xff] }
 0x4d2   : > { %v10887_v6 = vpop.f32.mrb[248].mxu1  ;;  %v7276_v52 = vpop.eup %7275  ;;  %v4427_v53 = vmul.f32 %v7274_v48, %v14041_v59  ;;  %v14042_v60 = vld [vmem:[#allocation56_spill] sm:$0xff]  ;;  %7287 = vpow2.f32 %v3548_v28  ;;  %v2919_v8 = vmax.f32 %v10878_v61, %v10881_v44 }
 0x4d3   : > { %4033 = vadd.xlane.f32.xlu1 %v4032_v21  ;;  %v2867_v26 = vpop.xlane.xlu0 %2866  ;;  %14038 = vst [vmem:[#allocation120_spill] sm:$0xff] %v10887_v6  ;;  %4000 = vadd.xlane.f32.xlu0 %v3999_v22  ;;  %v10890_v62 = vpop.f32.mrb[249].mxu1  ;;  %v4426_v30 = vmul.f32 %v7274_v48, %v14042_v60  ;;  %v14045_v21 = vld [vmem:[#allocation16_spill] sm:$0xff]  ;;  %v2344_v22 = vunpack.c.l.bf16 %v2147_v46  ;;  %7289 = vrcp.f32 %v10623_v1 }
 0x4d4   : > { %v3200_v35 = vsub.f32 %v14039_v50, %v2867_v26  ;;  %14040 = vst [vmem:[#allocation121_spill] sm:$0xff] %v10890_v62  ;;  %v3201_v31 = vsub.f32 %v14043_v42, %v2867_v26  ;;  %v10895_v24 = vpop.f32.mrb[250].mxu1  ;;  %v4429_v13 = vmul.f32 %v7276_v52, %v14045_v21  ;;  %v14046_v20 = vld [vmem:[#allocation92_spill] sm:$0xff]  ;;  %v10899_v58 = vpop.eup %7277  ;;  %v2345_v50 = vunpack.c.h.bf16 %v2147_v46 }
 0x4d5   : > { %14044 = vst [vmem:[#allocation130_spill] sm:$0xff] %v10895_v24  ;;  %v4428_v6 = vmul.f32 %v7276_v52, %v14046_v20  ;;  %14047 = vst [vmem:[#allocation129_spill] sm:$0xff] %v10899_v58  ;;  %v10903_v62 = vpop.f32.mrb[251].mxu1  ;;  %v10905_v59 = vpop.eup %7279  ;;  %v14050_v42 = vld [vmem:[#allocation40_spill] sm:$0xff]  ;;  %v14051_v24 = vld [vmem:[#allocation49_spill] sm:$0xff] }
 0x4d6   : > { %14048 = vst [vmem:[#allocation79_spill] sm:$0xff] %v10903_v62  ;;  %14049 = vst [vmem:[#allocation25_spill] sm:$0xff] %v10905_v59  ;;  %v4661_v28 = vpack.c.bf16 %v4429_v13, %v4427_v53  ;;  %v3554_v60 = vmul.f32 1.442695, %v3200_v35  ;;  %v7282_v20 = vpop.eup %7281  ;;  %v3556_v52 = vmul.f32 1.442695, %v3201_v31  ;;  %v10909_v21 = vadd.f32 %v2344_v22, %v14050_v42 }
 0x4d7   : > { %2953 = vmax.xlane.f32.xlu1 %v2952_v18  ;;  %v3953_v48 = vpop.xlane.xlu0 %3952  ;;  %v4660_v26 = vpack.c.bf16 %v4428_v6, %v4426_v30  ;;  %2920 = vmax.xlane.f32.xlu0 %v2919_v8  ;;  %v10912_v46 = vadd.f32 %v2345_v50, %v14051_v24  ;;  %v4005_v1 = vadd.f32 %v10905_v59, %v10899_v58  ;;  %v2149_v18 = vld [vmem:[#allocation5 + $0x238] sm:$0xff]  ;;  %v14053_v35 = vld [vmem:[#allocation95_spill] sm:$0xff]  ;;  %v14055_v31 = vld [vmem:[#allocation136_spill] sm:$0xff] }
 0x4d8   : > { %4886 = vmatprep.mubr.bf16.mxu0 %v4661_v28  ;;  %7291 = vrcp.f32 %v3953_v48  ;;  %v4431_v8 = vmul.f32 %v7282_v20, %v14055_v31  ;;  %v14056_v24 = vld [vmem:[#allocation135_spill] sm:$0xff]  ;;  %v14057_v50 = vld [vmem:[#allocation96_spill] sm:$0xff]  ;;  %v14060_v58 = vld [vmem:[#allocation93_spill] sm:$0xff] }
 0x4d9   : > { %4887 = vmatmul.mubr.bf16.gmra.mrb[76].mxu0 %v4660_v26  ;;  %7293 = vpow2.f32 %v3554_v60  ;;  %v4430_v22 = vmul.f32 %v7282_v20, %v14056_v24  ;;  %v14059_v26 = vld [vmem:[#allocation21_spill] sm:$0xff]  ;;  %v2925_v60 = vmax.f32 %v10909_v21, %v10912_v46 }
 0x4da   : > { %v10916_v13 = vpop.f32.mrb[252].mxu1  ;;  %v7284_v6 = vpop.eup %7283  ;;  %7295 = vpow2.f32 %v3556_v52 }
 0x4db   : > { %v2873_v62 = vpop.xlane.xlu0 %2872  ;;  %14052 = vst [vmem:[#allocation125_spill] sm:$0xff] %v10916_v13  ;;  %4006 = vadd.xlane.f32.xlu0 %v4005_v1  ;;  %v10919_v30 = vpop.f32.mrb[253].mxu1  ;;  %v4433_v42 = vmul.f32 %v7284_v6, %v14059_v26  ;;  %v4432_v13 = vmul.f32 %v7284_v6, %v14060_v58  ;;  %v2348_v1 = vunpack.c.l.bf16 %v2149_v18  ;;  %7297 = vrcp.f32 %v10719_v37  ;;  %v14064_v6 = vld [vmem:[#allocation23_spill] sm:$0xff]  ;;  %v2151_v37 = vld [vmem:[#allocation5 + $0x248] sm:$0xff] }
 0x4dc   : > { %v3204_v53 = vsub.f32 %v14053_v35, %v2873_v62  ;;  %14054 = vst [vmem:[#allocation126_spill] sm:$0xff] %v10919_v30  ;;  %v3205_v48 = vsub.f32 %v14057_v50, %v2873_v62  ;;  %v10924_v28 = vpop.f32.mrb[254].mxu1  ;;  %v10928_v59 = vpop.eup %7285  ;;  %v2349_v35 = vunpack.c.h.bf16 %v2149_v18 }
 0x4dd   : > { %14058 = vst [vmem:[#allocation28_spill] sm:$0xff] %v10924_v28  ;;  %14061 = vst [vmem:[#allocation32_spill] sm:$0xff] %v10928_v59  ;;  %v10932_v30 = vpop.f32.mrb[255].mxu1  ;;  %v10934_v31 = vpop.eup %7287  ;;  %v4663_v20 = vpack.c.bf16 %v4433_v42, %v4431_v8  ;;  %v4662_v52 = vpack.c.bf16 %v4432_v13, %v4430_v22  ;;  %v10938_v26 = vadd.f32 %v2348_v1, %v14064_v6  ;;  %v14065_v28 = vld [vmem:[#allocation27_spill] sm:$0xff]  ;;  %v14067_v22 = vld [vmem:[#allocation142_spill] sm:$0xff] }
 0x4de   : > { %14062 = vst [vmem:[#allocation56_spill] sm:$0xff] %v10932_v30  ;;  %14063 = vst [vmem:[#allocation94_spill] sm:$0xff] %v10934_v31  ;;  %v3562_v24 = vmul.f32 1.442695, %v3204_v53  ;;  %v7290_v50 = vpop.eup %7289  ;;  %v3564_v58 = vmul.f32 1.442695, %v3205_v48  ;;  %v10941_v38 = vadd.f32 %v2349_v35, %v14065_v28  ;;  %v4011_v18 = vadd.f32 %v10934_v31, %v10928_v59 }
 0x4df   : > { %v3959_v62 = vpop.xlane.xlu0 %3958  ;;  %2926 = vmax.xlane.f32.xlu0 %v2925_v60  ;;  %4894 = vmatprep.mubr.bf16.mxu0 %v4663_v20  ;;  %v14066_v13 = vld [vmem:[#allocation167_spill] sm:$0xff]  ;;  %v4435_v48 = vmul.f32 %v7290_v50, %v14067_v22  ;;  %v14068_v42 = vld [vmem:[#allocation141_spill] sm:$0xff]  ;;  %v14069_v1 = vld [vmem:[#allocation168_spill] sm:$0xff] }
 0x4e0   : > { %7299 = vrcp.f32 %v3959_v62  ;;  %v4434_v60 = vmul.f32 %v7290_v50, %v14068_v42  ;;  %v14070_v35 = vld [vmem:[#allocation158_spill] sm:$0xff]  ;;  %v14071_v20 = vld [vmem:[#allocation156_spill] sm:$0xff]  ;;  %v2931_v59 = vmax.f32 %v10938_v26, %v10941_v38 }
 0x4e1   : > { %4895 = vmatmul.mubr.bf16.gmra.mrb[80].mxu0 %v4662_v52  ;;  %7301 = vpow2.f32 %v3562_v24  ;;  %v2352_v24 = vunpack.c.l.bf16 %v2151_v37 }
 0x4e2   : > { %v7292_v8 = vpop.eup %7291  ;;  %7303 = vpow2.f32 %v3564_v58 }
 0x4e3   : > { %v2879_v30 = vpop.xlane.xlu0 %2878  ;;  %4012 = vadd.xlane.f32.xlu0 %v4011_v18  ;;  %v4437_v62 = vmul.f32 %v7292_v8, %v14070_v35  ;;  %v4436_v52 = vmul.f32 %v7292_v8, %v14071_v20  ;;  %v10951_v6 = vpop.eup %7293  ;;  %v2353_v18 = vunpack.c.h.bf16 %v2151_v37  ;;  %v14075_v8 = vld [vmem:[#allocation134_spill] sm:$0xff] }
 0x4e4   : > { %v3208_v53 = vsub.f32 %v14066_v13, %v2879_v30  ;;  %v3209_v28 = vsub.f32 %v14069_v1, %v2879_v30  ;;  %14072 = vst [vmem:[#allocation16_spill] sm:$0xff] %v10951_v6  ;;  %v10955_v31 = vpop.eup %7295  ;;  %v14074_v30 = vld [vmem:[#allocation133_spill] sm:$0xff]  ;;  %v2153_v37 = vld [vmem:[#allocation5 + $0x258] sm:$0xff] }
 0x4e5   : > { %14073 = vst [vmem:[#allocation92_spill] sm:$0xff] %v10955_v31  ;;  %v4665_v13 = vpack.c.bf16 %v4437_v62, %v4435_v48  ;;  %v4664_v22 = vpack.c.bf16 %v4436_v52, %v4434_v60  ;;  %v7298_v50 = vpop.eup %7297  ;;  %v10958_v42 = vadd.f32 %v2352_v24, %v14074_v30  ;;  %v10961_v1 = vadd.f32 %v2353_v18, %v14075_v8  ;;  %v14077_v48 = vld [vmem:[#allocation34_spill] sm:$0xff] }
 0x4e6   : > { %v3570_v57 = vmul.f32 1.442695, %v3208_v53  ;;  %v3572_v58 = vmul.f32 1.442695, %v3209_v28  ;;  %v4017_v35 = vadd.f32 %v10955_v31, %v10951_v6  ;;  %v4439_v53 = vmul.f32 %v7298_v50, %v14077_v48  ;;  %v14079_v28 = vld [vmem:[#allocation149_spill] sm:$0xff]  ;;  %v14080_v52 = vld [vmem:[#allocation162_spill] sm:$0xff] }
 0x4e7   : > { %2932 = vmax.xlane.f32.xlu0 %v2931_v59  ;;  %4902 = vmatprep.mubr.bf16.mxu0 %v4665_v13  ;;  %14076 = vst [vmem:[#allocation40_spill] sm:$0xff] %v10961_v1  ;;  %v14078_v59 = vld [vmem:[#allocation164_spill] sm:$0xff]  ;;  %v4438_v62 = vmul.f32 %v7298_v50, %v14079_v28  ;;  %v2937_v18 = vmax.f32 %v10958_v42, %v10961_v1  ;;  %v2357_v30 = vunpack.c.h.bf16 %v2153_v37  ;;  %v11179_v1 = vld [vmem:[#allocation5 + $0x300] sm:$0xff] }
 0x4e8   : > { %7305 = vpow2.f32 %v3570_v57  ;;  %v2155_v28 = vld [vmem:[#allocation5 + $0x268] sm:$0xff] }
 0x4e9   : > { %4903 = vmatmul.mubr.bf16.gmra.mrb[84].mxu0 %v4664_v22  ;;  %7307 = vpow2.f32 %v3572_v58  ;;  %v2356_v22 = vunpack.c.l.bf16 %v2153_v37  ;;  %v14083_v58 = vld [vmem:[#allocation140_spill] sm:$0xff] }
 0x4ea   : > { %v7300_v20 = vpop.eup %7299 }
 0x4eb   : > { %4018 = vadd.xlane.f32.xlu0 %v4017_v35  ;;  %v4441_v60 = vmul.f32 %v7300_v20, %v14078_v59  ;;  %v4440_v24 = vmul.f32 %v7300_v20, %v14080_v52  ;;  %v10969_v13 = vpop.eup %7301  ;;  %v10976_v48 = vadd.f32 %v2356_v22, %v14083_v58  ;;  %v14085_v59 = vld [vmem:[#allocation19_spill] sm:$0xff]  ;;  %v14091_v22 = vld [vmem:[#allocation146_spill] sm:$0xff] }
 0x4ec   : > { %14081 = vst [vmem:[#allocation49_spill] sm:$0xff] %v10969_v13  ;;  %v10973_v8 = vpop.eup %7303  ;;  %v10979_v50 = vadd.f32 %v2357_v30, %v14085_v59 }
 0x4ed   : > { %14082 = vst [vmem:[#allocation95_spill] sm:$0xff] %v10973_v8  ;;  %v4667_v57 = vpack.c.bf16 %v4441_v60, %v4439_v53  ;;  %v4666_v35 = vpack.c.bf16 %v4440_v24, %v4438_v62  ;;  %14084 = vst [vmem:[#allocation136_spill] sm:$0xff] %v10976_v48  ;;  %v4023_v20 = vadd.f32 %v10973_v8, %v10969_v13  ;;  %v2360_v53 = vunpack.c.l.bf16 %v2155_v28  ;;  %v14089_v24 = vld [vmem:[#allocation145_spill] sm:$0xff] }
 0x4ee   : > { %14086 = vst [vmem:[#allocation135_spill] sm:$0xff] %v10979_v50  ;;  %v2943_v37 = vmax.f32 %v10976_v48, %v10979_v50  ;;  %v2361_v60 = vunpack.c.h.bf16 %v2155_v28  ;;  %v14135_v50 = vld [vmem:[#allocation83_spill] sm:$0xff] }
 0x4ef   : > { %2938 = vmax.xlane.f32.xlu0 %v2937_v18  ;;  %4910 = vmatprep.mubr.bf16.mxu0 %v4667_v57  ;;  %v10990_v18 = vadd.f32 %v2360_v53, %v14089_v24 }
 0x4f0   : > { %v10993_v30 = vadd.f32 %v2361_v60, %v14091_v22  ;;  %v2158_v22 = vld [vmem:[#allocation5 + $0x280] sm:$0xff] }
 0x4f1   : > { %4911 = vmatmul.mubr.bf16.gmra.mrb[88].mxu0 %v4666_v35  ;;  %14090 = vst [vmem:[#allocation93_spill] sm:$0xff] %v10990_v18 }
 0x4f2   : > { %v10983_v52 = vpop.eup %7305  ;;  %14092 = vst [vmem:[#allocation23_spill] sm:$0xff] %v10993_v30  ;;  %v2949_v35 = vmax.f32 %v10990_v18, %v10993_v30 }
 0x4f3   : > { %4024 = vadd.xlane.f32.xlu0 %v4023_v20  ;;  %14087 = vst [vmem:[#allocation96_spill] sm:$0xff] %v10983_v52  ;;  %v10987_v62 = vpop.eup %7307 }
 0x4f4   : > { %14088 = vst [vmem:[#allocation21_spill] sm:$0xff] %v10987_v62  ;;  %v4029_v57 = vadd.f32 %v10987_v62, %v10983_v52 }
 0x4f7   : > { %2944 = vmax.xlane.f32.xlu0 %v2943_v37 }
 0x4fb   : > { %4030 = vadd.xlane.f32.xlu0 %v4029_v57 }
 0x4fc   : > { %v10999_v58 = vpop.xlane.xlu1 %3967 }
 0x4ff   : > { %2950 = vmax.xlane.f32.xlu0 %v2949_v35  ;;  %v2366_v35 = vunpack.c.l.bf16 %v2158_v22 }
 0x500   : > { %v2888_v59 = vpop.xlane.xlu1 %2887 }
 0x501   : > { %v3214_v20 = vsub.f32 %v10385_v55, %v2888_v59  ;;  %v3215_v28 = vsub.f32 %v10388_v43, %v2888_v59  ;;  %v2367_v55 = vunpack.c.h.bf16 %v2158_v22 }
 0x503   : > { %v3582_v37 = vmul.f32 1.442695, %v3214_v20  ;;  %v3584_v53 = vmul.f32 1.442695, %v3215_v28  ;;  %v14095_v20 = vld [vmem:[#allocation41_spill] sm:$0xff] }
 0x504   : > { %v11003_v24 = vpop.xlane.xlu1 %3973  ;;  %v11014_v28 = vadd.f32 %v2366_v35, %v14095_v20 }
 0x505   : > { %7309 = vpow2.f32 %v3582_v37 }
 0x506   : > { %7311 = vpow2.f32 %v3584_v53  ;;  %14096 = vst [vmem:[#allocation142_spill] sm:$0xff] %v11014_v28  ;;  %v14097_v53 = vld [vmem:[#allocation150_spill] sm:$0xff] }
 0x508   : > { %v2894_v60 = vpop.xlane.xlu1 %2893 }
 0x509   : > { %v3218_v57 = vsub.f32 %v10427_v29, %v2894_v60  ;;  %v3219_v52 = vsub.f32 %v10430_v41, %v2894_v60  ;;  %v11017_v29 = vadd.f32 %v2367_v55, %v14097_v53  ;;  %v2160_v41 = vld [vmem:[#allocation5 + $0x290] sm:$0xff] }
 0x50a   : > { %v2371_v20 = vunpack.c.h.bf16 %v2160_v41 }
 0x50b   : > { %v3590_v62 = vmul.f32 1.442695, %v3218_v57  ;;  %v3592_v13 = vmul.f32 1.442695, %v3219_v52  ;;  %14098 = vst [vmem:[#allocation141_spill] sm:$0xff] %v11017_v29  ;;  %v2370_v57 = vunpack.c.l.bf16 %v2160_v41  ;;  %v2958_v35 = vmax.f32 %v11014_v28, %v11017_v29 }
 0x50d   : > { %7313 = vpow2.f32 %v3590_v62 }
 0x50e   : > { %v11007_v8 = vpop.xlane.xlu1 %3979  ;;  %7315 = vpow2.f32 %v3592_v13 }
 0x50f   : > { %v11009_v43 = vpop.eup %7309 }
 0x510   : > { %14093 = vst [vmem:[#allocation27_spill] sm:$0xff] %v11009_v43  ;;  %v11011_v59 = vpop.eup %7311 }
 0x511   : > { %14094 = vst [vmem:[#allocation167_spill] sm:$0xff] %v11011_v59  ;;  %v4038_v62 = vadd.f32 %v11011_v59, %v11009_v43 }
 0x512   : > { %v2900_v37 = vpop.xlane.xlu1 %2899 }
 0x513   : > { %v3222_v52 = vsub.f32 %v10469_v16, %v2900_v37  ;;  %v3223_v60 = vsub.f32 %v10472_v10, %v2900_v37  ;;  %4039 = vadd.xlane.f32.xlu1 %v4038_v62  ;;  %v14101_v10 = vld [vmem:[#allocation87_spill] sm:$0xff] }
 0x514   : > { %v11032_v37 = vadd.f32 %v2370_v57, %v14101_v10  ;;  %v2162_v62 = vld [vmem:[#allocation5 + $0x2a0] sm:$0xff] }
 0x515   : > { %v3598_v13 = vmul.f32 1.442695, %v3222_v52  ;;  %v3600_v22 = vmul.f32 1.442695, %v3223_v60  ;;  %v14103_v52 = vld [vmem:[#allocation89_spill] sm:$0xff]  ;;  %v2375_v10 = vunpack.c.h.bf16 %v2162_v62 }
 0x516   : > { %v11023_v30 = vpop.xlane.xlu1 %3985  ;;  %14102 = vst [vmem:[#allocation156_spill] sm:$0xff] %v11032_v37  ;;  %v11035_v60 = vadd.f32 %v2371_v20, %v14103_v52 }
 0x517   : > { %7317 = vpow2.f32 %v3598_v13  ;;  %v11027_v55 = vpop.eup %7313  ;;  %2959 = vmax.xlane.f32.xlu1 %v2958_v35  ;;  %v2374_v35 = vunpack.c.l.bf16 %v2162_v62 }
 0x518   : > { %7319 = vpow2.f32 %v3600_v22  ;;  %14099 = vst [vmem:[#allocation168_spill] sm:$0xff] %v11027_v55  ;;  %v11029_v16 = vpop.eup %7315  ;;  %14104 = vst [vmem:[#allocation133_spill] sm:$0xff] %v11035_v60  ;;  %v2964_v57 = vmax.f32 %v11032_v37, %v11035_v60 }
 0x519   : > { %14100 = vst [vmem:[#allocation158_spill] sm:$0xff] %v11029_v16  ;;  %v4044_v41 = vadd.f32 %v11029_v16, %v11027_v55 }
 0x51a   : > { %v2906_v53 = vpop.xlane.xlu1 %2905 }
 0x51b   : > { %v3226_v43 = vsub.f32 %v10516_v34, %v2906_v53  ;;  %v3227_v59 = vsub.f32 %v10519_v56, %v2906_v53  ;;  %4045 = vadd.xlane.f32.xlu1 %v4044_v41  ;;  %v14107_v56 = vld [vmem:[#allocation91_spill] sm:$0xff]  ;;  %v2164_v41 = vld [vmem:[#allocation5 + $0x2b0] sm:$0xff] }
 0x51c   : > { %v11050_v53 = vadd.f32 %v2374_v35, %v14107_v56  ;;  %v2379_v56 = vunpack.c.h.bf16 %v2164_v41 }
 0x51d   : > { %v3606_v13 = vmul.f32 1.442695, %v3226_v43  ;;  %v3608_v22 = vmul.f32 1.442695, %v3227_v59  ;;  %v14109_v59 = vld [vmem:[#allocation30_spill] sm:$0xff] }
 0x51e   : > { %v11041_v29 = vpop.xlane.xlu1 %3991  ;;  %14108 = vst [vmem:[#allocation164_spill] sm:$0xff] %v11050_v53  ;;  %v11053_v52 = vadd.f32 %v2375_v10, %v14109_v59 }
 0x51f   : > { %7321 = vpow2.f32 %v3606_v13  ;;  %2965 = vmax.xlane.f32.xlu1 %v2964_v57  ;;  %v2378_v57 = vunpack.c.l.bf16 %v2164_v41 }
 0x520   : > { %7323 = vpow2.f32 %v3608_v22  ;;  %14110 = vst [vmem:[#allocation149_spill] sm:$0xff] %v11053_v52  ;;  %v2970_v35 = vmax.f32 %v11050_v53, %v11053_v52  ;;  %v14125_v53 = vld [vmem:[#allocation38_spill] sm:$0xff] }
 0x521   : > { %v11045_v20 = vpop.eup %7317 }
 0x522   : > { %14105 = vst [vmem:[#allocation134_spill] sm:$0xff] %v11045_v20  ;;  %v11047_v34 = vpop.eup %7319  ;;  %v2912_v43 = vpop.xlane.xlu1 %2911 }
 0x523   : > { %14106 = vst [vmem:[#allocation34_spill] sm:$0xff] %v11047_v34  ;;  %v3230_v55 = vsub.f32 %v10540_v19, %v2912_v43  ;;  %v3231_v16 = vsub.f32 %v10545_v45, %v2912_v43  ;;  %v4050_v62 = vadd.f32 %v11047_v34, %v11045_v20  ;;  %v14113_v45 = vld [vmem:[#allocation24_spill] sm:$0xff] }
 0x524   : > { %v11068_v43 = vadd.f32 %v2378_v57, %v14113_v45 }
 0x525   : > { %v3614_v13 = vmul.f32 1.442695, %v3230_v55  ;;  %v3616_v22 = vmul.f32 1.442695, %v3231_v16  ;;  %4051 = vadd.xlane.f32.xlu1 %v4050_v62  ;;  %v14115_v16 = vld [vmem:[#allocation17_spill] sm:$0xff]  ;;  %v2166_v62 = vld [vmem:[#allocation5 + $0x2c0] sm:$0xff] }
 0x526   : > { %v11059_v60 = vpop.xlane.xlu1 %3997  ;;  %14114 = vst [vmem:[#allocation19_spill] sm:$0xff] %v11068_v43  ;;  %v11071_v59 = vadd.f32 %v2379_v56, %v14115_v16  ;;  %v2383_v45 = vunpack.c.h.bf16 %v2166_v62 }
 0x527   : > { %7325 = vpow2.f32 %v3614_v13 }
 0x528   : > { %7327 = vpow2.f32 %v3616_v22  ;;  %14116 = vst [vmem:[#allocation145_spill] sm:$0xff] %v11071_v59  ;;  %v2976_v56 = vmax.f32 %v11068_v43, %v11071_v59 }
 0x529   : > { %v11063_v10 = vpop.eup %7321  ;;  %2971 = vmax.xlane.f32.xlu1 %v2970_v35  ;;  %v2382_v35 = vunpack.c.l.bf16 %v2166_v62  ;;  %7329 = vrcp.f32 %v10768_v49  ;;  %v14121_v49 = vld [vmem:[#allocation157_spill] sm:$0xff]  ;;  %v14124_v62 = vld [vmem:[#allocation47_spill] sm:$0xff] }
 0x52a   : > { %14111 = vst [vmem:[#allocation162_spill] sm:$0xff] %v11063_v10  ;;  %v11065_v19 = vpop.eup %7323  ;;  %v2918_v55 = vpop.xlane.xlu1 %2917 }
 0x52b   : > { %14112 = vst [vmem:[#allocation140_spill] sm:$0xff] %v11065_v19  ;;  %v3234_v20 = vsub.f32 %v10573_v14, %v2918_v55  ;;  %v3235_v34 = vsub.f32 %v10576_v9, %v2918_v55  ;;  %v4056_v41 = vadd.f32 %v11065_v19, %v11063_v10  ;;  %v2168_v10 = vld [vmem:[#allocation5 + $0x2d0] sm:$0xff]  ;;  %v14123_v19 = vld [vmem:[#allocation39_spill] sm:$0xff] }
 0x52d   : > { %v3622_v13 = vmul.f32 1.442695, %v3234_v20  ;;  %v3624_v22 = vmul.f32 1.442695, %v3235_v34  ;;  %4057 = vadd.xlane.f32.xlu1 %v4056_v41  ;;  %v14119_v20 = vld [vmem:[#allocation155_spill] sm:$0xff]  ;;  %v11090_v41 = vadd.f32 %v2383_v45, %v14121_v49  ;;  %v2386_v45 = vunpack.c.l.bf16 %v2168_v10 }
 0x52e   : > { %v11078_v57 = vpop.xlane.xlu1 %4003  ;;  %v11087_v34 = vadd.f32 %v2382_v35, %v14119_v20  ;;  %v14126_v35 = vld [vmem:[#allocation97_spill] sm:$0xff]  ;;  %v2387_v49 = vunpack.c.h.bf16 %v2168_v10 }
 0x52f   : > { %7331 = vpow2.f32 %v3622_v13  ;;  %v3965_v14 = vpop.xlane.xlu0 %3964  ;;  %14122 = vst [vmem:[#allocation87_spill] sm:$0xff] %v11090_v41 }
 0x530   : > { %7333 = vpow2.f32 %v3624_v22  ;;  %14120 = vst [vmem:[#allocation150_spill] sm:$0xff] %v11087_v34 }
 0x531   : > { %v11082_v16 = vpop.eup %7325  ;;  %2977 = vmax.xlane.f32.xlu1 %v2976_v56  ;;  %7335 = vrcp.f32 %v3965_v14  ;;  %v11098_v14 = vld [vmem:[#allocation5 + $0x278] sm:$0xff] }
 0x532   : > { %14117 = vst [vmem:[#allocation146_spill] sm:$0xff] %v11082_v16  ;;  %v11084_v9 = vpop.eup %7327  ;;  %v2924_v55 = vpop.xlane.xlu1 %2923  ;;  %7337 = vrcp.f32 %v10999_v58 }
 0x533   : > { %14118 = vst [vmem:[#allocation41_spill] sm:$0xff] %v11084_v9  ;;  %v3238_v59 = vsub.f32 %v14123_v19, %v2924_v55  ;;  %v3239_v13 = vsub.f32 %v14124_v62, %v2924_v55  ;;  %v4062_v22 = vadd.f32 %v11084_v9, %v11082_v16  ;;  %v2885_v43 = vpop.xlane.xlu0 %2884  ;;  %v2982_v55 = vmax.f32 %v11087_v34, %v11090_v41  ;;  %v11105_v62 = vld [vmem:[#allocation5 + $0x2e0] sm:$0xff]  ;;  %v14129_v16 = vld [vmem:[#allocation161_spill] sm:$0xff] }
 0x534   : > { %v3212_v37 = vsub.f32 %v14125_v53, %v2885_v43  ;;  %v3213_v20 = vsub.f32 %v14126_v35, %v2885_v43  ;;  %v7330_v53 = vpop.eup %7329  ;;  %v2364_v35 = vunpack.c.l.bf16 %v11098_v14  ;;  %v2365_v9 = vunpack.c.h.bf16 %v11098_v14 }
 0x535   : > { %v3630_v56 = vmul.f32 1.442695, %v3238_v59  ;;  %v3632_v52 = vmul.f32 1.442695, %v3239_v13  ;;  %4063 = vadd.xlane.f32.xlu1 %v4062_v22  ;;  %v11114_v41 = vadd.f32 %v2386_v45, %v14129_v16  ;;  %v4442_v48 = vmul.f32 %v7330_v53, %v14135_v50  ;;  %v14138_v50 = vld [vmem:[#allocation198_spill] sm:$0xff] }
 0x536   : > { %v11101_v19 = vpop.xlane.xlu1 %4009  ;;  %v3578_v59 = vmul.f32 1.442695, %v3212_v37  ;;  %v3580_v13 = vmul.f32 1.442695, %v3213_v20  ;;  %v2390_v37 = vunpack.c.l.bf16 %v11105_v62  ;;  %v14131_v20 = vld [vmem:[#allocation163_spill] sm:$0xff] }
 0x537   : > { %7339 = vpow2.f32 %v3630_v56  ;;  %14130 = vst [vmem:[#allocation30_spill] sm:$0xff] %v11114_v41  ;;  %v11118_v34 = vadd.f32 %v2387_v49, %v14131_v20 }
 0x538   : > { %7341 = vpow2.f32 %v3632_v52  ;;  %v3971_v43 = vpop.xlane.xlu0 %3970  ;;  %v6375_v58 = vpop.f32.mrb[32].mxu0 }
 0x539   : > { %v11107_v22 = vpop.eup %7331  ;;  %7343 = vpow2.f32 %v3578_v59  ;;  %2983 = vmax.xlane.f32.xlu1 %v2982_v55  ;;  %v6376_v52 = vpop.f32.mrb[33].mxu0  ;;  %14132 = vst [vmem:[#allocation24_spill] sm:$0xff] %v11118_v34 }
 0x53a   : > { %14127 = vst [vmem:[#allocation89_spill] sm:$0xff] %v11107_v22  ;;  %v11110_v10 = vpop.eup %7333  ;;  %7345 = vpow2.f32 %v3580_v13  ;;  %v2930_v56 = vpop.xlane.xlu1 %2929  ;;  %v11122_v59 = vadd.f32 %v6376_v52, %v6375_v58  ;;  %v14134_v13 = vld [vmem:[#allocation86_spill] sm:$0xff]  ;;  %v11130_v58 = vld [vmem:[#allocation5 + $0x288] sm:$0xff] }
 0x53b   : > { %14128 = vst [vmem:[#allocation91_spill] sm:$0xff] %v11110_v10  ;;  %v3242_v28 = vsub.f32 %v10657_v63, %v2930_v56  ;;  %v3243_v55 = vsub.f32 %v10660_v54, %v2930_v56  ;;  %v6378_v18 = vpop.f32.mrb[34].mxu0  ;;  %v7336_v6 = vpop.eup %7335  ;;  %7347 = vrcp.f32 %v3971_v43  ;;  %v4068_v16 = vadd.f32 %v11110_v10, %v11107_v22  ;;  %v11132_v56 = vld [vmem:[#allocation5 + $0x298] sm:$0xff]  ;;  %v14146_v10 = vld [vmem:[#allocation139_spill] sm:$0xff] }
 0x53c   : > { %14133 = vst [vmem:[#allocation17_spill] sm:$0xff] %v11122_v59  ;;  %v2891_v14 = vpop.xlane.xlu0 %2890  ;;  %v6379_v45 = vpop.f32.mrb[35].mxu0  ;;  %v4443_v31 = vmul.f32 %v7330_v53, %v14134_v13  ;;  %7349 = vrcp.f32 %v11003_v24  ;;  %v14137_v13 = vld [vmem:[#allocation14_spill] sm:$0xff]  ;;  %v2391_v53 = vunpack.c.h.bf16 %v11105_v62  ;;  %v2988_v24 = vmax.f32 %v11114_v41, %v11118_v34 }
 0x53d   : > { %v3638_v49 = vmul.f32 1.442695, %v3242_v28  ;;  %v3640_v20 = vmul.f32 1.442695, %v3243_v55  ;;  %v3216_v63 = vsub.f32 %v10665_v33, %v2891_v14  ;;  %v3217_v54 = vsub.f32 %v10668_v12, %v2891_v14  ;;  %4069 = vadd.xlane.f32.xlu1 %v4068_v16  ;;  %v11142_v33 = vld [vmem:[#allocation5 + $0x2f0] sm:$0xff]  ;;  %v7338_v14 = vpop.eup %7337 }
 0x53e   : > { %v11135_v43 = vadd.f32 %v6379_v45, %v6378_v18  ;;  %v11137_v52 = vpop.xlane.xlu1 %4015  ;;  %v4445_v59 = vmul.f32 %v7336_v6, %v14137_v13  ;;  %v4444_v28 = vmul.f32 %v7336_v6, %v14138_v50  ;;  %v2368_v13 = vunpack.c.l.bf16 %v11130_v58  ;;  %v14143_v6 = vld [vmem:[#allocation148_spill] sm:$0xff] }
 0x53f   : > { %7351 = vpow2.f32 %v3638_v49  ;;  %v3586_v12 = vmul.f32 1.442695, %v3216_v63  ;;  %v3588_v55 = vmul.f32 1.442695, %v3217_v54  ;;  %v14141_v54 = vld [vmem:[#allocation147_spill] sm:$0xff]  ;;  %v11161_v62 = vadd.f32 %v2365_v9, %v14143_v6 }
 0x540   : > { %14136 = vst [vmem:[#allocation155_spill] sm:$0xff] %v11135_v43  ;;  %7353 = vpow2.f32 %v3640_v20  ;;  %v3977_v18 = vpop.xlane.xlu0 %3976  ;;  %v4669_v16 = vpack.c.bf16 %v4445_v59, %v4443_v31  ;;  %v4668_v45 = vpack.c.bf16 %v4444_v28, %v4442_v48  ;;  %v6381_v49 = vpop.f32.mrb[36].mxu0  ;;  %v11154_v50 = vadd.f32 %v2364_v35, %v14141_v54 }
 0x541   : > { %v11146_v43 = vpop.eup %7339  ;;  %7355 = vpow2.f32 %v3586_v12  ;;  %2989 = vmax.xlane.f32.xlu1 %v2988_v24  ;;  %v6382_v59 = vpop.f32.mrb[37].mxu0  ;;  %14144 = vst [vmem:[#allocation38_spill] sm:$0xff] %v11161_v62  ;;  %v14145_v12 = vld [vmem:[#allocation58_spill] sm:$0xff] }
 0x542   : > { %14139 = vst [vmem:[#allocation157_spill] sm:$0xff] %v11146_v43  ;;  %v11151_v63 = vpop.eup %7341  ;;  %7357 = vpow2.f32 %v3588_v55  ;;  %4918 = vmatprep.mubr.bf16.mxu0 %v4669_v16  ;;  %v2936_v48 = vpop.xlane.xlu1 %2935  ;;  %v11165_v54 = vadd.f32 %v6382_v59, %v6381_v49  ;;  %v14149_v55 = vld [vmem:[#allocation169_spill] sm:$0xff]  ;;  %v14150_v24 = vld [vmem:[#allocation170_spill] sm:$0xff] }
 0x543   : > { %14140 = vst [vmem:[#allocation39_spill] sm:$0xff] %v11151_v63  ;;  %v11158_v28 = vpop.eup %7343  ;;  %4919 = vmatmul.mubr.bf16.gmra.mrb[92].mxu0 %v4668_v45  ;;  %v3246_v22 = vsub.f32 %v14145_v12, %v2936_v48  ;;  %v3247_v35 = vsub.f32 %v14146_v10, %v2936_v48  ;;  %v6384_v20 = vpop.f32.mrb[38].mxu0  ;;  %v11170_v16 = vadd.f32 %v2390_v37, %v14149_v55  ;;  %7359 = vrcp.f32 %v3977_v18  ;;  %v14151_v10 = vld [vmem:[#allocation137_spill] sm:$0xff]  ;;  %v14152_v48 = vld [vmem:[#allocation111_spill] sm:$0xff] }
 0x544   : > { %14142 = vst [vmem:[#allocation47_spill] sm:$0xff] %v11158_v28  ;;  %14147 = vst [vmem:[#allocation97_spill] sm:$0xff] %v11165_v54  ;;  %v11167_v34 = vpop.eup %7345  ;;  %v11173_v31 = vadd.f32 %v2391_v53, %v14150_v24  ;;  %v2897_v41 = vpop.xlane.xlu0 %2896  ;;  %v4074_v9 = vadd.f32 %v11151_v63, %v11146_v43  ;;  %v14153_v37 = vld [vmem:[#allocation179_spill] sm:$0xff]  ;;  %7361 = vrcp.f32 %v11007_v8  ;;  %v14157_v63 = vld [vmem:[#allocation108_spill] sm:$0xff] }
 0x545   : > { %14148 = vst [vmem:[#allocation161_spill] sm:$0xff] %v11167_v34  ;;  %v6385_v45 = vpop.f32.mrb[39].mxu0  ;;  %v3646_v6 = vmul.f32 1.442695, %v3246_v22  ;;  %v3648_v12 = vmul.f32 1.442695, %v3247_v35  ;;  %v3220_v49 = vsub.f32 %v14151_v10, %v2897_v41  ;;  %v3221_v59 = vsub.f32 %v14152_v48, %v2897_v41  ;;  %v7348_v54 = vpop.eup %7347 }
 0x546   : > { %v4446_v55 = vmul.f32 %v7338_v14, %v14153_v37  ;;  %4075 = vadd.xlane.f32.xlu1 %v4074_v9  ;;  %v4035_v53 = vadd.f32 %v11167_v34, %v11158_v28  ;;  %v11185_v18 = vadd.f32 %v6385_v45, %v6384_v20  ;;  %v11187_v24 = vpop.xlane.xlu1 %4021  ;;  %v14155_v22 = vld [vmem:[#allocation199_spill] sm:$0xff]  ;;  %v7350_v48 = vpop.eup %7349  ;;  %v2994_v43 = vmax.f32 %v11170_v16, %v11173_v31  ;;  %v14156_v9 = vld [vmem:[#allocation181_spill] sm:$0xff] }
 0x547   : > { %v4448_v35 = vmul.f32 %v7348_v54, %v14155_v22  ;;  %7363 = vpow2.f32 %v3646_v6  ;;  %v3594_v10 = vmul.f32 1.442695, %v3220_v49  ;;  %v3596_v41 = vmul.f32 1.442695, %v3221_v59  ;;  %v14161_v45 = vld [vmem:[#allocation85_spill] sm:$0xff] }
 0x548   : > { %14154 = vst [vmem:[#allocation163_spill] sm:$0xff] %v11185_v18  ;;  %7365 = vpow2.f32 %v3648_v12  ;;  %4036 = vadd.xlane.f32.xlu0 %v4035_v53  ;;  %v3983_v8 = vpop.xlane.xlu0 %3982  ;;  %v4447_v37 = vmul.f32 %v7338_v14, %v14156_v9  ;;  %v4449_v28 = vmul.f32 %v7348_v54, %v14157_v63  ;;  %v6387_v49 = vpop.f32.mrb[40].mxu0  ;;  %v2955_v12 = vmax.f32 %v11154_v50, %v11161_v62  ;;  %v14160_v53 = vld [vmem:[#allocation81_spill] sm:$0xff] }
 0x549   : > { %v11194_v20 = vpop.eup %7351  ;;  %7367 = vpow2.f32 %v3594_v10  ;;  %v4670_v6 = vpack.c.bf16 %v4448_v35, %v4446_v55  ;;  %v11203_v18 = vadd.f32 %v2368_v13, %v14160_v53  ;;  %v6388_v54 = vpop.f32.mrb[41].mxu0  ;;  %v14162_v10 = vunpack.c.h.bf16 %v11130_v58 }
 0x54a   : > { %14158 = vst [vmem:[#allocation86_spill] sm:$0xff] %v11194_v20  ;;  %v11198_v59 = vpop.eup %7353  ;;  %7369 = vpow2.f32 %v3596_v41  ;;  %v4671_v14 = vpack.c.bf16 %v4449_v28, %v4447_v37  ;;  %2995 = vmax.xlane.f32.xlu1 %v2994_v43  ;;  %v2942_v63 = vpop.xlane.xlu1 %2941  ;;  %v11214_v34 = vadd.f32 %v6388_v54, %v6387_v49  ;;  %v14164_v28 = vld [vmem:[#allocation173_spill] sm:$0xff]  ;;  %v14165_v43 = vunpack.c.l.bf16 %v11142_v33  ;;  %v14166_v37 = vld [vmem:[#allocation174_spill] sm:$0xff] }
 0x54b   : > { %14159 = vst [vmem:[#allocation83_spill] sm:$0xff] %v11198_v59  ;;  %v11205_v9 = vpop.eup %7355  ;;  %v11210_v55 = vadd.f32 %v14162_v10, %v14161_v45  ;;  %v3250_v35 = vsub.f32 %v10747_v7, %v2942_v63  ;;  %v3251_v22 = vsub.f32 %v10750_v23, %v2942_v63  ;;  %v6390_v13 = vpop.f32.mrb[42].mxu0  ;;  %v14167_v62 = vunpack.c.h.bf16 %v11142_v33  ;;  %v14168_v33 = vld [vmem:[#allocation65_spill] sm:$0xff] }
 0x54c   : > { %14163 = vst [vmem:[#allocation14_spill] sm:$0xff] %v11214_v34  ;;  %v11216_v53 = vpop.eup %7357  ;;  %v11221_v41 = vadd.f32 %v14165_v43, %v14164_v28  ;;  %7371 = vrcp.f32 %v3983_v8  ;;  %4959 = vmatprep.mubr.bf16.mxu0 %v4671_v14  ;;  %2956 = vmax.xlane.f32.xlu0 %v2955_v12  ;;  %v2903_v7 = vpop.xlane.xlu0 %2902  ;;  %v4080_v23 = vadd.f32 %v11198_v59, %v11194_v20 }
 0x54d   : > { %v11226_v58 = vadd.f32 %v14167_v62, %v14166_v37  ;;  %v6391_v45 = vpop.f32.mrb[43].mxu0  ;;  %4960 = vmatmul.mubr.bf16.vlgmr.msra.gmra.mrb[96].mxu0 %v4670_v6  ;;  %v3654_v49 = vmul.f32 1.442695, %v3250_v35  ;;  %v3656_v63 = vmul.f32 1.442695, %v3251_v22  ;;  %v3224_v54 = vsub.f32 %v10755_v2, %v2903_v7  ;;  %v7360_v28 = vpop.eup %7359  ;;  %v14171_v6 = vld [vmem:[#allocation183_spill] sm:$0xff] }
 0x54e   : > { %v3225_v10 = vsub.f32 %v10758_v25, %v2903_v7  ;;  %7373 = vrcp.f32 %v11023_v30  ;;  %6584 = vmatpush3.bf16.msk.msra.mxu0 %vm10488_vm13, %v14168_v33  ;;  %4081 = vadd.xlane.f32.xlu1 %v4080_v23  ;;  %v4041_v8 = vadd.f32 %v11216_v53, %v11205_v9  ;;  %v11238_v12 = vadd.f32 %v6391_v45, %v6390_v13  ;;  %v14172_v22 = vld [vmem:[#allocation66_spill] sm:$0xff]  ;;  %v14173_v30 = vld [vmem:[#allocation112_spill] sm:$0xff]  ;;  %v7362_v43 = vpop.eup %7361 }
 0x54f   : > { %v4451_v14 = vmul.f32 %v7350_v48, %v14171_v6  ;;  %6585 = vmatprep.subr.msk.bf16.mxu0 %vm10488_vm13, %v14172_v22  ;;  %7375 = vpow2.f32 %v3654_v49  ;;  %v3602_v2 = vmul.f32 1.442695, %v3224_v54  ;;  %v4453_v35 = vmul.f32 %v7360_v28, %v14173_v30  ;;  %v11245_v37 = vld [vmem:[#allocation5 + $0x2a8] sm:$0xff]  ;;  %v14174_v23 = vld [vmem:[#allocation98_spill] sm:$0xff]  ;;  %v14185_v22 = vld [vmem:[#allocation11_spill] sm:$0xff] }
 0x550   : > { %14170 = vst [vmem:[#allocation198_spill] sm:$0xff] %v11238_v12  ;;  %v3604_v25 = vmul.f32 1.442695, %v3225_v10  ;;  %v3000_v7 = vmax.f32 %v11221_v41, %v11226_v58  ;;  %7377 = vpow2.f32 %v3656_v63  ;;  %4042 = vadd.xlane.f32.xlu0 %v4041_v8  ;;  %v3989_v13 = vpop.xlane.xlu0 %3988  ;;  %v4450_v45 = vmul.f32 %v7350_v48, %v14174_v23  ;;  %v14175_v6 = vld [vmem:[#allocation26_spill] sm:$0xff]  ;;  %v6393_v10 = vpop.f32.mrb[44].mxu0  ;;  %v14178_v63 = vld [vmem:[#allocation67_spill] sm:$0xff] }
 0x551   : > { %v4452_v12 = vmul.f32 %v7360_v28, %v14175_v6  ;;  %v11251_v34 = vpop.eup %7363  ;;  %v2373_v49 = vunpack.c.h.bf16 %v11132_v56  ;;  %7379 = vpow2.f32 %v3602_v2  ;;  %v4673_v54 = vpack.c.bf16 %v4453_v35, %v4451_v14  ;;  %v6394_v28 = vpop.f32.mrb[45].mxu0  ;;  %v11264_v2 = vld [vmem:[#allocation5 + $0x310] sm:$0xff]  ;;  %v14180_v14 = vld [vmem:[#allocation68_spill] sm:$0xff] }
 0x552   : > { %14176 = vst [vmem:[#allocation147_spill] sm:$0xff] %v11251_v34  ;;  %v11254_v30 = vpop.eup %7365  ;;  %v2961_v20 = vmax.f32 %v11203_v18, %v11210_v55  ;;  %7381 = vpow2.f32 %v3604_v25  ;;  %6586 = vmatpush3.bf16.msk.msra.mxu0 %vm10488_vm13, %v14178_v63  ;;  %3001 = vmax.xlane.f32.xlu1 %v3000_v7  ;;  %v2376_v23 = vunpack.c.l.bf16 %v11245_v37  ;;  %v11269_v25 = vadd.f32 %v6394_v28, %v6393_v10  ;;  %v6396_v7 = vpop.f32.mrb[46].mxu0 }
 0x553   : > { %14177 = vst [vmem:[#allocation148_spill] sm:$0xff] %v11254_v30  ;;  %v4672_v48 = vpack.c.bf16 %v4452_v12, %v4450_v45  ;;  %v11261_v8 = vpop.eup %7367  ;;  %6587 = vmatprep.subr.msk.bf16.mxu0 %vm10488_vm13, %v14180_v14  ;;  %7383 = vrcp.f32 %v3989_v13  ;;  %4967 = vmatprep.mubr.bf16.mxu0 %v4673_v54  ;;  %v4086_v35 = vadd.f32 %v11254_v30, %v11251_v34  ;;  %v14183_v45 = vld [vmem:[#allocation48_spill] sm:$0xff]  ;;  %v14184_v6 = vunpack.c.l.bf16 %v11132_v56  ;;  %v14187_v54 = vld [vmem:[#allocation22_spill] sm:$0xff]  ;;  %v6397_v34 = vpop.f32.mrb[47].mxu0  ;;  %v14189_v30 = vld [vmem:[#allocation57_spill] sm:$0xff] }
 0x554   : > { %14179 = vst [vmem:[#allocation58_spill] sm:$0xff] %v11261_v8  ;;  %14181 = vst [vmem:[#allocation139_spill] sm:$0xff] %v11269_v25  ;;  %v11273_v12 = vpop.eup %7369  ;;  %v2377_v63 = vunpack.c.h.bf16 %v11245_v37  ;;  %v14186_v14 = vunpack.c.l.bf16 %v11179_v1  ;;  %v14188_v10 = vunpack.c.h.bf16 %v11179_v1  ;;  %2962 = vmax.xlane.f32.xlu0 %v2961_v20  ;;  %v2909_v25 = vpop.xlane.xlu0 %2908  ;;  %v11292_v33 = vadd.f32 %v2373_v49, %v14189_v30  ;;  %v14192_v49 = vld [vmem:[#allocation186_spill] sm:$0xff] }
 0x555   : > { %14182 = vst [vmem:[#allocation169_spill] sm:$0xff] %v11273_v12  ;;  %v11278_v59 = vadd.f32 %v14184_v6, %v14183_v45  ;;  %4968 = vmatmul.mubr.bf16.gmra.mrb[100].mxu0 %v4672_v48  ;;  %v3228_v56 = vsub.f32 %v10793_v4, %v2909_v25  ;;  %v3229_v37 = vsub.f32 %v10796_v3, %v2909_v25  ;;  %v11298_v45 = vld [vmem:[#allocation5 + $0x2b8] sm:$0xff]  ;;  %v2402_v1 = vunpack.c.l.bf16 %v11264_v2  ;;  %v14190_v6 = vld [vmem:[#allocation69_spill] sm:$0xff] }
 0x556   : > { %v11284_v13 = vadd.f32 %v14186_v14, %v14185_v22  ;;  %v11289_v28 = vadd.f32 %v14188_v10, %v14187_v54  ;;  %v4047_v22 = vadd.f32 %v11273_v12, %v11261_v8  ;;  %v7372_v14 = vpop.eup %7371  ;;  %6588 = vmatpush3.bf16.msk.msra.mxu0 %vm10488_vm13, %v14190_v6  ;;  %4087 = vadd.xlane.f32.xlu1 %v4086_v35  ;;  %v14193_v4 = vld [vmem:[#allocation102_spill] sm:$0xff]  ;;  %v2403_v35 = vunpack.c.h.bf16 %v11264_v2  ;;  %v14198_v2 = vld [vmem:[#allocation152_spill] sm:$0xff] }
 0x557   : > { %v11304_v20 = vadd.f32 %v6397_v34, %v6396_v7  ;;  %v4455_v30 = vmul.f32 %v7362_v43, %v14192_v49  ;;  %v4454_v48 = vmul.f32 %v7362_v43, %v14193_v4  ;;  %v14194_v3 = vld [vmem:[#allocation70_spill] sm:$0xff]  ;;  %v3610_v25 = vmul.f32 1.442695, %v3228_v56 }
 0x558   : > { %6589 = vmatprep.subr.msk.bf16.mxu0 %vm10488_vm13, %v14194_v3  ;;  %v3612_v54 = vmul.f32 1.442695, %v3229_v37  ;;  %v4457_v10 = vmul.f32 %v7372_v14, %v10740_v0  ;;  %v11312_v8 = vpop.xlane.xlu1 %4027  ;;  %v4456_v12 = vmul.f32 %v7372_v14, %v10715_v47  ;;  %v7374_v6 = vpop.eup %7373  ;;  %v3006_v34 = vmax.f32 %v11284_v13, %v11289_v28  ;;  %4048 = vadd.xlane.f32.xlu0 %v4047_v22  ;;  %v14197_v14 = vld [vmem:[#allocation151_spill] sm:$0xff] }
 0x559   : > { %14191 = vst [vmem:[#allocation170_spill] sm:$0xff] %v11304_v20  ;;  %7385 = vrcp.f32 %v11041_v29  ;;  %v3995_v43 = vpop.xlane.xlu0 %3994  ;;  %v11319_v7 = vpop.eup %7375  ;;  %v2380_v56 = vunpack.c.l.bf16 %v11298_v45  ;;  %v2967_v47 = vmax.f32 %v11278_v59, %v11292_v33  ;;  %v11327_v20 = vadd.f32 %v2376_v23, %v14197_v14  ;;  %v14199_v22 = vld [vmem:[#allocation71_spill] sm:$0xff] }
 0x55a   : > { %14195 = vst [vmem:[#allocation137_spill] sm:$0xff] %v11319_v7  ;;  %7387 = vpow2.f32 %v3610_v25  ;;  %v4675_v0 = vpack.c.bf16 %v4457_v10, %v4455_v30  ;;  %v4674_v37 = vpack.c.bf16 %v4456_v12, %v4454_v48  ;;  %v6399_v49 = vpop.f32.mrb[48].mxu0  ;;  %v11322_v4 = vpop.eup %7377  ;;  %v11330_v29 = vadd.f32 %v2377_v63, %v14198_v2  ;;  %6590 = vmatpush3.bf16.msk.msra.mxu0 %vm10488_vm13, %v14199_v22  ;;  %v14200_v48 = vld [vmem:[#allocation90_spill] sm:$0xff]  ;;  %v14201_v10 = vld [vmem:[#allocation72_spill] sm:$0xff] }
 0x55b   : > { %14196 = vst [vmem:[#allocation111_spill] sm:$0xff] %v11322_v4  ;;  %7389 = vpow2.f32 %v3612_v54  ;;  %3007 = vmax.xlane.f32.xlu1 %v3006_v34  ;;  %v6400_v30 = vpop.f32.mrb[49].mxu0  ;;  %v11335_v12 = vpop.eup %7379  ;;  %v11338_v25 = vadd.f32 %v2402_v1, %v14200_v48  ;;  %6591 = vmatprep.subr.msk.bf16.mxu0 %vm10488_vm13, %v14201_v10  ;;  %v4092_v23 = vadd.f32 %v11322_v4, %v11319_v7  ;;  %v14203_v2 = vld [vmem:[#allocation18_spill] sm:$0xff] }
 0x55c   : > { %7391 = vrcp.f32 %v3995_v43  ;;  %4975 = vmatprep.mubr.bf16.mxu0 %v4675_v0  ;;  %v11343_v63 = vadd.f32 %v6400_v30, %v6399_v49  ;;  %v2948_v54 = vpop.xlane.xlu1 %2947  ;;  %v6402_v14 = vpop.f32.mrb[50].mxu0  ;;  %v11350_v22 = vadd.f32 %v2403_v35, %v14203_v2  ;;  %2968 = vmax.xlane.f32.xlu0 %v2967_v47  ;;  %v14204_v0 = vld [vmem:[#allocation190_spill] sm:$0xff]  ;;  %v14205_v35 = vld [vmem:[#allocation188_spill] sm:$0xff]  ;;  %v14206_v47 = vld [vmem:[#allocation73_spill] sm:$0xff] }
 0x55d   : > { %v11347_v34 = vpop.eup %7381  ;;  %v2915_v1 = vpop.xlane.xlu0 %2914  ;;  %v3254_v48 = vsub.f32 %v10820_v15, %v2948_v54  ;;  %v3255_v10 = vsub.f32 %v10827_v40, %v2948_v54  ;;  %v4459_v49 = vmul.f32 %v7374_v6, %v14204_v0  ;;  %4976 = vmatmul.mubr.bf16.gmra.mrb[104].mxu0 %v4674_v37  ;;  %v4458_v2 = vmul.f32 %v7374_v6, %v14205_v35  ;;  %v14212_v35 = vld [vmem:[#allocation154_spill] sm:$0xff] }
 0x55e   : > { %14202 = vst [vmem:[#allocation179_spill] sm:$0xff] %v11343_v63  ;;  %v6403_v43 = vpop.f32.mrb[51].mxu0  ;;  %v7384_v30 = vpop.eup %7383  ;;  %v3232_v63 = vsub.f32 %v10835_v32, %v2915_v1  ;;  %v3233_v7 = vsub.f32 %v10838_v17, %v2915_v1  ;;  %v4053_v4 = vadd.f32 %v11347_v34, %v11335_v12  ;;  %7393 = vrcp.f32 %v11059_v60  ;;  %6592 = vmatpush3.bf16.msk.msra.mxu0 %vm10488_vm13, %v14206_v47  ;;  %v14208_v32 = vld [vmem:[#allocation74_spill] sm:$0xff] }
 0x55f   : > { %4093 = vadd.xlane.f32.xlu1 %v4092_v23  ;;  %v3662_v15 = vmul.f32 1.442695, %v3254_v48  ;;  %v11364_v40 = vadd.f32 %v6403_v43, %v6402_v14  ;;  %v4461_v37 = vmul.f32 %v7384_v30, %v10786_v11  ;;  %6593 = vmatprep.subr.msk.bf16.mxu0 %vm10488_vm13, %v14208_v32  ;;  %v3664_v1 = vmul.f32 1.442695, %v3255_v10  ;;  %v14209_v10 = vld [vmem:[#allocation75_spill] sm:$0xff] }
 0x560   : > { %v3618_v17 = vmul.f32 1.442695, %v3232_v63  ;;  %v3620_v54 = vmul.f32 1.442695, %v3233_v7  ;;  %v11370_v6 = vpop.xlane.xlu1 %4033  ;;  %v4460_v60 = vmul.f32 %v7384_v30, %v10777_v36  ;;  %v2381_v0 = vunpack.c.h.bf16 %v11298_v45  ;;  %4054 = vadd.xlane.f32.xlu0 %v4053_v4  ;;  %v14210_v45 = vld [vmem:[#allocation153_spill] sm:$0xff]  ;;  %v14211_v63 = vld [vmem:[#allocation76_spill] sm:$0xff] }
 0x561   : > { %14207 = vst [vmem:[#allocation199_spill] sm:$0xff] %v11364_v40  ;;  %7395 = vpow2.f32 %v3662_v15  ;;  %v4001_v23 = vpop.xlane.xlu0 %4000  ;;  %v4677_v14 = vpack.c.bf16 %v4461_v37, %v4459_v49  ;;  %v3012_v11 = vmax.f32 %v11338_v25, %v11350_v22  ;;  %v2973_v7 = vmax.f32 %v11327_v20, %v11330_v29 }
 0x562   : > { %7397 = vpow2.f32 %v3618_v17  ;;  %v4676_v48 = vpack.c.bf16 %v4460_v60, %v4458_v2  ;;  %6594 = vmatpush3.bf16.msk.msra.mxu0 %vm10488_vm13, %v14209_v10  ;;  %v11384_v4 = vadd.f32 %v2380_v56, %v14210_v45  ;;  %v11392_v2 = vadd.f32 %v2381_v0, %v14212_v35  ;;  %v2178_v45 = vld [vmem:[#allocation5 + $0x320] sm:$0xff] }
 0x563   : > { %v7386_v43 = vpop.eup %7385  ;;  %7399 = vpow2.f32 %v3620_v54  ;;  %4983 = vmatprep.mubr.bf16.mxu0 %v4677_v14  ;;  %6595 = vmatprep.subr.msk.bf16.mxu0 %vm10488_vm13, %v14211_v63  ;;  %v2167_v54 = vld [vmem:[#allocation5 + $0x2c8] sm:$0xff] }
 0x564   : > { %v11381_v36 = vpop.eup %7387  ;;  %7401 = vpow2.f32 %v3664_v1  ;;  %3013 = vmax.xlane.f32.xlu1 %v3012_v11  ;;  %v2954_v49 = vpop.xlane.xlu1 %2953  ;;  %2974 = vmax.xlane.f32.xlu0 %v2973_v7  ;;  %v14213_v11 = vld [vmem:[#allocation194_spill] sm:$0xff]  ;;  %v14215_v7 = vld [vmem:[#allocation192_spill] sm:$0xff]  ;;  %v2384_v40 = vunpack.c.l.bf16 %v2167_v54  ;;  %v2385_v63 = vunpack.c.h.bf16 %v2167_v54  ;;  %v2407_v54 = vunpack.c.h.bf16 %v2178_v45 }
 0x565   : > { %v11389_v30 = vpop.eup %7389  ;;  %7403 = vrcp.f32 %v4001_v23  ;;  %v2921_v15 = vpop.xlane.xlu0 %2920  ;;  %v3258_v37 = vsub.f32 %v10863_v39, %v2954_v49  ;;  %v3259_v56 = vsub.f32 %v10870_v27, %v2954_v49  ;;  %4984 = vmatmul.mubr.bf16.gmra.mrb[108].mxu0 %v4676_v48  ;;  %v4463_v0 = vmul.f32 %v7386_v43, %v14213_v11  ;;  %v14214_v23 = vld [vmem:[#allocation60_spill] sm:$0xff] }
 0x566   : > { %v7392_v17 = vpop.eup %7391  ;;  %v3236_v1 = vsub.f32 %v10878_v61, %v2921_v15  ;;  %v3237_v60 = vsub.f32 %v10881_v44, %v2921_v15  ;;  %v4059_v14 = vadd.f32 %v11389_v30, %v11381_v36  ;;  %6596 = vmatpush3.bf16.msk.msra.mxu0 %vm10488_vm13, %v14214_v23  ;;  %v4462_v49 = vmul.f32 %v7386_v43, %v14215_v7  ;;  %v14216_v61 = vld [vmem:[#allocation119_spill] sm:$0xff] }
 0x567   : > { %v3670_v39 = vmul.f32 1.442695, %v3258_v37  ;;  %v4465_v27 = vmul.f32 %v7392_v17, %v10814_v51  ;;  %v4464_v48 = vmul.f32 %v7392_v17, %v10807_v5  ;;  %7405 = vrcp.f32 %v11078_v57  ;;  %6597 = vmatprep.subr.msk.bf16.mxu0 %vm10488_vm13, %v14216_v61 }
 0x568   : > { %v3626_v44 = vmul.f32 1.442695, %v3236_v1  ;;  %v3628_v35 = vmul.f32 1.442695, %v3237_v60  ;;  %v3672_v15 = vmul.f32 1.442695, %v3259_v56  ;;  %v7394_v11 = vpop.eup %7393  ;;  %4060 = vadd.xlane.f32.xlu0 %v4059_v14  ;;  %v2406_v43 = vunpack.c.l.bf16 %v2178_v45 }
 0x569   : > { %7407 = vpow2.f32 %v3670_v39  ;;  %v14218_v51 = vmov 0  ;;  %v4007_v5 = vpop.xlane.xlu0 %4006  ;;  %v4679_v57 = vpack.c.bf16 %v4465_v27, %v4463_v0  ;;  %v4678_v17 = vpack.c.bf16 %v4464_v48, %v4462_v49  ;;  %v14222_v60 = vld [vmem:[#allocation177_spill] sm:$0xff]  ;;  %v14223_v39 = vld [vmem:[#allocation64_spill] sm:$0xff]  ;;  %v14224_v27 = vld [vmem:[#allocation159_spill] sm:$0xff] }
 0x56a   : > { %v14219_v51 = vsel %vm11414_vm14, 4294967295, %v14218_v51  ;;  %7409 = vpow2.f32 %v3626_v44  ;;  %v2979_v56 = vmax.f32 %v11384_v4, %v11392_v2  ;;  %6598 = vmatpush3.bf16.msk.msra.mxu0 %vm10488_vm13, %v14222_v60  ;;  %v11433_v7 = vadd.f32 %v2384_v40, %v14224_v27  ;;  %v14225_v49 = vld [vmem:[#allocation160_spill] sm:$0xff]  ;;  %v2169_v44 = vld [vmem:[#allocation5 + $0x2d8] sm:$0xff] }
 0x56b   : > { %14220 = vst [vmem:[#allocation181_spill] sm:$0xff] %v14219_v51  ;;  %v11418_v1 = vpop.eup %7395  ;;  %7411 = vpow2.f32 %v3628_v35  ;;  %4991 = vmatprep.mubr.bf16.mxu0 %v4679_v57  ;;  %6695 = vmatprep.subr.msk.bf16.mxu0 %vm11414_vm14, %v14223_v39  ;;  %v11436_v45 = vadd.f32 %v2385_v63, %v14225_v49  ;;  %v14227_v35 = vld [vmem:[#allocation99_spill] sm:$0xff]  ;;  %v14228_v63 = vld [vmem:[#allocation101_spill] sm:$0xff]  ;;  %v14229_v49 = vld [vmem:[#allocation196_spill] sm:$0xff]  ;;  %v2388_v10 = vunpack.c.l.bf16 %v2169_v44  ;;  %v2389_v32 = vunpack.c.h.bf16 %v2169_v44 }
 0x56c   : > { %14221 = vst [vmem:[#allocation108_spill] sm:$0xff] %v11418_v1  ;;  %v11425_v14 = vpop.eup %7397  ;;  %7413 = vpow2.f32 %v3672_v15  ;;  %2980 = vmax.xlane.f32.xlu0 %v2979_v56  ;;  %v11441_v15 = vadd.f32 %v2406_v43, %v14227_v35  ;;  %v11448_v27 = vadd.f32 %v2407_v54, %v14228_v63  ;;  %v4467_v60 = vmul.f32 %v7394_v11, %v14229_v49  ;;  %v14230_v43 = vld [vmem:[#allocation46_spill] sm:$0xff] }
 0x56d   : > { %v11430_v0 = vpop.eup %7399  ;;  %7415 = vrcp.f32 %v4007_v5  ;;  %v2927_v62 = vpop.xlane.xlu0 %2926  ;;  %4992 = vmatmul.mubr.bf16.gmra.mrb[112].mxu0 %v4678_v17  ;;  %v2180_v5 = vld [vmem:[#allocation5 + $0x330] sm:$0xff]  ;;  %v4466_v35 = vmul.f32 %v7394_v11, %v14230_v43  ;;  %v2985_v11 = vmax.f32 %v11433_v7, %v11436_v45 }
 0x56e   : > { %v11438_v48 = vpop.eup %7401  ;;  %v3240_v37 = vsub.f32 %v10909_v21, %v2927_v62  ;;  %v3241_v57 = vsub.f32 %v10912_v46, %v2927_v62  ;;  %v4065_v40 = vadd.f32 %v11430_v0, %v11425_v14  ;;  %v14231_v21 = vld [vmem:[#allocation128_spill] sm:$0xff]  ;;  %v14232_v46 = vld [vmem:[#allocation114_spill] sm:$0xff]  ;;  %7417 = vrcp.f32 %v11101_v19 }
 0x56f   : > { %14226 = vst [vmem:[#allocation81_spill] sm:$0xff] %v11438_v48  ;;  %v7404_v39 = vpop.eup %7403  ;;  %v4098_v56 = vadd.f32 %v11438_v48, %v11418_v1  ;;  %v2410_v47 = vunpack.c.l.bf16 %v2180_v5 }
 0x570   : > { %v3634_v17 = vmul.f32 1.442695, %v3240_v37  ;;  %v3636_v61 = vmul.f32 1.442695, %v3241_v57  ;;  %v4469_v23 = vmul.f32 %v7404_v39, %v14231_v21  ;;  %v4468_v62 = vmul.f32 %v7404_v39, %v14232_v46  ;;  %4066 = vadd.xlane.f32.xlu0 %v4065_v40  ;;  %v14236_v40 = vld [vmem:[#allocation165_spill] sm:$0xff] }
 0x571   : > { %4099 = vadd.xlane.f32.xlu1 %v4098_v56  ;;  %v4013_v54 = vpop.xlane.xlu0 %4012  ;;  %v7406_v63 = vpop.eup %7405  ;;  %v3018_v37 = vmax.f32 %v11441_v15, %v11448_v27  ;;  %v2411_v57 = vunpack.c.h.bf16 %v2180_v5  ;;  %v11468_v39 = vadd.f32 %v2388_v10, %v14236_v40  ;;  %v14239_v5 = vld [vmem:[#allocation106_spill] sm:$0xff] }
 0x572   : > { %7419 = vpow2.f32 %v3634_v17  ;;  %v4681_v1 = vpack.c.bf16 %v4469_v23, %v4467_v60  ;;  %v4680_v49 = vpack.c.bf16 %v4468_v62, %v4466_v35  ;;  %v14237_v23 = vld [vmem:[#allocation166_spill] sm:$0xff]  ;;  %v2171_v35 = vld [vmem:[#allocation5 + $0x2e8] sm:$0xff] }
 0x573   : > { %v11457_v48 = vpop.eup %7407  ;;  %7421 = vpow2.f32 %v3636_v61  ;;  %v11471_v60 = vadd.f32 %v2389_v32, %v14237_v23  ;;  %v11476_v61 = vadd.f32 %v2410_v47, %v14239_v5  ;;  %v14240_v32 = vld [vmem:[#allocation43_spill] sm:$0xff]  ;;  %v14243_v23 = vld [vmem:[#allocation25_spill] sm:$0xff] }
 0x574   : > { %14233 = vst [vmem:[#allocation85_spill] sm:$0xff] %v11457_v48  ;;  %v11463_v44 = vpop.eup %7409  ;;  %7423 = vrcp.f32 %v4013_v54  ;;  %4999 = vmatprep.mubr.bf16.mxu0 %v4681_v1  ;;  %2986 = vmax.xlane.f32.xlu0 %v2985_v11  ;;  %v11483_v46 = vadd.f32 %v2411_v57, %v14240_v32  ;;  %v14241_v54 = vld [vmem:[#allocation35_spill] sm:$0xff]  ;;  %v14244_v5 = vld [vmem:[#allocation129_spill] sm:$0xff]  ;;  %v2393_v32 = vunpack.c.h.bf16 %v2171_v35 }
 0x575   : > { %14234 = vst [vmem:[#allocation173_spill] sm:$0xff] %v11463_v44  ;;  %v11465_v19 = vpop.eup %7411  ;;  %3019 = vmax.xlane.f32.xlu1 %v3018_v37  ;;  %v2933_v56 = vpop.xlane.xlu0 %2932  ;;  %5000 = vmatmul.mubr.bf16.gmra.mrb[116].mxu0 %v4680_v49  ;;  %v4471_v11 = vmul.f32 %v7406_v63, %v14241_v54  ;;  %v14242_v37 = vld [vmem:[#allocation61_spill] sm:$0xff]  ;;  %7425 = vrcp.f32 %v11137_v52 }
 0x576   : > { %14235 = vst [vmem:[#allocation174_spill] sm:$0xff] %v11465_v19  ;;  %v11473_v43 = vpop.eup %7413  ;;  %v3244_v1 = vsub.f32 %v10938_v26, %v2933_v56  ;;  %v3245_v17 = vsub.f32 %v10941_v38, %v2933_v56  ;;  %v4071_v10 = vadd.f32 %v11465_v19, %v11463_v44  ;;  %v4470_v47 = vmul.f32 %v7406_v63, %v14242_v37  ;;  %v14255_v19 = vld [vmem:[#allocation109_spill] sm:$0xff] }
 0x577   : > { %14238 = vst [vmem:[#allocation105_spill] sm:$0xff] %v11473_v43  ;;  %v7416_v21 = vpop.eup %7415  ;;  %v4104_v62 = vadd.f32 %v11473_v43, %v11457_v48  ;;  %v2392_v56 = vunpack.c.l.bf16 %v2171_v35  ;;  %v2991_v63 = vmax.f32 %v11468_v39, %v11471_v60 }
 0x578   : > { %v3642_v40 = vmul.f32 1.442695, %v3244_v1  ;;  %v3644_v49 = vmul.f32 1.442695, %v3245_v17  ;;  %v4473_v26 = vmul.f32 %v7416_v21, %v14243_v23  ;;  %v4472_v38 = vmul.f32 %v7416_v21, %v14244_v5  ;;  %4072 = vadd.xlane.f32.xlu0 %v4071_v10  ;;  %v7418_v43 = vpop.eup %7417  ;;  %v14247_v10 = vld [vmem:[#allocation171_spill] sm:$0xff] }
 0x579   : > { %4105 = vadd.xlane.f32.xlu1 %v4104_v62  ;;  %v4019_v57 = vpop.xlane.xlu0 %4018  ;;  %v3024_v1 = vmax.f32 %v11476_v61, %v11483_v46  ;;  %v11501_v21 = vadd.f32 %v2392_v56, %v14247_v10  ;;  %v14252_v56 = vld [vmem:[#allocation132_spill] sm:$0xff] }
 0x57a   : > { %7427 = vpow2.f32 %v3642_v40  ;;  %v4683_v3 = vpack.c.bf16 %v4473_v26, %v4471_v11  ;;  %v4682_v48 = vpack.c.bf16 %v4472_v38, %v4470_v47  ;;  %v14248_v11 = vld [vmem:[#allocation172_spill] sm:$0xff]  ;;  %v2173_v47 = vld [vmem:[#allocation5 + $0x2f8] sm:$0xff] }
 0x57b   : > { %7429 = vpow2.f32 %v3644_v49  ;;  %v11504_v37 = vadd.f32 %v2393_v32, %v14248_v11  ;;  %v14250_v49 = vld [vmem:[#allocation40_spill] sm:$0xff]  ;;  %v2396_v51 = vunpack.c.l.bf16 %v2173_v47 }
 0x57c   : > { %v11496_v17 = vpop.eup %7419  ;;  %7431 = vrcp.f32 %v4019_v57  ;;  %5007 = vmatprep.mubr.bf16.mxu0 %v4683_v3  ;;  %2992 = vmax.xlane.f32.xlu0 %v2991_v63  ;;  %v6405_v62 = vpop.f32.mrb[52].mxu0  ;;  %v4475_v57 = vmul.f32 %v7418_v43, %v14252_v56  ;;  %v14253_v63 = vld [vmem:[#allocation94_spill] sm:$0xff]  ;;  %v14254_v10 = vld [vmem:[#allocation32_spill] sm:$0xff] }
 0x57d   : > { %14245 = vst [vmem:[#allocation183_spill] sm:$0xff] %v11496_v17  ;;  %v11498_v52 = vpop.eup %7421  ;;  %3025 = vmax.xlane.f32.xlu1 %v3024_v1  ;;  %v2939_v35 = vpop.xlane.xlu0 %2938  ;;  %14249 = vst [vmem:[#allocation98_spill] sm:$0xff] %v11504_v37  ;;  %5008 = vmatmul.mubr.bf16.gmra.mrb[120].mxu0 %v4682_v48  ;;  %7433 = vrcp.f32 %v11187_v24  ;;  %v14259_v24 = vld [vmem:[#allocation175_spill] sm:$0xff] }
 0x57e   : > { %14246 = vst [vmem:[#allocation112_spill] sm:$0xff] %v11498_v52  ;;  %v7424_v54 = vpop.eup %7423  ;;  %v3248_v40 = vsub.f32 %v10958_v42, %v2939_v35  ;;  %v3249_v23 = vsub.f32 %v14250_v49, %v2939_v35  ;;  %v4077_v3 = vadd.f32 %v11498_v52, %v11496_v17  ;;  %v6406_v26 = vpop.f32.mrb[53].mxu0  ;;  %v4474_v42 = vmul.f32 %v7418_v43, %v14255_v19  ;;  %v14267_v52 = vld [vmem:[#allocation55_spill] sm:$0xff] }
 0x57f   : > { %v11510_v5 = vadd.f32 %v6406_v26, %v6405_v62  ;;  %v6408_v38 = vpop.f32.mrb[54].mxu0  ;;  %v4477_v1 = vmul.f32 %v7424_v54, %v14253_v63  ;;  %v4476_v32 = vmul.f32 %v7424_v54, %v14254_v10  ;;  %v2397_v26 = vunpack.c.h.bf16 %v2173_v47  ;;  %v2175_v63 = vld [vmem:[#allocation5 + $0x308] sm:$0xff]  ;;  %v14262_v10 = vld [vmem:[#allocation135_spill] sm:$0xff] }
 0x580   : > { %v3650_v11 = vmul.f32 1.442695, %v3248_v40  ;;  %v3652_v44 = vmul.f32 1.442695, %v3249_v23  ;;  %v6409_v48 = vpop.f32.mrb[55].mxu0  ;;  %4078 = vadd.xlane.f32.xlu0 %v4077_v3  ;;  %v2997_v54 = vmax.f32 %v11501_v21, %v11504_v37  ;;  %v11526_v43 = vadd.f32 %v2396_v51, %v14259_v24 }
 0x581   : > { %14251 = vst [vmem:[#allocation26_spill] sm:$0xff] %v11510_v5  ;;  %v4025_v35 = vpop.xlane.xlu0 %4024  ;;  %v11517_v49 = vadd.f32 %v6409_v48, %v6408_v38  ;;  %v4685_v62 = vpack.c.bf16 %v4477_v1, %v4475_v57  ;;  %v4684_v56 = vpack.c.bf16 %v4476_v32, %v4474_v42  ;;  %v7426_v5 = vpop.eup %7425  ;;  %v14260_v38 = vld [vmem:[#allocation176_spill] sm:$0xff]  ;;  %v2400_v37 = vunpack.c.l.bf16 %v2175_v63 }
 0x582   : > { %7435 = vpow2.f32 %v3650_v11  ;;  %v11529_v57 = vadd.f32 %v2397_v26, %v14260_v38  ;;  %v14261_v1 = vld [vmem:[#allocation136_spill] sm:$0xff] }
 0x583   : > { %14256 = vst [vmem:[#allocation48_spill] sm:$0xff] %v11517_v49  ;;  %7437 = vpow2.f32 %v3652_v44  ;;  %5015 = vmatprep.mubr.bf16.mxu0 %v4685_v62  ;;  %v14266_v49 = vld [vmem:[#allocation16_spill] sm:$0xff] }
 0x584   : > { %v11521_v40 = vpop.eup %7427  ;;  %7439 = vrcp.f32 %v4025_v35  ;;  %2998 = vmax.xlane.f32.xlu0 %v2997_v54  ;;  %v6411_v3 = vpop.f32.mrb[56].mxu0  ;;  %v14264_v35 = vld [vmem:[#allocation104_spill] sm:$0xff] }
 0x585   : > { %14257 = vst [vmem:[#allocation11_spill] sm:$0xff] %v11521_v40  ;;  %v11523_v19 = vpop.eup %7429  ;;  %v2945_v23 = vpop.xlane.xlu0 %2944  ;;  %5016 = vmatmul.mubr.bf16.gmra.mrb[124].mxu0 %v4684_v56  ;;  %v4479_v62 = vmul.f32 %v7426_v5, %v14264_v35  ;;  %v14265_v54 = vld [vmem:[#allocation92_spill] sm:$0xff]  ;;  %7441 = vrcp.f32 %v11312_v8 }
 0x586   : > { %14258 = vst [vmem:[#allocation22_spill] sm:$0xff] %v11523_v19  ;;  %v7432_v47 = vpop.eup %7431  ;;  %v3252_v44 = vsub.f32 %v14261_v1, %v2945_v23  ;;  %v3253_v32 = vsub.f32 %v14262_v10, %v2945_v23  ;;  %v4083_v11 = vadd.f32 %v11523_v19, %v11521_v40  ;;  %v6412_v48 = vpop.f32.mrb[57].mxu0  ;;  %v4478_v1 = vmul.f32 %v7426_v5, %v14267_v52  ;;  %v14271_v8 = vld [vmem:[#allocation88_spill] sm:$0xff] }
 0x587   : > { %v11535_v42 = vadd.f32 %v6412_v48, %v6411_v3  ;;  %v6414_v51 = vpop.f32.mrb[58].mxu0  ;;  %v4481_v24 = vmul.f32 %v7432_v47, %v14265_v54  ;;  %v4480_v26 = vmul.f32 %v7432_v47, %v14266_v49  ;;  %v2401_v48 = vunpack.c.h.bf16 %v2175_v63 }
 0x588   : > { %v3658_v38 = vmul.f32 1.442695, %v3252_v44  ;;  %v3660_v17 = vmul.f32 1.442695, %v3253_v32  ;;  %v6415_v56 = vpop.f32.mrb[59].mxu0  ;;  %4084 = vadd.xlane.f32.xlu0 %v4083_v11  ;;  %v3003_v49 = vmax.f32 %v11526_v43, %v11529_v57  ;;  %v11551_v5 = vadd.f32 %v2400_v37, %v14271_v8  ;;  %v14273_v11 = vld [vmem:[#allocation178_spill] sm:$0xff] }
 0x589   : > { %14263 = vst [vmem:[#allocation57_spill] sm:$0xff] %v11535_v42  ;;  %v4031_v23 = vpop.xlane.xlu0 %4030  ;;  %v11542_v10 = vadd.f32 %v6415_v56, %v6414_v51  ;;  %v4687_v3 = vpack.c.bf16 %v4481_v24, %v4479_v62  ;;  %v4686_v35 = vpack.c.bf16 %v4480_v26, %v4478_v1  ;;  %v7434_v42 = vpop.eup %7433  ;;  %v11554_v51 = vadd.f32 %v2401_v48, %v14273_v11  ;;  %v14275_v62 = vld [vmem:[#allocation93_spill] sm:$0xff]  ;;  %v2177_v56 = vld [vmem:[#allocation5 + $0x318] sm:$0xff] }
 0x58a   : > { %7443 = vpow2.f32 %v3658_v38  ;;  %14272 = vst [vmem:[#allocation152_spill] sm:$0xff] %v11551_v5 }
 0x58b   : > { %14268 = vst [vmem:[#allocation186_spill] sm:$0xff] %v11542_v10  ;;  %7445 = vpow2.f32 %v3660_v17  ;;  %5023 = vmatprep.mubr.bf16.mxu0 %v4687_v3  ;;  %14274 = vst [vmem:[#allocation90_spill] sm:$0xff] %v11554_v51  ;;  %v14276_v17 = vld [vmem:[#allocation23_spill] sm:$0xff]  ;;  %v14280_v10 = vld [vmem:[#allocation49_spill] sm:$0xff] }
 0x58c   : > { %v11546_v47 = vpop.eup %7435  ;;  %7447 = vrcp.f32 %v4031_v23  ;;  %3004 = vmax.xlane.f32.xlu0 %v3003_v49  ;;  %v6417_v32 = vpop.f32.mrb[60].mxu0  ;;  %v14278_v23 = vld [vmem:[#allocation107_spill] sm:$0xff] }
 0x58d   : > { %14269 = vst [vmem:[#allocation102_spill] sm:$0xff] %v11546_v47  ;;  %v11548_v52 = vpop.eup %7437  ;;  %v2951_v44 = vpop.xlane.xlu0 %2950  ;;  %5024 = vmatmul.mubr.bf16.gmra.mrb[128].mxu0 %v4686_v35  ;;  %v4483_v3 = vmul.f32 %v7434_v42, %v14278_v23  ;;  %v14279_v49 = vld [vmem:[#allocation95_spill] sm:$0xff]  ;;  %v3009_v23 = vmax.f32 %v11551_v5, %v11554_v51 }
 0x58e   : > { %14270 = vst [vmem:[#allocation151_spill] sm:$0xff] %v11548_v52  ;;  %v7440_v63 = vpop.eup %7439  ;;  %v3256_v54 = vsub.f32 %v14275_v62, %v2951_v44  ;;  %v3257_v24 = vsub.f32 %v14276_v17, %v2951_v44  ;;  %v4089_v26 = vadd.f32 %v11548_v52, %v11546_v47  ;;  %v6418_v38 = vpop.f32.mrb[61].mxu0  ;;  %v14281_v62 = vld [vmem:[#allocation131_spill] sm:$0xff]  ;;  %v2404_v47 = vunpack.c.l.bf16 %v2177_v56 }
 0x58f   : > { %v11560_v1 = vadd.f32 %v6418_v38, %v6417_v32  ;;  %v6420_v37 = vpop.f32.mrb[62].mxu0  ;;  %v4485_v8 = vmul.f32 %v7440_v63, %v14279_v49  ;;  %v4484_v48 = vmul.f32 %v7440_v63, %v14280_v10  ;;  %v4482_v19 = vmul.f32 %v7434_v42, %v14281_v62  ;;  %v7442_v38 = vpop.eup %7441  ;;  %v14292_v62 = vld [vmem:[#allocation96_spill] sm:$0xff] }
 0x590   : > { %v3666_v11 = vmul.f32 1.442695, %v3256_v54  ;;  %v3668_v35 = vmul.f32 1.442695, %v3257_v24  ;;  %v6421_v40 = vpop.f32.mrb[63].mxu0  ;;  %4090 = vadd.xlane.f32.xlu0 %v4089_v26  ;;  %v2405_v52 = vunpack.c.h.bf16 %v2177_v56  ;;  %v14287_v26 = vld [vmem:[#allocation182_spill] sm:$0xff] }
 0x591   : > { %14277 = vst [vmem:[#allocation18_spill] sm:$0xff] %v11560_v1  ;;  %v11566_v44 = vadd.f32 %v6421_v40, %v6420_v37  ;;  %v4689_v17 = vpack.c.bf16 %v4485_v8, %v4483_v3  ;;  %v4688_v32 = vpack.c.bf16 %v4484_v48, %v4482_v19  ;;  %v14285_v40 = vld [vmem:[#allocation180_spill] sm:$0xff]  ;;  %v14290_v8 = vld [vmem:[#allocation33_spill] sm:$0xff] }
 0x592   : > { %7449 = vpow2.f32 %v3666_v11  ;;  %v11575_v24 = vadd.f32 %v2404_v47, %v14285_v40  ;;  %v11578_v56 = vadd.f32 %v2405_v52, %v14287_v26  ;;  %v4487_v48 = vmul.f32 %v7442_v38, %v14290_v8  ;;  %v14291_v11 = vld [vmem:[#allocation21_spill] sm:$0xff]  ;;  %v14293_v40 = vld [vmem:[#allocation123_spill] sm:$0xff] }
 0x593   : > { %14282 = vst [vmem:[#allocation190_spill] sm:$0xff] %v11566_v44  ;;  %7451 = vpow2.f32 %v3668_v35  ;;  %5031 = vmatprep.mubr.bf16.mxu0 %v4689_v17  ;;  %v4486_v44 = vmul.f32 %v7442_v38, %v14293_v40 }
 0x594   : > { %v11570_v10 = vpop.eup %7443  ;;  %3010 = vmax.xlane.f32.xlu0 %v3009_v23  ;;  %v6423_v42 = vpop.f32.mrb[64].mxu0  ;;  %14286 = vst [vmem:[#allocation154_spill] sm:$0xff] %v11575_v24  ;;  %14288 = vst [vmem:[#allocation194_spill] sm:$0xff] %v11578_v56  ;;  %v2179_v23 = vld [vmem:[#allocation5 + $0x328] sm:$0xff] }
 0x595   : > { %14283 = vst [vmem:[#allocation188_spill] sm:$0xff] %v11570_v10  ;;  %v11572_v63 = vpop.eup %7445  ;;  %5032 = vmatmul.mubr.bf16.gmra.mrb[132].mxu0 %v4688_v32  ;;  %v6424_v37 = vpop.f32.mrb[65].mxu0 }
 0x596   : > { %14284 = vst [vmem:[#allocation153_spill] sm:$0xff] %v11572_v63  ;;  %v7448_v54 = vpop.eup %7447  ;;  %v4095_v19 = vadd.f32 %v11572_v63, %v11570_v10  ;;  %v11582_v3 = vadd.f32 %v6424_v37, %v6423_v42  ;;  %v6426_v49 = vpop.f32.mrb[66].mxu0  ;;  %v3015_v42 = vmax.f32 %v11575_v24, %v11578_v56  ;;  %v2408_v37 = vunpack.c.l.bf16 %v2179_v23  ;;  %v14309_v10 = vld [vmem:[#allocation133_spill] sm:$0xff] }
 0x597   : > { %v4489_v35 = vmul.f32 %v7448_v54, %v14291_v11  ;;  %v4488_v17 = vmul.f32 %v7448_v54, %v14292_v62  ;;  %v6427_v47 = vpop.f32.mrb[67].mxu0 }
 0x598   : > { %14289 = vst [vmem:[#allocation192_spill] sm:$0xff] %v11582_v3  ;;  %4096 = vadd.xlane.f32.xlu0 %v4095_v19  ;;  %v11588_v52 = vadd.f32 %v6427_v47, %v6426_v49  ;;  %v2409_v3 = vunpack.c.h.bf16 %v2179_v23  ;;  %v14297_v49 = vld [vmem:[#allocation36_spill] sm:$0xff] }
 0x599   : > { %v4691_v32 = vpack.c.bf16 %v4489_v35, %v4487_v48  ;;  %v4690_v26 = vpack.c.bf16 %v4488_v17, %v4486_v44  ;;  %v11599_v48 = vadd.f32 %v2408_v37, %v14297_v49  ;;  %v14299_v44 = vld [vmem:[#allocation184_spill] sm:$0xff] }
 0x59a   : > { %14294 = vst [vmem:[#allocation13_spill] sm:$0xff] %v11588_v52  ;;  %v11602_v35 = vadd.f32 %v2409_v3, %v14299_v44  ;;  %v14304_v44 = vld [vmem:[#allocation142_spill] sm:$0xff] }
 0x59b   : > { %5039 = vmatprep.mubr.bf16.mxu0 %v4691_v32  ;;  %14298 = vst [vmem:[#allocation160_spill] sm:$0xff] %v11599_v48 }
 0x59c   : > { %v11592_v8 = vpop.eup %7449  ;;  %3016 = vmax.xlane.f32.xlu0 %v3015_v42  ;;  %v6429_v54 = vpop.f32.mrb[68].mxu0  ;;  %14300 = vst [vmem:[#allocation99_spill] sm:$0xff] %v11602_v35  ;;  %v3021_v40 = vmax.f32 %v11599_v48, %v11602_v35 }
 0x59d   : > { %14295 = vst [vmem:[#allocation64_spill] sm:$0xff] %v11592_v8  ;;  %v11594_v11 = vpop.eup %7451  ;;  %5040 = vmatmul.mubr.bf16.gmra.mrb[136].mxu0 %v4690_v26  ;;  %v6430_v19 = vpop.f32.mrb[69].mxu0 }
 0x59e   : > { %14296 = vst [vmem:[#allocation159_spill] sm:$0xff] %v11594_v11  ;;  %v4101_v38 = vadd.f32 %v11594_v11, %v11592_v8  ;;  %v11604_v62 = vadd.f32 %v6430_v19, %v6429_v54  ;;  %v6432_v17 = vpop.f32.mrb[70].mxu0  ;;  %v14305_v19 = vld [vmem:[#allocation141_spill] sm:$0xff] }
 0x59f   : > { %v6433_v23 = vpop.f32.mrb[71].mxu0 }
 0x5a0   : > { %14301 = vst [vmem:[#allocation101_spill] sm:$0xff] %v11604_v62  ;;  %4102 = vadd.xlane.f32.xlu0 %v4101_v38  ;;  %v11606_v47 = vadd.f32 %v6433_v23, %v6432_v17  ;;  %v11610_v32 = vpop.xlane.xlu1 %4039 }
 0x5a2   : > { %14302 = vst [vmem:[#allocation196_spill] sm:$0xff] %v11606_v47 }
 0x5a4   : > { %3022 = vmax.xlane.f32.xlu0 %v3021_v40  ;;  %v6435_v26 = vpop.f32.mrb[72].mxu0  ;;  %v2960_v37 = vpop.xlane.xlu1 %2959 }
 0x5a5   : > { %v6436_v42 = vpop.f32.mrb[73].mxu0  ;;  %v3262_v54 = vsub.f32 %v14304_v44, %v2960_v37  ;;  %v3263_v62 = vsub.f32 %v14305_v19, %v2960_v37 }
 0x5a6   : > { %v11612_v49 = vadd.f32 %v6436_v42, %v6435_v26  ;;  %v6438_v3 = vpop.f32.mrb[74].mxu0  ;;  %v2182_v42 = vld [vmem:[#allocation5 + $0x340] sm:$0xff] }
 0x5a7   : > { %v6439_v52 = vpop.f32.mrb[75].mxu0  ;;  %v3678_v17 = vmul.f32 1.442695, %v3262_v54  ;;  %v3680_v23 = vmul.f32 1.442695, %v3263_v62  ;;  %v2414_v54 = vunpack.c.l.bf16 %v2182_v42 }
 0x5a8   : > { %14303 = vst [vmem:[#allocation46_spill] sm:$0xff] %v11612_v49  ;;  %v11616_v38 = vadd.f32 %v6439_v52, %v6438_v3  ;;  %v11618_v47 = vpop.xlane.xlu1 %4045  ;;  %v14308_v49 = vld [vmem:[#allocation156_spill] sm:$0xff] }
 0x5a9   : > { %7453 = vpow2.f32 %v3678_v17  ;;  %v2415_v17 = vunpack.c.h.bf16 %v2182_v42  ;;  %v14318_v42 = vld [vmem:[#allocation164_spill] sm:$0xff] }
 0x5aa   : > { %14306 = vst [vmem:[#allocation128_spill] sm:$0xff] %v11616_v38  ;;  %7455 = vpow2.f32 %v3680_v23 }
 0x5ac   : > { %v6441_v40 = vpop.f32.mrb[76].mxu0  ;;  %v2966_v8 = vpop.xlane.xlu1 %2965 }
 0x5ad   : > { %v6442_v1 = vpop.f32.mrb[77].mxu0  ;;  %v3266_v44 = vsub.f32 %v14308_v49, %v2966_v8  ;;  %v3267_v37 = vsub.f32 %v14309_v10, %v2966_v8  ;;  %v14313_v49 = vld [vmem:[#allocation12_spill] sm:$0xff] }
 0x5ae   : > { %v11620_v11 = vadd.f32 %v6442_v1, %v6441_v40  ;;  %v6444_v26 = vpop.f32.mrb[78].mxu0  ;;  %v11633_v63 = vadd.f32 %v2414_v54, %v14313_v49 }
 0x5af   : > { %v6445_v19 = vpop.f32.mrb[79].mxu0  ;;  %v3686_v3 = vmul.f32 1.442695, %v3266_v44  ;;  %v3688_v62 = vmul.f32 1.442695, %v3267_v37  ;;  %v14316_v44 = vld [vmem:[#allocation100_spill] sm:$0xff] }
 0x5b0   : > { %14307 = vst [vmem:[#allocation114_spill] sm:$0xff] %v11620_v11  ;;  %v11624_v52 = vadd.f32 %v6445_v19, %v6444_v26  ;;  %14314 = vst [vmem:[#allocation43_spill] sm:$0xff] %v11633_v63  ;;  %v11638_v37 = vadd.f32 %v2415_v17, %v14316_v44  ;;  %v2184_v19 = vld [vmem:[#allocation5 + $0x350] sm:$0xff] }
 0x5b1   : > { %7457 = vpow2.f32 %v3686_v3  ;;  %v2419_v44 = vunpack.c.h.bf16 %v2184_v19 }
 0x5b2   : > { %14310 = vst [vmem:[#allocation165_spill] sm:$0xff] %v11624_v52  ;;  %v11626_v38 = vpop.xlane.xlu1 %4051  ;;  %7459 = vpow2.f32 %v3688_v62  ;;  %14317 = vst [vmem:[#allocation61_spill] sm:$0xff] %v11638_v37  ;;  %v14319_v62 = vld [vmem:[#allocation149_spill] sm:$0xff]  ;;  %v3030_v17 = vmax.f32 %v11633_v63, %v11638_v37 }
 0x5b3   : > { %v11628_v1 = vpop.eup %7453 }
 0x5b4   : > { %v6447_v23 = vpop.f32.mrb[80].mxu0  ;;  %14311 = vst [vmem:[#allocation166_spill] sm:$0xff] %v11628_v1  ;;  %v11630_v11 = vpop.eup %7455 }
 0x5b5   : > { %v6448_v40 = vpop.f32.mrb[81].mxu0  ;;  %14312 = vst [vmem:[#allocation106_spill] sm:$0xff] %v11630_v11  ;;  %v4110_v35 = vadd.f32 %v11630_v11, %v11628_v1  ;;  %v14329_v11 = vld [vmem:[#allocation145_spill] sm:$0xff] }
 0x5b6   : > { %v2972_v10 = vpop.xlane.xlu1 %2971  ;;  %v11635_v8 = vadd.f32 %v6448_v40, %v6447_v23  ;;  %v6450_v26 = vpop.f32.mrb[82].mxu0  ;;  %v2418_v23 = vunpack.c.l.bf16 %v2184_v19  ;;  %v2186_v19 = vld [vmem:[#allocation5 + $0x360] sm:$0xff] }
 0x5b7   : > { %v3270_v3 = vsub.f32 %v14318_v42, %v2972_v10  ;;  %v3271_v52 = vsub.f32 %v14319_v62, %v2972_v10  ;;  %v6451_v48 = vpop.f32.mrb[83].mxu0  ;;  %4111 = vadd.xlane.f32.xlu1 %v4110_v35 }
 0x5b8   : > { %14315 = vst [vmem:[#allocation35_spill] sm:$0xff] %v11635_v8  ;;  %v11644_v56 = vadd.f32 %v6451_v48, %v6450_v26  ;;  %v14323_v48 = vld [vmem:[#allocation53_spill] sm:$0xff] }
 0x5b9   : > { %v3694_v54 = vmul.f32 1.442695, %v3270_v3  ;;  %v3696_v49 = vmul.f32 1.442695, %v3271_v52  ;;  %v11655_v26 = vadd.f32 %v2418_v23, %v14323_v48 }
 0x5ba   : > { %14320 = vst [vmem:[#allocation25_spill] sm:$0xff] %v11644_v56  ;;  %v11646_v40 = vpop.xlane.xlu1 %4057  ;;  %v14326_v56 = vld [vmem:[#allocation113_spill] sm:$0xff] }
 0x5bb   : > { %7461 = vpow2.f32 %v3694_v54  ;;  %v11650_v10 = vpop.eup %7457  ;;  %3031 = vmax.xlane.f32.xlu1 %v3030_v17  ;;  %14324 = vst [vmem:[#allocation172_spill] sm:$0xff] %v11655_v26  ;;  %v11660_v1 = vadd.f32 %v2419_v44, %v14326_v56  ;;  %v14328_v54 = vld [vmem:[#allocation19_spill] sm:$0xff]  ;;  %v2423_v44 = vunpack.c.h.bf16 %v2186_v19 }
 0x5bc   : > { %7463 = vpow2.f32 %v3696_v49  ;;  %v6453_v42 = vpop.f32.mrb[84].mxu0  ;;  %14321 = vst [vmem:[#allocation129_spill] sm:$0xff] %v11650_v10  ;;  %v11652_v8 = vpop.eup %7459 }
 0x5bd   : > { %v6454_v62 = vpop.f32.mrb[85].mxu0  ;;  %14322 = vst [vmem:[#allocation171_spill] sm:$0xff] %v11652_v8  ;;  %14327 = vst [vmem:[#allocation132_spill] sm:$0xff] %v11660_v1  ;;  %v4116_v17 = vadd.f32 %v11652_v8, %v11650_v10  ;;  %v3036_v56 = vmax.f32 %v11655_v26, %v11660_v1  ;;  %v2188_v26 = vld [vmem:[#allocation5 + $0x370] sm:$0xff] }
 0x5be   : > { %v2978_v35 = vpop.xlane.xlu1 %2977  ;;  %v11657_v52 = vadd.f32 %v6454_v62, %v6453_v42  ;;  %v6456_v3 = vpop.f32.mrb[86].mxu0  ;;  %v2422_v42 = vunpack.c.l.bf16 %v2186_v19  ;;  %v14338_v19 = vld [vmem:[#allocation150_spill] sm:$0xff] }
 0x5bf   : > { %v3274_v49 = vsub.f32 %v14328_v54, %v2978_v35  ;;  %v3275_v37 = vsub.f32 %v14329_v11, %v2978_v35  ;;  %v6457_v63 = vpop.f32.mrb[87].mxu0  ;;  %4117 = vadd.xlane.f32.xlu1 %v4116_v17 }
 0x5c0   : > { %14325 = vst [vmem:[#allocation40_spill] sm:$0xff] %v11657_v52  ;;  %v11666_v24 = vadd.f32 %v6457_v63, %v6456_v3  ;;  %v14333_v63 = vld [vmem:[#allocation59_spill] sm:$0xff] }
 0x5c1   : > { %v3702_v23 = vmul.f32 1.442695, %v3274_v49  ;;  %v3704_v48 = vmul.f32 1.442695, %v3275_v37  ;;  %v11677_v3 = vadd.f32 %v2422_v42, %v14333_v63 }
 0x5c2   : > { %14330 = vst [vmem:[#allocation94_spill] sm:$0xff] %v11666_v24  ;;  %v11668_v62 = vpop.xlane.xlu1 %4063  ;;  %v14336_v24 = vld [vmem:[#allocation118_spill] sm:$0xff] }
 0x5c3   : > { %7465 = vpow2.f32 %v3702_v23  ;;  %3037 = vmax.xlane.f32.xlu1 %v3036_v56  ;;  %14334 = vst [vmem:[#allocation175_spill] sm:$0xff] %v11677_v3  ;;  %v11682_v10 = vadd.f32 %v2423_v44, %v14336_v24  ;;  %v2427_v24 = vunpack.c.h.bf16 %v2188_v26 }
 0x5c4   : > { %7467 = vpow2.f32 %v3704_v48  ;;  %v6459_v54 = vpop.f32.mrb[88].mxu0  ;;  %v14339_v48 = vld [vmem:[#allocation87_spill] sm:$0xff] }
 0x5c5   : > { %v11672_v11 = vpop.eup %7461  ;;  %v6460_v35 = vpop.f32.mrb[89].mxu0  ;;  %14337 = vst [vmem:[#allocation136_spill] sm:$0xff] %v11682_v10 }
 0x5c6   : > { %14331 = vst [vmem:[#allocation32_spill] sm:$0xff] %v11672_v11  ;;  %v11674_v52 = vpop.eup %7463  ;;  %v2984_v37 = vpop.xlane.xlu1 %2983  ;;  %v11679_v49 = vadd.f32 %v6460_v35, %v6459_v54  ;;  %v3042_v54 = vmax.f32 %v11677_v3, %v11682_v10  ;;  %v2426_v35 = vunpack.c.l.bf16 %v2188_v26  ;;  %v2190_v26 = vld [vmem:[#allocation5 + $0x380] sm:$0xff] }
 0x5c7   : > { %14332 = vst [vmem:[#allocation109_spill] sm:$0xff] %v11674_v52  ;;  %v6462_v17 = vpop.f32.mrb[90].mxu0  ;;  %v3278_v23 = vsub.f32 %v14338_v19, %v2984_v37  ;;  %v3279_v8 = vsub.f32 %v14339_v48, %v2984_v37  ;;  %v4122_v56 = vadd.f32 %v11674_v52, %v11672_v11  ;;  %v14343_v48 = vld [vmem:[#allocation37_spill] sm:$0xff] }
 0x5c8   : > { %14335 = vst [vmem:[#allocation176_spill] sm:$0xff] %v11679_v49  ;;  %v6463_v1 = vpop.f32.mrb[91].mxu0  ;;  %v14348_v49 = vld [vmem:[#allocation24_spill] sm:$0xff] }
 0x5c9   : > { %v11688_v51 = vadd.f32 %v6463_v1, %v6462_v17  ;;  %v3710_v42 = vmul.f32 1.442695, %v3278_v23  ;;  %v3712_v63 = vmul.f32 1.442695, %v3279_v8  ;;  %4123 = vadd.xlane.f32.xlu1 %v4122_v56  ;;  %v11699_v1 = vadd.f32 %v2426_v35, %v14343_v48  ;;  %v14345_v17 = vld [vmem:[#allocation63_spill] sm:$0xff] }
 0x5ca   : > { %v11692_v44 = vpop.xlane.xlu1 %4069  ;;  %v11702_v8 = vadd.f32 %v2427_v24, %v14345_v17  ;;  %v2430_v35 = vunpack.c.l.bf16 %v2190_v26  ;;  %v2431_v48 = vunpack.c.h.bf16 %v2190_v26 }
 0x5cb   : > { %14340 = vst [vmem:[#allocation135_spill] sm:$0xff] %v11688_v51  ;;  %7469 = vpow2.f32 %v3710_v42  ;;  %14344 = vst [vmem:[#allocation16_spill] sm:$0xff] %v11699_v1  ;;  %v14347_v42 = vld [vmem:[#allocation30_spill] sm:$0xff] }
 0x5cc   : > { %7471 = vpow2.f32 %v3712_v63  ;;  %14346 = vst [vmem:[#allocation55_spill] sm:$0xff] %v11702_v8  ;;  %v3048_v52 = vmax.f32 %v11699_v1, %v11702_v8 }
 0x5cd   : > { %v11694_v37 = vpop.eup %7465  ;;  %3043 = vmax.xlane.f32.xlu1 %v3042_v54  ;;  %7473 = vrcp.f32 %v11370_v6 }
 0x5ce   : > { %14341 = vst [vmem:[#allocation104_spill] sm:$0xff] %v11694_v37  ;;  %v11696_v19 = vpop.eup %7467  ;;  %v2990_v23 = vpop.xlane.xlu1 %2989 }
 0x5cf   : > { %14342 = vst [vmem:[#allocation92_spill] sm:$0xff] %v11696_v19  ;;  %v4128_v56 = vadd.f32 %v11696_v19, %v11694_v37  ;;  %v3282_v51 = vsub.f32 %v14347_v42, %v2990_v23  ;;  %v3283_v63 = vsub.f32 %v14348_v49, %v2990_v23  ;;  %v2192_v49 = vld [vmem:[#allocation5 + $0x390] sm:$0xff] }
 0x5d0   : > { %v2434_v19 = vunpack.c.l.bf16 %v2192_v49 }
 0x5d1   : > { %4129 = vadd.xlane.f32.xlu1 %v4128_v56  ;;  %v3718_v11 = vmul.f32 1.442695, %v3282_v51  ;;  %v3720_v54 = vmul.f32 1.442695, %v3283_v63  ;;  %v14351_v51 = vld [vmem:[#allocation200_spill] sm:$0xff] }
 0x5d2   : > { %v11718_v23 = vadd.f32 %v2430_v35, %v14351_v51  ;;  %v14353_v56 = vld [vmem:[#allocation44_spill] sm:$0xff]  ;;  %v14355_v51 = vld [vmem:[#allocation38_spill] sm:$0xff] }
 0x5d3   : > { %v11711_v24 = vpop.xlane.xlu1 %4075  ;;  %7475 = vpow2.f32 %v3718_v11  ;;  %v11721_v63 = vadd.f32 %v2431_v48, %v14353_v56 }
 0x5d4   : > { %7477 = vpow2.f32 %v3720_v54  ;;  %14352 = vst [vmem:[#allocation93_spill] sm:$0xff] %v11718_v23 }
 0x5d5   : > { %v11713_v17 = vpop.eup %7469  ;;  %v4037_v37 = vpop.xlane.xlu0 %4036  ;;  %3049 = vmax.xlane.f32.xlu1 %v3048_v52  ;;  %14354 = vst [vmem:[#allocation23_spill] sm:$0xff] %v11721_v63  ;;  %v2435_v52 = vunpack.c.h.bf16 %v2192_v49 }
 0x5d6   : > { %14349 = vst [vmem:[#allocation88_spill] sm:$0xff] %v11713_v17  ;;  %v11715_v42 = vpop.eup %7471  ;;  %7479 = vrcp.f32 %v4037_v37  ;;  %v3054_v37 = vmax.f32 %v11718_v23, %v11721_v63  ;;  %v14362_v63 = vld [vmem:[#allocation77_spill] sm:$0xff] }
 0x5d7   : > { %14350 = vst [vmem:[#allocation178_spill] sm:$0xff] %v11715_v42  ;;  %v2996_v26 = vpop.xlane.xlu1 %2995  ;;  %v4134_v6 = vadd.f32 %v11715_v42, %v11713_v17  ;;  %7481 = vrcp.f32 %v11610_v32 }
 0x5d8   : > { %v3286_v11 = vsub.f32 %v11170_v16, %v2996_v26  ;;  %v3287_v54 = vsub.f32 %v11173_v31, %v2996_v26  ;;  %v11734_v16 = vld [vmem:[#allocation5 + $0x338] sm:$0xff]  ;;  %v7474_v26 = vpop.eup %7473 }
 0x5d9   : > { %v2957_v8 = vpop.xlane.xlu0 %2956  ;;  %4135 = vadd.xlane.f32.xlu1 %v4134_v6  ;;  %v14356_v6 = vld [vmem:[#allocation31_spill] sm:$0xff]  ;;  %v4491_v23 = vmul.f32 %v7474_v26, %v14362_v63  ;;  %v14367_v63 = vld [vmem:[#allocation54_spill] sm:$0xff] }
 0x5da   : > { %v3726_v1 = vmul.f32 1.442695, %v3286_v11  ;;  %v3728_v10 = vmul.f32 1.442695, %v3287_v54  ;;  %v3260_v35 = vsub.f32 %v11154_v50, %v2957_v8  ;;  %v3261_v48 = vsub.f32 %v14355_v51, %v2957_v8  ;;  %v14358_v54 = vld [vmem:[#allocation62_spill] sm:$0xff]  ;;  %v2194_v8 = vld [vmem:[#allocation5 + $0x3a0] sm:$0xff] }
 0x5db   : > { %v11732_v56 = vpop.xlane.xlu1 %4081  ;;  %v11737_v11 = vadd.f32 %v2434_v19, %v14356_v6  ;;  %v11740_v50 = vadd.f32 %v2435_v52, %v14358_v54  ;;  %v2438_v19 = vunpack.c.l.bf16 %v2194_v8  ;;  %v2439_v54 = vunpack.c.h.bf16 %v2194_v8  ;;  %v14366_v8 = vld [vmem:[#allocation47_spill] sm:$0xff] }
 0x5dc   : > { %7483 = vpow2.f32 %v3726_v1  ;;  %v3674_v31 = vmul.f32 1.442695, %v3260_v35  ;;  %v3676_v49 = vmul.f32 1.442695, %v3261_v48  ;;  %v2412_v1 = vunpack.c.l.bf16 %v11734_v16 }
 0x5dd   : > { %14357 = vst [vmem:[#allocation107_spill] sm:$0xff] %v11737_v11  ;;  %14359 = vst [vmem:[#allocation95_spill] sm:$0xff] %v11740_v50  ;;  %7485 = vpow2.f32 %v3728_v10  ;;  %v4043_v51 = vpop.xlane.xlu0 %4042  ;;  %3055 = vmax.xlane.f32.xlu1 %v3054_v37  ;;  %v11742_v17 = vpop.eup %7475  ;;  %v2413_v35 = vunpack.c.h.bf16 %v11734_v16 }
 0x5de   : > { %14360 = vst [vmem:[#allocation49_spill] sm:$0xff] %v11742_v17  ;;  %7487 = vpow2.f32 %v3674_v31  ;;  %v11744_v32 = vpop.eup %7477  ;;  %v3060_v31 = vmax.f32 %v11737_v11, %v11740_v50  ;;  %v11763_v11 = vld [vmem:[#allocation5 + $0x348] sm:$0xff] }
 0x5df   : > { %14361 = vst [vmem:[#allocation131_spill] sm:$0xff] %v11744_v32  ;;  %7489 = vpow2.f32 %v3676_v49  ;;  %v3002_v48 = vpop.xlane.xlu1 %3001  ;;  %v4140_v10 = vadd.f32 %v11744_v32, %v11742_v17  ;;  %v14365_v32 = vld [vmem:[#allocation143_spill] sm:$0xff] }
 0x5e0   : > { %v3290_v6 = vsub.f32 %v11221_v41, %v3002_v48  ;;  %v3291_v52 = vsub.f32 %v11226_v58, %v3002_v48  ;;  %v7480_v37 = vpop.eup %7479  ;;  %7491 = vrcp.f32 %v4043_v51  ;;  %v14364_v48 = vld [vmem:[#allocation161_spill] sm:$0xff]  ;;  %v4490_v50 = vmul.f32 %v7474_v26, %v14365_v32 }
 0x5e1   : > { %v2963_v42 = vpop.xlane.xlu0 %2962  ;;  %4141 = vadd.xlane.f32.xlu1 %v4140_v10  ;;  %7493 = vrcp.f32 %v11618_v47  ;;  %v4493_v17 = vmul.f32 %v7480_v37, %v14364_v48  ;;  %v4492_v51 = vmul.f32 %v7480_v37, %v14366_v8  ;;  %v14368_v10 = vld [vmem:[#allocation45_spill] sm:$0xff]  ;;  %v2417_v37 = vunpack.c.h.bf16 %v11763_v11 }
 0x5e2   : > { %v3734_v16 = vmul.f32 1.442695, %v3290_v6  ;;  %v3736_v49 = vmul.f32 1.442695, %v3291_v52  ;;  %v3264_v3 = vsub.f32 %v11203_v18, %v2963_v42  ;;  %v3265_v41 = vsub.f32 %v11210_v55, %v2963_v42  ;;  %v2196_v52 = vld [vmem:[#allocation5 + $0x3b0] sm:$0xff]  ;;  %v7482_v42 = vpop.eup %7481 }
 0x5e3   : > { %v11758_v58 = vpop.xlane.xlu1 %4087  ;;  %v11766_v6 = vadd.f32 %v2438_v19, %v14367_v63  ;;  %v11769_v47 = vadd.f32 %v2439_v54, %v14368_v10  ;;  %v4693_v48 = vpack.c.bf16 %v4493_v17, %v4491_v23  ;;  %v2416_v19 = vunpack.c.l.bf16 %v11763_v11  ;;  %v14372_v11 = vld [vmem:[#allocation187_spill] sm:$0xff]  ;;  %v14373_v10 = vld [vmem:[#allocation117_spill] sm:$0xff] }
 0x5e4   : > { %14363 = vst [vmem:[#allocation180_spill] sm:$0xff] %v11758_v58  ;;  %7495 = vpow2.f32 %v3734_v16  ;;  %v3682_v18 = vmul.f32 1.442695, %v3264_v3  ;;  %v3684_v55 = vmul.f32 1.442695, %v3265_v41  ;;  %v4692_v58 = vpack.c.bf16 %v4492_v51, %v4490_v50  ;;  %v14371_v41 = vld [vmem:[#allocation185_spill] sm:$0xff] }
 0x5e5   : > { %7497 = vpow2.f32 %v3736_v49  ;;  %v4049_v5 = vpop.xlane.xlu0 %4048  ;;  %3061 = vmax.xlane.f32.xlu1 %v3060_v31  ;;  %v2442_v3 = vunpack.c.l.bf16 %v2196_v52  ;;  %5047 = vmatprep.mubr.bf16.mxu0 %v4693_v48  ;;  %v2443_v49 = vunpack.c.h.bf16 %v2196_v52  ;;  %v11786_v8 = vadd.f32 %v2412_v1, %v14371_v41  ;;  %v14375_v41 = vld [vmem:[#allocation78_spill] sm:$0xff] }
 0x5e6   : > { %v11771_v26 = vpop.eup %7483  ;;  %7499 = vpow2.f32 %v3682_v18  ;;  %5048 = vmatmul.mubr.bf16.gmra.mrb[140].mxu0 %v4692_v58  ;;  %v11789_v51 = vadd.f32 %v2413_v35, %v14372_v11  ;;  %v3066_v63 = vmax.f32 %v11766_v6, %v11769_v47  ;;  %v14376_v11 = vld [vmem:[#allocation27_spill] sm:$0xff] }
 0x5e7   : > { %14369 = vst [vmem:[#allocation182_spill] sm:$0xff] %v11771_v26  ;;  %v11773_v32 = vpop.eup %7485  ;;  %7501 = vpow2.f32 %v3684_v55  ;;  %v11796_v48 = vadd.f32 %v2442_v3, %v14373_v10  ;;  %v11808_v3 = vadd.f32 %v2443_v49, %v14375_v41  ;;  %v2185_v41 = vld [vmem:[#allocation5 + $0x358] sm:$0xff] }
 0x5e8   : > { %14370 = vst [vmem:[#allocation33_spill] sm:$0xff] %v11773_v32  ;;  %v3008_v16 = vpop.xlane.xlu1 %3007  ;;  %v11777_v54 = vpop.eup %7487  ;;  %v4146_v50 = vadd.f32 %v11773_v32, %v11771_v26  ;;  %7503 = vrcp.f32 %v4049_v5  ;;  %v14374_v5 = vld [vmem:[#allocation167_spill] sm:$0xff] }
 0x5e9   : > { %v3294_v17 = vsub.f32 %v11284_v13, %v3008_v16  ;;  %v3295_v23 = vsub.f32 %v11289_v28, %v3008_v16  ;;  %v11783_v31 = vpop.eup %7489  ;;  %v2969_v58 = vpop.xlane.xlu0 %2968  ;;  %7505 = vrcp.f32 %v11626_v38  ;;  %v4495_v16 = vmul.f32 %v7482_v42, %v14374_v5 }
 0x5ea   : > { %v3268_v28 = vsub.f32 %v11278_v59, %v2969_v58  ;;  %v3269_v18 = vsub.f32 %v11292_v33, %v2969_v58  ;;  %4147 = vadd.xlane.f32.xlu1 %v4146_v50  ;;  %v7492_v55 = vpop.eup %7491  ;;  %v4107_v1 = vadd.f32 %v11783_v31, %v11777_v54  ;;  %v4494_v58 = vmul.f32 %v7482_v42, %v14376_v11 }
 0x5eb   : > { %v3742_v52 = vmul.f32 1.442695, %v3294_v17  ;;  %v3744_v13 = vmul.f32 1.442695, %v3295_v23  ;;  %v11804_v17 = vld [vmem:[#allocation5 + $0x3c0] sm:$0xff]  ;;  %v4497_v33 = vmul.f32 %v7492_v55, %v11216_v53  ;;  %v7494_v50 = vpop.eup %7493  ;;  %v4496_v10 = vmul.f32 %v7492_v55, %v11205_v9 }
 0x5ec   : > { %v11801_v35 = vpop.xlane.xlu1 %4093  ;;  %v3690_v59 = vmul.f32 1.442695, %v3268_v28  ;;  %v3692_v23 = vmul.f32 1.442695, %v3269_v18  ;;  %4108 = vadd.xlane.f32.xlu0 %v4107_v1  ;;  %v3027_v53 = vmax.f32 %v11786_v8, %v11789_v51  ;;  %v2446_v49 = vunpack.c.l.bf16 %v11804_v17  ;;  %v14380_v18 = vld [vmem:[#allocation189_spill] sm:$0xff]  ;;  %v14381_v9 = vld [vmem:[#allocation191_spill] sm:$0xff] }
 0x5ed   : > { %7507 = vpow2.f32 %v3742_v52  ;;  %v4055_v38 = vpop.xlane.xlu0 %4054  ;;  %v4695_v5 = vpack.c.bf16 %v4497_v33, %v4495_v16  ;;  %v11822_v42 = vadd.f32 %v2416_v19, %v14380_v18  ;;  %v11825_v55 = vadd.f32 %v2417_v37, %v14381_v9 }
 0x5ee   : > { %7509 = vpow2.f32 %v3744_v13  ;;  %v11812_v26 = vpop.eup %7495  ;;  %3067 = vmax.xlane.f32.xlu1 %v3066_v63  ;;  %v4694_v13 = vpack.c.bf16 %v4496_v10, %v4494_v58  ;;  %v2447_v1 = vunpack.c.h.bf16 %v11804_v17  ;;  %v14382_v10 = vld [vmem:[#allocation158_spill] sm:$0xff] }
 0x5ef   : > { %14377 = vst [vmem:[#allocation21_spill] sm:$0xff] %v11812_v26  ;;  %7511 = vpow2.f32 %v3690_v59  ;;  %v11814_v52 = vpop.eup %7497  ;;  %5055 = vmatprep.mubr.bf16.mxu0 %v4695_v5  ;;  %v4499_v5 = vmul.f32 %v7494_v50, %v14382_v10  ;;  %v2421_v10 = vunpack.c.h.bf16 %v2185_v41 }
 0x5f0   : > { %14378 = vst [vmem:[#allocation96_spill] sm:$0xff] %v11814_v52  ;;  %7513 = vpow2.f32 %v3692_v23  ;;  %v11819_v28 = vpop.eup %7499  ;;  %v4152_v16 = vadd.f32 %v11814_v52, %v11812_v26  ;;  %v3072_v23 = vmax.f32 %v11796_v48, %v11808_v3  ;;  %5056 = vmatmul.mubr.bf16.gmra.mrb[144].mxu0 %v4694_v13  ;;  %3028 = vmax.xlane.f32.xlu0 %v3027_v53 }
 0x5f1   : > { %14379 = vst [vmem:[#allocation123_spill] sm:$0xff] %v11819_v28  ;;  %v3014_v63 = vpop.xlane.xlu1 %3013  ;;  %v11830_v59 = vpop.eup %7501  ;;  %7515 = vrcp.f32 %v4055_v38 }
 0x5f2   : > { %v3298_v19 = vsub.f32 %v11338_v25, %v3014_v63  ;;  %v3299_v37 = vsub.f32 %v11350_v22, %v3014_v63  ;;  %v2975_v33 = vpop.xlane.xlu0 %2974  ;;  %4153 = vadd.xlane.f32.xlu1 %v4152_v16  ;;  %v4113_v58 = vadd.f32 %v11830_v59, %v11819_v28  ;;  %v7504_v18 = vpop.eup %7503  ;;  %7517 = vrcp.f32 %v11646_v40  ;;  %v14383_v25 = vld [vmem:[#allocation168_spill] sm:$0xff]  ;;  %v14384_v63 = vld [vmem:[#allocation169_spill] sm:$0xff] }
 0x5f3   : > { %v3272_v17 = vsub.f32 %v11327_v20, %v2975_v33  ;;  %v3273_v11 = vsub.f32 %v11330_v29, %v2975_v33  ;;  %v4498_v13 = vmul.f32 %v7494_v50, %v14383_v25  ;;  %v4501_v26 = vmul.f32 %v7504_v18, %v14384_v63  ;;  %v14385_v20 = vld [vmem:[#allocation58_spill] sm:$0xff]  ;;  %v7506_v29 = vpop.eup %7505  ;;  %v2200_v28 = vld [vmem:[#allocation5 + $0x3d0] sm:$0xff] }
 0x5f4   : > { %v3750_v38 = vmul.f32 1.442695, %v3298_v19  ;;  %v3752_v53 = vmul.f32 1.442695, %v3299_v37  ;;  %v4500_v52 = vmul.f32 %v7504_v18, %v14385_v20  ;;  %v2420_v16 = vunpack.c.l.bf16 %v2185_v41  ;;  %4114 = vadd.xlane.f32.xlu0 %v4113_v58  ;;  %v14389_v18 = vld [vmem:[#allocation138_spill] sm:$0xff] }
 0x5f5   : > { %v3698_v22 = vmul.f32 1.442695, %v3272_v17  ;;  %v3700_v9 = vmul.f32 1.442695, %v3273_v11  ;;  %v4697_v40 = vpack.c.bf16 %v4501_v26, %v4499_v5  ;;  %v3033_v37 = vmax.f32 %v11822_v42, %v11825_v55  ;;  %v14388_v17 = vld [vmem:[#allocation20_spill] sm:$0xff] }
 0x5f6   : > { %7519 = vpow2.f32 %v3750_v38  ;;  %v4061_v33 = vpop.xlane.xlu0 %4060  ;;  %3073 = vmax.xlane.f32.xlu1 %v3072_v23  ;;  %v4696_v19 = vpack.c.bf16 %v4500_v52, %v4498_v13  ;;  %v11852_v11 = vadd.f32 %v2446_v49, %v14388_v17  ;;  %v11855_v38 = vadd.f32 %v2447_v1, %v14389_v18  ;;  %v14390_v23 = vld [vmem:[#allocation193_spill] sm:$0xff]  ;;  %v14391_v1 = vld [vmem:[#allocation195_spill] sm:$0xff]  ;;  %v2187_v13 = vld [vmem:[#allocation5 + $0x368] sm:$0xff] }
 0x5f7   : > { %v11845_v32 = vpop.eup %7507  ;;  %7521 = vpow2.f32 %v3752_v53  ;;  %5063 = vmatprep.mubr.bf16.mxu0 %v4697_v40  ;;  %v11864_v41 = vadd.f32 %v2420_v16, %v14390_v23  ;;  %v2450_v5 = vunpack.c.l.bf16 %v2200_v28  ;;  %v2451_v53 = vunpack.c.h.bf16 %v2200_v28  ;;  %v14392_v16 = vld [vmem:[#allocation34_spill] sm:$0xff] }
 0x5f8   : > { %14386 = vst [vmem:[#allocation36_spill] sm:$0xff] %v11845_v32  ;;  %v11847_v50 = vpop.eup %7509  ;;  %7523 = vpow2.f32 %v3698_v22  ;;  %5064 = vmatmul.mubr.bf16.gmra.mrb[148].mxu0 %v4696_v19  ;;  %3034 = vmax.xlane.f32.xlu0 %v3033_v37  ;;  %v11867_v25 = vadd.f32 %v2421_v10, %v14391_v1  ;;  %v3078_v28 = vmax.f32 %v11852_v11, %v11855_v38  ;;  %v14393_v40 = vld [vmem:[#allocation134_spill] sm:$0xff]  ;;  %v2424_v18 = vunpack.c.l.bf16 %v2187_v13 }
 0x5f9   : > { %14387 = vst [vmem:[#allocation184_spill] sm:$0xff] %v11847_v50  ;;  %v11857_v58 = vpop.eup %7511  ;;  %7525 = vpow2.f32 %v3700_v9  ;;  %v4158_v26 = vadd.f32 %v11847_v50, %v11845_v32  ;;  %v4502_v10 = vmul.f32 %v7506_v29, %v14393_v40  ;;  %v2189_v1 = vld [vmem:[#allocation5 + $0x378] sm:$0xff]  ;;  %v11987_v50 = vld [vmem:[#allocation5 + $0x3a8] sm:$0xff] }
 0x5fa   : > { %v11861_v52 = vpop.eup %7513  ;;  %7527 = vrcp.f32 %v4061_v33  ;;  %v2981_v49 = vpop.xlane.xlu0 %2980  ;;  %v4503_v33 = vmul.f32 %v7506_v29, %v14392_v16  ;;  %v3039_v29 = vmax.f32 %v11864_v41, %v11867_v25  ;;  %v2429_v40 = vunpack.c.h.bf16 %v2189_v1 }
 0x5fb   : > { %v3276_v22 = vsub.f32 %v11384_v4, %v2981_v49  ;;  %v3277_v9 = vsub.f32 %v11392_v2, %v2981_v49  ;;  %4159 = vadd.xlane.f32.xlu1 %v4158_v26  ;;  %v4119_v63 = vadd.f32 %v11861_v52, %v11857_v58  ;;  %v7516_v20 = vpop.eup %7515  ;;  %7529 = vrcp.f32 %v11668_v62 }
 0x5fc   : > { %v4505_v4 = vmul.f32 %v7516_v20, %v11347_v34  ;;  %v4504_v2 = vmul.f32 %v7516_v20, %v11335_v12  ;;  %v7518_v17 = vpop.eup %7517  ;;  %v2425_v49 = vunpack.c.h.bf16 %v2187_v13  ;;  %v14395_v34 = vld [vmem:[#allocation80_spill] sm:$0xff]  ;;  %v14396_v12 = vld [vmem:[#allocation122_spill] sm:$0xff]  ;;  %v14398_v20 = vld [vmem:[#allocation29_spill] sm:$0xff] }
 0x5fd   : > { %v3706_v19 = vmul.f32 1.442695, %v3276_v22  ;;  %v3708_v37 = vmul.f32 1.442695, %v3277_v9  ;;  %4120 = vadd.xlane.f32.xlu0 %v4119_v63  ;;  %v11887_v22 = vadd.f32 %v2450_v5, %v14395_v34  ;;  %v11890_v9 = vadd.f32 %v2451_v53, %v14396_v12  ;;  %v14400_v34 = vld [vmem:[#allocation140_spill] sm:$0xff] }
 0x5fe   : > { %v4067_v26 = vpop.xlane.xlu0 %4066  ;;  %v11880_v23 = vpop.xlane.xlu1 %4099  ;;  %v4699_v62 = vpack.c.bf16 %v4505_v4, %v4503_v33  ;;  %v4698_v16 = vpack.c.bf16 %v4504_v2, %v4502_v10  ;;  %v2428_v33 = vunpack.c.l.bf16 %v2189_v1  ;;  %v4507_v12 = vmul.f32 %v7518_v17, %v14400_v34 }
 0x5ff   : > { %7531 = vpow2.f32 %v3706_v19  ;;  %3079 = vmax.xlane.f32.xlu1 %v3078_v28  ;;  %v11897_v28 = vadd.f32 %v2424_v18, %v14398_v20 }
 0x600   : > { %v11882_v32 = vpop.eup %7519  ;;  %7533 = vpow2.f32 %v3708_v37  ;;  %5071 = vmatprep.mubr.bf16.mxu0 %v4699_v62  ;;  %v14399_v62 = vld [vmem:[#allocation197_spill] sm:$0xff] }
 0x601   : > { %14394 = vst [vmem:[#allocation142_spill] sm:$0xff] %v11882_v32  ;;  %v11892_v63 = vpop.eup %7521  ;;  %7535 = vrcp.f32 %v4067_v26  ;;  %5072 = vmatmul.mubr.bf16.gmra.mrb[152].mxu0 %v4698_v16  ;;  %3040 = vmax.xlane.f32.xlu0 %v3039_v29  ;;  %v11908_v1 = vadd.f32 %v2425_v49, %v14399_v62  ;;  %v3084_v16 = vmax.f32 %v11887_v22, %v11890_v9  ;;  %v14401_v62 = vld [vmem:[#allocation162_spill] sm:$0xff] }
 0x602   : > { %14397 = vst [vmem:[#allocation141_spill] sm:$0xff] %v11892_v63  ;;  %v11894_v13 = vpop.eup %7523  ;;  %v2987_v10 = vpop.xlane.xlu0 %2986  ;;  %v4164_v5 = vadd.f32 %v11892_v63, %v11882_v32  ;;  %7537 = vrcp.f32 %v11692_v44 }
 0x603   : > { %v3020_v53 = vpop.xlane.xlu1 %3019  ;;  %v11901_v19 = vpop.eup %7525  ;;  %v3280_v37 = vsub.f32 %v11433_v7, %v2987_v10  ;;  %v3281_v4 = vsub.f32 %v11436_v45, %v2987_v10 }
 0x604   : > { %v3302_v2 = vsub.f32 %v11441_v15, %v3020_v53  ;;  %v3303_v18 = vsub.f32 %v11448_v27, %v3020_v53  ;;  %v7528_v26 = vpop.eup %7527  ;;  %4165 = vadd.xlane.f32.xlu1 %v4164_v5  ;;  %v4125_v29 = vadd.f32 %v11901_v19, %v11894_v13  ;;  %v4506_v5 = vmul.f32 %v7518_v17, %v14401_v62  ;;  %v14403_v17 = vld [vmem:[#allocation42_spill] sm:$0xff] }
 0x605   : > { %v3714_v7 = vmul.f32 1.442695, %v3280_v37  ;;  %v3716_v20 = vmul.f32 1.442695, %v3281_v4  ;;  %v4509_v15 = vmul.f32 %v7528_v26, %v11389_v30  ;;  %v7530_v10 = vpop.eup %7529  ;;  %v4508_v32 = vmul.f32 %v7528_v26, %v11381_v36  ;;  %v14404_v36 = vld [vmem:[#allocation146_spill] sm:$0xff] }
 0x606   : > { %v3758_v45 = vmul.f32 1.442695, %v3302_v2  ;;  %v3760_v27 = vmul.f32 1.442695, %v3303_v18  ;;  %4126 = vadd.xlane.f32.xlu0 %v4125_v29  ;;  %v4073_v49 = vpop.xlane.xlu0 %4072  ;;  %v3045_v37 = vmax.f32 %v11897_v28, %v11908_v1  ;;  %v14402_v2 = vld [vmem:[#allocation124_spill] sm:$0xff]  ;;  %v11931_v29 = vadd.f32 %v2429_v40, %v14403_v17  ;;  %v11944_v17 = vld [vmem:[#allocation5 + $0x398] sm:$0xff] }
 0x607   : > { %v11917_v53 = vpop.xlane.xlu1 %4105  ;;  %7539 = vpow2.f32 %v3714_v7  ;;  %v4701_v63 = vpack.c.bf16 %v4509_v15, %v4507_v12  ;;  %v4700_v30 = vpack.c.bf16 %v4508_v32, %v4506_v5  ;;  %v11928_v18 = vadd.f32 %v2428_v33, %v14402_v2  ;;  %v2191_v33 = vld [vmem:[#allocation5 + $0x388] sm:$0xff] }
 0x608   : > { %7541 = vpow2.f32 %v3716_v20  ;;  %3085 = vmax.xlane.f32.xlu1 %v3084_v16  ;;  %v4510_v26 = vmul.f32 %v7530_v10, %v14404_v36  ;;  %v2202_v20 = vld [vmem:[#allocation5 + $0x3e0] sm:$0xff]  ;;  %v2432_v2 = vunpack.c.l.bf16 %v2191_v33 }
 0x609   : > { %v11923_v4 = vpop.eup %7531  ;;  %7543 = vpow2.f32 %v3758_v45  ;;  %5079 = vmatprep.mubr.bf16.mxu0 %v4701_v63 }
 0x60a   : > { %v11925_v44 = vpop.eup %7533  ;;  %7545 = vpow2.f32 %v3760_v27  ;;  %5080 = vmatmul.mubr.bf16.gmra.mrb[156].mxu0 %v4700_v30  ;;  %3046 = vmax.xlane.f32.xlu0 %v3045_v37  ;;  %v2993_v34 = vpop.xlane.xlu0 %2992  ;;  %v14405_v27 = vld [vmem:[#allocation41_spill] sm:$0xff] }
 0x60b   : > { %v3026_v16 = vpop.xlane.xlu1 %3025  ;;  %v7536_v32 = vpop.eup %7535  ;;  %7547 = vrcp.f32 %v4073_v49  ;;  %v3284_v12 = vsub.f32 %v11468_v39, %v2993_v34  ;;  %v3285_v63 = vsub.f32 %v11471_v60, %v2993_v34  ;;  %v4131_v15 = vadd.f32 %v11925_v44, %v11923_v4 }
 0x60c   : > { %v3306_v7 = vsub.f32 %v11476_v61, %v3026_v16  ;;  %v4512_v40 = vmul.f32 %v7536_v32, %v11425_v14  ;;  %v3307_v45 = vsub.f32 %v11483_v46, %v3026_v16  ;;  %v4511_v62 = vmul.f32 %v7530_v10, %v14405_v27  ;;  %v7538_v36 = vpop.eup %7537  ;;  %v14413_v27 = vld [vmem:[#allocation50_spill] sm:$0xff] }
 0x60d   : > { %v3722_v5 = vmul.f32 1.442695, %v3284_v12  ;;  %v3724_v37 = vmul.f32 1.442695, %v3285_v63  ;;  %v4513_v39 = vmul.f32 %v7536_v32, %v11430_v0  ;;  %7549 = vrcp.f32 %v11711_v24  ;;  %v14409_v63 = vld [vmem:[#allocation65_spill] sm:$0xff] }
 0x60e   : > { %v3766_v49 = vmul.f32 1.442695, %v3306_v7  ;;  %v3768_v60 = vmul.f32 1.442695, %v3307_v45  ;;  %4132 = vadd.xlane.f32.xlu0 %v4131_v15  ;;  %v4079_v61 = vpop.xlane.xlu0 %4078  ;;  %v4702_v30 = vpack.c.bf16 %v4512_v40, %v4510_v26  ;;  %v2433_v14 = vunpack.c.h.bf16 %v2191_v33 }
 0x60f   : > { %7551 = vpow2.f32 %v3722_v5  ;;  %v4703_v46 = vpack.c.bf16 %v4513_v39, %v4511_v62  ;;  %v3051_v10 = vmax.f32 %v11928_v18, %v11931_v29  ;;  %v2454_v34 = vunpack.c.l.bf16 %v2202_v20  ;;  %v14414_v5 = vld [vmem:[#allocation15_spill] sm:$0xff] }
 0x610   : > { %v2455_v16 = vunpack.c.h.bf16 %v2202_v20  ;;  %7553 = vpow2.f32 %v3724_v37  ;;  %v2436_v26 = vunpack.c.l.bf16 %v11944_v17  ;;  %v14411_v20 = vld [vmem:[#allocation98_spill] sm:$0xff]  ;;  %v11965_v62 = vadd.f32 %v2432_v2, %v14413_v27  ;;  %v14420_v27 = vld [vmem:[#allocation89_spill] sm:$0xff] }
 0x611   : > { %v11948_v0 = vpop.eup %7539  ;;  %7555 = vpow2.f32 %v3766_v49  ;;  %5120 = vmatprep.mubr.bf16.mxu0 %v4703_v46  ;;  %v11968_v37 = vadd.f32 %v2433_v14, %v14414_v5  ;;  %v14415_v49 = vld [vmem:[#allocation120_spill] sm:$0xff]  ;;  %v4514_v5 = vmul.f32 %v7538_v36, %v14420_v27 }
 0x612   : > { %14406 = vst [vmem:[#allocation156_spill] sm:$0xff] %v11948_v0  ;;  %v11950_v24 = vpop.eup %7541  ;;  %7557 = vpow2.f32 %v3768_v60  ;;  %5121 = vmatmul.mubr.bf16.vlgmr.msra.gmra.mrb[160].mxu0 %v4702_v30  ;;  %3052 = vmax.xlane.f32.xlu0 %v3051_v10  ;;  %v2999_v32 = vpop.xlane.xlu0 %2998  ;;  %v11971_v39 = vadd.f32 %v2454_v34, %v14415_v49  ;;  %v14416_v60 = vld [vmem:[#allocation121_spill] sm:$0xff]  ;;  %v14417_v30 = vld [vmem:[#allocation66_spill] sm:$0xff]  ;;  %v14418_v34 = vld [vmem:[#allocation91_spill] sm:$0xff] }
 0x613   : > { %14407 = vst [vmem:[#allocation133_spill] sm:$0xff] %v11950_v24  ;;  %v11953_v12 = vpop.eup %7543  ;;  %7559 = vrcp.f32 %v4079_v61  ;;  %6696 = vmatpush3.bf16.msk.msra.mxu0 %vm11414_vm14, %v14409_v63  ;;  %v3288_v33 = vsub.f32 %v11501_v21, %v2999_v32  ;;  %v3289_v40 = vsub.f32 %v14411_v20, %v2999_v32  ;;  %v4137_v45 = vadd.f32 %v11950_v24, %v11948_v0  ;;  %v2204_v21 = vld [vmem:[#allocation5 + $0x3f0] sm:$0xff]  ;;  %v14419_v20 = vld [vmem:[#allocation174_spill] sm:$0xff] }
 0x614   : > { %14408 = vst [vmem:[#allocation12_spill] sm:$0xff] %v11953_v12  ;;  %v11962_v15 = vpop.eup %7545  ;;  %v11974_v61 = vadd.f32 %v2455_v16, %v14416_v60  ;;  %6697 = vmatprep.subr.msk.bf16.mxu0 %vm11414_vm14, %v14417_v30  ;;  %7561 = vrcp.f32 %v11732_v56  ;;  %v4515_v63 = vmul.f32 %v7538_v36, %v14418_v34  ;;  %v14421_v49 = vld [vmem:[#allocation173_spill] sm:$0xff]  ;;  %v2437_v30 = vunpack.c.h.bf16 %v11944_v17  ;;  %v14423_v36 = vld [vmem:[#allocation68_spill] sm:$0xff]  ;;  %v12042_v24 = vld [vmem:[#allocation5 + $0x3b8] sm:$0xff] }
 0x615   : > { %14412 = vst [vmem:[#allocation100_spill] sm:$0xff] %v11962_v15  ;;  %v7548_v46 = vpop.eup %7547  ;;  %v3730_v10 = vmul.f32 1.442695, %v3288_v33  ;;  %v3732_v2 = vmul.f32 1.442695, %v3289_v40  ;;  %v4170_v14 = vadd.f32 %v11962_v15, %v11953_v12  ;;  %v2458_v56 = vunpack.c.l.bf16 %v2204_v21  ;;  %v14422_v40 = vld [vmem:[#allocation67_spill] sm:$0xff] }
 0x616   : > { %4138 = vadd.xlane.f32.xlu0 %v4137_v45  ;;  %v4085_v32 = vpop.xlane.xlu0 %4084  ;;  %v4517_v16 = vmul.f32 %v7548_v46, %v14419_v20  ;;  %v4516_v60 = vmul.f32 %v7548_v46, %v14421_v49  ;;  %v2459_v33 = vunpack.c.h.bf16 %v2204_v21  ;;  %v6465_v45 = vpop.f32.mrb[92].mxu0  ;;  %v3057_v20 = vmax.f32 %v11965_v62, %v11968_v37  ;;  %v14427_v12 = vld [vmem:[#allocation103_spill] sm:$0xff] }
 0x617   : > { %7563 = vpow2.f32 %v3730_v10  ;;  %6698 = vmatpush3.bf16.msk.msra.mxu0 %vm11414_vm14, %v14422_v40  ;;  %4171 = vadd.xlane.f32.xlu1 %v4170_v14  ;;  %v7550_v34 = vpop.eup %7549  ;;  %v6466_v27 = vpop.f32.mrb[93].mxu0  ;;  %v3090_v10 = vmax.f32 %v11971_v39, %v11974_v61  ;;  %v2440_v15 = vunpack.c.l.bf16 %v11987_v50 }
 0x618   : > { %7565 = vpow2.f32 %v3732_v2  ;;  %6699 = vmatprep.subr.msk.bf16.mxu0 %vm11414_vm14, %v14423_v36  ;;  %v4705_v17 = vpack.c.bf16 %v4517_v16, %v4515_v63  ;;  %v4704_v46 = vpack.c.bf16 %v4516_v60, %v4514_v5  ;;  %v12001_v14 = vadd.f32 %v6466_v27, %v6465_v45  ;;  %v6468_v49 = vpop.f32.mrb[94].mxu0 }
 0x619   : > { %v11997_v21 = vpop.eup %7551  ;;  %7567 = vrcp.f32 %v4085_v32  ;;  %v12006_v2 = vadd.f32 %v2436_v26, %v14427_v12  ;;  %v6469_v16 = vpop.f32.mrb[95].mxu0  ;;  %v2441_v60 = vunpack.c.h.bf16 %v11987_v50  ;;  %v14431_v12 = vld [vmem:[#allocation52_spill] sm:$0xff]  ;;  %v14437_v50 = vld [vmem:[#allocation69_spill] sm:$0xff] }
 0x61a   : > { %14424 = vst [vmem:[#allocation164_spill] sm:$0xff] %v11997_v21  ;;  %14425 = vst [vmem:[#allocation149_spill] sm:$0xff] %v12001_v14  ;;  %v12003_v40 = vpop.eup %7553  ;;  %5128 = vmatprep.mubr.bf16.mxu0 %v4705_v17  ;;  %3058 = vmax.xlane.f32.xlu0 %v3057_v20  ;;  %v3005_v63 = vpop.xlane.xlu0 %3004  ;;  %v12014_v36 = vadd.f32 %v6469_v16, %v6468_v49  ;;  %v12019_v27 = vadd.f32 %v2437_v30, %v14431_v12  ;;  %v14433_v20 = vld [vmem:[#allocation125_spill] sm:$0xff]  ;;  %v14435_v14 = vld [vmem:[#allocation126_spill] sm:$0xff] }
 0x61b   : > { %14426 = vst [vmem:[#allocation53_spill] sm:$0xff] %v12003_v40  ;;  %v12009_v5 = vpop.eup %7555  ;;  %5129 = vmatmul.mubr.bf16.gmra.mrb[164].mxu0 %v4704_v46  ;;  %3091 = vmax.xlane.f32.xlu1 %v3090_v10  ;;  %v3292_v32 = vsub.f32 %v11526_v43, %v3005_v63  ;;  %v3293_v45 = vsub.f32 %v11529_v57, %v3005_v63  ;;  %v14438_v46 = vld [vmem:[#allocation70_spill] sm:$0xff]  ;;  %v14439_v49 = vld [vmem:[#allocation39_spill] sm:$0xff]  ;;  %v14441_v16 = vld [vmem:[#allocation112_spill] sm:$0xff] }
 0x61c   : > { %14428 = vst [vmem:[#allocation113_spill] sm:$0xff] %v12009_v5  ;;  %14429 = vst [vmem:[#allocation19_spill] sm:$0xff] %v12014_v36  ;;  %v12016_v26 = vpop.eup %7557  ;;  %v12022_v17 = vadd.f32 %v2458_v56, %v14433_v20  ;;  %v12025_v0 = vadd.f32 %v2459_v33, %v14435_v14  ;;  %6700 = vmatpush3.bf16.msk.msra.mxu0 %vm11414_vm14, %v14437_v50  ;;  %v4143_v43 = vadd.f32 %v12003_v40, %v11997_v21  ;;  %v14440_v14 = vld [vmem:[#allocation180_spill] sm:$0xff]  ;;  %v14442_v20 = vld [vmem:[#allocation157_spill] sm:$0xff] }
 0x61d   : > { %14430 = vst [vmem:[#allocation145_spill] sm:$0xff] %v12016_v26  ;;  %14432 = vst [vmem:[#allocation59_spill] sm:$0xff] %v12019_v27  ;;  %v7560_v57 = vpop.eup %7559  ;;  %6701 = vmatprep.subr.msk.bf16.mxu0 %vm11414_vm14, %v14438_v46  ;;  %v3738_v30 = vmul.f32 1.442695, %v3292_v32  ;;  %v3740_v10 = vmul.f32 1.442695, %v3293_v45  ;;  %v4176_v56 = vadd.f32 %v12016_v26, %v12009_v5  ;;  %v4519_v33 = vmul.f32 %v7550_v34, %v14439_v49 }
 0x61e   : > { %14434 = vst [vmem:[#allocation118_spill] sm:$0xff] %v12022_v17  ;;  %14436 = vst [vmem:[#allocation150_spill] sm:$0xff] %v12025_v0  ;;  %7569 = vrcp.f32 %v14440_v14  ;;  %4144 = vadd.xlane.f32.xlu0 %v4143_v43  ;;  %v4091_v63 = vpop.xlane.xlu0 %4090  ;;  %v4521_v12 = vmul.f32 %v7560_v57, %v14441_v16  ;;  %v4518_v50 = vmul.f32 %v7550_v34, %v14442_v20  ;;  %v14443_v36 = vld [vmem:[#allocation183_spill] sm:$0xff]  ;;  %v7562_v40 = vpop.eup %7561  ;;  %v14449_v14 = vld [vmem:[#allocation84_spill] sm:$0xff] }
 0x61f   : > { %v4520_v21 = vmul.f32 %v7560_v57, %v14443_v36  ;;  %7571 = vpow2.f32 %v3738_v30  ;;  %4177 = vadd.xlane.f32.xlu1 %v4176_v56  ;;  %v3063_v32 = vmax.f32 %v12006_v2, %v12019_v27  ;;  %v14444_v45 = vld [vmem:[#allocation71_spill] sm:$0xff]  ;;  %v3096_v34 = vmax.f32 %v12022_v17, %v12025_v0  ;;  %v14446_v36 = vld [vmem:[#allocation72_spill] sm:$0xff]  ;;  %v14455_v0 = vld [vmem:[#allocation73_spill] sm:$0xff] }
 0x620   : > { %7573 = vpow2.f32 %v3740_v10  ;;  %6702 = vmatpush3.bf16.msk.msra.mxu0 %vm11414_vm14, %v14444_v45  ;;  %v4707_v43 = vpack.c.bf16 %v4521_v12, %v4519_v33  ;;  %v6487_v57 = vpop.f32.mrb[96].mxu0  ;;  %v14448_v10 = vld [vmem:[#allocation82_spill] sm:$0xff]  ;;  %v12062_v16 = vadd.f32 %v2441_v60, %v14449_v14  ;;  %v14451_v20 = vld [vmem:[#allocation83_spill] sm:$0xff] }
 0x621   : > { %v4706_v46 = vpack.c.bf16 %v4520_v21, %v4518_v50  ;;  %v12049_v49 = vpop.eup %7563  ;;  %6703 = vmatprep.subr.msk.bf16.mxu0 %vm11414_vm14, %v14446_v36  ;;  %7575 = vrcp.f32 %v4091_v63  ;;  %v12059_v56 = vadd.f32 %v2440_v15, %v14448_v10  ;;  %v2444_v21 = vunpack.c.l.bf16 %v12042_v24  ;;  %v6488_v33 = vpop.f32.mrb[97].mxu0  ;;  %v14452_v36 = vld [vmem:[#allocation17_spill] sm:$0xff]  ;;  %v14453_v10 = vld [vmem:[#allocation152_spill] sm:$0xff]  ;;  %v14454_v60 = vld [vmem:[#allocation90_spill] sm:$0xff] }
 0x622   : > { %14445 = vst [vmem:[#allocation87_spill] sm:$0xff] %v12049_v49  ;;  %v12056_v30 = vpop.eup %7565  ;;  %14450 = vst [vmem:[#allocation63_spill] sm:$0xff] %v12062_v16  ;;  %5136 = vmatprep.mubr.bf16.mxu0 %v4707_v43  ;;  %3064 = vmax.xlane.f32.xlu0 %v3063_v32  ;;  %v3011_v12 = vpop.xlane.xlu0 %3010  ;;  %v4523_v50 = vmul.f32 %v7562_v40, %v14451_v20  ;;  %v5410_v63 = vsel %vm357_vm0, %v14452_v36, 0.0  ;;  %v6489_v5 = vadd.f32 %v6488_v33, %v6487_v57  ;;  %v14456_v20 = vld [vmem:[#allocation22_spill] sm:$0xff] }
 0x623   : > { %14447 = vst [vmem:[#allocation37_spill] sm:$0xff] %v12056_v30  ;;  %v7568_v45 = vpop.eup %7567  ;;  %5137 = vmatmul.mubr.bf16.gmra.mrb[168].mxu0 %v4706_v46  ;;  %3097 = vmax.xlane.f32.xlu1 %v3096_v34  ;;  %v6490_v15 = vpop.f32.mrb[98].mxu0  ;;  %v3296_v26 = vsub.f32 %v14453_v10, %v3011_v12  ;;  %v3297_v14 = vsub.f32 %v14454_v60, %v3011_v12  ;;  %v14457_v27 = vld [vmem:[#allocation86_spill] sm:$0xff]  ;;  %v14458_v46 = vld [vmem:[#allocation11_spill] sm:$0xff]  ;;  %7577 = vrcp.f32 %v11801_v35 }
 0x624   : > { %6704 = vmatpush3.bf16.msk.msra.mxu0 %vm11414_vm14, %v14455_v0  ;;  %v6491_v32 = vpop.f32.mrb[99].mxu0  ;;  %v4149_v43 = vadd.f32 %v12056_v30, %v12049_v49  ;;  %v4525_v17 = vmul.f32 %v7568_v45, %v14456_v20  ;;  %v4522_v36 = vmul.f32 %v7562_v40, %v14457_v27  ;;  %v4524_v57 = vmul.f32 %v7568_v45, %v14458_v46  ;;  %v14459_v33 = vld [vmem:[#allocation74_spill] sm:$0xff]  ;;  %v12086_v27 = vld [vmem:[#allocation5 + $0x3c8] sm:$0xff]  ;;  %v14461_v45 = vld [vmem:[#allocation155_spill] sm:$0xff] }
 0x625   : > { %v5411_v34 = vsel %vm357_vm0, %v6489_v5, 0.0  ;;  %6705 = vmatprep.subr.msk.bf16.mxu0 %vm11414_vm14, %v14459_v33  ;;  %v3746_v12 = vmul.f32 1.442695, %v3296_v26  ;;  %v3748_v10 = vmul.f32 1.442695, %v3297_v14  ;;  %v6492_v60 = vadd.f32 %v6491_v32, %v6490_v15  ;;  %v14477_v30 = vld [vmem:[#allocation147_spill] sm:$0xff] }
 0x626   : > { %v2445_v0 = vunpack.c.h.bf16 %v12042_v24  ;;  %v12084_v49 = vadd.f32 %v5411_v34, %v5410_v63  ;;  %4150 = vadd.xlane.f32.xlu0 %v4149_v43  ;;  %v4097_v20 = vpop.xlane.xlu0 %4096  ;;  %v4709_v40 = vpack.c.bf16 %v4525_v17, %v4523_v50  ;;  %v5417_v5 = vsel %vm357_vm0, %v14461_v45, 0.0  ;;  %v14463_v63 = vld [vmem:[#allocation75_spill] sm:$0xff]  ;;  %v14465_v50 = vld [vmem:[#allocation76_spill] sm:$0xff] }
 0x627   : > { %7579 = vpow2.f32 %v3746_v12  ;;  %v5418_v46 = vsel %vm357_vm0, %v6492_v60, 0.0  ;;  %v4708_v26 = vpack.c.bf16 %v4524_v57, %v4522_v36  ;;  %v3069_v24 = vmax.f32 %v12059_v56, %v12062_v16  ;;  %v14467_v43 = vld [vmem:[#allocation116_spill] sm:$0xff]  ;;  %v14471_v12 = vld [vmem:[#allocation97_spill] sm:$0xff]  ;;  %v14479_v16 = vld [vmem:[#allocation119_spill] sm:$0xff] }
 0x628   : > { %14460 = vst [vmem:[#allocation30_spill] sm:$0xff] %v12084_v49  ;;  %v7570_v14 = vpop.eup %7569  ;;  %7581 = vpow2.f32 %v3748_v10  ;;  %v12093_v35 = vadd.f32 %v5418_v46, %v5417_v5  ;;  %6706 = vmatpush3.bf16.msk.msra.mxu0 %vm11414_vm14, %v14463_v63  ;;  %5144 = vmatprep.mubr.bf16.mxu0 %v4709_v40  ;;  %v6493_v15 = vpop.f32.mrb[100].mxu0  ;;  %v12106_v36 = vadd.f32 %v2444_v21, %v14467_v43  ;;  %v14469_v57 = vld [vmem:[#allocation144_spill] sm:$0xff]  ;;  %v2448_v33 = vunpack.c.l.bf16 %v12086_v27  ;;  %v14472_v46 = vld [vmem:[#allocation154_spill] sm:$0xff] }
 0x629   : > { %v12098_v17 = vpop.eup %7571  ;;  %6707 = vmatprep.subr.msk.bf16.mxu0 %vm11414_vm14, %v14465_v50  ;;  %7583 = vrcp.f32 %v4097_v20  ;;  %v12109_v34 = vadd.f32 %v2445_v0, %v14469_v57  ;;  %v5424_v10 = vsel %vm357_vm0, %v14471_v12, 0.0  ;;  %v6494_v60 = vpop.f32.mrb[101].mxu0  ;;  %v14473_v50 = vld [vmem:[#allocation194_spill] sm:$0xff]  ;;  %v14474_v43 = vld [vmem:[#allocation60_spill] sm:$0xff] }
 0x62a   : > { %14462 = vst [vmem:[#allocation24_spill] sm:$0xff] %v12093_v35  ;;  %14464 = vst [vmem:[#allocation200_spill] sm:$0xff] %v12098_v17  ;;  %v12103_v32 = vpop.eup %7573  ;;  %3070 = vmax.xlane.f32.xlu0 %v3069_v24  ;;  %v3017_v40 = vpop.xlane.xlu0 %3016  ;;  %v6495_v20 = vadd.f32 %v6494_v60, %v6493_v15  ;;  %v14475_v12 = vld [vmem:[#allocation148_spill] sm:$0xff]  ;;  %v14476_v35 = vld [vmem:[#allocation151_spill] sm:$0xff]  ;;  %7585 = vrcp.f32 %v11880_v23 }
 0x62b   : > { %14466 = vst [vmem:[#allocation44_spill] sm:$0xff] %v12103_v32  ;;  %14468 = vst [vmem:[#allocation38_spill] sm:$0xff] %v12106_v36  ;;  %v7576_v45 = vpop.eup %7575  ;;  %5145 = vmatmul.mubr.bf16.gmra.mrb[172].mxu0 %v4708_v26  ;;  %v6496_v5 = vpop.f32.mrb[102].mxu0  ;;  %v3300_v63 = vsub.f32 %v14472_v46, %v3017_v40  ;;  %v3301_v21 = vsub.f32 %v14473_v50, %v3017_v40  ;;  %v4155_v0 = vadd.f32 %v12103_v32, %v12098_v17  ;;  %v14478_v15 = vld [vmem:[#allocation102_spill] sm:$0xff]  ;;  %v14483_v23 = vld [vmem:[#allocation177_spill] sm:$0xff] }
 0x62c   : > { %14470 = vst [vmem:[#allocation31_spill] sm:$0xff] %v12109_v34  ;;  %6708 = vmatpush3.bf16.msk.msra.mxu0 %vm11414_vm14, %v14474_v43  ;;  %v6497_v57 = vpop.f32.mrb[103].mxu0  ;;  %v4527_v24 = vmul.f32 %v7570_v14, %v14475_v12  ;;  %v4529_v49 = vmul.f32 %v7576_v45, %v14476_v35  ;;  %v4526_v26 = vmul.f32 %v7570_v14, %v14477_v30  ;;  %v5425_v46 = vsel %vm357_vm0, %v6495_v20, 0.0  ;;  %v14481_v14 = vld [vmem:[#allocation163_spill] sm:$0xff] }
 0x62d   : > { %v4528_v60 = vmul.f32 %v7576_v45, %v14478_v15  ;;  %6709 = vmatprep.subr.msk.bf16.mxu0 %vm11414_vm14, %v14479_v16  ;;  %v3754_v40 = vmul.f32 1.442695, %v3300_v63  ;;  %v3756_v50 = vmul.f32 1.442695, %v3301_v21  ;;  %v6498_v17 = vadd.f32 %v6497_v57, %v6496_v5  ;;  %v7578_v16 = vpop.eup %7577 }
 0x62e   : > { %v2449_v43 = vunpack.c.h.bf16 %v12086_v27  ;;  %v12131_v12 = vadd.f32 %v5425_v46, %v5424_v10  ;;  %4156 = vadd.xlane.f32.xlu0 %v4155_v0  ;;  %v4103_v35 = vpop.xlane.xlu0 %4102  ;;  %v4711_v30 = vpack.c.bf16 %v4529_v49, %v4527_v24  ;;  %v5431_v45 = vsel %vm357_vm0, %v14481_v14, 0.0  ;;  %v14487_v0 = vld [vmem:[#allocation110_spill] sm:$0xff] }
 0x62f   : > { %7587 = vpow2.f32 %v3754_v40  ;;  %v5432_v20 = vsel %vm357_vm0, %v6498_v17, 0.0  ;;  %v4710_v15 = vpack.c.bf16 %v4528_v60, %v4526_v26  ;;  %v3075_v5 = vmax.f32 %v12106_v36, %v12109_v34  ;;  %v14486_v17 = vld [vmem:[#allocation51_spill] sm:$0xff]  ;;  %v14488_v24 = vld [vmem:[#allocation14_spill] sm:$0xff] }
 0x630   : > { %14480 = vst [vmem:[#allocation62_spill] sm:$0xff] %v12131_v12  ;;  %7589 = vpow2.f32 %v3756_v50  ;;  %v12138_v27 = vadd.f32 %v5432_v20, %v5431_v45  ;;  %6710 = vmatpush3.bf16.msk.msra.mxu0 %vm11414_vm14, %v14483_v23  ;;  %5152 = vmatprep.mubr.bf16.mxu0 %v4711_v30  ;;  %v6499_v10 = vpop.f32.mrb[104].mxu0  ;;  %v12148_v21 = vadd.f32 %v2448_v33, %v14486_v17  ;;  %v5438_v26 = vsel %vm357_vm0, %v14488_v24, 0.0  ;;  %v2201_v40 = vld [vmem:[#allocation5 + $0x3d8] sm:$0xff]  ;;  %v14489_v30 = vld [vmem:[#allocation160_spill] sm:$0xff]  ;;  %v14490_v45 = vld [vmem:[#allocation99_spill] sm:$0xff] }
 0x631   : > { %v12143_v49 = vpop.eup %7579  ;;  %7591 = vrcp.f32 %v4103_v35  ;;  %v12151_v57 = vadd.f32 %v2449_v43, %v14487_v0  ;;  %v6500_v60 = vpop.f32.mrb[105].mxu0  ;;  %v14491_v23 = vld [vmem:[#allocation111_spill] sm:$0xff]  ;;  %v14492_v0 = vld [vmem:[#allocation153_spill] sm:$0xff]  ;;  %v14494_v12 = vld [vmem:[#allocation188_spill] sm:$0xff] }
 0x632   : > { %14482 = vst [vmem:[#allocation77_spill] sm:$0xff] %v12138_v27  ;;  %14484 = vst [vmem:[#allocation161_spill] sm:$0xff] %v12143_v49  ;;  %v12145_v63 = vpop.eup %7581  ;;  %3076 = vmax.xlane.f32.xlu0 %v3075_v5  ;;  %v3023_v7 = vpop.xlane.xlu0 %3022  ;;  %v6501_v50 = vadd.f32 %v6500_v60, %v6499_v10  ;;  %v4531_v17 = vmul.f32 %v7578_v16, %v14491_v23  ;;  %v14493_v5 = vld [vmem:[#allocation137_spill] sm:$0xff] }
 0x633   : > { %14485 = vst [vmem:[#allocation143_spill] sm:$0xff] %v12145_v63  ;;  %v7584_v46 = vpop.eup %7583  ;;  %5153 = vmatmul.mubr.bf16.gmra.mrb[176].mxu0 %v4710_v15  ;;  %v6502_v35 = vpop.f32.mrb[106].mxu0  ;;  %v3304_v14 = vsub.f32 %v14489_v30, %v3023_v7  ;;  %v3305_v20 = vsub.f32 %v14490_v45, %v3023_v7  ;;  %v4161_v33 = vadd.f32 %v12145_v63, %v12143_v49  ;;  %v2452_v30 = vunpack.c.l.bf16 %v2201_v40  ;;  %v14496_v45 = vld [vmem:[#allocation198_spill] sm:$0xff] }
 0x634   : > { %v6503_v43 = vpop.f32.mrb[107].mxu0  ;;  %v4533_v24 = vmul.f32 %v7584_v46, %v14492_v0  ;;  %v4530_v27 = vmul.f32 %v7578_v16, %v14493_v5  ;;  %v4532_v32 = vmul.f32 %v7584_v46, %v14494_v12  ;;  %v5439_v15 = vsel %vm357_vm0, %v6501_v50, 0.0  ;;  %v7586_v16 = vpop.eup %7585  ;;  %v14502_v5 = vld [vmem:[#allocation81_spill] sm:$0xff] }
 0x635   : > { %v3762_v10 = vmul.f32 1.442695, %v3304_v14  ;;  %v3764_v60 = vmul.f32 1.442695, %v3305_v20  ;;  %v6504_v34 = vadd.f32 %v6503_v43, %v6502_v35  ;;  %v12164_v36 = vadd.f32 %v5439_v15, %v5438_v26  ;;  %v14500_v43 = vld [vmem:[#allocation115_spill] sm:$0xff] }
 0x636   : > { %4162 = vadd.xlane.f32.xlu0 %v4161_v33  ;;  %v4713_v7 = vpack.c.bf16 %v4533_v24, %v4531_v17  ;;  %v5445_v63 = vsel %vm357_vm0, %v14496_v45, 0.0  ;;  %v4712_v0 = vpack.c.bf16 %v4532_v32, %v4530_v27  ;;  %v3081_v12 = vmax.f32 %v12148_v21, %v12151_v57 }
 0x637   : > { %14495 = vst [vmem:[#allocation47_spill] sm:$0xff] %v12164_v36  ;;  %7593 = vpow2.f32 %v3762_v10  ;;  %v5446_v23 = vsel %vm357_vm0, %v6504_v34, 0.0  ;;  %v2453_v46 = vunpack.c.h.bf16 %v2201_v40  ;;  %v12178_v34 = vadd.f32 %v2452_v30, %v14500_v43  ;;  %v14503_v10 = vld [vmem:[#allocation159_spill] sm:$0xff] }
 0x638   : > { %7595 = vpow2.f32 %v3764_v60  ;;  %v12171_v50 = vadd.f32 %v5446_v23, %v5445_v63  ;;  %5160 = vmatprep.mubr.bf16.mxu0 %v4713_v7  ;;  %v6505_v35 = vpop.f32.mrb[108].mxu0  ;;  %v14501_v63 = vld [vmem:[#allocation127_spill] sm:$0xff]  ;;  %v4535_v15 = vmul.f32 %v7586_v16, %v14502_v5  ;;  %v14504_v7 = vld [vmem:[#allocation64_spill] sm:$0xff] }
 0x639   : > { %v12173_v26 = vpop.eup %7587  ;;  %v6506_v20 = vpop.f32.mrb[109].mxu0  ;;  %v12183_v17 = vadd.f32 %v2453_v46, %v14501_v63  ;;  %v2203_v23 = vld [vmem:[#allocation5 + $0x3e8] sm:$0xff]  ;;  %v14508_v63 = vld [vmem:[#allocation170_spill] sm:$0xff] }
 0x63a   : > { %14497 = vst [vmem:[#allocation54_spill] sm:$0xff] %v12171_v50  ;;  %14498 = vst [vmem:[#allocation45_spill] sm:$0xff] %v12173_v26  ;;  %v12175_v14 = vpop.eup %7589  ;;  %3082 = vmax.xlane.f32.xlu0 %v3081_v12  ;;  %v6507_v32 = vadd.f32 %v6506_v20, %v6505_v35  ;;  %v6508_v27 = vpop.f32.mrb[110].mxu0  ;;  %v14505_v12 = vld [vmem:[#allocation139_spill] sm:$0xff]  ;;  %v14506_v20 = vld [vmem:[#allocation108_spill] sm:$0xff]  ;;  %v5459_v5 = vsel %vm357_vm0, %v14508_v63, 0.0 }
 0x63b   : > { %14499 = vst [vmem:[#allocation185_spill] sm:$0xff] %v12175_v14  ;;  %v7592_v33 = vpop.eup %7591  ;;  %5161 = vmatmul.mubr.bf16.gmra.mrb[180].mxu0 %v4712_v0  ;;  %v4167_v40 = vadd.f32 %v12175_v14, %v12173_v26  ;;  %v6509_v24 = vpop.f32.mrb[111].mxu0  ;;  %v5452_v30 = vsel %vm357_vm0, %v14505_v12, 0.0  ;;  %v4534_v43 = vmul.f32 %v7586_v16, %v14506_v20  ;;  %v2457_v12 = vunpack.c.h.bf16 %v2203_v23  ;;  %v14516_v20 = vld [vmem:[#allocation179_spill] sm:$0xff] }
 0x63c   : > { %v4537_v60 = vmul.f32 %v7592_v33, %v14503_v10  ;;  %v4536_v45 = vmul.f32 %v7592_v33, %v14504_v7  ;;  %v5453_v0 = vsel %vm357_vm0, %v6507_v32, 0.0  ;;  %v6510_v35 = vadd.f32 %v6509_v24, %v6508_v27 }
 0x63d   : > { %v12192_v50 = vadd.f32 %v5453_v0, %v5452_v30  ;;  %v3087_v33 = vmax.f32 %v12178_v34, %v12183_v17  ;;  %v2456_v7 = vunpack.c.l.bf16 %v2203_v23  ;;  %v14514_v23 = vld [vmem:[#allocation79_spill] sm:$0xff] }
 0x63e   : > { %4168 = vadd.xlane.f32.xlu0 %v4167_v40  ;;  %v4715_v46 = vpack.c.bf16 %v4537_v60, %v4535_v15  ;;  %v5460_v10 = vsel %vm357_vm0, %v6510_v35, 0.0  ;;  %v4714_v36 = vpack.c.bf16 %v4536_v45, %v4534_v43  ;;  %v14512_v45 = vld [vmem:[#allocation130_spill] sm:$0xff]  ;;  %v12211_v0 = vadd.f32 %v2457_v12, %v14514_v23 }
 0x63f   : > { %14507 = vst [vmem:[#allocation187_spill] sm:$0xff] %v12192_v50  ;;  %v12199_v26 = vadd.f32 %v5460_v10, %v5459_v5  ;;  %v12208_v30 = vadd.f32 %v2456_v7, %v14512_v45  ;;  %v5466_v43 = vsel %vm357_vm0, %v14516_v20, 0.0 }
 0x640   : > { %5168 = vmatprep.mubr.bf16.mxu0 %v4715_v46  ;;  %v6511_v16 = vpop.f32.mrb[112].mxu0  ;;  %14515 = vst [vmem:[#allocation189_spill] sm:$0xff] %v12211_v0 }
 0x641   : > { %14509 = vst [vmem:[#allocation117_spill] sm:$0xff] %v12199_v26  ;;  %v12201_v32 = vpop.eup %7593  ;;  %v6512_v40 = vpop.f32.mrb[113].mxu0  ;;  %14513 = vst [vmem:[#allocation27_spill] sm:$0xff] %v12208_v30  ;;  %v3093_v12 = vmax.f32 %v12208_v30, %v12211_v0 }
 0x642   : > { %14510 = vst [vmem:[#allocation167_spill] sm:$0xff] %v12201_v32  ;;  %v12203_v27 = vpop.eup %7595  ;;  %3088 = vmax.xlane.f32.xlu0 %v3087_v33  ;;  %v6513_v24 = vadd.f32 %v6512_v40, %v6511_v16  ;;  %v6514_v15 = vpop.f32.mrb[114].mxu0 }
 0x643   : > { %14511 = vst [vmem:[#allocation78_spill] sm:$0xff] %v12203_v27  ;;  %5169 = vmatmul.mubr.bf16.gmra.mrb[184].mxu0 %v4714_v36  ;;  %v4173_v60 = vadd.f32 %v12203_v27, %v12201_v32  ;;  %v6515_v35 = vpop.f32.mrb[115].mxu0  ;;  %v14518_v36 = vld [vmem:[#allocation199_spill] sm:$0xff] }
 0x644   : > { %v5467_v46 = vsel %vm357_vm0, %v6513_v24, 0.0  ;;  %v6516_v63 = vadd.f32 %v6515_v35, %v6514_v15  ;;  %v5473_v10 = vsel %vm357_vm0, %v14518_v36, 0.0  ;;  %v12221_v7 = vpop.xlane.xlu1 %4111  ;;  %v14522_v36 = vld [vmem:[#allocation26_spill] sm:$0xff] }
 0x645   : > { %v12216_v5 = vadd.f32 %v5467_v46, %v5466_v43  ;;  %v14521_v43 = vld [vmem:[#allocation61_spill] sm:$0xff] }
 0x646   : > { %4174 = vadd.xlane.f32.xlu0 %v4173_v60  ;;  %v5474_v33 = vsel %vm357_vm0, %v6516_v63, 0.0  ;;  %v14520_v60 = vld [vmem:[#allocation43_spill] sm:$0xff]  ;;  %v5480_v63 = vsel %vm357_vm0, %v14522_v36, 0.0 }
 0x647   : > { %14517 = vst [vmem:[#allocation191_spill] sm:$0xff] %v12216_v5  ;;  %v12225_v16 = vadd.f32 %v5474_v33, %v5473_v10 }
 0x648   : > { %v6517_v40 = vpop.f32.mrb[116].mxu0  ;;  %v3032_v23 = vpop.xlane.xlu1 %3031 }
 0x649   : > { %14519 = vst [vmem:[#allocation158_spill] sm:$0xff] %v12225_v16  ;;  %v6518_v45 = vpop.f32.mrb[117].mxu0  ;;  %v3310_v20 = vsub.f32 %v14520_v60, %v3032_v23  ;;  %v3311_v46 = vsub.f32 %v14521_v43, %v3032_v23 }
 0x64a   : > { %3094 = vmax.xlane.f32.xlu0 %v3093_v12  ;;  %v6519_v24 = vadd.f32 %v6518_v45, %v6517_v40  ;;  %v6520_v15 = vpop.f32.mrb[118].mxu0  ;;  %v14524_v12 = vld [vmem:[#allocation48_spill] sm:$0xff] }
 0x64b   : > { %v6521_v35 = vpop.f32.mrb[119].mxu0  ;;  %v3774_v10 = vmul.f32 1.442695, %v3310_v20  ;;  %v3776_v33 = vmul.f32 1.442695, %v3311_v46  ;;  %v5487_v40 = vsel %vm357_vm0, %v14524_v12, 0.0 }
 0x64c   : > { %v5481_v5 = vsel %vm357_vm0, %v6519_v24, 0.0  ;;  %v6522_v26 = vadd.f32 %v6521_v35, %v6520_v15  ;;  %v12237_v16 = vpop.xlane.xlu1 %4117  ;;  %v14526_v35 = vld [vmem:[#allocation172_spill] sm:$0xff] }
 0x64d   : > { %v12232_v50 = vadd.f32 %v5481_v5, %v5480_v63  ;;  %7597 = vpow2.f32 %v3774_v10  ;;  %v14527_v46 = vld [vmem:[#allocation132_spill] sm:$0xff] }
 0x64e   : > { %v5488_v45 = vsel %vm357_vm0, %v6522_v26, 0.0  ;;  %7599 = vpow2.f32 %v3776_v33 }
 0x64f   : > { %14523 = vst [vmem:[#allocation168_spill] sm:$0xff] %v12232_v50  ;;  %v12239_v60 = vadd.f32 %v5488_v45, %v5487_v40  ;;  %v14528_v50 = vld [vmem:[#allocation57_spill] sm:$0xff]  ;;  %v14530_v45 = vld [vmem:[#allocation186_spill] sm:$0xff] }
 0x650   : > { %v6523_v23 = vpop.f32.mrb[120].mxu0  ;;  %v3038_v15 = vpop.xlane.xlu1 %3037  ;;  %v5494_v12 = vsel %vm357_vm0, %v14528_v50, 0.0 }
 0x651   : > { %14525 = vst [vmem:[#allocation169_spill] sm:$0xff] %v12239_v60  ;;  %v6524_v43 = vpop.f32.mrb[121].mxu0  ;;  %v3314_v20 = vsub.f32 %v14526_v35, %v3038_v15  ;;  %v3315_v63 = vsub.f32 %v14527_v46, %v3038_v15 }
 0x652   : > { %v6525_v36 = vadd.f32 %v6524_v43, %v6523_v23  ;;  %v6526_v24 = vpop.f32.mrb[122].mxu0  ;;  %v5501_v23 = vsel %vm357_vm0, %v14530_v45, 0.0  ;;  %v14535_v45 = vld [vmem:[#allocation136_spill] sm:$0xff] }
 0x653   : > { %v6527_v5 = vpop.f32.mrb[123].mxu0  ;;  %v3782_v10 = vmul.f32 1.442695, %v3314_v20  ;;  %v3784_v33 = vmul.f32 1.442695, %v3315_v63 }
 0x654   : > { %v5495_v26 = vsel %vm357_vm0, %v6525_v36, 0.0  ;;  %v6528_v32 = vadd.f32 %v6527_v5, %v6526_v24 }
 0x655   : > { %v12246_v40 = vadd.f32 %v5495_v26, %v5494_v12  ;;  %7601 = vpow2.f32 %v3782_v10  ;;  %v14534_v12 = vld [vmem:[#allocation175_spill] sm:$0xff] }
 0x656   : > { %v5502_v43 = vsel %vm357_vm0, %v6528_v32, 0.0  ;;  %v12251_v60 = vpop.xlane.xlu1 %4123  ;;  %7603 = vpow2.f32 %v3784_v33 }
 0x657   : > { %14529 = vst [vmem:[#allocation58_spill] sm:$0xff] %v12246_v40  ;;  %v12253_v35 = vadd.f32 %v5502_v43, %v5501_v23  ;;  %v12255_v50 = vpop.eup %7597  ;;  %v14536_v43 = vld [vmem:[#allocation18_spill] sm:$0xff] }
 0x658   : > { %v6529_v15 = vpop.f32.mrb[124].mxu0  ;;  %14532 = vst [vmem:[#allocation138_spill] sm:$0xff] %v12255_v50  ;;  %v12257_v24 = vpop.eup %7599  ;;  %v5508_v10 = vsel %vm357_vm0, %v14536_v43, 0.0 }
 0x659   : > { %14531 = vst [vmem:[#allocation20_spill] sm:$0xff] %v12253_v35  ;;  %v6530_v36 = vpop.f32.mrb[125].mxu0  ;;  %14533 = vst [vmem:[#allocation193_spill] sm:$0xff] %v12257_v24  ;;  %v4182_v23 = vadd.f32 %v12257_v24, %v12255_v50 }
 0x65a   : > { %v6531_v5 = vadd.f32 %v6530_v36, %v6529_v15  ;;  %v6532_v20 = vpop.f32.mrb[126].mxu0  ;;  %v3044_v46 = vpop.xlane.xlu1 %3043  ;;  %v14538_v36 = vld [vmem:[#allocation190_spill] sm:$0xff] }
 0x65b   : > { %v6533_v63 = vpop.f32.mrb[127].mxu0  ;;  %v3318_v26 = vsub.f32 %v14534_v12, %v3044_v46  ;;  %v3319_v32 = vsub.f32 %v14535_v45, %v3044_v46  ;;  %4183 = vadd.xlane.f32.xlu1 %v4182_v23  ;;  %v5515_v14 = vsel %vm357_vm0, %v14538_v36, 0.0  ;;  %v14543_v36 = vld [vmem:[#allocation55_spill] sm:$0xff] }
 0x65c   : > { %v5509_v33 = vsel %vm357_vm0, %v6531_v5, 0.0  ;;  %v6534_v35 = vadd.f32 %v6533_v63, %v6532_v20 }
 0x65d   : > { %v12266_v40 = vadd.f32 %v5509_v33, %v5508_v10  ;;  %v3790_v27 = vmul.f32 1.442695, %v3318_v26  ;;  %v3792_v15 = vmul.f32 1.442695, %v3319_v32  ;;  %v14542_v10 = vld [vmem:[#allocation16_spill] sm:$0xff] }
 0x65e   : > { %v5516_v12 = vsel %vm357_vm0, %v6534_v35, 0.0  ;;  %v12271_v46 = vpop.xlane.xlu1 %4129 }
 0x65f   : > { %14537 = vst [vmem:[#allocation195_spill] sm:$0xff] %v12266_v40  ;;  %v12273_v45 = vadd.f32 %v5516_v12, %v5515_v14  ;;  %7605 = vpow2.f32 %v3790_v27  ;;  %v12275_v50 = vpop.eup %7601  ;;  %v14544_v12 = vld [vmem:[#allocation192_spill] sm:$0xff] }
 0x660   : > { %7607 = vpow2.f32 %v3792_v15  ;;  %v6535_v43 = vpop.f32.mrb[128].mxu0  ;;  %14540 = vst [vmem:[#allocation134_spill] sm:$0xff] %v12275_v50  ;;  %v12277_v20 = vpop.eup %7603  ;;  %v5522_v27 = vsel %vm357_vm0, %v14544_v12, 0.0 }
 0x661   : > { %14539 = vst [vmem:[#allocation34_spill] sm:$0xff] %v12273_v45  ;;  %v6536_v5 = vpop.f32.mrb[129].mxu0  ;;  %14541 = vst [vmem:[#allocation80_spill] sm:$0xff] %v12277_v20  ;;  %v4188_v14 = vadd.f32 %v12277_v20, %v12275_v50 }
 0x662   : > { %v6537_v63 = vadd.f32 %v6536_v5, %v6535_v43  ;;  %v6538_v26 = vpop.f32.mrb[130].mxu0  ;;  %v3050_v32 = vpop.xlane.xlu1 %3049  ;;  %v14546_v5 = vld [vmem:[#allocation13_spill] sm:$0xff] }
 0x663   : > { %v6539_v23 = vpop.f32.mrb[131].mxu0  ;;  %v3322_v33 = vsub.f32 %v14542_v10, %v3050_v32  ;;  %v3323_v35 = vsub.f32 %v14543_v36, %v3050_v32  ;;  %4189 = vadd.xlane.f32.xlu1 %v4188_v14  ;;  %v5529_v0 = vsel %vm357_vm0, %v14546_v5, 0.0  ;;  %v14551_v5 = vld [vmem:[#allocation23_spill] sm:$0xff] }
 0x664   : > { %v5523_v15 = vsel %vm357_vm0, %v6537_v63, 0.0  ;;  %v6540_v45 = vadd.f32 %v6539_v23, %v6538_v26 }
 0x665   : > { %v12286_v40 = vadd.f32 %v5523_v15, %v5522_v27  ;;  %v3798_v24 = vmul.f32 1.442695, %v3322_v33  ;;  %v3800_v43 = vmul.f32 1.442695, %v3323_v35  ;;  %v14550_v27 = vld [vmem:[#allocation93_spill] sm:$0xff] }
 0x666   : > { %v5530_v10 = vsel %vm357_vm0, %v6540_v45, 0.0  ;;  %v12291_v32 = vpop.xlane.xlu1 %4135 }
 0x667   : > { %14545 = vst [vmem:[#allocation122_spill] sm:$0xff] %v12286_v40  ;;  %v12293_v36 = vadd.f32 %v5530_v10, %v5529_v0  ;;  %7609 = vpow2.f32 %v3798_v24  ;;  %v14552_v10 = vld [vmem:[#allocation101_spill] sm:$0xff] }
 0x668   : > { %7611 = vpow2.f32 %v3800_v43  ;;  %v6541_v12 = vpop.f32.mrb[132].mxu0  ;;  %v5536_v24 = vsel %vm357_vm0, %v14552_v10, 0.0 }
 0x669   : > { %14547 = vst [vmem:[#allocation29_spill] sm:$0xff] %v12293_v36  ;;  %v12295_v50 = vpop.eup %7605  ;;  %v6542_v63 = vpop.f32.mrb[133].mxu0 }
 0x66a   : > { %14548 = vst [vmem:[#allocation197_spill] sm:$0xff] %v12295_v50  ;;  %v12297_v26 = vpop.eup %7607  ;;  %v6543_v23 = vadd.f32 %v6542_v63, %v6541_v12  ;;  %v6544_v33 = vpop.f32.mrb[134].mxu0  ;;  %v14554_v63 = vld [vmem:[#allocation196_spill] sm:$0xff] }
 0x66b   : > { %14549 = vst [vmem:[#allocation140_spill] sm:$0xff] %v12297_v26  ;;  %v3056_v35 = vpop.xlane.xlu1 %3055  ;;  %v6545_v14 = vpop.f32.mrb[135].mxu0  ;;  %v4194_v0 = vadd.f32 %v12297_v26, %v12295_v50  ;;  %v5543_v30 = vsel %vm357_vm0, %v14554_v63, 0.0 }
 0x66c   : > { %v3326_v15 = vsub.f32 %v14550_v27, %v3056_v35  ;;  %v3327_v45 = vsub.f32 %v14551_v5, %v3056_v35  ;;  %v5537_v43 = vsel %vm357_vm0, %v6543_v23, 0.0  ;;  %v6546_v36 = vadd.f32 %v6545_v14, %v6544_v33 }
 0x66d   : > { %v12306_v40 = vadd.f32 %v5537_v43, %v5536_v24  ;;  %4195 = vadd.xlane.f32.xlu1 %v4194_v0 }
 0x66e   : > { %v3806_v20 = vmul.f32 1.442695, %v3326_v15  ;;  %v3808_v12 = vmul.f32 1.442695, %v3327_v45  ;;  %v5544_v27 = vsel %vm357_vm0, %v6546_v36, 0.0  ;;  %v14557_v45 = vld [vmem:[#allocation46_spill] sm:$0xff] }
 0x66f   : > { %14553 = vst [vmem:[#allocation162_spill] sm:$0xff] %v12306_v40  ;;  %v12311_v35 = vadd.f32 %v5544_v27, %v5543_v30  ;;  %v12313_v5 = vpop.xlane.xlu1 %4141  ;;  %v5550_v0 = vsel %vm357_vm0, %v14557_v45, 0.0  ;;  %v14559_v27 = vld [vmem:[#allocation95_spill] sm:$0xff] }
 0x670   : > { %7613 = vpow2.f32 %v3806_v20  ;;  %v6547_v10 = vpop.f32.mrb[136].mxu0 }
 0x671   : > { %14555 = vst [vmem:[#allocation124_spill] sm:$0xff] %v12311_v35  ;;  %7615 = vpow2.f32 %v3808_v12  ;;  %v12315_v50 = vpop.eup %7609  ;;  %v6548_v23 = vpop.f32.mrb[137].mxu0  ;;  %v14558_v12 = vld [vmem:[#allocation107_spill] sm:$0xff] }
 0x672   : > { %14556 = vst [vmem:[#allocation42_spill] sm:$0xff] %v12315_v50  ;;  %v12317_v33 = vpop.eup %7611  ;;  %v6549_v14 = vadd.f32 %v6548_v23, %v6547_v10  ;;  %v6550_v15 = vpop.f32.mrb[138].mxu0  ;;  %v14560_v10 = vld [vmem:[#allocation128_spill] sm:$0xff]  ;;  %7617 = vrcp.f32 %v11917_v53 }
 0x673   : > { %v6551_v24 = vpop.f32.mrb[139].mxu0  ;;  %v3062_v43 = vpop.xlane.xlu1 %3061  ;;  %v4200_v30 = vadd.f32 %v12317_v33, %v12315_v50  ;;  %v5557_v23 = vsel %vm357_vm0, %v14560_v10, 0.0 }
 0x674   : > { %v5551_v20 = vsel %vm357_vm0, %v6549_v14, 0.0  ;;  %v6552_v36 = vadd.f32 %v6551_v24, %v6550_v15  ;;  %v3330_v63 = vsub.f32 %v14558_v12, %v3062_v43  ;;  %v3331_v35 = vsub.f32 %v14559_v27, %v3062_v43 }
 0x675   : > { %v12326_v40 = vadd.f32 %v5551_v20, %v5550_v0  ;;  %4201 = vadd.xlane.f32.xlu1 %v4200_v30 }
 0x676   : > { %v5558_v45 = vsel %vm357_vm0, %v6552_v36, 0.0  ;;  %v3814_v26 = vmul.f32 1.442695, %v3330_v63  ;;  %v3816_v49 = vmul.f32 1.442695, %v3331_v35 }
 0x677   : > { %v12332_v50 = vadd.f32 %v5558_v45, %v5557_v23  ;;  %v12334_v14 = vpop.xlane.xlu1 %4147 }
 0x678   : > { %7619 = vpow2.f32 %v3814_v26 }
 0x679   : > { %7621 = vpow2.f32 %v3816_v49  ;;  %v4109_v24 = vpop.xlane.xlu0 %4108 }
 0x67a   : > { %v12336_v15 = vpop.eup %7613  ;;  %7623 = vrcp.f32 %v4109_v24 }
 0x67b   : > { %v12338_v0 = vpop.eup %7615  ;;  %v3068_v43 = vpop.xlane.xlu1 %3067 }
 0x67c   : > { %v4206_v30 = vadd.f32 %v12338_v0, %v12336_v15  ;;  %v3334_v35 = vsub.f32 %v11766_v6, %v3068_v43  ;;  %v3335_v53 = vsub.f32 %v11769_v47, %v3068_v43  ;;  %v7618_v27 = vpop.eup %7617 }
 0x67d   : > { %v3029_v12 = vpop.xlane.xlu0 %3028 }
 0x67e   : > { %4207 = vadd.xlane.f32.xlu1 %v4206_v30  ;;  %v3822_v20 = vmul.f32 1.442695, %v3334_v35  ;;  %v3824_v36 = vmul.f32 1.442695, %v3335_v53  ;;  %v3308_v26 = vsub.f32 %v11786_v8, %v3029_v12  ;;  %v3309_v49 = vsub.f32 %v11789_v51, %v3029_v12  ;;  %v14561_v35 = vld [vmem:[#allocation105_spill] sm:$0xff] }
 0x67f   : > { %v12346_v63 = vpop.xlane.xlu1 %4153  ;;  %v4539_v53 = vmul.f32 %v7618_v27, %v14561_v35 }
 0x680   : > { %7625 = vpow2.f32 %v3822_v20  ;;  %v3770_v10 = vmul.f32 1.442695, %v3308_v26  ;;  %v3772_v23 = vmul.f32 1.442695, %v3309_v49  ;;  %v14562_v20 = vld [vmem:[#allocation85_spill] sm:$0xff] }
 0x681   : > { %7627 = vpow2.f32 %v3824_v36  ;;  %v4115_v6 = vpop.xlane.xlu0 %4114  ;;  %v4538_v36 = vmul.f32 %v7618_v27, %v14562_v20 }
 0x682   : > { %v12348_v45 = vpop.eup %7619  ;;  %7629 = vrcp.f32 %v12221_v7 }
 0x683   : > { %v12351_v47 = vpop.eup %7621  ;;  %7631 = vpow2.f32 %v3770_v10  ;;  %v3074_v24 = vpop.xlane.xlu1 %3073 }
 0x684   : > { %7633 = vpow2.f32 %v3772_v23  ;;  %v3338_v8 = vsub.f32 %v11796_v48, %v3074_v24  ;;  %v3339_v51 = vsub.f32 %v11808_v3, %v3074_v24  ;;  %v4212_v43 = vadd.f32 %v12351_v47, %v12348_v45  ;;  %v7624_v30 = vpop.eup %7623  ;;  %v2205_v48 = vld [vmem:[#allocation5 + $0x3f8] sm:$0xff] }
 0x685   : > { %7635 = vrcp.f32 %v4115_v6  ;;  %v3035_v26 = vpop.xlane.xlu0 %3034  ;;  %v4541_v49 = vmul.f32 %v7624_v30, %v11783_v31  ;;  %v4540_v10 = vmul.f32 %v7624_v30, %v11777_v54  ;;  %v2460_v31 = vunpack.c.l.bf16 %v2205_v48 }
 0x686   : > { %v3830_v7 = vmul.f32 1.442695, %v3338_v8  ;;  %v3832_v12 = vmul.f32 1.442695, %v3339_v51  ;;  %4213 = vadd.xlane.f32.xlu1 %v4212_v43  ;;  %7637 = vrcp.f32 %v12237_v16  ;;  %v3312_v3 = vsub.f32 %v11822_v42, %v3035_v26 }
 0x687   : > { %v3313_v23 = vsub.f32 %v11825_v55, %v3035_v26  ;;  %v4717_v24 = vpack.c.bf16 %v4541_v49, %v4539_v53  ;;  %v4716_v27 = vpack.c.bf16 %v4540_v10, %v4538_v36  ;;  %v2461_v35 = vunpack.c.h.bf16 %v2205_v48  ;;  %v14564_v49 = vld [vmem:[#allocation56_spill] sm:$0xff] }
 0x688   : > { %v12364_v6 = vpop.xlane.xlu1 %4159  ;;  %7639 = vpow2.f32 %v3830_v7  ;;  %v3778_v8 = vmul.f32 1.442695, %v3312_v3 }
 0x689   : > { %7641 = vpow2.f32 %v3832_v12  ;;  %v3780_v51 = vmul.f32 1.442695, %v3313_v23  ;;  %5176 = vmatprep.mubr.bf16.mxu0 %v4717_v24  ;;  %v14563_v12 = vld [vmem:[#allocation28_spill] sm:$0xff]  ;;  %v12382_v10 = vadd.f32 %v2461_v35, %v14564_v49 }
 0x68a   : > { %v12366_v43 = vpop.eup %7625  ;;  %v4121_v54 = vpop.xlane.xlu0 %4120  ;;  %7643 = vpow2.f32 %v3778_v8  ;;  %5177 = vmatmul.mubr.bf16.gmra.mrb[188].mxu0 %v4716_v27  ;;  %v12379_v26 = vadd.f32 %v2460_v31, %v14563_v12  ;;  %v14565_v8 = vld [vmem:[#allocation106_spill] sm:$0xff] }
 0x68b   : > { %v12368_v30 = vpop.eup %7627  ;;  %7645 = vpow2.f32 %v3780_v51 }
 0x68c   : > { %v3080_v42 = vpop.xlane.xlu1 %3079  ;;  %v7630_v55 = vpop.eup %7629  ;;  %v4218_v20 = vadd.f32 %v12368_v30, %v12366_v43  ;;  %7647 = vrcp.f32 %v4121_v54  ;;  %v14566_v54 = vld [vmem:[#allocation166_spill] sm:$0xff] }
 0x68d   : > { %v3342_v16 = vsub.f32 %v11852_v11, %v3080_v42  ;;  %v3343_v53 = vsub.f32 %v11855_v38, %v3080_v42  ;;  %v12374_v36 = vpop.eup %7631  ;;  %v4543_v51 = vmul.f32 %v7630_v55, %v14565_v8  ;;  %v4542_v42 = vmul.f32 %v7630_v55, %v14566_v54  ;;  %v14569_v54 = vld [vmem:[#allocation129_spill] sm:$0xff] }
 0x68e   : > { %v12376_v7 = vpop.eup %7633  ;;  %v3041_v23 = vpop.xlane.xlu0 %3040  ;;  %4219 = vadd.xlane.f32.xlu1 %v4218_v20 }
 0x68f   : > { %v3838_v48 = vmul.f32 1.442695, %v3342_v16  ;;  %v3840_v3 = vmul.f32 1.442695, %v3343_v53  ;;  %v7636_v11 = vpop.eup %7635  ;;  %v3316_v38 = vsub.f32 %v11864_v41, %v3041_v23  ;;  %v3317_v24 = vsub.f32 %v11867_v25, %v3041_v23  ;;  %v14567_v16 = vld [vmem:[#allocation123_spill] sm:$0xff] }
 0x690   : > { %v4179_v27 = vadd.f32 %v12376_v7, %v12374_v36  ;;  %v4545_v35 = vmul.f32 %v7636_v11, %v11830_v59  ;;  %v4544_v53 = vmul.f32 %v7636_v11, %v14567_v16  ;;  %v7638_v20 = vpop.eup %7637  ;;  %v3099_v59 = vmax.f32 %v12379_v26, %v12382_v10 }
 0x691   : > { %7649 = vpow2.f32 %v3838_v48  ;;  %v12389_v31 = vpop.xlane.xlu1 %4165  ;;  %v3786_v12 = vmul.f32 1.442695, %v3316_v38  ;;  %v3788_v41 = vmul.f32 1.442695, %v3317_v24 }
 0x692   : > { %7651 = vpow2.f32 %v3840_v3  ;;  %4180 = vadd.xlane.f32.xlu0 %v4179_v27  ;;  %v12394_v25 = vpop.eup %7639  ;;  %v4719_v23 = vpack.c.bf16 %v4545_v35, %v4543_v51  ;;  %v4718_v48 = vpack.c.bf16 %v4544_v53, %v4542_v42  ;;  %v14568_v51 = vld [vmem:[#allocation171_spill] sm:$0xff]  ;;  %v4546_v42 = vmul.f32 %v7638_v20, %v14569_v54 }
 0x693   : > { %7653 = vrcp.f32 %v12251_v60  ;;  %v4127_v49 = vpop.xlane.xlu0 %4126  ;;  %v12397_v8 = vpop.eup %7641  ;;  %v4547_v35 = vmul.f32 %v7638_v20, %v14568_v51 }
 0x694   : > { %7655 = vpow2.f32 %v3786_v12  ;;  %5184 = vmatprep.mubr.bf16.mxu0 %v4719_v23  ;;  %v4224_v3 = vadd.f32 %v12397_v8, %v12394_v25  ;;  %v12403_v11 = vpop.eup %7643 }
 0x695   : > { %7657 = vpow2.f32 %v3788_v41  ;;  %v3086_v55 = vpop.xlane.xlu1 %3085  ;;  %5185 = vmatmul.mubr.bf16.gmra.mrb[192].mxu0 %v4718_v48  ;;  %v12407_v24 = vpop.eup %7645 }
 0x696   : > { %7659 = vrcp.f32 %v4127_v49  ;;  %3100 = vmax.xlane.f32.xlu0 %v3099_v59  ;;  %v3346_v60 = vsub.f32 %v11887_v22, %v3086_v55  ;;  %v3347_v38 = vsub.f32 %v11890_v9, %v3086_v55  ;;  %4225 = vadd.xlane.f32.xlu1 %v4224_v3  ;;  %v7648_v16 = vpop.eup %7647  ;;  %v4185_v22 = vadd.f32 %v12407_v24, %v12403_v11 }
 0x697   : > { %v3047_v27 = vpop.xlane.xlu0 %3046  ;;  %7661 = vrcp.f32 %v12271_v46  ;;  %v4549_v9 = vmul.f32 %v7648_v16, %v11861_v52  ;;  %v4548_v23 = vmul.f32 %v7648_v16, %v11857_v58 }
 0x698   : > { %v3846_v53 = vmul.f32 1.442695, %v3346_v60  ;;  %v3848_v12 = vmul.f32 1.442695, %v3347_v38  ;;  %v3320_v41 = vsub.f32 %v11897_v28, %v3047_v27  ;;  %v3321_v49 = vsub.f32 %v11908_v1, %v3047_v27 }
 0x699   : > { %v4721_v28 = vpack.c.bf16 %v4549_v9, %v4547_v35  ;;  %v4720_v3 = vpack.c.bf16 %v4548_v23, %v4546_v42  ;;  %v14570_v42 = vld [vmem:[#allocation109_spill] sm:$0xff] }
 0x69a   : > { %7663 = vpow2.f32 %v3846_v53  ;;  %v3794_v48 = vmul.f32 1.442695, %v3320_v41  ;;  %v3796_v59 = vmul.f32 1.442695, %v3321_v49  ;;  %4186 = vadd.xlane.f32.xlu0 %v4185_v22 }
 0x69b   : > { %v12418_v20 = vpop.eup %7649  ;;  %7665 = vpow2.f32 %v3848_v12  ;;  %v4133_v55 = vpop.xlane.xlu0 %4132  ;;  %5192 = vmatprep.mubr.bf16.mxu0 %v4721_v28  ;;  %v14571_v12 = vld [vmem:[#allocation32_spill] sm:$0xff] }
 0x69c   : > { %v12420_v1 = vpop.eup %7651  ;;  %7667 = vpow2.f32 %v3794_v48 }
 0x69d   : > { %v7654_v46 = vpop.eup %7653  ;;  %7669 = vpow2.f32 %v3796_v59  ;;  %v4230_v52 = vadd.f32 %v12420_v1, %v12418_v20  ;;  %5193 = vmatmul.mubr.bf16.gmra.mrb[196].mxu0 %v4720_v3 }
 0x69e   : > { %v12424_v58 = vpop.eup %7655  ;;  %7671 = vrcp.f32 %v4133_v55  ;;  %v4551_v16 = vmul.f32 %v7654_v46, %v14570_v42  ;;  %v4550_v41 = vmul.f32 %v7654_v46, %v14571_v12  ;;  %v14572_v46 = vld [vmem:[#allocation92_spill] sm:$0xff] }
 0x69f   : > { %v12426_v60 = vpop.eup %7657  ;;  %v3053_v38 = vpop.xlane.xlu0 %3052  ;;  %4231 = vadd.xlane.f32.xlu1 %v4230_v52  ;;  %7673 = vrcp.f32 %v12291_v32  ;;  %v14573_v42 = vld [vmem:[#allocation104_spill] sm:$0xff] }
 0x6a0   : > { %v7660_v27 = vpop.eup %7659  ;;  %v3324_v51 = vsub.f32 %v11928_v18, %v3053_v38  ;;  %v3325_v35 = vsub.f32 %v11931_v29, %v3053_v38  ;;  %v4191_v54 = vadd.f32 %v12426_v60, %v12424_v58 }
 0x6a1   : > { %v4553_v53 = vmul.f32 %v7660_v27, %v11901_v19  ;;  %v4552_v49 = vmul.f32 %v7660_v27, %v11894_v13  ;;  %v7662_v23 = vpop.eup %7661 }
 0x6a2   : > { %v3802_v22 = vmul.f32 1.442695, %v3324_v51  ;;  %v3804_v9 = vmul.f32 1.442695, %v3325_v35  ;;  %4192 = vadd.xlane.f32.xlu0 %v4191_v54  ;;  %v4555_v52 = vmul.f32 %v7662_v23, %v14572_v46 }
 0x6a3   : > { %v4139_v18 = vpop.xlane.xlu0 %4138  ;;  %v4723_v48 = vpack.c.bf16 %v4553_v53, %v4551_v16  ;;  %v4722_v29 = vpack.c.bf16 %v4552_v49, %v4550_v41  ;;  %v4554_v16 = vmul.f32 %v7662_v23, %v14573_v42  ;;  %v14577_v42 = vld [vmem:[#allocation178_spill] sm:$0xff] }
 0x6a4   : > { %v12437_v59 = vpop.eup %7663  ;;  %7675 = vpow2.f32 %v3802_v22  ;;  %v12439_v55 = vpop.xlane.xlu1 %4171 }
 0x6a5   : > { %v12441_v28 = vpop.eup %7665  ;;  %7677 = vpow2.f32 %v3804_v9  ;;  %5200 = vmatprep.mubr.bf16.mxu0 %v4723_v48 }
 0x6a6   : > { %v12443_v19 = vpop.eup %7667  ;;  %7679 = vrcp.f32 %v4139_v18  ;;  %5201 = vmatmul.mubr.bf16.gmra.mrb[200].mxu0 %v4722_v29  ;;  %v4236_v13 = vadd.f32 %v12441_v28, %v12437_v59 }
 0x6a7   : > { %v12447_v32 = vpop.eup %7669  ;;  %v3059_v3 = vpop.xlane.xlu0 %3058  ;;  %7681 = vrcp.f32 %v12313_v5 }
 0x6a8   : > { %v7672_v38 = vpop.eup %7671  ;;  %v3328_v27 = vsub.f32 %v11965_v62, %v3059_v3  ;;  %v3329_v51 = vsub.f32 %v11968_v37, %v3059_v3  ;;  %4237 = vadd.xlane.f32.xlu1 %v4236_v13  ;;  %v3092_v35 = vpop.xlane.xlu1 %3091  ;;  %v4197_v54 = vadd.f32 %v12447_v32, %v12443_v19  ;;  %v14574_v3 = vld [vmem:[#allocation59_spill] sm:$0xff] }
 0x6a9   : > { %v3350_v53 = vsub.f32 %v11971_v39, %v3092_v35  ;;  %v3351_v12 = vsub.f32 %v11974_v61, %v3092_v35  ;;  %v4557_v41 = vmul.f32 %v7672_v38, %v11925_v44  ;;  %v4556_v49 = vmul.f32 %v7672_v38, %v11923_v4  ;;  %v7674_v39 = vpop.eup %7673  ;;  %v14576_v35 = vld [vmem:[#allocation150_spill] sm:$0xff] }
 0x6aa   : > { %v3810_v62 = vmul.f32 1.442695, %v3328_v27  ;;  %v3812_v22 = vmul.f32 1.442695, %v3329_v51  ;;  %4198 = vadd.xlane.f32.xlu0 %v4197_v54  ;;  %v14575_v27 = vld [vmem:[#allocation118_spill] sm:$0xff] }
 0x6ab   : > { %v3854_v37 = vmul.f32 1.442695, %v3350_v53  ;;  %v3856_v9 = vmul.f32 1.442695, %v3351_v12  ;;  %v4145_v18 = vpop.xlane.xlu0 %4144  ;;  %v4725_v48 = vpack.c.bf16 %v4557_v41, %v4555_v52  ;;  %v4724_v29 = vpack.c.bf16 %v4556_v49, %v4554_v16  ;;  %v14578_v53 = vld [vmem:[#allocation133_spill] sm:$0xff] }
 0x6ac   : > { %7683 = vpow2.f32 %v3810_v62  ;;  %v12460_v23 = vpop.xlane.xlu1 %4177  ;;  %v4559_v16 = vmul.f32 %v7674_v39, %v14577_v42  ;;  %v14579_v62 = vld [vmem:[#allocation88_spill] sm:$0xff] }
 0x6ad   : > { %7685 = vpow2.f32 %v3812_v22  ;;  %5208 = vmatprep.mubr.bf16.mxu0 %v4725_v48  ;;  %v4558_v22 = vmul.f32 %v7674_v39, %v14579_v62  ;;  %v14585_v62 = vld [vmem:[#allocation49_spill] sm:$0xff] }
 0x6ae   : > { %v12462_v61 = vpop.eup %7675  ;;  %7687 = vpow2.f32 %v3854_v37  ;;  %5209 = vmatmul.mubr.bf16.gmra.mrb[204].mxu0 %v4724_v29 }
 0x6af   : > { %v12464_v4 = vpop.eup %7677  ;;  %7689 = vpow2.f32 %v3856_v9  ;;  %v3065_v44 = vpop.xlane.xlu0 %3064 }
 0x6b0   : > { %v7680_v5 = vpop.eup %7679  ;;  %7691 = vrcp.f32 %v4145_v18  ;;  %v3332_v13 = vsub.f32 %v12006_v2, %v3065_v44  ;;  %v3333_v46 = vsub.f32 %v14574_v3, %v3065_v44  ;;  %v3098_v52 = vpop.xlane.xlu1 %3097  ;;  %v4203_v38 = vadd.f32 %v12464_v4, %v12462_v61  ;;  %v14580_v2 = vld [vmem:[#allocation156_spill] sm:$0xff] }
 0x6b1   : > { %v3354_v51 = vsub.f32 %v14575_v27, %v3098_v52  ;;  %v3355_v54 = vsub.f32 %v14576_v35, %v3098_v52  ;;  %v4561_v12 = vmul.f32 %v7680_v5, %v14578_v53  ;;  %v4560_v37 = vmul.f32 %v7680_v5, %v14580_v2  ;;  %v7682_v44 = vpop.eup %7681  ;;  %v14583_v53 = vld [vmem:[#allocation131_spill] sm:$0xff]  ;;  %v14586_v2 = vld [vmem:[#allocation164_spill] sm:$0xff] }
 0x6b2   : > { %v3818_v41 = vmul.f32 1.442695, %v3332_v13  ;;  %v3820_v49 = vmul.f32 1.442695, %v3333_v46  ;;  %4204 = vadd.xlane.f32.xlu0 %v4203_v38  ;;  %7693 = vrcp.f32 %v12334_v14  ;;  %v14582_v46 = vld [vmem:[#allocation63_spill] sm:$0xff] }
 0x6b3   : > { %v3862_v9 = vmul.f32 1.442695, %v3354_v51  ;;  %v3864_v18 = vmul.f32 1.442695, %v3355_v54  ;;  %v4151_v48 = vpop.xlane.xlu0 %4150  ;;  %v4727_v29 = vpack.c.bf16 %v4561_v12, %v4559_v16  ;;  %v4726_v3 = vpack.c.bf16 %v4560_v37, %v4558_v22 }
 0x6b4   : > { %7695 = vpow2.f32 %v3818_v41  ;;  %v4563_v12 = vmul.f32 %v7682_v44, %v14583_v53  ;;  %v4562_v22 = vmul.f32 %v7682_v44, %v14585_v62 }
 0x6b5   : > { %7697 = vpow2.f32 %v3820_v49  ;;  %5216 = vmatprep.mubr.bf16.mxu0 %v4727_v29 }
 0x6b6   : > { %v12477_v52 = vpop.eup %7683  ;;  %7699 = vpow2.f32 %v3862_v9  ;;  %5217 = vmatmul.mubr.bf16.gmra.mrb[208].mxu0 %v4726_v3 }
 0x6b7   : > { %v12479_v13 = vpop.eup %7685  ;;  %7701 = vpow2.f32 %v3864_v18  ;;  %v3071_v39 = vpop.xlane.xlu0 %3070 }
 0x6b8   : > { %v12481_v5 = vpop.eup %7687  ;;  %7703 = vrcp.f32 %v4151_v48  ;;  %v3336_v14 = vsub.f32 %v12059_v56, %v3071_v39  ;;  %v3337_v38 = vsub.f32 %v14582_v46, %v3071_v39  ;;  %v4209_v27 = vadd.f32 %v12479_v13, %v12477_v52  ;;  %v14584_v56 = vld [vmem:[#allocation53_spill] sm:$0xff] }
 0x6b9   : > { %14581 = vst [vmem:[#allocation146_spill] sm:$0xff] %v12481_v5  ;;  %v12487_v51 = vpop.eup %7689  ;;  %7705 = vrcp.f32 %v12346_v63  ;;  %v6553_v9 = vpop.f32.mrb[140].mxu0 }
 0x6ba   : > { %v7692_v35 = vpop.eup %7691  ;;  %v3826_v54 = vmul.f32 1.442695, %v3336_v14  ;;  %v3828_v42 = vmul.f32 1.442695, %v3337_v38  ;;  %4210 = vadd.xlane.f32.xlu0 %v4209_v27  ;;  %v4242_v16 = vadd.f32 %v12487_v51, %v12481_v5  ;;  %v6554_v3 = vpop.f32.mrb[141].mxu0  ;;  %v14587_v38 = vld [vmem:[#allocation114_spill] sm:$0xff] }
 0x6bb   : > { %v4157_v41 = vpop.xlane.xlu0 %4156  ;;  %v4565_v49 = vmul.f32 %v7692_v35, %v14584_v56  ;;  %v4564_v37 = vmul.f32 %v7692_v35, %v14586_v2  ;;  %v6555_v14 = vadd.f32 %v6554_v3, %v6553_v9  ;;  %v6556_v63 = vpop.f32.mrb[142].mxu0  ;;  %v5564_v44 = vsel %vm357_vm0, %v14587_v38, 0.0  ;;  %v14588_v27 = vld [vmem:[#allocation165_spill] sm:$0xff]  ;;  %v14591_v56 = vld [vmem:[#allocation31_spill] sm:$0xff]  ;;  %v14595_v3 = vld [vmem:[#allocation182_spill] sm:$0xff] }
 0x6bc   : > { %7707 = vpow2.f32 %v3826_v54  ;;  %4243 = vadd.xlane.f32.xlu1 %v4242_v16  ;;  %v7694_v18 = vpop.eup %7693  ;;  %v5571_v35 = vsel %vm357_vm0, %v14588_v27, 0.0  ;;  %v6557_v16 = vpop.f32.mrb[143].mxu0  ;;  %v14594_v9 = vld [vmem:[#allocation33_spill] sm:$0xff] }
 0x6bd   : > { %7709 = vpow2.f32 %v3828_v42  ;;  %v4729_v48 = vpack.c.bf16 %v4565_v49, %v4563_v12  ;;  %v4728_v29 = vpack.c.bf16 %v4564_v37, %v4562_v22  ;;  %v5565_v53 = vsel %vm357_vm0, %v6555_v14, 0.0  ;;  %v14590_v12 = vld [vmem:[#allocation38_spill] sm:$0xff] }
 0x6be   : > { %v12496_v39 = vpop.eup %7695  ;;  %7711 = vrcp.f32 %v4157_v41  ;;  %v6558_v62 = vadd.f32 %v6557_v16, %v6556_v63  ;;  %v12511_v2 = vadd.f32 %v5565_v53, %v5564_v44  ;;  %v4566_v38 = vmul.f32 %v7694_v18, %v14595_v3  ;;  %v14597_v16 = vld [vmem:[#allocation37_spill] sm:$0xff] }
 0x6bf   : > { %v12498_v46 = vpop.eup %7697  ;;  %5224 = vmatprep.mubr.bf16.mxu0 %v4729_v48  ;;  %v3077_v54 = vpop.xlane.xlu0 %3076  ;;  %v4567_v48 = vmul.f32 %v7694_v18, %v14594_v9  ;;  %7713 = vrcp.f32 %v12364_v6 }
 0x6c0   : > { %v12504_v42 = vpop.eup %7699  ;;  %5225 = vmatmul.mubr.bf16.gmra.mrb[212].mxu0 %v4728_v29  ;;  %v3340_v41 = vsub.f32 %v14590_v12, %v3077_v54  ;;  %v3341_v49 = vsub.f32 %v14591_v56, %v3077_v54  ;;  %14593 = vst [vmem:[#allocation181_spill] sm:$0xff] %v12511_v2  ;;  %v4215_v37 = vadd.f32 %v12498_v46, %v12496_v39  ;;  %v5572_v14 = vsel %vm357_vm0, %v6558_v62, 0.0  ;;  %v14598_v12 = vld [vmem:[#allocation87_spill] sm:$0xff] }
 0x6c1   : > { %14589 = vst [vmem:[#allocation41_spill] sm:$0xff] %v12504_v42  ;;  %v12509_v22 = vpop.eup %7701  ;;  %v12521_v63 = vadd.f32 %v5572_v14, %v5571_v35  ;;  %v14599_v35 = vld [vmem:[#allocation35_spill] sm:$0xff] }
 0x6c2   : > { %14592 = vst [vmem:[#allocation65_spill] sm:$0xff] %v12509_v22  ;;  %v7704_v27 = vpop.eup %7703  ;;  %v3834_v29 = vmul.f32 1.442695, %v3340_v41  ;;  %v3836_v5 = vmul.f32 1.442695, %v3341_v49  ;;  %v4248_v54 = vadd.f32 %v12509_v22, %v12504_v42  ;;  %4216 = vadd.xlane.f32.xlu0 %v4215_v37  ;;  %v5578_v37 = vsel %vm357_vm0, %v14599_v35, 0.0 }
 0x6c3   : > { %14596 = vst [vmem:[#allocation98_spill] sm:$0xff] %v12521_v63  ;;  %v4163_v44 = vpop.xlane.xlu0 %4162  ;;  %v4569_v53 = vmul.f32 %v7704_v27, %v14597_v16  ;;  %v4568_v56 = vmul.f32 %v7704_v27, %v14598_v12  ;;  %v7706_v18 = vpop.eup %7705  ;;  %v14601_v35 = vld [vmem:[#allocation44_spill] sm:$0xff] }
 0x6c4   : > { %7715 = vpow2.f32 %v3834_v29  ;;  %4249 = vadd.xlane.f32.xlu1 %v4248_v54  ;;  %v6559_v49 = vpop.f32.mrb[144].mxu0 }
 0x6c5   : > { %7717 = vpow2.f32 %v3836_v5  ;;  %v4731_v41 = vpack.c.bf16 %v4569_v53, %v4567_v48  ;;  %v4730_v62 = vpack.c.bf16 %v4568_v56, %v4566_v38  ;;  %v6560_v3 = vpop.f32.mrb[145].mxu0 }
 0x6c6   : > { %v12525_v9 = vpop.eup %7707  ;;  %7719 = vrcp.f32 %v4163_v44  ;;  %v6561_v14 = vadd.f32 %v6560_v3, %v6559_v49  ;;  %v6562_v16 = vpop.f32.mrb[146].mxu0  ;;  %v14600_v44 = vld [vmem:[#allocation96_spill] sm:$0xff] }
 0x6c7   : > { %v12527_v6 = vpop.eup %7709  ;;  %5232 = vmatprep.mubr.bf16.mxu0 %v4731_v41  ;;  %v3083_v27 = vpop.xlane.xlu0 %3082  ;;  %v4571_v53 = vmul.f32 %v7706_v18, %v14600_v44  ;;  %v14602_v49 = vld [vmem:[#allocation200_spill] sm:$0xff]  ;;  %7721 = vrcp.f32 %v12389_v31 }
 0x6c8   : > { %v7712_v29 = vpop.eup %7711  ;;  %5233 = vmatmul.mubr.bf16.gmra.mrb[216].mxu0 %v4730_v62  ;;  %v3344_v5 = vsub.f32 %v12148_v21, %v3083_v27  ;;  %v3345_v48 = vsub.f32 %v12151_v57, %v3083_v27  ;;  %v6563_v38 = vpop.f32.mrb[147].mxu0  ;;  %v4221_v54 = vadd.f32 %v12527_v6, %v12525_v9  ;;  %v5579_v12 = vsel %vm357_vm0, %v6561_v14, 0.0  ;;  %v14604_v21 = vld [vmem:[#allocation21_spill] sm:$0xff] }
 0x6c9   : > { %v6564_v56 = vadd.f32 %v6563_v38, %v6562_v16  ;;  %v4573_v41 = vmul.f32 %v7712_v29, %v14601_v35  ;;  %v4572_v3 = vmul.f32 %v7712_v29, %v14602_v49  ;;  %v12539_v22 = vadd.f32 %v5579_v12, %v5578_v37  ;;  %v14605_v27 = vld [vmem:[#allocation25_spill] sm:$0xff]  ;;  %v7714_v37 = vpop.eup %7713  ;;  %v14607_v12 = vld [vmem:[#allocation40_spill] sm:$0xff] }
 0x6ca   : > { %v3842_v62 = vmul.f32 1.442695, %v3344_v5  ;;  %v3844_v42 = vmul.f32 1.442695, %v3345_v48  ;;  %4222 = vadd.xlane.f32.xlu0 %v4221_v54  ;;  %v4570_v57 = vmul.f32 %v7706_v18, %v14604_v21  ;;  %v5585_v63 = vsel %vm357_vm0, %v14605_v27, 0.0 }
 0x6cb   : > { %14603 = vst [vmem:[#allocation50_spill] sm:$0xff] %v12539_v22  ;;  %v5586_v44 = vsel %vm357_vm0, %v6564_v56, 0.0  ;;  %v4169_v14 = vpop.xlane.xlu0 %4168  ;;  %v4733_v16 = vpack.c.bf16 %v4573_v41, %v4571_v53  ;;  %v6565_v5 = vpop.f32.mrb[148].mxu0  ;;  %v5592_v31 = vsel %vm357_vm0, %v14607_v12, 0.0 }
 0x6cc   : > { %7723 = vpow2.f32 %v3842_v62  ;;  %v12546_v38 = vadd.f32 %v5586_v44, %v5585_v63  ;;  %v4732_v29 = vpack.c.bf16 %v4572_v3, %v4570_v57  ;;  %v6566_v18 = vpop.f32.mrb[149].mxu0  ;;  %v14608_v62 = vld [vmem:[#allocation184_spill] sm:$0xff]  ;;  %v14609_v57 = vld [vmem:[#allocation161_spill] sm:$0xff] }
 0x6cd   : > { %7725 = vpow2.f32 %v3844_v42  ;;  %5240 = vmatprep.mubr.bf16.mxu0 %v4733_v16  ;;  %v6567_v56 = vadd.f32 %v6566_v18, %v6565_v5  ;;  %v6568_v35 = vpop.f32.mrb[150].mxu0  ;;  %v4575_v21 = vmul.f32 %v7714_v37, %v14608_v62  ;;  %v14610_v16 = vld [vmem:[#allocation143_spill] sm:$0xff]  ;;  %v14611_v18 = vld [vmem:[#allocation36_spill] sm:$0xff] }
 0x6ce   : > { %14606 = vst [vmem:[#allocation15_spill] sm:$0xff] %v12546_v38  ;;  %v12548_v48 = vpop.eup %7715  ;;  %7727 = vrcp.f32 %v4169_v14  ;;  %v6569_v49 = vpop.f32.mrb[151].mxu0  ;;  %v4574_v12 = vmul.f32 %v7714_v37, %v14611_v18 }
 0x6cf   : > { %v12550_v54 = vpop.eup %7717  ;;  %v3089_v53 = vpop.xlane.xlu0 %3088  ;;  %v5593_v44 = vsel %vm357_vm0, %v6567_v56, 0.0  ;;  %v6570_v14 = vadd.f32 %v6569_v49, %v6568_v35  ;;  %7729 = vrcp.f32 %v12439_v55  ;;  %v14615_v49 = vld [vmem:[#allocation176_spill] sm:$0xff] }
 0x6d0   : > { %v7720_v41 = vpop.eup %7719  ;;  %5241 = vmatmul.mubr.bf16.gmra.mrb[220].mxu0 %v4732_v29  ;;  %v3348_v63 = vsub.f32 %v12178_v34, %v3089_v53  ;;  %v3349_v42 = vsub.f32 %v12183_v17, %v3089_v53  ;;  %v4227_v3 = vadd.f32 %v12550_v54, %v12548_v48  ;;  %v12563_v29 = vadd.f32 %v5593_v44, %v5592_v31  ;;  %v14613_v17 = vld [vmem:[#allocation94_spill] sm:$0xff] }
 0x6d1   : > { %v4576_v27 = vmul.f32 %v7720_v41, %v14609_v57  ;;  %v4577_v5 = vmul.f32 %v7720_v41, %v14610_v16  ;;  %v5599_v53 = vsel %vm357_vm0, %v14613_v17, 0.0  ;;  %v5600_v62 = vsel %vm357_vm0, %v6570_v14, 0.0  ;;  %v7722_v41 = vpop.eup %7721  ;;  %v14616_v16 = vld [vmem:[#allocation27_spill] sm:$0xff] }
 0x6d2   : > { %14612 = vst [vmem:[#allocation120_spill] sm:$0xff] %v12563_v29  ;;  %v3850_v34 = vmul.f32 1.442695, %v3348_v63  ;;  %v3852_v38 = vmul.f32 1.442695, %v3349_v42  ;;  %4228 = vadd.xlane.f32.xlu0 %v4227_v3  ;;  %v12569_v56 = vadd.f32 %v5600_v62, %v5599_v53  ;;  %v5606_v55 = vsel %vm357_vm0, %v14615_v49, 0.0 }
 0x6d3   : > { %v4175_v57 = vpop.xlane.xlu0 %4174  ;;  %v4735_v22 = vpack.c.bf16 %v4577_v5, %v4575_v21  ;;  %v4734_v35 = vpack.c.bf16 %v4576_v27, %v4574_v12  ;;  %v14617_v5 = vld [vmem:[#allocation189_spill] sm:$0xff] }
 0x6d4   : > { %7731 = vpow2.f32 %v3850_v34  ;;  %14614 = vst [vmem:[#allocation121_spill] sm:$0xff] %v12569_v56  ;;  %v6571_v37 = vpop.f32.mrb[152].mxu0  ;;  %v14618_v12 = vld [vmem:[#allocation141_spill] sm:$0xff] }
 0x6d5   : > { %7733 = vpow2.f32 %v3852_v38  ;;  %5281 = vmatprep.mubr.bf16.mxu0 %v4735_v22  ;;  %v6572_v63 = vpop.f32.mrb[153].mxu0  ;;  %v4579_v34 = vmul.f32 %v7722_v41, %v14618_v12  ;;  %v14619_v62 = vld [vmem:[#allocation185_spill] sm:$0xff] }
 0x6d6   : > { %v12571_v31 = vpop.eup %7723  ;;  %7735 = vrcp.f32 %v4175_v57  ;;  %v6573_v3 = vadd.f32 %v6572_v63, %v6571_v37  ;;  %v6574_v44 = vpop.f32.mrb[154].mxu0  ;;  %v14620_v37 = vld [vmem:[#allocation45_spill] sm:$0xff] }
 0x6d7   : > { %v12573_v42 = vpop.eup %7725  ;;  %v3095_v21 = vpop.xlane.xlu0 %3094 }
 0x6d8   : > { %v7728_v14 = vpop.eup %7727  ;;  %5282 = vmatmul.mubr.bf16.vlgmr.msra.gmra.mrb[224].mxu0 %v4734_v35  ;;  %v3352_v27 = vsub.f32 %v14616_v16, %v3095_v21  ;;  %v3353_v38 = vsub.f32 %v14617_v5, %v3095_v21  ;;  %v6575_v22 = vpop.f32.mrb[155].mxu0  ;;  %v4233_v18 = vadd.f32 %v12573_v42, %v12571_v31  ;;  %v5607_v17 = vsel %vm357_vm0, %v6573_v3, 0.0  ;;  %v14622_v16 = vld [vmem:[#allocation142_spill] sm:$0xff]  ;;  %v14623_v5 = vld [vmem:[#allocation135_spill] sm:$0xff] }
 0x6d9   : > { %v6576_v53 = vadd.f32 %v6575_v22, %v6574_v44  ;;  %v4581_v57 = vmul.f32 %v7728_v14, %v14619_v62  ;;  %v4580_v63 = vmul.f32 %v7728_v14, %v14620_v37  ;;  %v12585_v49 = vadd.f32 %v5607_v17, %v5606_v55  ;;  %v7730_v22 = vpop.eup %7729  ;;  %v14625_v62 = vld [vmem:[#allocation149_spill] sm:$0xff] }
 0x6da   : > { %v3858_v35 = vmul.f32 1.442695, %v3352_v27  ;;  %v3860_v56 = vmul.f32 1.442695, %v3353_v38  ;;  %4234 = vadd.xlane.f32.xlu0 %v4233_v18  ;;  %v4578_v21 = vmul.f32 %v7722_v41, %v14622_v16  ;;  %v5613_v29 = vsel %vm357_vm0, %v14623_v5, 0.0  ;;  %v14628_v16 = vld [vmem:[#allocation167_spill] sm:$0xff] }
 0x6db   : > { %14621 = vst [vmem:[#allocation66_spill] sm:$0xff] %v12585_v49  ;;  %v5614_v2 = vsel %vm357_vm0, %v6576_v53, 0.0  ;;  %v4737_v12 = vpack.c.bf16 %v4581_v57, %v4579_v34  ;;  %v5620_v53 = vsel %vm357_vm0, %v14625_v62, 0.0 }
 0x6dc   : > { %7737 = vpow2.f32 %v3858_v35  ;;  %v12591_v3 = vadd.f32 %v5614_v2, %v5613_v29  ;;  %v4736_v44 = vpack.c.bf16 %v4580_v63, %v4578_v21  ;;  %v14626_v29 = vld [vmem:[#allocation100_spill] sm:$0xff]  ;;  %v14627_v63 = vld [vmem:[#allocation78_spill] sm:$0xff] }
 0x6dd   : > { %7739 = vpow2.f32 %v3860_v56  ;;  %5289 = vmatprep.mubr.bf16.mxu0 %v4737_v12  ;;  %v6577_v55 = vpop.f32.mrb[156].mxu0  ;;  %v4583_v56 = vmul.f32 %v7730_v22, %v14626_v29  ;;  %v14629_v12 = vld [vmem:[#allocation12_spill] sm:$0xff] }
 0x6de   : > { %14624 = vst [vmem:[#allocation91_spill] sm:$0xff] %v12591_v3  ;;  %v12593_v14 = vpop.eup %7731  ;;  %v6578_v27 = vpop.f32.mrb[157].mxu0  ;;  %7741 = vrcp.f32 %v12460_v23 }
 0x6df   : > { %v12595_v38 = vpop.eup %7733  ;;  %v6579_v41 = vadd.f32 %v6578_v27, %v6577_v55  ;;  %v6580_v18 = vpop.f32.mrb[158].mxu0  ;;  %v4582_v55 = vmul.f32 %v7730_v22, %v14629_v12  ;;  %v14630_v27 = vld [vmem:[#allocation19_spill] sm:$0xff] }
 0x6e0   : > { %v7736_v17 = vpop.eup %7735  ;;  %5290 = vmatmul.mubr.bf16.gmra.mrb[228].mxu0 %v4736_v44  ;;  %v6581_v34 = vpop.f32.mrb[159].mxu0  ;;  %v4239_v2 = vadd.f32 %v12595_v38, %v12593_v14  ;;  %v5627_v44 = vsel %vm357_vm0, %v14630_v27, 0.0 }
 0x6e1   : > { %v5621_v57 = vsel %vm357_vm0, %v6579_v41, 0.0  ;;  %v6582_v37 = vadd.f32 %v6581_v34, %v6580_v18  ;;  %v4585_v35 = vmul.f32 %v7736_v17, %v14627_v63  ;;  %v4584_v21 = vmul.f32 %v7736_v17, %v14628_v16  ;;  %v14631_v63 = vld [vmem:[#allocation30_spill] sm:$0xff]  ;;  %v14633_v16 = vld [vmem:[#allocation24_spill] sm:$0xff] }
 0x6e2   : > { %v12605_v5 = vadd.f32 %v5621_v57, %v5620_v53  ;;  %4240 = vadd.xlane.f32.xlu0 %v4239_v2 }
 0x6e3   : > { %v5628_v62 = vsel %vm357_vm0, %v6582_v37, 0.0  ;;  %v4739_v3 = vpack.c.bf16 %v4585_v35, %v4583_v56  ;;  %v4738_v29 = vpack.c.bf16 %v4584_v21, %v4582_v55 }
 0x6e4   : > { %v12611_v49 = vadd.f32 %v5628_v62, %v5627_v44 }
 0x6e5   : > { %5297 = vmatprep.mubr.bf16.mxu0 %v4739_v3  ;;  %v6599_v41 = vpop.f32.mrb[160].mxu0 }
 0x6e6   : > { %v12613_v18 = vpop.eup %7737  ;;  %v6600_v34 = vpop.f32.mrb[161].mxu0 }
 0x6e7   : > { %v12615_v17 = vpop.eup %7739  ;;  %v6601_v53 = vadd.f32 %v6600_v34, %v6599_v41  ;;  %v6602_v2 = vpop.f32.mrb[162].mxu0  ;;  %v14635_v34 = vld [vmem:[#allocation62_spill] sm:$0xff] }
 0x6e8   : > { %5298 = vmatmul.mubr.bf16.gmra.mrb[232].mxu0 %v4738_v29  ;;  %v6603_v22 = vpop.f32.mrb[163].mxu0  ;;  %v4245_v57 = vadd.f32 %v12615_v17, %v12613_v18 }
 0x6e9   : > { %v5413_v37 = vsel %vm357_vm0, %v6601_v53, 0.0  ;;  %v6604_v56 = vadd.f32 %v6603_v22, %v6602_v2  ;;  %v14637_v22 = vld [vmem:[#allocation77_spill] sm:$0xff] }
 0x6ea   : > { %v12621_v35 = vadd.f32 %v5413_v37, %v14631_v63  ;;  %4246 = vadd.xlane.f32.xlu0 %v4245_v57 }
 0x6eb   : > { %v5420_v3 = vsel %vm357_vm0, %v6604_v56, 0.0 }
 0x6ec   : > { %14632 = vst [vmem:[#allocation174_spill] sm:$0xff] %v12621_v35  ;;  %v12625_v21 = vadd.f32 %v5420_v3, %v14633_v16 }
 0x6ee   : > { %14634 = vst [vmem:[#allocation89_spill] sm:$0xff] %v12625_v21  ;;  %v6605_v12 = vpop.f32.mrb[164].mxu0  ;;  %v14639_v21 = vld [vmem:[#allocation47_spill] sm:$0xff] }
 0x6ef   : > { %v6606_v55 = vpop.f32.mrb[165].mxu0 }
 0x6f0   : > { %v6607_v27 = vadd.f32 %v6606_v55, %v6605_v12  ;;  %v6608_v44 = vpop.f32.mrb[166].mxu0 }
 0x6f1   : > { %v6609_v62 = vpop.f32.mrb[167].mxu0 }
 0x6f2   : > { %v5427_v29 = vsel %vm357_vm0, %v6607_v27, 0.0  ;;  %v6610_v41 = vadd.f32 %v6609_v62, %v6608_v44  ;;  %v14641_v44 = vld [vmem:[#allocation54_spill] sm:$0xff] }
 0x6f3   : > { %v12629_v53 = vadd.f32 %v5427_v29, %v14635_v34 }
 0x6f4   : > { %v5434_v2 = vsel %vm357_vm0, %v6610_v41, 0.0 }
 0x6f5   : > { %14636 = vst [vmem:[#allocation173_spill] sm:$0xff] %v12629_v53  ;;  %v12633_v57 = vadd.f32 %v5434_v2, %v14637_v22 }
 0x6f6   : > { %v6611_v37 = vpop.f32.mrb[168].mxu0 }
 0x6f7   : > { %14638 = vst [vmem:[#allocation67_spill] sm:$0xff] %v12633_v57  ;;  %v6612_v56 = vpop.f32.mrb[169].mxu0  ;;  %v14643_v57 = vld [vmem:[#allocation187_spill] sm:$0xff] }
 0x6f8   : > { %v6613_v63 = vadd.f32 %v6612_v56, %v6611_v37  ;;  %v6614_v3 = vpop.f32.mrb[170].mxu0 }
 0x6f9   : > { %v6615_v16 = vpop.f32.mrb[171].mxu0 }
 0x6fa   : > { %v5441_v12 = vsel %vm357_vm0, %v6613_v63, 0.0  ;;  %v6616_v55 = vadd.f32 %v6615_v16, %v6614_v3 }
 0x6fb   : > { %v12637_v35 = vadd.f32 %v5441_v12, %v14639_v21  ;;  %v14645_v21 = vld [vmem:[#allocation117_spill] sm:$0xff] }
 0x6fc   : > { %v5448_v27 = vsel %vm357_vm0, %v6616_v55, 0.0 }
 0x6fd   : > { %14640 = vst [vmem:[#allocation68_spill] sm:$0xff] %v12637_v35  ;;  %v12641_v62 = vadd.f32 %v5448_v27, %v14641_v44 }
 0x6fe   : > { %v6617_v29 = vpop.f32.mrb[172].mxu0 }
 0x6ff   : > { %14642 = vst [vmem:[#allocation103_spill] sm:$0xff] %v12641_v62  ;;  %v6618_v41 = vpop.f32.mrb[173].mxu0  ;;  %v14647_v62 = vld [vmem:[#allocation191_spill] sm:$0xff] }
 0x700   : > { %v6619_v34 = vadd.f32 %v6618_v41, %v6617_v29  ;;  %v6620_v2 = vpop.f32.mrb[174].mxu0 }
 0x701   : > { %v6621_v22 = vpop.f32.mrb[175].mxu0 }
 0x702   : > { %v5455_v37 = vsel %vm357_vm0, %v6619_v34, 0.0  ;;  %v6622_v56 = vadd.f32 %v6621_v22, %v6620_v2 }
 0x703   : > { %v12645_v53 = vadd.f32 %v5455_v37, %v14643_v57  ;;  %v14649_v57 = vld [vmem:[#allocation158_spill] sm:$0xff] }
 0x704   : > { %v5462_v63 = vsel %vm357_vm0, %v6622_v56, 0.0 }
 0x705   : > { %14644 = vst [vmem:[#allocation52_spill] sm:$0xff] %v12645_v53  ;;  %v12649_v3 = vadd.f32 %v5462_v63, %v14645_v21 }
 0x706   : > { %v6623_v16 = vpop.f32.mrb[176].mxu0 }
 0x707   : > { %14646 = vst [vmem:[#allocation125_spill] sm:$0xff] %v12649_v3  ;;  %v6624_v12 = vpop.f32.mrb[177].mxu0  ;;  %v14651_v3 = vld [vmem:[#allocation168_spill] sm:$0xff] }
 0x708   : > { %v6625_v55 = vadd.f32 %v6624_v12, %v6623_v16  ;;  %v6626_v27 = vpop.f32.mrb[178].mxu0 }
 0x709   : > { %v6627_v44 = vpop.f32.mrb[179].mxu0 }
 0x70a   : > { %v5469_v29 = vsel %vm357_vm0, %v6625_v55, 0.0  ;;  %v6628_v41 = vadd.f32 %v6627_v44, %v6626_v27 }
 0x70b   : > { %v12653_v35 = vadd.f32 %v5469_v29, %v14647_v62  ;;  %v14652_v62 = vld [vmem:[#allocation169_spill] sm:$0xff] }
 0x70c   : > { %v5476_v34 = vsel %vm357_vm0, %v6628_v41, 0.0 }
 0x70d   : > { %14648 = vst [vmem:[#allocation126_spill] sm:$0xff] %v12653_v35  ;;  %v12657_v2 = vadd.f32 %v5476_v34, %v14649_v57 }
 0x70e   : > { %v6629_v22 = vpop.f32.mrb[180].mxu0 }
 0x70f   : > { %14650 = vst [vmem:[#allocation69_spill] sm:$0xff] %v12657_v2  ;;  %v6630_v37 = vpop.f32.mrb[181].mxu0  ;;  %v14653_v2 = vld [vmem:[#allocation58_spill] sm:$0xff] }
 0x710   : > { %v6631_v56 = vadd.f32 %v6630_v37, %v6629_v22  ;;  %v6632_v63 = vpop.f32.mrb[182].mxu0 }
 0x711   : > { %v6633_v21 = vpop.f32.mrb[183].mxu0 }
 0x712   : > { %v5483_v16 = vsel %vm357_vm0, %v6631_v56, 0.0  ;;  %v6634_v12 = vadd.f32 %v6633_v21, %v6632_v63 }
 0x713   : > { %v12661_v53 = vadd.f32 %v5483_v16, %v14651_v3  ;;  %v14654_v3 = vld [vmem:[#allocation20_spill] sm:$0xff] }
 0x714   : > { %v5490_v55 = vsel %vm357_vm0, %v6634_v12, 0.0  ;;  %v4184_v12 = vpop.xlane.xlu1 %4183 }
 0x715   : > { %v12665_v27 = vadd.f32 %v5490_v55, %v14652_v62 }
 0x716   : > { %v6635_v44 = vpop.f32.mrb[184].mxu0 }
 0x717   : > { %v6636_v29 = vpop.f32.mrb[185].mxu0 }
 0x718   : > { %v6637_v41 = vadd.f32 %v6636_v29, %v6635_v44  ;;  %v6638_v34 = vpop.f32.mrb[186].mxu0 }
 0x719   : > { %v6639_v57 = vpop.f32.mrb[187].mxu0 }
 0x71a   : > { %v5497_v22 = vsel %vm357_vm0, %v6637_v41, 0.0  ;;  %v6640_v37 = vadd.f32 %v6639_v57, %v6638_v34  ;;  %v4190_v57 = vpop.xlane.xlu1 %4189 }
 0x71b   : > { %v12669_v35 = vadd.f32 %v5497_v22, %v14653_v2  ;;  %v7742_v2 = vpop.eup %7741  ;;  %v14655_v22 = vld [vmem:[#allocation145_spill] sm:$0xff] }
 0x71c   : > { %v5504_v56 = vsel %vm357_vm0, %v6640_v37, 0.0  ;;  %v4587_v23 = vmul.f32 %v7742_v2, %v14655_v22 }
 0x71d   : > { %v12673_v63 = vadd.f32 %v5504_v56, %v14654_v3  ;;  %v14656_v56 = vld [vmem:[#allocation113_spill] sm:$0xff] }
 0x71e   : > { %v4586_v3 = vmul.f32 %v7742_v2, %v14656_v56  ;;  %v14657_v2 = vld [vmem:[#allocation193_spill] sm:$0xff] }
 0x71f   : > { %v4181_v21 = vpop.xlane.xlu0 %4180 }
 0x720   : > { %7743 = vrcp.f32 %v4181_v21 }
 0x721   : > { %7745 = vrcp.f32 %v4184_v12 }
 0x723   : > { %v3101_v16 = vpop.xlane.xlu0 %3100 }
 0x724   : > { %v3356_v55 = vsub.f32 %v12379_v26, %v3101_v16  ;;  %v3357_v62 = vsub.f32 %v12382_v10, %v3101_v16 }
 0x726   : > { %v3866_v44 = vmul.f32 1.442695, %v3356_v55  ;;  %v3868_v29 = vmul.f32 1.442695, %v3357_v62 }
 0x727   : > { %v4187_v41 = vpop.xlane.xlu0 %4186 }
 0x728   : > { %7747 = vpow2.f32 %v3866_v44  ;;  %v4196_v44 = vpop.xlane.xlu1 %4195 }
 0x729   : > { %7749 = vpow2.f32 %v3868_v29 }
 0x72a   : > { %v7744_v34 = vpop.eup %7743  ;;  %7751 = vrcp.f32 %v4187_v41 }
 0x72b   : > { %v4589_v37 = vmul.f32 %v7744_v34, %v12376_v7  ;;  %v4588_v26 = vmul.f32 %v7744_v34, %v12374_v36  ;;  %7753 = vrcp.f32 %v4190_v57  ;;  %v7746_v12 = vpop.eup %7745  ;;  %v14658_v34 = vld [vmem:[#allocation138_spill] sm:$0xff] }
 0x72c   : > { %v4591_v41 = vmul.f32 %v7746_v12, %v14657_v2  ;;  %v4590_v57 = vmul.f32 %v7746_v12, %v14658_v34  ;;  %v14660_v12 = vld [vmem:[#allocation134_spill] sm:$0xff] }
 0x72d   : > { %v4741_v21 = vpack.c.bf16 %v4589_v37, %v4587_v23  ;;  %v4740_v10 = vpack.c.bf16 %v4588_v26, %v4586_v3 }
 0x72f   : > { %v4193_v16 = vpop.xlane.xlu0 %4192  ;;  %5305 = vmatprep.mubr.bf16.mxu0 %v4741_v21  ;;  %v4202_v21 = vpop.xlane.xlu1 %4201 }
 0x730   : > { %7755 = vrcp.f32 %v4193_v16  ;;  %5306 = vmatmul.mubr.bf16.gmra.mrb[236].mxu0 %v4740_v10  ;;  %v14659_v10 = vld [vmem:[#allocation80_spill] sm:$0xff] }
 0x731   : > { %7757 = vrcp.f32 %v4196_v44 }
 0x732   : > { %v12682_v55 = vpop.eup %7747 }
 0x733   : > { %v12684_v62 = vpop.eup %7749 }
 0x734   : > { %v7752_v29 = vpop.eup %7751  ;;  %v4251_v7 = vadd.f32 %v12684_v62, %v12682_v55 }
 0x735   : > { %v4593_v36 = vmul.f32 %v7752_v29, %v12407_v24  ;;  %v4592_v22 = vmul.f32 %v7752_v29, %v12403_v11  ;;  %v7754_v3 = vpop.eup %7753 }
 0x736   : > { %4252 = vadd.xlane.f32.xlu0 %v4251_v7  ;;  %v4595_v16 = vmul.f32 %v7754_v3, %v14659_v10  ;;  %v4594_v34 = vmul.f32 %v7754_v3, %v14660_v12  ;;  %v14663_v12 = vld [vmem:[#allocation42_spill] sm:$0xff] }
 0x737   : > { %v4199_v23 = vpop.xlane.xlu0 %4198  ;;  %v4743_v37 = vpack.c.bf16 %v4593_v36, %v4591_v41  ;;  %v4742_v56 = vpack.c.bf16 %v4592_v22, %v4590_v57  ;;  %v4208_v36 = vpop.xlane.xlu1 %4207  ;;  %v14661_v57 = vld [vmem:[#allocation140_spill] sm:$0xff] }
 0x738   : > { %7759 = vrcp.f32 %v4199_v23 }
 0x739   : > { %5313 = vmatprep.mubr.bf16.mxu0 %v4743_v37  ;;  %7761 = vrcp.f32 %v4202_v21  ;;  %v14662_v37 = vld [vmem:[#allocation197_spill] sm:$0xff] }
 0x73a   : > { %v7756_v26 = vpop.eup %7755  ;;  %5314 = vmatmul.mubr.bf16.gmra.mrb[240].mxu0 %v4742_v56 }
 0x73b   : > { %v4597_v2 = vmul.f32 %v7756_v26, %v12426_v60  ;;  %v4596_v24 = vmul.f32 %v7756_v26, %v12424_v58  ;;  %v7758_v7 = vpop.eup %7757 }
 0x73c   : > { %v4599_v22 = vmul.f32 %v7758_v7, %v14661_v57  ;;  %v4598_v58 = vmul.f32 %v7758_v7, %v14662_v37 }
 0x73d   : > { %v4745_v11 = vpack.c.bf16 %v4597_v2, %v4595_v16  ;;  %v4744_v44 = vpack.c.bf16 %v4596_v24, %v4594_v34 }
 0x73f   : > { %v4205_v29 = vpop.xlane.xlu0 %4204  ;;  %5321 = vmatprep.mubr.bf16.mxu0 %v4745_v11 }
 0x740   : > { %7763 = vrcp.f32 %v4205_v29 }
 0x741   : > { %7765 = vrcp.f32 %v4208_v36 }
 0x742   : > { %v7760_v41 = vpop.eup %7759  ;;  %5322 = vmatmul.mubr.bf16.gmra.mrb[244].mxu0 %v4744_v44 }
 0x743   : > { %v4601_v23 = vmul.f32 %v7760_v41, %v12447_v32  ;;  %v4600_v60 = vmul.f32 %v7760_v41, %v12443_v19  ;;  %v7762_v21 = vpop.eup %7761  ;;  %v4214_v32 = vpop.xlane.xlu1 %4213 }
 0x744   : > { %v4603_v16 = vmul.f32 %v7762_v21, %v12317_v33  ;;  %v4602_v19 = vmul.f32 %v7762_v21, %v14663_v12 }
 0x745   : > { %v4747_v56 = vpack.c.bf16 %v4601_v23, %v4599_v22  ;;  %v4746_v3 = vpack.c.bf16 %v4600_v60, %v4598_v58 }
 0x747   : > { %v4211_v26 = vpop.xlane.xlu0 %4210  ;;  %5329 = vmatprep.mubr.bf16.mxu0 %v4747_v56  ;;  %v4220_v41 = vpop.xlane.xlu1 %4219 }
 0x748   : > { %7767 = vrcp.f32 %v4211_v26 }
 0x749   : > { %7769 = vrcp.f32 %v4214_v32 }
 0x74a   : > { %v7764_v10 = vpop.eup %7763  ;;  %5330 = vmatmul.mubr.bf16.gmra.mrb[248].mxu0 %v4746_v3 }
 0x74b   : > { %v4605_v2 = vmul.f32 %v7764_v10, %v12464_v4  ;;  %v4604_v24 = vmul.f32 %v7764_v10, %v12462_v61  ;;  %v7766_v44 = vpop.eup %7765  ;;  %v4226_v58 = vpop.xlane.xlu1 %4225 }
 0x74c   : > { %v4607_v33 = vmul.f32 %v7766_v44, %v12338_v0  ;;  %v4606_v61 = vmul.f32 %v7766_v44, %v12336_v15  ;;  %v14664_v44 = vld [vmem:[#allocation195_spill] sm:$0xff] }
 0x74d   : > { %v4749_v34 = vpack.c.bf16 %v4605_v2, %v4603_v16  ;;  %v4748_v11 = vpack.c.bf16 %v4604_v24, %v4602_v19 }
 0x74f   : > { %5337 = vmatprep.mubr.bf16.mxu0 %v4749_v34  ;;  %v4217_v29 = vpop.xlane.xlu0 %4216  ;;  %v4232_v12 = vpop.xlane.xlu1 %4231 }
 0x750   : > { %7771 = vrcp.f32 %v4217_v29 }
 0x751   : > { %7773 = vrcp.f32 %v4220_v41 }
 0x752   : > { %v7768_v7 = vpop.eup %7767  ;;  %5338 = vmatmul.mubr.bf16.gmra.mrb[252].mxu0 %v4748_v11 }
 0x753   : > { %v4608_v36 = vmul.f32 %v7768_v7, %v12477_v52  ;;  %v4609_v4 = vmul.f32 %v7768_v7, %v12479_v13  ;;  %v7770_v60 = vpop.eup %7769 }
 0x754   : > { %v4610_v56 = vmul.f32 %v7770_v60, %v12348_v45  ;;  %v4611_v0 = vmul.f32 %v7770_v60, %v12351_v47 }
 0x755   : > { %v4751_v57 = vpack.c.bf16 %v4609_v4, %v4607_v33  ;;  %v4750_v22 = vpack.c.bf16 %v4608_v36, %v4606_v61  ;;  %v14665_v33 = vld [vmem:[#allocation34_spill] sm:$0xff] }
 0x757   : > { %v4223_v23 = vpop.xlane.xlu0 %4222  ;;  %5345 = vmatprep.mubr.bf16.mxu0 %v4751_v57 }
 0x758   : > { %7775 = vrcp.f32 %v4223_v23 }
 0x759   : > { %7777 = vrcp.f32 %v4226_v58 }
 0x75a   : > { %5346 = vmatmul.mubr.bf16.gmra.mrb[0].mxu0 %v4750_v22  ;;  %v7772_v37 = vpop.eup %7771 }
 0x75b   : > { %v4612_v52 = vmul.f32 %v7772_v37, %v12496_v39  ;;  %v4613_v13 = vmul.f32 %v7772_v37, %v12498_v46  ;;  %v7774_v26 = vpop.eup %7773 }
 0x75c   : > { %v4615_v39 = vmul.f32 %v7774_v26, %v12368_v30  ;;  %v4614_v11 = vmul.f32 %v7774_v26, %v12366_v43  ;;  %v4238_v43 = vpop.xlane.xlu1 %4237  ;;  %v14666_v26 = vld [vmem:[#allocation122_spill] sm:$0xff] }
 0x75d   : > { %v4752_v15 = vpack.c.bf16 %v4612_v52, %v4610_v56  ;;  %v4753_v3 = vpack.c.bf16 %v4613_v13, %v4611_v0  ;;  %v6641_v10 = vpop.f32.mrb[188].mxu0 }
 0x75e   : > { %v6642_v16 = vpop.f32.mrb[189].mxu0 }
 0x75f   : > { %v4229_v21 = vpop.xlane.xlu0 %4228  ;;  %5353 = vmatprep.mubr.bf16.mxu0 %v4753_v3  ;;  %v6643_v2 = vadd.f32 %v6642_v16, %v6641_v10  ;;  %v6644_v24 = vpop.f32.mrb[190].mxu0 }
 0x760   : > { %7779 = vrcp.f32 %v4229_v21  ;;  %v6645_v45 = vpop.f32.mrb[191].mxu0 }
 0x761   : > { %v5511_v46 = vsel %vm357_vm0, %v6643_v2, 0.0  ;;  %v6646_v19 = vadd.f32 %v6645_v45, %v6644_v24  ;;  %7781 = vrcp.f32 %v4232_v12 }
 0x762   : > { %v7776_v32 = vpop.eup %7775  ;;  %5354 = vmatmul.mubr.bf16.gmra.mrb[4].mxu0 %v4752_v15  ;;  %v12718_v29 = vadd.f32 %v5511_v46, %v14664_v44 }
 0x763   : > { %v4616_v47 = vmul.f32 %v7776_v32, %v12525_v9  ;;  %v4617_v34 = vmul.f32 %v7776_v32, %v12527_v6  ;;  %v5518_v7 = vsel %vm357_vm0, %v6646_v19, 0.0  ;;  %v7778_v9 = vpop.eup %7777  ;;  %v4244_v32 = vpop.xlane.xlu1 %4243 }
 0x764   : > { %v12722_v30 = vadd.f32 %v5518_v7, %v14665_v33  ;;  %v4619_v37 = vmul.f32 %v7778_v9, %v12397_v8  ;;  %v4618_v56 = vmul.f32 %v7778_v9, %v12394_v25  ;;  %v14667_v8 = vld [vmem:[#allocation29_spill] sm:$0xff] }
 0x765   : > { %v4755_v41 = vpack.c.bf16 %v4617_v34, %v4615_v39  ;;  %v4754_v36 = vpack.c.bf16 %v4616_v47, %v4614_v11 }
 0x767   : > { %v4235_v4 = vpop.xlane.xlu0 %4234  ;;  %5361 = vmatprep.mubr.bf16.mxu0 %v4755_v41 }
 0x768   : > { %7783 = vrcp.f32 %v4235_v4  ;;  %v6647_v61 = vpop.f32.mrb[192].mxu0 }
 0x769   : > { %v6648_v6 = vpop.f32.mrb[193].mxu0  ;;  %7785 = vrcp.f32 %v4238_v43 }
 0x76a   : > { %v7780_v57 = vpop.eup %7779  ;;  %5362 = vmatmul.mubr.bf16.gmra.mrb[8].mxu0 %v4754_v36  ;;  %v6649_v23 = vadd.f32 %v6648_v6, %v6647_v61  ;;  %v6650_v60 = vpop.f32.mrb[194].mxu0  ;;  %v14668_v36 = vld [vmem:[#allocation162_spill] sm:$0xff] }
 0x76b   : > { %v4620_v22 = vmul.f32 %v7780_v57, %v12548_v48  ;;  %v4621_v58 = vmul.f32 %v7780_v57, %v12550_v54  ;;  %v6651_v52 = vpop.f32.mrb[195].mxu0  ;;  %v7782_v16 = vpop.eup %7781 }
 0x76c   : > { %v5525_v0 = vsel %vm357_vm0, %v6649_v23, 0.0  ;;  %v6652_v13 = vadd.f32 %v6651_v52, %v6650_v60  ;;  %v4623_v47 = vmul.f32 %v7782_v16, %v12420_v1  ;;  %v4622_v19 = vmul.f32 %v7782_v16, %v12418_v20  ;;  %v14669_v1 = vld [vmem:[#allocation124_spill] sm:$0xff] }
 0x76d   : > { %v4757_v15 = vpack.c.bf16 %v4621_v58, %v4619_v37  ;;  %v4756_v3 = vpack.c.bf16 %v4620_v22, %v4618_v56  ;;  %v12730_v21 = vadd.f32 %v5525_v0, %v14666_v26 }
 0x76e   : > { %v5532_v48 = vsel %vm357_vm0, %v6652_v13, 0.0 }
 0x76f   : > { %v4241_v10 = vpop.xlane.xlu0 %4240  ;;  %5369 = vmatprep.mubr.bf16.mxu0 %v4757_v15  ;;  %v12734_v2 = vadd.f32 %v5532_v48, %v14667_v8 }
 0x770   : > { %7787 = vrcp.f32 %v4241_v10  ;;  %v6653_v25 = vpop.f32.mrb[196].mxu0 }
 0x771   : > { %v6654_v24 = vpop.f32.mrb[197].mxu0  ;;  %7789 = vrcp.f32 %v4244_v32 }
 0x772   : > { %v7784_v54 = vpop.eup %7783  ;;  %5370 = vmatmul.mubr.bf16.gmra.mrb[12].mxu0 %v4756_v3  ;;  %v6655_v39 = vadd.f32 %v6654_v24, %v6653_v25  ;;  %v6656_v12 = vpop.f32.mrb[198].mxu0  ;;  %v14670_v25 = vld [vmem:[#allocation146_spill] sm:$0xff] }
 0x773   : > { %v4624_v45 = vmul.f32 %v7784_v54, %v12571_v31  ;;  %v4625_v46 = vmul.f32 %v7784_v54, %v12573_v42  ;;  %v6657_v34 = vpop.f32.mrb[199].mxu0  ;;  %v7786_v9 = vpop.eup %7785 }
 0x774   : > { %v5539_v11 = vsel %vm357_vm0, %v6655_v39, 0.0  ;;  %v6658_v44 = vadd.f32 %v6657_v34, %v6656_v12  ;;  %v4627_v23 = vmul.f32 %v7786_v9, %v12441_v28  ;;  %v4626_v37 = vmul.f32 %v7786_v9, %v12437_v59  ;;  %v14671_v12 = vld [vmem:[#allocation181_spill] sm:$0xff]  ;;  %v14674_v9 = vld [vmem:[#allocation15_spill] sm:$0xff] }
 0x775   : > { %v4759_v7 = vpack.c.bf16 %v4625_v46, %v4623_v47  ;;  %v4758_v41 = vpack.c.bf16 %v4624_v45, %v4622_v19  ;;  %v12742_v33 = vadd.f32 %v5539_v11, %v14668_v36  ;;  %v14673_v36 = vld [vmem:[#allocation50_spill] sm:$0xff] }
 0x776   : > { %v5546_v31 = vsel %vm357_vm0, %v6658_v44, 0.0 }
 0x777   : > { %v4247_v4 = vpop.xlane.xlu0 %4246  ;;  %5377 = vmatprep.mubr.bf16.mxu0 %v4759_v7  ;;  %v12746_v61 = vadd.f32 %v5546_v31, %v14669_v1 }
 0x778   : > { %7791 = vrcp.f32 %v4247_v4 }
 0x779   : > { %v6659_v20 = vpop.f32.mrb[200].mxu0 }
 0x77a   : > { %v7788_v42 = vpop.eup %7787  ;;  %5378 = vmatmul.mubr.bf16.gmra.mrb[16].mxu0 %v4758_v41  ;;  %v6660_v57 = vpop.f32.mrb[201].mxu0 }
 0x77b   : > { %v4628_v6 = vmul.f32 %v7788_v42, %v12593_v14  ;;  %v6661_v43 = vadd.f32 %v6660_v57, %v6659_v20  ;;  %v6662_v22 = vpop.f32.mrb[202].mxu0  ;;  %v4629_v60 = vmul.f32 %v7788_v42, %v12595_v38  ;;  %v7790_v14 = vpop.eup %7789 }
 0x77c   : > { %v6663_v58 = vpop.f32.mrb[203].mxu0  ;;  %v4631_v8 = vmul.f32 %v7790_v14, %v12487_v51  ;;  %v4630_v54 = vmul.f32 %v7790_v14, %v14670_v25 }
 0x77d   : > { %v5553_v56 = vsel %vm357_vm0, %v6661_v43, 0.0  ;;  %v6664_v52 = vadd.f32 %v6663_v58, %v6662_v22  ;;  %v4761_v0 = vpack.c.bf16 %v4629_v60, %v4627_v23  ;;  %v4760_v13 = vpack.c.bf16 %v4628_v6, %v4626_v37  ;;  %v14675_v60 = vld [vmem:[#allocation120_spill] sm:$0xff] }
 0x77e   : > { %v12754_v15 = vadd.f32 %v5553_v56, %v12326_v40  ;;  %v14676_v56 = vld [vmem:[#allocation121_spill] sm:$0xff] }
 0x77f   : > { %v5560_v3 = vsel %vm357_vm0, %v6664_v52, 0.0  ;;  %5385 = vmatprep.mubr.bf16.mxu0 %v4761_v0 }
 0x780   : > { %v12758_v26 = vadd.f32 %v5560_v3, %v12332_v50 }
 0x781   : > { %v6665_v28 = vpop.f32.mrb[204].mxu0 }
 0x782   : > { %v7792_v38 = vpop.eup %7791  ;;  %5386 = vmatmul.mubr.bf16.gmra.mrb[20].mxu0 %v4760_v13  ;;  %v6666_v59 = vpop.f32.mrb[205].mxu0 }
 0x783   : > { %v4632_v48 = vmul.f32 %v7792_v38, %v12613_v18  ;;  %v6667_v10 = vadd.f32 %v6666_v59, %v6665_v28  ;;  %v6668_v16 = vpop.f32.mrb[206].mxu0  ;;  %v4633_v40 = vmul.f32 %v7792_v38, %v12615_v17  ;;  %v14672_v18 = vld [vmem:[#allocation98_spill] sm:$0xff] }
 0x784   : > { %v6669_v24 = vpop.f32.mrb[207].mxu0 }
 0x785   : > { %v5567_v32 = vsel %vm357_vm0, %v6667_v10, 0.0  ;;  %v6670_v45 = vadd.f32 %v6669_v24, %v6668_v16  ;;  %v4763_v50 = vpack.c.bf16 %v4633_v40, %v4631_v8  ;;  %v4762_v39 = vpack.c.bf16 %v4632_v48, %v4630_v54  ;;  %v14677_v48 = vld [vmem:[#allocation66_spill] sm:$0xff]  ;;  %v14678_v8 = vld [vmem:[#allocation91_spill] sm:$0xff] }
 0x786   : > { %v12766_v47 = vadd.f32 %v5567_v32, %v14671_v12 }
 0x787   : > { %v5574_v46 = vsel %vm357_vm0, %v6670_v45, 0.0  ;;  %5393 = vmatprep.mubr.bf16.mxu0 %v4763_v50 }
 0x788   : > { %v12770_v19 = vadd.f32 %v5574_v46, %v14672_v18 }
 0x789   : > { %v6671_v51 = vpop.f32.mrb[208].mxu0 }
 0x78a   : > { %5394 = vmatmul.mubr.bf16.gmra.mrb[24].mxu0 %v4762_v39  ;;  %v6672_v17 = vpop.f32.mrb[209].mxu0 }
 0x78b   : > { %v6673_v34 = vadd.f32 %v6672_v17, %v6671_v51  ;;  %v6674_v11 = vpop.f32.mrb[210].mxu0 }
 0x78c   : > { %v6675_v44 = vpop.f32.mrb[211].mxu0 }
 0x78d   : > { %v5581_v7 = vsel %vm357_vm0, %v6673_v34, 0.0  ;;  %v6676_v41 = vadd.f32 %v6675_v44, %v6674_v11 }
 0x78e   : > { %v12774_v31 = vadd.f32 %v5581_v7, %v14673_v36  ;;  %v14679_v36 = vld [vmem:[#allocation174_spill] sm:$0xff] }
 0x78f   : > { %v5588_v4 = vsel %vm357_vm0, %v6676_v41, 0.0 }
 0x790   : > { %v12778_v1 = vadd.f32 %v5588_v4, %v14674_v9 }
 0x793   : > { %v6677_v20 = vpop.f32.mrb[212].mxu0 }
 0x794   : > { %v6678_v42 = vpop.f32.mrb[213].mxu0 }
 0x795   : > { %v6679_v57 = vadd.f32 %v6678_v42, %v6677_v20  ;;  %v6680_v6 = vpop.f32.mrb[214].mxu0 }
 0x796   : > { %v6681_v43 = vpop.f32.mrb[215].mxu0 }
 0x797   : > { %v5595_v22 = vsel %vm357_vm0, %v6679_v57, 0.0  ;;  %v6682_v23 = vadd.f32 %v6681_v43, %v6680_v6 }
 0x798   : > { %v12782_v37 = vadd.f32 %v5595_v22, %v14675_v60 }
 0x799   : > { %v5602_v58 = vsel %vm357_vm0, %v6682_v23, 0.0 }
 0x79a   : > { %v12786_v52 = vadd.f32 %v5602_v58, %v14676_v56  ;;  %v14681_v58 = vld [vmem:[#allocation173_spill] sm:$0xff] }
 0x79b   : > { %v6683_v0 = vpop.f32.mrb[216].mxu0 }
 0x79c   : > { %v6684_v13 = vpop.f32.mrb[217].mxu0 }
 0x79d   : > { %v6685_v3 = vadd.f32 %v6684_v13, %v6683_v0  ;;  %v6686_v14 = vpop.f32.mrb[218].mxu0  ;;  %v14682_v13 = vld [vmem:[#allocation67_spill] sm:$0xff] }
 0x79e   : > { %v6687_v28 = vpop.f32.mrb[219].mxu0 }
 0x79f   : > { %v5609_v38 = vsel %vm357_vm0, %v6685_v3, 0.0  ;;  %v6688_v59 = vadd.f32 %v6687_v28, %v6686_v14 }
 0x7a0   : > { %v12790_v10 = vadd.f32 %v5609_v38, %v14677_v48 }
 0x7a1   : > { %v5616_v16 = vsel %vm357_vm0, %v6688_v59, 0.0 }
 0x7a2   : > { %v12794_v40 = vadd.f32 %v5616_v16, %v14678_v8  ;;  %v4250_v8 = vpop.xlane.xlu1 %4249 }
 0x7a3   : > { %v6689_v25 = vpop.f32.mrb[220].mxu0  ;;  %7793 = vrcp.f32 %v4250_v8 }
 0x7a4   : > { %v6690_v54 = vpop.f32.mrb[221].mxu0 }
 0x7a5   : > { %v6691_v24 = vadd.f32 %v6690_v54, %v6689_v25  ;;  %v6692_v32 = vpop.f32.mrb[222].mxu0 }
 0x7a6   : > { %v6693_v45 = vpop.f32.mrb[223].mxu0 }
 0x7a7   : > { %v5623_v50 = vsel %vm357_vm0, %v6691_v24, 0.0  ;;  %v6694_v39 = vadd.f32 %v6693_v45, %v6692_v32  ;;  %v14683_v24 = vld [vmem:[#allocation68_spill] sm:$0xff] }
 0x7a8   : > { %v12798_v12 = vadd.f32 %v5623_v50, %v12605_v5  ;;  %v14680_v5 = vld [vmem:[#allocation89_spill] sm:$0xff]  ;;  %v14684_v50 = vld [vmem:[#allocation103_spill] sm:$0xff] }
 0x7a9   : > { %v5630_v46 = vsel %vm357_vm0, %v6694_v39, 0.0 }
 0x7aa   : > { %v12802_v18 = vadd.f32 %v5630_v46, %v12611_v49 }
 0x7ab   : > { %v6711_v51 = vpop.f32.mrb[224].mxu0 }
 0x7ac   : > { %v6712_v17 = vpop.f32.mrb[225].mxu0 }
 0x7ad   : > { %v6713_v34 = vadd.f32 %v6712_v17, %v6711_v51  ;;  %v6714_v11 = vpop.f32.mrb[226].mxu0  ;;  %v7794_v17 = vpop.eup %7793 }
 0x7ae   : > { %v6715_v44 = vpop.f32.mrb[227].mxu0 }
 0x7af   : > { %v5415_v7 = vsel %vm357_vm0, %v6713_v34, 0.0  ;;  %v6716_v41 = vadd.f32 %v6715_v44, %v6714_v11  ;;  %v14685_v11 = vld [vmem:[#allocation41_spill] sm:$0xff] }
 0x7b0   : > { %v12806_v4 = vadd.f32 %v5415_v7, %v14679_v36  ;;  %v4634_v44 = vmul.f32 %v7794_v17, %v14685_v11 }
 0x7b1   : > { %v5422_v9 = vsel %vm357_vm0, %v6716_v41, 0.0  ;;  %v14686_v41 = vld [vmem:[#allocation65_spill] sm:$0xff] }
 0x7b2   : > { %v12810_v20 = vadd.f32 %v5422_v9, %v14680_v5  ;;  %v4635_v36 = vmul.f32 %v7794_v17, %v14686_v41  ;;  %v14690_v17 = vld [vmem:[#allocation69_spill] sm:$0xff] }
 0x7b3   : > { %v6717_v42 = vpop.f32.mrb[228].mxu0 }
 0x7b4   : > { %v6718_v57 = vpop.f32.mrb[229].mxu0  ;;  %v5638_v49 = vpack.c.bf16 %v12810_v20, %v12806_v4 }
 0x7b5   : > { %v6719_v6 = vadd.f32 %v6718_v57, %v6717_v42  ;;  %v6720_v43 = vpop.f32.mrb[230].mxu0 }
 0x7b6   : > { %v6721_v22 = vpop.f32.mrb[231].mxu0 }
 0x7b7   : > { %v5429_v23 = vsel %vm357_vm0, %v6719_v6, 0.0  ;;  %v6722_v60 = vadd.f32 %v6721_v22, %v6720_v43 }
 0x7b8   : > { %v12816_v56 = vadd.f32 %v5429_v23, %v14681_v58 }
 0x7b9   : > { %v5436_v0 = vsel %vm357_vm0, %v6722_v60, 0.0 }
 0x7ba   : > { %v12820_v3 = vadd.f32 %v5436_v0, %v14682_v13  ;;  %v14687_v0 = vld [vmem:[#allocation52_spill] sm:$0xff] }
 0x7bb   : > { %v6723_v14 = vpop.f32.mrb[232].mxu0 }
 0x7bc   : > { %v6724_v28 = vpop.f32.mrb[233].mxu0  ;;  %v5639_v38 = vpack.c.bf16 %v12820_v3, %v12816_v56 }
 0x7bd   : > { %v6725_v59 = vadd.f32 %v6724_v28, %v6723_v14  ;;  %v6726_v48 = vpop.f32.mrb[234].mxu0  ;;  %v14688_v14 = vld [vmem:[#allocation125_spill] sm:$0xff] }
 0x7be   : > { %v6727_v16 = vpop.f32.mrb[235].mxu0  ;;  %v5698_v4 = vsel %vm357_vm0, %v5639_v38, 0 }
 0x7bf   : > { %v5443_v25 = vsel %vm357_vm0, %v6725_v59, 0.0  ;;  %v6728_v54 = vadd.f32 %v6727_v16, %v6726_v48 }
 0x7c0   : > { %v12826_v32 = vadd.f32 %v5443_v25, %v14683_v24 }
 0x7c1   : > { %v5450_v45 = vsel %vm357_vm0, %v6728_v54, 0.0 }
 0x7c2   : > { %v12830_v39 = vadd.f32 %v5450_v45, %v14684_v50  ;;  %v14689_v45 = vld [vmem:[#allocation126_spill] sm:$0xff] }
 0x7c3   : > { %v4253_v46 = vpop.xlane.xlu0 %4252 }
 0x7c4   : > { %7795 = vrcp.f32 %v4253_v46  ;;  %v5640_v51 = vpack.c.bf16 %v12830_v39, %v12826_v32 }
 0x7ce   : > { %v7796_v34 = vpop.eup %7795 }
 0x7cf   : > { %v4636_v7 = vmul.f32 %v7796_v34, %v12682_v55  ;;  %v4637_v9 = vmul.f32 %v7796_v34, %v12684_v62 }
 0x7d1   : > { %v4764_v5 = vpack.c.bf16 %v4636_v7, %v4634_v44  ;;  %v4765_v42 = vpack.c.bf16 %v4637_v9, %v4635_v36 }
 0x7d3   : > { %5401 = vmatprep.mubr.bf16.mxu0 %v4765_v42 }
 0x7d4   : > { %5402 = vmatmul.mubr.bf16.gmra.mrb[28].mxu0 %v4764_v5 }
 0x803   : > { %v6729_v57 = vpop.f32.mrb[236].mxu0 }
 0x804   : > { %v6730_v6 = vpop.f32.mrb[237].mxu0 }
 0x805   : > { %v6731_v43 = vadd.f32 %v6730_v6, %v6729_v57  ;;  %v6732_v22 = vpop.f32.mrb[238].mxu0 }
 0x806   : > { %v6733_v23 = vpop.f32.mrb[239].mxu0 }
 0x807   : > { %v5457_v60 = vsel %vm357_vm0, %v6731_v43, 0.0  ;;  %v6734_v58 = vadd.f32 %v6733_v23, %v6732_v22 }
 0x808   : > { %v12840_v13 = vadd.f32 %v5457_v60, %v14687_v0 }
 0x809   : > { %v5464_v55 = vsel %vm357_vm0, %v6734_v58, 0.0 }
 0x80a   : > { %v12844_v28 = vadd.f32 %v5464_v55, %v14688_v14 }
 0x80c   : > { %v5641_v62 = vpack.c.bf16 %v12844_v28, %v12840_v13 }
 0x80d   : > { %v6735_v59 = vpop.f32.mrb[240].mxu0 }
 0x80e   : > { %v6736_v48 = vpop.f32.mrb[241].mxu0 }
 0x80f   : > { %v6737_v16 = vadd.f32 %v6736_v48, %v6735_v59  ;;  %v6738_v8 = vpop.f32.mrb[242].mxu0 }
 0x810   : > { %v6739_v25 = vpop.f32.mrb[243].mxu0 }
 0x811   : > { %v5471_v54 = vsel %vm357_vm0, %v6737_v16, 0.0  ;;  %v6740_v24 = vadd.f32 %v6739_v25, %v6738_v8 }
 0x812   : > { %v12850_v50 = vadd.f32 %v5471_v54, %v14689_v45 }
 0x813   : > { %v5478_v46 = vsel %vm357_vm0, %v6740_v24, 0.0 }
 0x814   : > { %v12854_v34 = vadd.f32 %v5478_v46, %v14690_v17 }
 0x815   : > { %v6741_v11 = vpop.f32.mrb[244].mxu0 }
 0x816   : > { %v6742_v44 = vpop.f32.mrb[245].mxu0  ;;  %v5642_v7 = vpack.c.bf16 %v12854_v34, %v12850_v50 }
 0x817   : > { %v6743_v41 = vadd.f32 %v6742_v44, %v6741_v11  ;;  %v6744_v36 = vpop.f32.mrb[246].mxu0 }
 0x818   : > { %v6745_v9 = vpop.f32.mrb[247].mxu0  ;;  %v5707_v13 = vsel %vm357_vm0, %v5642_v7, 0 }
 0x819   : > { %v5485_v5 = vsel %vm357_vm0, %v6743_v41, 0.0  ;;  %v6746_v42 = vadd.f32 %v6745_v9, %v6744_v36 }
 0x81a   : > { %v12860_v57 = vadd.f32 %v5485_v5, %v12661_v53 }
 0x81b   : > { %v5492_v6 = vsel %vm357_vm0, %v6746_v42, 0.0 }
 0x81c   : > { %v12864_v43 = vadd.f32 %v5492_v6, %v12665_v27 }
 0x81d   : > { %v6747_v22 = vpop.f32.mrb[248].mxu0 }
 0x81e   : > { %v6748_v23 = vpop.f32.mrb[249].mxu0  ;;  %v5643_v60 = vpack.c.bf16 %v12864_v43, %v12860_v57 }
 0x81f   : > { %v6749_v58 = vadd.f32 %v6748_v23, %v6747_v22  ;;  %v6750_v0 = vpop.f32.mrb[250].mxu0 }
 0x820   : > { %v6751_v55 = vpop.f32.mrb[251].mxu0  ;;  %v5710_v50 = vsel %vm357_vm0, %v5643_v60, 0 }
 0x821   : > { %v5499_v14 = vsel %vm357_vm0, %v6749_v58, 0.0  ;;  %v6752_v59 = vadd.f32 %v6751_v55, %v6750_v0 }
 0x822   : > { %v12870_v48 = vadd.f32 %v5499_v14, %v12669_v35 }
 0x823   : > { %v5506_v53 = vsel %vm357_vm0, %v6752_v59, 0.0 }
 0x824   : > { %v12874_v16 = vadd.f32 %v5506_v53, %v12673_v63 }
 0x825   : > { %v6753_v27 = vpop.f32.mrb[252].mxu0 }
 0x826   : > { %v6754_v8 = vpop.f32.mrb[253].mxu0  ;;  %v5644_v25 = vpack.c.bf16 %v12874_v16, %v12870_v48  ;;  %v7028_v16 = vld [vmem:[%s13040_s3 + $0x8] sm:$0xff]  }
 0x827   : > { %v6755_v54 = vadd.f32 %v6754_v8, %v6753_v27  ;;  %v6756_v24 = vpop.f32.mrb[254].mxu0 }
 0x828   : > { %v6757_v45 = vpop.f32.mrb[255].mxu0  ;;  %v5713_v57 = vsel %vm357_vm0, %v5644_v25, 0 }
 0x829   : > { %v5513_v46 = vsel %vm357_vm0, %v6755_v54, 0.0  ;;  %v6758_v17 = vadd.f32 %v6757_v45, %v6756_v24 }
 0x82a   : > { %v12880_v11 = vadd.f32 %v5513_v46, %v12718_v29 }
 0x82b   : > { %v5520_v35 = vsel %vm357_vm0, %v6758_v17, 0.0 }
 0x82c   : > { %v12884_v44 = vadd.f32 %v5520_v35, %v12722_v30  ;;  %v12894_v30 = vld [vmem:[%s13040_s3] sm:$0xff]  }
 0x82d   : > { %v6759_v63 = vpop.f32.mrb[0].mxu0  ;;  %6823 = vmatprep.mubr.msk.bf16.mxu1 %vm357_vm0, %v12894_v30 }
 0x82e   : > { %v6760_v41 = vpop.f32.mrb[1].mxu0  ;;  %v5645_v36 = vpack.c.bf16 %v12884_v44, %v12880_v11 }
 0x82f   : > { %v6761_v9 = vadd.f32 %v6760_v41, %v6759_v63  ;;  %v6762_v5 = vpop.f32.mrb[2].mxu0 }
 0x830   : > { %v6763_v42 = vpop.f32.mrb[3].mxu0  ;;  %v5716_v48 = vsel %vm357_vm0, %v5645_v36, 0 }
 0x831   : > { %v5527_v6 = vsel %vm357_vm0, %v6761_v9, 0.0  ;;  %v6764_v22 = vadd.f32 %v6763_v42, %v6762_v5  ;;  %v5655_v5 = vld [vmem:[%s13041_s4 + $0x8] sm:$0xff] }
 0x832   : > { %v5528_v23 = vadd.f32 %v5527_v6, %v12730_v21  ;;  %v5695_v21 = vsel %vm357_vm0, %v5638_v49, 0  ;;  %v7933_v6 = vmov 0  }
 0x833   : > { %v5534_v29 = vsel %vm357_vm0, %v6764_v22, 0.0  ;;  %7023 = vset.pattern.permute.xlu1 %v7933_v6  ;;  %7024 = vset.pattern.permute.xlu0 %v7933_v6 }
 0x834   : > { %v5535_v58 = vadd.f32 %v5534_v29, %v12734_v2  ;;  %5665 = vperm.xlu0 %7024, %v5655_v5  }
 0x835   : > { %v6765_v0 = vpop.f32.mrb[4].mxu0 }
 0x836   : > { %v5646_v55 = vpack.c.bf16 %v5535_v58, %v5528_v23  ;;  %v6766_v14 = vpop.f32.mrb[5].mxu0 }
 0x837   : > { %v6767_v59 = vadd.f32 %v6766_v14, %v6765_v0  ;;  %v6768_v53 = vpop.f32.mrb[6].mxu0  ;;  %v5701_v0 = vsel %vm357_vm0, %v5640_v51, 0  ;;  %v5657_v14 = vld [vmem:[%s13041_s4 + $0x18] sm:$0xff] }
 0x838   : > { %v6769_v27 = vpop.f32.mrb[7].mxu0  ;;  %6871 = vmatprep.subr.msk.bf16.mxu1 %vm357_vm0, %v5646_v55 }
 0x839   : > { %v5541_v8 = vsel %vm357_vm0, %v6767_v59, 0.0  ;;  %v6770_v54 = vadd.f32 %v6769_v27, %v6768_v53  ;;  %6808 = vmatpush3.bf16.xpose.msra.mxu1 %v5695_v21 }
 0x83a   : > { %v5542_v2 = vadd.f32 %v5541_v8, %v12742_v33 }
 0x83b   : > { %v5548_v24 = vsel %vm357_vm0, %v6770_v54, 0.0 }
 0x83c   : > { %v5549_v45 = vadd.f32 %v5548_v24, %v12746_v61  ;;  %v5654_v61 = vld [vmem:[%s13041_s4] sm:$0xff] }
 0x83d   : > { %v6771_v46 = vpop.f32.mrb[8].mxu0  ;;  %5660 = vperm.xlu1 %7023, %v5654_v61  }
 0x83e   : > { %v5647_v17 = vpack.c.bf16 %v5549_v45, %v5542_v2  ;;  %v6772_v35 = vpop.f32.mrb[9].mxu0  ;;  %v5704_v2 = vsel %vm357_vm0, %v5641_v62, 0 }
 0x83f   : > { %v6773_v63 = vadd.f32 %v6772_v35, %v6771_v46  ;;  %v6774_v41 = vpop.f32.mrb[10].mxu0 }
 0x840   : > { %v6775_v9 = vpop.f32.mrb[11].mxu0  ;;  %6872 = vmatprep.subr.msk.bf16.mxu1 %vm357_vm0, %v5647_v17 }
 0x841   : > { %v5555_v20 = vsel %vm357_vm0, %v6773_v63, 0.0  ;;  %v6776_v33 = vadd.f32 %v6775_v9, %v6774_v41  ;;  %6810 = vmatpush3.bf16.xpose.msra.mxu1 %v5698_v4 }
 0x842   : > { %v5556_v49 = vadd.f32 %v5555_v20, %v12754_v15  ;;  %v5656_v15 = vld [vmem:[%s13041_s4 + $0x10] sm:$0xff] }
 0x843   : > { %v5562_v42 = vsel %vm357_vm0, %v6776_v33, 0.0  ;;  %5670 = vperm.xlu1 %7023, %v5656_v15  }
 0x844   : > { %v5563_v56 = vadd.f32 %v5562_v42, %v12758_v26 }
 0x845   : > { %v6777_v3 = vpop.f32.mrb[12].mxu0 }
 0x846   : > { %v5648_v38 = vpack.c.bf16 %v5563_v56, %v5556_v49  ;;  %v6778_v22 = vpop.f32.mrb[13].mxu0 }
 0x847   : > { %v6779_v23 = vadd.f32 %v6778_v22, %v6777_v3  ;;  %v6780_v29 = vpop.f32.mrb[14].mxu0  ;;  %5675 = vperm.xlu1 %7023, %v5657_v14  }
 0x848   : > { %v6781_v58 = vpop.f32.mrb[15].mxu0  ;;  %6873 = vmatprep.subr.msk.bf16.mxu1 %vm357_vm0, %v5648_v38 }
 0x849   : > { %v5569_v26 = vsel %vm357_vm0, %v6779_v23, 0.0  ;;  %v6782_v55 = vadd.f32 %v6781_v58, %v6780_v29  ;;  %6812 = vmatpush3.bf16.xpose.msra.mxu1 %v5701_v0 }
 0x84a   : > { %v5570_v59 = vadd.f32 %v5569_v26, %v12766_v47 }
 0x84b   : > { %v5576_v53 = vsel %vm357_vm0, %v6782_v55, 0.0 }
 0x84c   : > { %v5577_v27 = vadd.f32 %v5576_v53, %v12770_v19 }
 0x84d   : > { %v6783_v21 = vpop.f32.mrb[16].mxu0 }
 0x84e   : > { %v5649_v32 = vpack.c.bf16 %v5577_v27, %v5570_v59  ;;  %v6784_v39 = vpop.f32.mrb[17].mxu0 }
 0x84f   : > { %v6785_v51 = vadd.f32 %v6784_v39, %v6783_v21  ;;  %v6786_v8 = vpop.f32.mrb[18].mxu0 }
 0x850   : > { %v6787_v54 = vpop.f32.mrb[19].mxu0  ;;  %6874 = vmatprep.subr.msk.bf16.mxu1 %vm357_vm0, %v5649_v32 }
 0x851   : > { %v5583_v47 = vsel %vm357_vm0, %v6785_v51, 0.0  ;;  %v6788_v24 = vadd.f32 %v6787_v54, %v6786_v8  ;;  %6814 = vmatpush3.bf16.xpose.msra.mxu1 %v5704_v2 }
 0x852   : > { %v5584_v19 = vadd.f32 %v5583_v47, %v12774_v31 }
 0x853   : > { %v5590_v45 = vsel %vm357_vm0, %v6788_v24, 0.0 }
 0x854   : > { %v5591_v46 = vadd.f32 %v5590_v45, %v12778_v1 }
 0x855   : > { %v6789_v17 = vpop.f32.mrb[20].mxu0 }
 0x856   : > { %v5650_v35 = vpack.c.bf16 %v5591_v46, %v5584_v19  ;;  %v6790_v63 = vpop.f32.mrb[21].mxu0 }
 0x857   : > { %v6791_v41 = vadd.f32 %v6790_v63, %v6789_v17  ;;  %v6792_v9 = vpop.f32.mrb[22].mxu0 }
 0x858   : > { %v6793_v4 = vpop.f32.mrb[23].mxu0  ;;  %6875 = vmatprep.subr.msk.bf16.mxu1 %vm357_vm0, %v5650_v35 }
 0x859   : > { %v5597_v28 = vsel %vm357_vm0, %v6791_v41, 0.0  ;;  %v6794_v31 = vadd.f32 %v6793_v4, %v6792_v9  ;;  %6816 = vmatpush3.bf16.xpose.msra.mxu1 %v5707_v13 }
 0x85a   : > { %v5598_v62 = vadd.f32 %v5597_v28, %v12782_v37 }
 0x85b   : > { %v5604_v1 = vsel %vm357_vm0, %v6794_v31, 0.0 }
 0x85c   : > { %v5605_v20 = vadd.f32 %v5604_v1, %v12786_v52 }
 0x85d   : > { %v6795_v33 = vpop.f32.mrb[24].mxu0 }
 0x85e   : > { %v5651_v49 = vpack.c.bf16 %v5605_v20, %v5598_v62  ;;  %v6796_v61 = vpop.f32.mrb[25].mxu0 }
 0x85f   : > { %v6797_v5 = vadd.f32 %v6796_v61, %v6795_v33  ;;  %v6798_v42 = vpop.f32.mrb[26].mxu0 }
 0x860   : > { %v6799_v6 = vpop.f32.mrb[27].mxu0  ;;  %6876 = vmatprep.subr.msk.bf16.mxu1 %vm357_vm0, %v5651_v49 }
 0x861   : > { %v5611_v34 = vsel %vm357_vm0, %v6797_v5, 0.0  ;;  %v6800_v37 = vadd.f32 %v6799_v6, %v6798_v42  ;;  %6818 = vmatpush3.bf16.xpose.msra.mxu1 %v5710_v50 }
 0x862   : > { %v5612_v7 = vadd.f32 %v5611_v34, %v12790_v10 }
 0x863   : > { %v5618_v52 = vsel %vm357_vm0, %v6800_v37, 0.0 }
 0x864   : > { %v5619_v56 = vadd.f32 %v5618_v52, %v12794_v40 }
 0x866   : > { %v5652_v3 = vpack.c.bf16 %v5619_v56, %v5612_v7 }
 0x868   : > { %6877 = vmatprep.subr.msk.bf16.mxu1 %vm357_vm0, %v5652_v3 }
 0x869   : > { %6820 = vmatpush3.bf16.xpose.msra.mxu1 %v5713_v57 }
 0x8a7   : > { %v6801_v43 = vpop.f32.mrb[28].mxu0 }
 0x8a8   : > { %v6802_v60 = vpop.f32.mrb[29].mxu0 }
 0x8a9   : > { %v6803_v15 = vadd.f32 %v6802_v60, %v6801_v43  ;;  %v6804_v38 = vpop.f32.mrb[30].mxu0 }
 0x8aa   : > { %v6805_v22 = vpop.f32.mrb[31].mxu0 }
 0x8ab   : > { %v5625_v10 = vsel %vm357_vm0, %v6803_v15, 0.0  ;;  %v6806_v23 = vadd.f32 %v6805_v22, %v6804_v38 }
 0x8ac   : > { %v5626_v40 = vadd.f32 %v5625_v10, %v12798_v12 }
 0x8ad   : > { %v5632_v29 = vsel %vm357_vm0, %v6806_v23, 0.0 }
 0x8ae   : > { %v5633_v58 = vadd.f32 %v5632_v29, %v12802_v18 }
 0x8b0   : > { %v5653_v0 = vpack.c.bf16 %v5633_v58, %v5626_v40 }
 0x8b2   : > { %6878 = vmatprep.subr.msk.bf16.mxu1 %vm357_vm0, %v5653_v0 }
 0x8b3   : > { %6822 = vmatpush3.bf16.xpose.msra.mxu1 %v5716_v48  ;;  %v5666_v25 = vpop.permute.xlu0 %5665 }
 0x8ba   : > { %6824 = vmatmul.mubr.msk.bf16.vlgmr.msra.gmra.mrb[0].mxu1 %vm357_vm0, %v12894_v30 }
 0x8bb   : > { %6825 = vmatprep.mubr.msk.bf16.mxu1 %vm357_vm0, %v7028_v16 }
 0x8bc   : > { %v5661_v12 = vpop.permute.xlu1 %5660 }
 0x8c2   : > { %6826 = vmatmul.mubr.msk.bf16.gmra.mrb[4].mxu1 %vm357_vm0, %v7028_v16  ;;  %v5671_v59 = vpop.permute.xlu1 %5670 }
 0x8c6   : > { %v5676_v51 = vpop.permute.xlu1 %5675 }
 0x98d   : > { %v5776_v18 = vpop.f32.mrb[0].mxu1 }
 0x98e   : > { %v5777_v11 = vadd.f32 %v5776_v18, %v5661_v12  ;;  %v5778_v44 = vpop.f32.mrb[1].mxu1 }
 0x98f   : > { %v5779_v36 = vadd.f32 %v5778_v44, %v5661_v12  ;;  %v5780_v26 = vpop.f32.mrb[2].mxu1 }
 0x990   : > { %5795 = vst [vmem:[%s284_s30] sm:$0xff] %v5777_v11  ;;  %v5782_v55 = vpop.f32.mrb[3].mxu1  ;;  %v5781_v14 = vadd.f32 %v5780_v26, %v5666_v25 }
 0x991   : > { %5796 = vst [vmem:[%s284_s30 + $0x8] sm:$0xff] %v5779_v36  ;;  %v5783_v30 = vadd.f32 %v5782_v55, %v5666_v25 }
 0x992   : > { %5797 = vst [vmem:[%s284_s30 + $0x10] sm:$0xff] %v5781_v14 }
 0x993   : > { %5798 = vst [vmem:[%s284_s30 + $0x18] sm:$0xff] %v5783_v30 }
 0x995   : > { %v5786_v53 = vpop.f32.mrb[4].mxu1 }
 0x996   : > { %v5787_v27 = vadd.f32 %v5786_v53, %v5671_v59  ;;  %v5788_v21 = vpop.f32.mrb[5].mxu1 }
 0x997   : > { %v5789_v32 = vadd.f32 %v5788_v21, %v5671_v59  ;;  %v5790_v39 = vpop.f32.mrb[6].mxu1 }
 0x998   : > { %5799 = vst [vmem:[%s284_s30 + $0x20] sm:$0xff] %v5787_v27  ;;  %v5791_v8 = vadd.f32 %v5790_v39, %v5676_v51  ;;  %v5792_v54 = vpop.f32.mrb[7].mxu1 }
 0x999   : > { %5800 = vst [vmem:[%s284_s30 + $0x28] sm:$0xff] %v5789_v32  ;;  %v5793_v2 = vadd.f32 %v5792_v54, %v5676_v51 }
 0x99a   : > { %5801 = vst [vmem:[%s284_s30 + $0x30] sm:$0xff] %v5791_v8 }
 0x99b   : > { %5802 = vst [vmem:[%s284_s30 + $0x38] sm:$0xff] %v5793_v2 }
 0x99c   : > { %7868 = shalt.err (!%p7865_p7)
}
 0x99d   : > { %s7869_s19 = scalar_lea.hbm %s12993_s7, 1024  ;;  %s7873_s11 = scalar_lea.hbm %s13043_s6, 2048 }
 0x99e   : > { %p7870_p9 = scmp.ne.s32.totalorder %s12993_s7, %s7869_s19  ;;  %p7874_p5 = scmp.lt.u32.totalorder %s12993_s7, %s13043_s6 }
 0x99f   : > { %p7875_p11 = scmp.lt.u32.totalorder %s7873_s11, %s7869_s19  ;;  %p7877_p4 = scmp.lt.u32.totalorder %s7869_s19, %s12993_s7 }
 0x9a0   : > { %p7871_p1 = pnand %p7870_p9, %p8066_p12 }
 0x9a1   : > { %p7876_p2 = por %p7875_p11, %p7874_p5 }
 0x9a2   : > { %p7872_p0 = pneg %p7871_p1 }
 0x9a3   : > { %p7878_p6 = por %p7877_p4, %p7876_p2 }
 0x9a5   : > { %p7879_p8 = pnand %p7878_p6, %p7872_p0 }
 0x9a7   : > { %7882 = shalt.err (!%p7879_p8)
}
 0x9a8   : > { %s7935_s18 = smov 256   ;;  %s7936_s17 = smov 16  }
 0x9a9   : > { %6885 = dma.vmem_to_hbm [thread:$0]  (%p8066_p12), %s12988_s15, 1024, %s12993_s7, %s5804_s25, %s7935_s18, %s7935_s18, %s7936_s17  }
 0x9aa PF: > { %s5832_s8 = sand.u32 1, %s7913_s21   ;;  %p14691_p10 = scmp.ne.s32.totalorder %s13424_s28, 0 }
 0x9ab   : > { %p14692_p13 = scmp.ge.s32.totalorder %s7925_s24, 2  ;;  %s5833_s29 = scalar_lea.sflag [#allocation4], %s5832_s8 }
 0x9ad   : > { %p6896_p3 = pnand %p14692_p13, %p14691_p10 }
 0x9af   : > { %7908 = dma.done.wait (!%p6896_p3), %s5833_s29, 1024  }
 0x9b0   : > { %7910 = vsyncadd (!%p6896_p3), %s5833_s29, 4294966272  ;;  %p20_p7 = scmp.ge.s32.totalorder %s8028_s9, 4   ;;  %s14693_s21 = smov %s7917_s22 }
 0x9b1   : > { %s14694_s22 = smov %s7921_s23  ;;  %s14695_s23 = smov %s8062_s13 }
 0x9b2   : > { %s14696_s24 = smov %s8028_s9  ;;  %22 = sbr.rel (!%p20_p7) target bundleno = 6 (0x6), region = 93 }
 0x9b9   :  { %5838 = vsyncpa [#allocation3], 1 }
 0x9ba   :  { %5840 = vsyncpa [#allocation3 + $0x1], 1 }
 0x9bb   :  { %5841 = vsyncpa [#allocation6], 1 }
 0x9bc   :  { %5842 = vsyncpa [#allocation4], 1 }
 0x9bd   :  { %5844 = vsyncpa [#allocation4 + $0x1], 1 }

</bundles_post_ra>
